<compile_context>
chip_gen: v5e
topology: v5e:2x2
jax: 0.10.0
libtpu: 0.0.40
codegen_flags: <defaults>
</compile_context>

<pallas_src>
import functools

import jax
import jax.numpy as jnp
from jax.experimental import pallas as pl
from jax.experimental.pallas import tpu as pltpu

_EPS = 1e-5
# Explicit scoped-VMEM budget: fits v5e (128 MiB phys), v6e (128 MiB) and
# v7x (64 MiB phys) comfortably; per-step footprint here is far below it.
_VMEM_LIMIT = 32 * 1024 * 1024


def _compiler_params():
    return pltpu.CompilerParams(
        dimension_semantics=("parallel",),      # batch grid axis -> both TCs on v7x
        vmem_limit_bytes=_VMEM_LIMIT)


def _act(y, activation):
    if activation == "relu":
        return jnp.maximum(y, 0.0)
    if activation == "leaky_relu":
        return jnp.where(y >= 0, y, 0.01 * y)
    return y


def _window(x_ref, kh, kw, Hout, Wout, stride):
    """(Hout, Wout, Cin) input window for conv tap (kh, kw)."""
    if stride == 1:
        # Direct Ref window load: only the needed rows/cols are read.
        return x_ref[0, kh:kh + Hout, kw:kw + Wout, :]
    # TODO(synk): for stride > 1, express the stride via a strided DMA /
    # index_map instead of an in-register strided slice.
    cin = x_ref.shape[-1]
    xv = x_ref[0]
    return jax.lax.slice(
        xv, (kh, kw, 0),
        (kh + stride * (Hout - 1) + 1, kw + stride * (Wout - 1) + 1, cin),
        (stride, stride, 1))


def _store_stats(s_ref, a):
    """Per-block BN partial stats: row 0 = block mean, row 1 = sum((a-mean)^2)."""
    mean = jnp.mean(a, axis=0, keepdims=True)          # (1, C) f32
    m2 = jnp.sum((a - mean) ** 2, axis=0, keepdims=True)
    s_ref[0, 0:1, :] = mean
    s_ref[0, 1:2, :] = m2


# --------------------------------------------------------------------------
# Kernel A: conv1 (3x3, stride, pad=1) [+ fused 1x1 shortcut conv] + partial
# BN statistics.  One grid step = one batch element.
# --------------------------------------------------------------------------
def _conv1_kernel(x_ref, w1_ref, *rest, Hout, Wout, K, stride, has_sc):
    if has_sc:
        ws_ref, o1_ref, s1_ref, osc_ref, ssc_ref, acc1 = rest
    else:
        o1_ref, s1_ref, acc1 = rest

    cin = x_ref.shape[-1]
    M = Hout * Wout

    # K*K shifted matmuls on the MXU, accumulated into a VMEM scratch (f32).
    acc1[...] = jnp.zeros_like(acc1)
    for kh in range(K):
        for kw in range(K):
            patch = _window(x_ref, kh, kw, Hout, Wout, stride).reshape(M, cin)
            acc1[...] += jnp.dot(patch, w1_ref[kh, kw],
                                 preferred_element_type=jnp.float32)
    a1 = acc1[...]
    o1_ref[...] = a1.reshape(o1_ref.shape)
    _store_stats(s1_ref, a1)

    if has_sc:
        # 1x1 shortcut conv shares the same (padded) x block; its single tap
        # sits at the padding offset (1, 1).
        patch = _window(x_ref, 1, 1, Hout, Wout, stride).reshape(M, cin)
        asc = jnp.dot(patch, ws_ref[...], preferred_element_type=jnp.float32)
        osc_ref[...] = asc.reshape(osc_ref.shape)
        _store_stats(ssc_ref, asc)


def conv1_and_shortcut(xp_bf16, w1_bf16, ws_bf16, *, Hout, Wout, stride):
    N, Hp, Wp, Cin = xp_bf16.shape
    K = w1_bf16.shape[0]
    C1 = w1_bf16.shape[-1]
    M = Hout * Wout
    has_sc = ws_bf16 is not None

    def full(shape):
        return pl.BlockSpec(shape, lambda b: (0,) * len(shape))

    in_specs = [pl.BlockSpec((1, Hp, Wp, Cin), lambda b: (b, 0, 0, 0)),
                full((K, K, Cin, C1))]
    inputs = [xp_bf16, w1_bf16]
    out_shape = [jax.ShapeDtypeStruct((N, M, C1), jnp.float32),
                 jax.ShapeDtypeStruct((N, 2, C1), jnp.float32)]
    out_specs = [pl.BlockSpec((1, M, C1), lambda b: (b, 0, 0)),
                 pl.BlockSpec((1, 2, C1), lambda b: (b, 0, 0))]
    if has_sc:
        Cs = ws_bf16.shape[-1]
        in_specs.append(full((Cin, Cs)))
        inputs.append(ws_bf16)
        out_shape += [jax.ShapeDtypeStruct((N, M, Cs), jnp.float32),
                      jax.ShapeDtypeStruct((N, 2, Cs), jnp.float32)]
        out_specs += [pl.BlockSpec((1, M, Cs), lambda b: (b, 0, 0)),
                      pl.BlockSpec((1, 2, Cs), lambda b: (b, 0, 0))]

    kernel = functools.partial(_conv1_kernel, Hout=Hout, Wout=Wout, K=K,
                               stride=stride, has_sc=has_sc)
    return pl.pallas_call(
        kernel,
        out_shape=tuple(out_shape),
        grid_spec=pltpu.PrefetchScalarGridSpec(
            num_scalar_prefetch=0, grid=(N,),
            in_specs=in_specs, out_specs=tuple(out_specs),
            scratch_shapes=[pltpu.VMEM((M, C1), jnp.float32)]),
        compiler_params=_compiler_params(),
    )(*inputs)


# --------------------------------------------------------------------------
# Kernel C: bn1 + activation (fused, never hits HBM) -> conv2 (3x3, stride 1,
# pad 1 via an in-VMEM zero-padded scratch) + partial BN statistics.
# --------------------------------------------------------------------------
def _bn_act_conv2_kernel(o1_ref, sc1_ref, sh1_ref, w2_ref, o2_ref, s2_ref,
                         pbuf, acc2, *, Hout, Wout, activation):
    C1 = o1_ref.shape[-1]
    M = Hout * Wout

    # Normalize + activate in f32, then cast to bf16 for the MXU.
    y = _act(o1_ref[0] * sc1_ref[...] + sh1_ref[...], activation)
    pbuf[...] = jnp.zeros_like(pbuf)                 # zero border (pad = 1)
    pbuf[1:1 + Hout, 1:1 + Wout, :] = y.reshape(Hout, Wout, C1).astype(pbuf.dtype)

    acc2[...] = jnp.zeros_like(acc2)
    for kh in range(3):
        for kw in range(3):
            patch = pbuf[kh:kh + Hout, kw:kw + Wout, :].reshape(M, C1)
            acc2[...] += jnp.dot(patch, w2_ref[kh, kw],
                                 preferred_element_type=jnp.float32)
    a2 = acc2[...]
    o2_ref[...] = a2.reshape(o2_ref.shape)
    _store_stats(s2_ref, a2)


def bn_act_conv2(o1_raw, scale1, shift1, w2_bf16, *, Hout, Wout, activation):
    N, M, C1 = o1_raw.shape
    vec = pl.BlockSpec((1, C1), lambda b: (0, 0))
    big = pl.BlockSpec((1, M, C1), lambda b: (b, 0, 0))
    kernel = functools.partial(_bn_act_conv2_kernel, Hout=Hout, Wout=Wout,
                               activation=activation)
    return pl.pallas_call(
        kernel,
        out_shape=(jax.ShapeDtypeStruct((N, M, C1), jnp.float32),
                   jax.ShapeDtypeStruct((N, 2, C1), jnp.float32)),
        grid_spec=pltpu.PrefetchScalarGridSpec(
            num_scalar_prefetch=0, grid=(N,),
            in_specs=[big, vec, vec,
                      pl.BlockSpec((3, 3, C1, C1), lambda b: (0, 0, 0, 0))],
            out_specs=(pl.BlockSpec((1, M, C1), lambda b: (b, 0, 0)),
                       pl.BlockSpec((1, 2, C1), lambda b: (b, 0, 0))),
            scratch_shapes=[pltpu.VMEM((Hout + 2, Wout + 2, C1), jnp.bfloat16),
                            pltpu.VMEM((M, C1), jnp.float32)]),
        compiler_params=_compiler_params(),
    )(o1_raw, scale1, shift1, w2_bf16)


# --------------------------------------------------------------------------
# Kernel D: bn2 + (shortcut bn or identity residual) + add + activation.
# --------------------------------------------------------------------------
def _bn_add_act_kernel(o2_ref, sc2_ref, sh2_ref, *rest, activation, has_sc):
    if has_sc:
        scraw_ref, scs_ref, shs_ref, out_ref = rest
    else:
        res_ref, out_ref = rest

    y = o2_ref[0] * sc2_ref[...] + sh2_ref[...]
    if has_sc:
        r = scraw_ref[0] * scs_ref[...] + shs_ref[...]
    else:
        r = res_ref[0]
    out_ref[...] = _act(y + r, activation).reshape(out_ref.shape)


def bn_add_act(o2_raw, scale2, shift2, *, shortcut_raw, scale_s, shift_s,
               residual, activation):
    N, M, C = o2_raw.shape
    has_sc = shortcut_raw is not None
    vec = pl.BlockSpec((1, C), lambda b: (0, 0))
    big = pl.BlockSpec((1, M, C), lambda b: (b, 0, 0))

    in_specs = [big, vec, vec]
    inputs = [o2_raw, scale2, shift2]
    if has_sc:
        in_specs += [big, vec, vec]
        inputs += [shortcut_raw, scale_s, shift_s]
    else:
        Cin = residual.shape[-1]
        in_specs += [pl.BlockSpec((1, M, Cin), lambda b: (b, 0, 0))]
        inputs += [residual]

    kernel = functools.partial(_bn_add_act_kernel, activation=activation,
                               has_sc=has_sc)
    return pl.pallas_call(
        kernel,
        out_shape=jax.ShapeDtypeStruct((N, M, C), jnp.float32),
        grid_spec=pltpu.PrefetchScalarGridSpec(
            num_scalar_prefetch=0, grid=(N,),
            in_specs=in_specs,
            out_specs=pl.BlockSpec((1, M, C), lambda b: (b, 0, 0))),
        compiler_params=_compiler_params(),
    )(*inputs)


# --------------------------------------------------------------------------
# Tiny cross-block BN-stat finalize (Chan-style parallel combine) + affine
# fold into (scale, shift).  Handful of values per channel -> plain JAX.
# --------------------------------------------------------------------------
def _bn_scale_shift(stats, gamma, beta, m_per_block):
    means = stats[:, 0, :]                  # (Nb, C) per-block means
    m2s = stats[:, 1, :]                    # (Nb, C) per-block sum of sq dev
    nb = stats.shape[0]
    mean = jnp.mean(means, axis=0)
    m2 = jnp.sum(m2s, axis=0) + m_per_block * jnp.sum((means - mean) ** 2, axis=0)
    var = m2 / (nb * m_per_block)
    scale = gamma * jax.lax.rsqrt(var + _EPS)
    shift = beta - mean * scale
    return (scale.reshape(1, -1).astype(jnp.float32),
            shift.reshape(1, -1).astype(jnp.float32))


class ResidualBlockPallas:
    """Pallas port of the PyTorch ResidualBlock (expansion = 1)."""
    expansion = 1

    def __init__(self, in_planes, planes, stride=1, activation="relu",
                 key=jax.random.PRNGKey(0)):
        self.stride = stride
        self.activation = activation
        ks = jax.random.split(key, 8)

        def conv_init(k, kh, kw, cin, cout):
            fan_in = kh * kw * cin
            return (jax.random.normal(k, (kh, kw, cin, cout), jnp.float32)
                    * jnp.sqrt(2.0 / fan_in))

        self.w1 = conv_init(ks[0], 3, 3, in_planes, planes)          # HWIO
        self.w2 = conv_init(ks[1], 3, 3, planes, planes)
        self.g1 = 1.0 + 0.1 * jax.random.normal(ks[2], (planes,), jnp.float32)
        self.b1 = 0.1 * jax.random.normal(ks[3], (planes,), jnp.float32)
        self.g2 = 1.0 + 0.1 * jax.random.normal(ks[4], (planes,), jnp.float32)
        self.b2 = 0.1 * jax.random.normal(ks[5], (planes,), jnp.float32)

        self.has_shortcut_conv = (stride != 1
                                  or in_planes != self.expansion * planes)
        if self.has_shortcut_conv:
            cs = self.expansion * planes
            self.ws = conv_init(ks[6], 1, 1, in_planes, cs)
            self.gs = 1.0 + 0.1 * jax.random.normal(ks[7], (cs,), jnp.float32)
            self.bs = jnp.zeros((cs,), jnp.float32)

    def __call__(self, x_nchw):
        # NCHW (PyTorch interface) -> NHWC (kernel layout).
        x = jnp.transpose(x_nchw, (0, 2, 3, 1)).astype(jnp.float32)
        N, H, W, Cin = x.shape
        s = self.stride
        Hout = (H + 2 - 3) // s + 1
        Wout = (W + 2 - 3) // s + 1
        M = Hout * Wout

        xp = jnp.pad(x, ((0, 0), (1, 1), (1, 1), (0, 0))).astype(jnp.bfloat16)
        w1 = self.w1.astype(jnp.bfloat16)
        w2 = self.w2.astype(jnp.bfloat16)
        ws = (self.ws.reshape(Cin, -1).astype(jnp.bfloat16)
              if self.has_shortcut_conv else None)

        # Pass 1: conv1 (+ fused 1x1 shortcut conv) + BN partial stats.
        outs = conv1_and_shortcut(xp, w1, ws, Hout=Hout, Wout=Wout, stride=s)
        if self.has_shortcut_conv:
            o1_raw, st1, osc_raw, sts = outs
        else:
            o1_raw, st1 = outs

        scale1, shift1 = _bn_scale_shift(st1, self.g1, self.b1, M)

        # Pass 2: fused bn1 + act + conv2 + BN partial stats.
        o2_raw, st2 = bn_act_conv2(o1_raw, scale1, shift1, w2,
                                   Hout=Hout, Wout=Wout,
                                   activation=self.activation)
        scale2, shift2 = _bn_scale_shift(st2, self.g2, self.b2, M)

        # Pass 3: bn2 + shortcut(bn) + residual add + act.
        if self.has_shortcut_conv:
            scale_s, shift_s = _bn_scale_shift(sts, self.gs, self.bs, M)
            out = bn_add_act(o2_raw, scale2, shift2,
                             shortcut_raw=osc_raw, scale_s=scale_s,
                             shift_s=shift_s, residual=None,
                             activation=self.activation)
        else:
            out = bn_add_act(o2_raw, scale2, shift2,
                             shortcut_raw=None, scale_s=None, shift_s=None,
                             residual=x.reshape(N, H * W, Cin),
                             activation=self.activation)

        out = out.reshape(N, Hout, Wout, -1)
        return jnp.transpose(out, (0, 3, 1, 2))     # back to NCHW


# ---------------- pure-JAX reference for the correctness check ----------------
def _conv_ref(x, w, stride, pad):
    # Match the kernel's bf16 MXU inputs with f32 accumulation.
    return jax.lax.conv_general_dilated(
        x.astype(jnp.bfloat16), w.astype(jnp.bfloat16),
        (stride, stride), [(pad, pad), (pad, pad)],
        dimension_numbers=("NHWC", "HWIO", "NHWC"),
        preferred_element_type=jnp.float32)


def _bn_ref(y, gamma, beta):
    mean = y.mean(axis=(0, 1, 2), keepdims=True)
    var = ((y - mean) ** 2).mean(axis=(0, 1, 2), keepdims=True)
    return ((y - mean) / jnp.sqrt(var + _EPS)
            * gamma.reshape(1, 1, 1, -1) + beta.reshape(1, 1, 1, -1))


def _block_ref(blk, x_nchw):
    act = (lambda v: jnp.maximum(v, 0.0)) if blk.activation == "relu" \
        else (lambda v: jnp.where(v >= 0, v, 0.01 * v))
    x = jnp.transpose(x_nchw, (0, 2, 3, 1)).astype(jnp.float32)
    o = act(_bn_ref(_conv_ref(x, blk.w1, blk.stride, 1), blk.g1, blk.b1))
    o = _bn_ref(_conv_ref(o, blk.w2, 1, 1), blk.g2, blk.b2)
    sc = _bn_ref(_conv_ref(x, blk.ws, blk.stride, 0), blk.gs, blk.bs) \
        if blk.has_shortcut_conv else x
    o = act(o + sc)
    return jnp.transpose(o, (0, 3, 1, 2))


if __name__ == "__main__":
    key = jax.random.PRNGKey(0)
    k_x, k_p = jax.random.split(key)

    # Small shapes consistent with the module: NCHW input.
    N, C_in, H, W = 2, 4, 16, 16
    planes = 8          # in_planes != planes -> exercises the 1x1 shortcut path
    x = jax.random.normal(k_x, (N, C_in, H, W), jnp.float32)

    block = ResidualBlockPallas(C_in, planes, stride=1,
                                activation="relu", key=k_p)

    out = jax.block_until_ready(block(x))
    ref = _block_ref(block, x)

    assert out.shape == (N, planes, H, W)
    # bf16 MXU inputs -> slightly looser tolerance than a pure-f32 pipeline.
    assert jnp.allclose(out, ref, rtol=5e-3, atol=5e-3), \
        float(jnp.max(jnp.abs(out - ref)))

    print("KERNEL_OK")
</pallas_src>

<mosaic_0001>
module attributes {stable_mosaic.version = 11 : i64} {
  func.func @_conv1_kernel(%arg0: i32, %arg1: memref<1x18x18x4xbf16, #tpu.memory_space<vmem>>, %arg2: memref<3x3x4x8xbf16, #tpu.memory_space<vmem>>, %arg3: memref<4x8xbf16, #tpu.memory_space<vmem>>, %arg4: memref<1x256x8xf32, #tpu.memory_space<vmem>>, %arg5: memref<1x2x8xf32, #tpu.memory_space<vmem>>, %arg6: memref<1x256x8xf32, #tpu.memory_space<vmem>>, %arg7: memref<1x2x8xf32, #tpu.memory_space<vmem>>, %arg8: memref<256x8xf32, #tpu.memory_space<vmem>>) attributes {dimension_semantics = [#tpu.dimension_semantics<parallel>], iteration_bounds = array<i64: 2>, scalar_prefetch = 0 : i64, scratch_operands = 1 : i64, tpu.core_type = #tpu.core_type<tc>, window_params = [{transform_indices = @transform_0, window_bounds = array<i64: 1, 18, 18, 4>}, {pipeline_mode = #tpu.pipeline_mode<synchronous>, transform_indices = @transform_1, window_bounds = array<i64: 3, 3, 4, 8>}, {pipeline_mode = #tpu.pipeline_mode<synchronous>, transform_indices = @transform_2, window_bounds = array<i64: 4, 8>}, {transform_indices = @transform_3, window_bounds = array<i64: 1, 256, 8>}, {transform_indices = @transform_4, window_bounds = array<i64: 1, 2, 8>}, {transform_indices = @transform_5, window_bounds = array<i64: 1, 256, 8>}, {transform_indices = @transform_6, window_bounds = array<i64: 1, 2, 8>}]} {
    %cst = arith.constant 0.000000e+00 : f32
    %0 = vector.broadcast %cst : f32 to vector<256x8xf32>
    %c0 = arith.constant 0 : index
    %c0_0 = arith.constant 0 : index
    %1 = vector.load %arg8[%c0, %c0_0] : memref<256x8xf32, #tpu.memory_space<vmem>>, vector<256x8xf32>
    tpu.vector_store %arg8[%c0, %c0_0], %0 {strides = array<i32>} : memref<256x8xf32, #tpu.memory_space<vmem>>, vector<256x8xf32>,
    %c0_1 = arith.constant 0 : index
    %c0_2 = arith.constant 0 : index
    %c0_3 = arith.constant 0 : index
    %c0_4 = arith.constant 0 : index
    %2 = vector.load %arg1[%c0_1, %c0_2, %c0_3, %c0_4] : memref<1x18x18x4xbf16, #tpu.memory_space<vmem>>, vector<1x16x16x4xbf16>
    %3 = vector.shape_cast %2 : vector<1x16x16x4xbf16> to vector<16x16x4xbf16>
    %4 = vector.shape_cast %3 : vector<16x16x4xbf16> to vector<256x4xbf16>
    %c0_5 = arith.constant 0 : index
    %c0_6 = arith.constant 0 : index
    %5 = vector.load %arg8[%c0_5, %c0_6] : memref<256x8xf32, #tpu.memory_space<vmem>>, vector<256x8xf32>
    %c0_7 = arith.constant 0 : index
    %c0_8 = arith.constant 0 : index
    %c0_9 = arith.constant 0 : index
    %c0_10 = arith.constant 0 : index
    %6 = vector.load %arg2[%c0_7, %c0_8, %c0_9, %c0_10] : memref<3x3x4x8xbf16, #tpu.memory_space<vmem>>, vector<1x1x4x8xbf16>
    %7 = vector.shape_cast %6 : vector<1x1x4x8xbf16> to vector<4x8xbf16>
    %cst_11 = arith.constant dense<0.000000e+00> : vector<256x8xf32>
    %8 = tpu.matmul %4, %7, %cst_11 {dimension_numbers = #tpu.dot_dimension_numbers<[1], [0], [0], [1], [0, 0, 1, 1], [], []>} : vector<256x4xbf16>, vector<4x8xbf16>, vector<256x8xf32> -> vector<256x8xf32>
    %9 = arith.addf %5, %8 : vector<256x8xf32>
    %c0_12 = arith.constant 0 : index
    %c0_13 = arith.constant 0 : index
    %10 = vector.load %arg8[%c0_12, %c0_13] : memref<256x8xf32, #tpu.memory_space<vmem>>, vector<256x8xf32>
    tpu.vector_store %arg8[%c0_12, %c0_13], %9 {strides = array<i32>} : memref<256x8xf32, #tpu.memory_space<vmem>>, vector<256x8xf32>,
    %c0_14 = arith.constant 0 : index
    %c0_15 = arith.constant 0 : index
    %c1 = arith.constant 1 : index
    %c0_16 = arith.constant 0 : index
    %11 = vector.load %arg1[%c0_14, %c0_15, %c1, %c0_16] : memref<1x18x18x4xbf16, #tpu.memory_space<vmem>>, vector<1x16x16x4xbf16>
    %12 = vector.shape_cast %11 : vector<1x16x16x4xbf16> to vector<16x16x4xbf16>
    %13 = vector.shape_cast %12 : vector<16x16x4xbf16> to vector<256x4xbf16>
    %c0_17 = arith.constant 0 : index
    %c0_18 = arith.constant 0 : index
    %14 = vector.load %arg8[%c0_17, %c0_18] : memref<256x8xf32, #tpu.memory_space<vmem>>, vector<256x8xf32>
    %c0_19 = arith.constant 0 : index
    %c1_20 = arith.constant 1 : index
    %c0_21 = arith.constant 0 : index
    %c0_22 = arith.constant 0 : index
    %15 = vector.load %arg2[%c0_19, %c1_20, %c0_21, %c0_22] : memref<3x3x4x8xbf16, #tpu.memory_space<vmem>>, vector<1x1x4x8xbf16>
    %16 = vector.shape_cast %15 : vector<1x1x4x8xbf16> to vector<4x8xbf16>
    %cst_23 = arith.constant dense<0.000000e+00> : vector<256x8xf32>
    %17 = tpu.matmul %13, %16, %cst_23 {dimension_numbers = #tpu.dot_dimension_numbers<[1], [0], [0], [1], [0, 0, 1, 1], [], []>} : vector<256x4xbf16>, vector<4x8xbf16>, vector<256x8xf32> -> vector<256x8xf32>
    %18 = arith.addf %14, %17 : vector<256x8xf32>
    %c0_24 = arith.constant 0 : index
    %c0_25 = arith.constant 0 : index
    %19 = vector.load %arg8[%c0_24, %c0_25] : memref<256x8xf32, #tpu.memory_space<vmem>>, vector<256x8xf32>
    tpu.vector_store %arg8[%c0_24, %c0_25], %18 {strides = array<i32>} : memref<256x8xf32, #tpu.memory_space<vmem>>, vector<256x8xf32>,
    %c0_26 = arith.constant 0 : index
    %c0_27 = arith.constant 0 : index
    %c2 = arith.constant 2 : index
    %c0_28 = arith.constant 0 : index
    %20 = vector.load %arg1[%c0_26, %c0_27, %c2, %c0_28] : memref<1x18x18x4xbf16, #tpu.memory_space<vmem>>, vector<1x16x16x4xbf16>
    %21 = vector.shape_cast %20 : vector<1x16x16x4xbf16> to vector<16x16x4xbf16>
    %22 = vector.shape_cast %21 : vector<16x16x4xbf16> to vector<256x4xbf16>
    %c0_29 = arith.constant 0 : index
    %c0_30 = arith.constant 0 : index
    %23 = vector.load %arg8[%c0_29, %c0_30] : memref<256x8xf32, #tpu.memory_space<vmem>>, vector<256x8xf32>
    %c0_31 = arith.constant 0 : index
    %c2_32 = arith.constant 2 : index
    %c0_33 = arith.constant 0 : index
    %c0_34 = arith.constant 0 : index
    %24 = vector.load %arg2[%c0_31, %c2_32, %c0_33, %c0_34] : memref<3x3x4x8xbf16, #tpu.memory_space<vmem>>, vector<1x1x4x8xbf16>
    %25 = vector.shape_cast %24 : vector<1x1x4x8xbf16> to vector<4x8xbf16>
    %cst_35 = arith.constant dense<0.000000e+00> : vector<256x8xf32>
    %26 = tpu.matmul %22, %25, %cst_35 {dimension_numbers = #tpu.dot_dimension_numbers<[1], [0], [0], [1], [0, 0, 1, 1], [], []>} : vector<256x4xbf16>, vector<4x8xbf16>, vector<256x8xf32> -> vector<256x8xf32>
    %27 = arith.addf %23, %26 : vector<256x8xf32>
    %c0_36 = arith.constant 0 : index
    %c0_37 = arith.constant 0 : index
    %28 = vector.load %arg8[%c0_36, %c0_37] : memref<256x8xf32, #tpu.memory_space<vmem>>, vector<256x8xf32>
    tpu.vector_store %arg8[%c0_36, %c0_37], %27 {strides = array<i32>} : memref<256x8xf32, #tpu.memory_space<vmem>>, vector<256x8xf32>,
    %c0_38 = arith.constant 0 : index
    %c1_39 = arith.constant 1 : index
    %c0_40 = arith.constant 0 : index
    %c0_41 = arith.constant 0 : index
    %29 = vector.load %arg1[%c0_38, %c1_39, %c0_40, %c0_41] : memref<1x18x18x4xbf16, #tpu.memory_space<vmem>>, vector<1x16x16x4xbf16>
    %30 = vector.shape_cast %29 : vector<1x16x16x4xbf16> to vector<16x16x4xbf16>
    %31 = vector.shape_cast %30 : vector<16x16x4xbf16> to vector<256x4xbf16>
    %c0_42 = arith.constant 0 : index
    %c0_43 = arith.constant 0 : index
    %32 = vector.load %arg8[%c0_42, %c0_43] : memref<256x8xf32, #tpu.memory_space<vmem>>, vector<256x8xf32>
    %c1_44 = arith.constant 1 : index
    %c0_45 = arith.constant 0 : index
    %c0_46 = arith.constant 0 : index
    %c0_47 = arith.constant 0 : index
    %33 = vector.load %arg2[%c1_44, %c0_45, %c0_46, %c0_47] : memref<3x3x4x8xbf16, #tpu.memory_space<vmem>>, vector<1x1x4x8xbf16>
    %34 = vector.shape_cast %33 : vector<1x1x4x8xbf16> to vector<4x8xbf16>
    %cst_48 = arith.constant dense<0.000000e+00> : vector<256x8xf32>
    %35 = tpu.matmul %31, %34, %cst_48 {dimension_numbers = #tpu.dot_dimension_numbers<[1], [0], [0], [1], [0, 0, 1, 1], [], []>} : vector<256x4xbf16>, vector<4x8xbf16>, vector<256x8xf32> -> vector<256x8xf32>
    %36 = arith.addf %32, %35 : vector<256x8xf32>
    %c0_49 = arith.constant 0 : index
    %c0_50 = arith.constant 0 : index
    %37 = vector.load %arg8[%c0_49, %c0_50] : memref<256x8xf32, #tpu.memory_space<vmem>>, vector<256x8xf32>
    tpu.vector_store %arg8[%c0_49, %c0_50], %36 {strides = array<i32>} : memref<256x8xf32, #tpu.memory_space<vmem>>, vector<256x8xf32>,
    %c0_51 = arith.constant 0 : index
    %c1_52 = arith.constant 1 : index
    %c1_53 = arith.constant 1 : index
    %c0_54 = arith.constant 0 : index
    %38 = vector.load %arg1[%c0_51, %c1_52, %c1_53, %c0_54] : memref<1x18x18x4xbf16, #tpu.memory_space<vmem>>, vector<1x16x16x4xbf16>
    %39 = vector.shape_cast %38 : vector<1x16x16x4xbf16> to vector<16x16x4xbf16>
    %40 = vector.shape_cast %39 : vector<16x16x4xbf16> to vector<256x4xbf16>
    %c0_55 = arith.constant 0 : index
    %c0_56 = arith.constant 0 : index
    %41 = vector.load %arg8[%c0_55, %c0_56] : memref<256x8xf32, #tpu.memory_space<vmem>>, vector<256x8xf32>
    %c1_57 = arith.constant 1 : index
    %c1_58 = arith.constant 1 : index
    %c0_59 = arith.constant 0 : index
    %c0_60 = arith.constant 0 : index
    %42 = vector.load %arg2[%c1_57, %c1_58, %c0_59, %c0_60] : memref<3x3x4x8xbf16, #tpu.memory_space<vmem>>, vector<1x1x4x8xbf16>
    %43 = vector.shape_cast %42 : vector<1x1x4x8xbf16> to vector<4x8xbf16>
    %cst_61 = arith.constant dense<0.000000e+00> : vector<256x8xf32>
    %44 = tpu.matmul %40, %43, %cst_61 {dimension_numbers = #tpu.dot_dimension_numbers<[1], [0], [0], [1], [0, 0, 1, 1], [], []>} : vector<256x4xbf16>, vector<4x8xbf16>, vector<256x8xf32> -> vector<256x8xf32>
    %45 = arith.addf %41, %44 : vector<256x8xf32>
    %c0_62 = arith.constant 0 : index
    %c0_63 = arith.constant 0 : index
    %46 = vector.load %arg8[%c0_62, %c0_63] : memref<256x8xf32, #tpu.memory_space<vmem>>, vector<256x8xf32>
    tpu.vector_store %arg8[%c0_62, %c0_63], %45 {strides = array<i32>} : memref<256x8xf32, #tpu.memory_space<vmem>>, vector<256x8xf32>,
    %c0_64 = arith.constant 0 : index
    %c1_65 = arith.constant 1 : index
    %c2_66 = arith.constant 2 : index
    %c0_67 = arith.constant 0 : index
    %47 = vector.load %arg1[%c0_64, %c1_65, %c2_66, %c0_67] : memref<1x18x18x4xbf16, #tpu.memory_space<vmem>>, vector<1x16x16x4xbf16>
    %48 = vector.shape_cast %47 : vector<1x16x16x4xbf16> to vector<16x16x4xbf16>
    %49 = vector.shape_cast %48 : vector<16x16x4xbf16> to vector<256x4xbf16>
    %c0_68 = arith.constant 0 : index
    %c0_69 = arith.constant 0 : index
    %50 = vector.load %arg8[%c0_68, %c0_69] : memref<256x8xf32, #tpu.memory_space<vmem>>, vector<256x8xf32>
    %c1_70 = arith.constant 1 : index
    %c2_71 = arith.constant 2 : index
    %c0_72 = arith.constant 0 : index
    %c0_73 = arith.constant 0 : index
    %51 = vector.load %arg2[%c1_70, %c2_71, %c0_72, %c0_73] : memref<3x3x4x8xbf16, #tpu.memory_space<vmem>>, vector<1x1x4x8xbf16>
    %52 = vector.shape_cast %51 : vector<1x1x4x8xbf16> to vector<4x8xbf16>
    %cst_74 = arith.constant dense<0.000000e+00> : vector<256x8xf32>
    %53 = tpu.matmul %49, %52, %cst_74 {dimension_numbers = #tpu.dot_dimension_numbers<[1], [0], [0], [1], [0, 0, 1, 1], [], []>} : vector<256x4xbf16>, vector<4x8xbf16>, vector<256x8xf32> -> vector<256x8xf32>
    %54 = arith.addf %50, %53 : vector<256x8xf32>
    %c0_75 = arith.constant 0 : index
    %c0_76 = arith.constant 0 : index
    %55 = vector.load %arg8[%c0_75, %c0_76] : memref<256x8xf32, #tpu.memory_space<vmem>>, vector<256x8xf32>
    tpu.vector_store %arg8[%c0_75, %c0_76], %54 {strides = array<i32>} : memref<256x8xf32, #tpu.memory_space<vmem>>, vector<256x8xf32>,
    %c0_77 = arith.constant 0 : index
    %c2_78 = arith.constant 2 : index
    %c0_79 = arith.constant 0 : index
    %c0_80 = arith.constant 0 : index
    %56 = vector.load %arg1[%c0_77, %c2_78, %c0_79, %c0_80] : memref<1x18x18x4xbf16, #tpu.memory_space<vmem>>, vector<1x16x16x4xbf16>
    %57 = vector.shape_cast %56 : vector<1x16x16x4xbf16> to vector<16x16x4xbf16>
    %58 = vector.shape_cast %57 : vector<16x16x4xbf16> to vector<256x4xbf16>
    %c0_81 = arith.constant 0 : index
    %c0_82 = arith.constant 0 : index
    %59 = vector.load %arg8[%c0_81, %c0_82] : memref<256x8xf32, #tpu.memory_space<vmem>>, vector<256x8xf32>
    %c2_83 = arith.constant 2 : index
    %c0_84 = arith.constant 0 : index
    %c0_85 = arith.constant 0 : index
    %c0_86 = arith.constant 0 : index
    %60 = vector.load %arg2[%c2_83, %c0_84, %c0_85, %c0_86] : memref<3x3x4x8xbf16, #tpu.memory_space<vmem>>, vector<1x1x4x8xbf16>
    %61 = vector.shape_cast %60 : vector<1x1x4x8xbf16> to vector<4x8xbf16>
    %cst_87 = arith.constant dense<0.000000e+00> : vector<256x8xf32>
    %62 = tpu.matmul %58, %61, %cst_87 {dimension_numbers = #tpu.dot_dimension_numbers<[1], [0], [0], [1], [0, 0, 1, 1], [], []>} : vector<256x4xbf16>, vector<4x8xbf16>, vector<256x8xf32> -> vector<256x8xf32>
    %63 = arith.addf %59, %62 : vector<256x8xf32>
    %c0_88 = arith.constant 0 : index
    %c0_89 = arith.constant 0 : index
    %64 = vector.load %arg8[%c0_88, %c0_89] : memref<256x8xf32, #tpu.memory_space<vmem>>, vector<256x8xf32>
    tpu.vector_store %arg8[%c0_88, %c0_89], %63 {strides = array<i32>} : memref<256x8xf32, #tpu.memory_space<vmem>>, vector<256x8xf32>,
    %c0_90 = arith.constant 0 : index
    %c2_91 = arith.constant 2 : index
    %c1_92 = arith.constant 1 : index
    %c0_93 = arith.constant 0 : index
    %65 = vector.load %arg1[%c0_90, %c2_91, %c1_92, %c0_93] : memref<1x18x18x4xbf16, #tpu.memory_space<vmem>>, vector<1x16x16x4xbf16>
    %66 = vector.shape_cast %65 : vector<1x16x16x4xbf16> to vector<16x16x4xbf16>
    %67 = vector.shape_cast %66 : vector<16x16x4xbf16> to vector<256x4xbf16>
    %c0_94 = arith.constant 0 : index
    %c0_95 = arith.constant 0 : index
    %68 = vector.load %arg8[%c0_94, %c0_95] : memref<256x8xf32, #tpu.memory_space<vmem>>, vector<256x8xf32>
    %c2_96 = arith.constant 2 : index
    %c1_97 = arith.constant 1 : index
    %c0_98 = arith.constant 0 : index
    %c0_99 = arith.constant 0 : index
    %69 = vector.load %arg2[%c2_96, %c1_97, %c0_98, %c0_99] : memref<3x3x4x8xbf16, #tpu.memory_space<vmem>>, vector<1x1x4x8xbf16>
    %70 = vector.shape_cast %69 : vector<1x1x4x8xbf16> to vector<4x8xbf16>
    %cst_100 = arith.constant dense<0.000000e+00> : vector<256x8xf32>
    %71 = tpu.matmul %67, %70, %cst_100 {dimension_numbers = #tpu.dot_dimension_numbers<[1], [0], [0], [1], [0, 0, 1, 1], [], []>} : vector<256x4xbf16>, vector<4x8xbf16>, vector<256x8xf32> -> vector<256x8xf32>
    %72 = arith.addf %68, %71 : vector<256x8xf32>
    %c0_101 = arith.constant 0 : index
    %c0_102 = arith.constant 0 : index
    %73 = vector.load %arg8[%c0_101, %c0_102] : memref<256x8xf32, #tpu.memory_space<vmem>>, vector<256x8xf32>
    tpu.vector_store %arg8[%c0_101, %c0_102], %72 {strides = array<i32>} : memref<256x8xf32, #tpu.memory_space<vmem>>, vector<256x8xf32>,
    %c0_103 = arith.constant 0 : index
    %c2_104 = arith.constant 2 : index
    %c2_105 = arith.constant 2 : index
    %c0_106 = arith.constant 0 : index
    %74 = vector.load %arg1[%c0_103, %c2_104, %c2_105, %c0_106] : memref<1x18x18x4xbf16, #tpu.memory_space<vmem>>, vector<1x16x16x4xbf16>
    %75 = vector.shape_cast %74 : vector<1x16x16x4xbf16> to vector<16x16x4xbf16>
    %76 = vector.shape_cast %75 : vector<16x16x4xbf16> to vector<256x4xbf16>
    %c0_107 = arith.constant 0 : index
    %c0_108 = arith.constant 0 : index
    %77 = vector.load %arg8[%c0_107, %c0_108] : memref<256x8xf32, #tpu.memory_space<vmem>>, vector<256x8xf32>
    %c2_109 = arith.constant 2 : index
    %c2_110 = arith.constant 2 : index
    %c0_111 = arith.constant 0 : index
    %c0_112 = arith.constant 0 : index
    %78 = vector.load %arg2[%c2_109, %c2_110, %c0_111, %c0_112] : memref<3x3x4x8xbf16, #tpu.memory_space<vmem>>, vector<1x1x4x8xbf16>
    %79 = vector.shape_cast %78 : vector<1x1x4x8xbf16> to vector<4x8xbf16>
    %cst_113 = arith.constant dense<0.000000e+00> : vector<256x8xf32>
    %80 = tpu.matmul %76, %79, %cst_113 {dimension_numbers = #tpu.dot_dimension_numbers<[1], [0], [0], [1], [0, 0, 1, 1], [], []>} : vector<256x4xbf16>, vector<4x8xbf16>, vector<256x8xf32> -> vector<256x8xf32>
    %81 = arith.addf %77, %80 : vector<256x8xf32>
    %c0_114 = arith.constant 0 : index
    %c0_115 = arith.constant 0 : index
    %82 = vector.load %arg8[%c0_114, %c0_115] : memref<256x8xf32, #tpu.memory_space<vmem>>, vector<256x8xf32>
    tpu.vector_store %arg8[%c0_114, %c0_115], %81 {strides = array<i32>} : memref<256x8xf32, #tpu.memory_space<vmem>>, vector<256x8xf32>,
    %c0_116 = arith.constant 0 : index
    %c0_117 = arith.constant 0 : index
    %83 = vector.load %arg8[%c0_116, %c0_117] : memref<256x8xf32, #tpu.memory_space<vmem>>, vector<256x8xf32>
    %84 = vector.shape_cast %83 : vector<256x8xf32> to vector<1x256x8xf32>
    %c0_118 = arith.constant 0 : index
    %c0_119 = arith.constant 0 : index
    %c0_120 = arith.constant 0 : index
    %85 = vector.load %arg4[%c0_118, %c0_119, %c0_120] : memref<1x256x8xf32, #tpu.memory_space<vmem>>, vector<1x256x8xf32>
    tpu.vector_store %arg4[%c0_118, %c0_119, %c0_120], %84 {strides = array<i32>} : memref<1x256x8xf32, #tpu.memory_space<vmem>>, vector<1x256x8xf32>,
    %cst_121 = arith.constant dense<0.000000e+00> : vector<8xf32>
    %86 = vector.multi_reduction <add>, %83, %cst_121 [0] : vector<256x8xf32> to vector<8xf32>
    %87 = vector.shape_cast %86 : vector<8xf32> to vector<1x8xf32>
    %cst_122 = arith.constant 2.560000e+02 : f32
    %88 = vector.broadcast %cst_122 : f32 to vector<1x8xf32>
    %89 = arith.divf %87, %88 : vector<1x8xf32>
    %90 = vector.broadcast %89 : vector<1x8xf32> to vector<256x8xf32>
    %91 = arith.subf %83, %90 : vector<256x8xf32>
    %92 = arith.mulf %91, %91 : vector<256x8xf32>
    %cst_123 = arith.constant dense<0.000000e+00> : vector<8xf32>
    %93 = vector.multi_reduction <add>, %92, %cst_123 [0] : vector<256x8xf32> to vector<8xf32>
    %94 = vector.shape_cast %93 : vector<8xf32> to vector<1x8xf32>
    %c0_124 = arith.constant 0 : index
    %c0_125 = arith.constant 0 : index
    %c0_126 = arith.constant 0 : index
    %95 = vector.load %arg5[%c0_124, %c0_125, %c0_126] : memref<1x2x8xf32, #tpu.memory_space<vmem>>, vector<1x1x8xf32>
    %96 = vector.shape_cast %95 : vector<1x1x8xf32> to vector<1x8xf32>
    %97 = vector.shape_cast %89 : vector<1x8xf32> to vector<1x1x8xf32>
    tpu.vector_store %arg5[%c0_124, %c0_125, %c0_126], %97 {strides = array<i32>} : memref<1x2x8xf32, #tpu.memory_space<vmem>>, vector<1x1x8xf32>,
    %c0_127 = arith.constant 0 : index
    %c1_128 = arith.constant 1 : index
    %c0_129 = arith.constant 0 : index
    %98 = vector.load %arg5[%c0_127, %c1_128, %c0_129] : memref<1x2x8xf32, #tpu.memory_space<vmem>>, vector<1x1x8xf32>
    %99 = vector.shape_cast %98 : vector<1x1x8xf32> to vector<1x8xf32>
    %100 = vector.shape_cast %94 : vector<1x8xf32> to vector<1x1x8xf32>
    tpu.vector_store %arg5[%c0_127, %c1_128, %c0_129], %100 {strides = array<i32>} : memref<1x2x8xf32, #tpu.memory_space<vmem>>, vector<1x1x8xf32>,
    %c0_130 = arith.constant 0 : index
    %c1_131 = arith.constant 1 : index
    %c1_132 = arith.constant 1 : index
    %c0_133 = arith.constant 0 : index
    %101 = vector.load %arg1[%c0_130, %c1_131, %c1_132, %c0_133] : memref<1x18x18x4xbf16, #tpu.memory_space<vmem>>, vector<1x16x16x4xbf16>
    %102 = vector.shape_cast %101 : vector<1x16x16x4xbf16> to vector<16x16x4xbf16>
    %103 = vector.shape_cast %102 : vector<16x16x4xbf16> to vector<256x4xbf16>
    %c0_134 = arith.constant 0 : index
    %c0_135 = arith.constant 0 : index
    %104 = vector.load %arg3[%c0_134, %c0_135] : memref<4x8xbf16, #tpu.memory_space<vmem>>, vector<4x8xbf16>
    %cst_136 = arith.constant dense<0.000000e+00> : vector<256x8xf32>
    %105 = tpu.matmul %103, %104, %cst_136 {dimension_numbers = #tpu.dot_dimension_numbers<[1], [0], [0], [1], [0, 0, 1, 1], [], []>} : vector<256x4xbf16>, vector<4x8xbf16>, vector<256x8xf32> -> vector<256x8xf32>
    %106 = vector.shape_cast %105 : vector<256x8xf32> to vector<1x256x8xf32>
    %c0_137 = arith.constant 0 : index
    %c0_138 = arith.constant 0 : index
    %c0_139 = arith.constant 0 : index
    %107 = vector.load %arg6[%c0_137, %c0_138, %c0_139] : memref<1x256x8xf32, #tpu.memory_space<vmem>>, vector<1x256x8xf32>
    tpu.vector_store %arg6[%c0_137, %c0_138, %c0_139], %106 {strides = array<i32>} : memref<1x256x8xf32, #tpu.memory_space<vmem>>, vector<1x256x8xf32>,
    %cst_140 = arith.constant dense<0.000000e+00> : vector<8xf32>
    %108 = vector.multi_reduction <add>, %105, %cst_140 [0] : vector<256x8xf32> to vector<8xf32>
    %109 = vector.shape_cast %108 : vector<8xf32> to vector<1x8xf32>
    %cst_141 = arith.constant 2.560000e+02 : f32
    %110 = vector.broadcast %cst_141 : f32 to vector<1x8xf32>
    %111 = arith.divf %109, %110 : vector<1x8xf32>
    %112 = vector.broadcast %111 : vector<1x8xf32> to vector<256x8xf32>
    %113 = arith.subf %105, %112 : vector<256x8xf32>
    %114 = arith.mulf %113, %113 : vector<256x8xf32>
    %cst_142 = arith.constant dense<0.000000e+00> : vector<8xf32>
    %115 = vector.multi_reduction <add>, %114, %cst_142 [0] : vector<256x8xf32> to vector<8xf32>
    %116 = vector.shape_cast %115 : vector<8xf32> to vector<1x8xf32>
    %c0_143 = arith.constant 0 : index
    %c0_144 = arith.constant 0 : index
    %c0_145 = arith.constant 0 : index
    %117 = vector.load %arg7[%c0_143, %c0_144, %c0_145] : memref<1x2x8xf32, #tpu.memory_space<vmem>>, vector<1x1x8xf32>
    %118 = vector.shape_cast %117 : vector<1x1x8xf32> to vector<1x8xf32>
    %119 = vector.shape_cast %111 : vector<1x8xf32> to vector<1x1x8xf32>
    tpu.vector_store %arg7[%c0_143, %c0_144, %c0_145], %119 {strides = array<i32>} : memref<1x2x8xf32, #tpu.memory_space<vmem>>, vector<1x1x8xf32>,
    %c0_146 = arith.constant 0 : index
    %c1_147 = arith.constant 1 : index
    %c0_148 = arith.constant 0 : index
    %120 = vector.load %arg7[%c0_146, %c1_147, %c0_148] : memref<1x2x8xf32, #tpu.memory_space<vmem>>, vector<1x1x8xf32>
    %121 = vector.shape_cast %120 : vector<1x1x8xf32> to vector<1x8xf32>
    %122 = vector.shape_cast %116 : vector<1x8xf32> to vector<1x1x8xf32>
    tpu.vector_store %arg7[%c0_146, %c1_147, %c0_148], %122 {strides = array<i32>} : memref<1x2x8xf32, #tpu.memory_space<vmem>>, vector<1x1x8xf32>,
    return
  }
  func.func @transform_0(%arg0: i32) -> (i32, i32, i32, i32) {
    %c0_i32 = arith.constant 0 : i32
    %c0_i32_0 = arith.constant 0 : i32
    %c0_i32_1 = arith.constant 0 : i32
    %c0_i32_2 = arith.constant 0 : i32
    return %arg0, %c0_i32, %c0_i32_0, %c0_i32_1 : i32, i32, i32, i32
  }
  func.func @transform_1(%arg0: i32) -> (i32, i32, i32, i32) {
    %c0_i32 = arith.constant 0 : i32
    %c0_i32_0 = arith.constant 0 : i32
    %c0_i32_1 = arith.constant 0 : i32
    %c0_i32_2 = arith.constant 0 : i32
    %c0_i32_3 = arith.constant 0 : i32
    return %c0_i32, %c0_i32_0, %c0_i32_1, %c0_i32_2 : i32, i32, i32, i32
  }
  func.func @transform_2(%arg0: i32) -> (i32, i32) {
    %c0_i32 = arith.constant 0 : i32
    %c0_i32_0 = arith.constant 0 : i32
    %c0_i32_1 = arith.constant 0 : i32
    return %c0_i32, %c0_i32_0 : i32, i32
  }
  func.func @transform_3(%arg0: i32) -> (i32, i32, i32) {
    %c0_i32 = arith.constant 0 : i32
    %c0_i32_0 = arith.constant 0 : i32
    %c0_i32_1 = arith.constant 0 : i32
    return %arg0, %c0_i32, %c0_i32_0 : i32, i32, i32
  }
  func.func @transform_4(%arg0: i32) -> (i32, i32, i32) {
    %c0_i32 = arith.constant 0 : i32
    %c0_i32_0 = arith.constant 0 : i32
    %c0_i32_1 = arith.constant 0 : i32
    return %arg0, %c0_i32, %c0_i32_0 : i32, i32, i32
  }
  func.func @transform_5(%arg0: i32) -> (i32, i32, i32) {
    %c0_i32 = arith.constant 0 : i32
    %c0_i32_0 = arith.constant 0 : i32
    %c0_i32_1 = arith.constant 0 : i32
    return %arg0, %c0_i32, %c0_i32_0 : i32, i32, i32
  }
  func.func @transform_6(%arg0: i32) -> (i32, i32, i32) {
    %c0_i32 = arith.constant 0 : i32
    %c0_i32_0 = arith.constant 0 : i32
    %c0_i32_1 = arith.constant 0 : i32
    return %arg0, %c0_i32, %c0_i32_0 : i32, i32, i32
  }
}

</mosaic_0001>

<bundles_post_ra>
// kernel: tpu_custom_call.1
= control target key start
LH: loop header
LB: loop body
LE: loop exit
PB: predicated region body
PF: predicated region fallthrough
CT: control target
= control target key end

     0   :  { %12 = vsyncpa [#allocation4], 0  ;;  %s9984_s0 = inlined_call_operand.vmem [shape: bf16[2,18,18,4], index: 0, kind: input, shape index: {}]   ;;  %s9985_s1 = inlined_call_operand.vmem [shape: bf16[3,3,4,8], index: 1, kind: input, shape index: {}]   ;;  %s9986_s2 = inlined_call_operand.vmem [shape: bf16[4,8], index: 2, kind: input, shape index: {}]   ;;  %s9987_s3 = inlined_call_operand.vmem [shape: f32[2,256,8], index: 3, kind: output, shape index: {0}]   ;;  %s9988_s4 = inlined_call_operand.hbm [shape: f32[2,2,8], index: 4, kind: output, shape index: {1}]   ;;  %s9989_s5 = inlined_call_operand.vmem [shape: f32[2,256,8], index: 5, kind: output, shape index: {2}]   ;;  %s9990_s6 = inlined_call_operand.hbm [shape: f32[2,2,8], index: 6, kind: output, shape index: {3}]  }
   0x1   :  { %14 = vsyncpa [#allocation4 + $0x1], 0 }
   0x2   :  { %15 = vsyncpa [#allocation6], 0 }
   0x3   :  { %17 = vsyncpa [#allocation6 + $0x1], 0  ;;  %s7305_s21 = smov 0   ;;  %s7307_s22 = smov 0  }
   0x4   :  { %s7309_s23 = smov 0   ;;  %s7311_s24 = smov 0  }
   0x5 LB: > { %s7326_s25 = sadd.s32 4294967295, %s7266_s24   ;;  %s6342_s26 = sadd.s32 4294967294, %s7266_s24   ;;  %s7266_s24 = sphi %s7311_s24, %s10051_s24   ;;  %s7262_s23 = sphi %s7309_s23, %s10050_s23   ;;  %s7258_s22 = sphi %s7307_s22, %s10049_s22   ;;  %s7254_s21 = sphi %s7305_s21, %s10048_s21  }
   0x6   : > { %s7330_s27 = sadd.s32 1, %s7266_s24   ;;  %s124_s28 = sadd.s32 1, %s7262_s23 }
   0x7   : > { %s121_s29 = ssub.s32 %s7266_s24, %s7330_s27  ;;  %p134_p0 = scmp.ne.s32.totalorder %s7262_s23, %s7258_s22 }
   0x8   : > { %p122_p1 = scmp.eq.s32.totalorder %s121_s29, 0  ;;  %p135_p2 = scmp.eq.s32.totalorder %s7326_s25, 1 }
   0x9   : > { %p140_p3 = scmp.ne.s32.totalorder %s7258_s22, %s7254_s21  ;;  %p141_p4 = scmp.eq.s32.totalorder %s6342_s26, 1 }
   0xa   : > { %s7341_s30 = scalar_select %p122_p1, %s7262_s23, %s124_s28  }
   0xb   : > { %p7343_p5 = por %p135_p2, %p134_p0  ;;  %p7347_p6 = por %p141_p4, %p140_p3 }
   0xc   : > { %p6345_p7 = scmp.ge.s32.totalorder %s7266_s24, 1  ;;  %p225_p8 = scmp.lt.s32.totalorder %s7266_s24, 3 }
   0xe   : > { %p226_p9 = pnand %p6345_p7, %p225_p8 }
  0x10   : > { %229 = sbr.rel (%p226_p9) target bundleno = 951 (0x3b7), region = 32 }
  0x15   : > { %v383_v0 = vld [vmem:[%s9985_s1] sm:$0x3]  ;;  %vm513_vm0 = vcmask 1041408   ;;  %p270_p10 = scmp.lt.s32.totalorder %s7326_s25, 1  ;;  %v6466_v2 = vld [vmem:[%s9985_s1 + $0x4] sm:$0x3] }
  0x16   : > { %v515_v1 = vsel %vm513_vm0, %v383_v0, 0  ;;  %v6433_v3 = vld [vmem:[%s9985_s1 + $0x2] sm:$0x3]  ;;  %v1733_v4 = vsel %vm513_vm0, %v6466_v2, 0  ;;  %v6515_v6 = vld [vmem:[%s9985_s1 + $0x6] sm:$0x3] }
  0x17   : > { %7121 = vmatpush.bf16.msra.mxu2 %v515_v1  ;;  %s7365_s15 = scalar_select %p270_p10, %s7326_s25, 1  ;;  %v1236_v5 = vsel %vm513_vm0, %v6433_v3, 0  ;;  %524 = vmatpush.bf16.msra.mxu0 %v515_v1  ;;  %v2084_v7 = vsel %vm513_vm0, %v6515_v6, 0  ;;  %vm464_vm1 = vcmask 31744   ;;  %vm718_vm2 = vsmask.f32 3328 }
  0x18   : > { %1245 = vmatpush.bf16.msra.mxu1 %v1236_v5  ;;  %7122 = vmatpush.bf16.msra.mxu3 %v1236_v5  ;;  %vm719_vm3 = vsmask.f32 7440  ;;  %vm286_vm5 = vcmask 64512   ;;  %vm1487_vm6 = vcmask 1042432   ;;  %vm1488_vm7 = vcmask 1046532   ;;  %s7067_s16 = sshll.u32 %s7326_s25, 1 }
  0x19   : > { %s7123_s18 = smul.u32 216, %s7365_s15  ;;  %vm7392_vm4 = vmor %vm718_vm2, %vm719_vm3  ;;  %s7071_s20 = sshll.u32 %s7365_s15, 8  ;;  %vm5288_vm10 = vcmask 57344  }
  0x1a   : > { %vm7598_vm8 = vmor %vm1487_vm6, %vm1488_vm7  ;;  %s8854_s9 = scalar_lea.vmem %s9989_s5, %s7071_s20  ;;  %s8980_s12 = scalar_lea.vmem %s9987_s3, %s7071_s20 }
  0x1b   : > { %1742 = vmatpush.bf16.msrb.mxu2 %v1733_v4  ;;  %s7377_s26 = scalar_lea.vmem %s9984_s0, %s7123_s18  ;;  %s9696_s15 = sand.u32 1, %s7258_s22  }
  0x1c   : > { %2093 = vmatpush.bf16.msrb.mxu3 %v2084_v7  ;;  %v7081_v8 = vld [vmem:[%s7377_s26 + $0x60] sm:$0xff]  ;;  %v672_v11 = vld [vmem:[%s7377_s26 + $0x8] sm:$0x1]  ;;  %v673_v33 = vld [vmem:[%s7377_s26 + $0xc] sm:$0xf]  ;;  %s6195_s19 = scalar_lea.hbm %s9990_s6, %s7067_s16  ;;  %s6165_s29 = scalar_lea.sflag [#allocation6], %s9696_s15 }
  0x1d   : > { %v670_v9 = vld [vmem:[%s7377_s26] sm:$0xf]  ;;  %v671_v10 = vld [vmem:[%s7377_s26 + $0x4] sm:$0xf]  ;;  %6425 = vmatmul.msk.bf16.vlgmr.msra.gmra.mxu2 %vm464_vm1, %v7081_v8  ;;  %v741_v16 = vshll.u32 %v672_v11, 16  ;;  %v746_v39 = vshrl.u32 %v673_v33, 16 }
  0x1e   : > { %v722_v12 = vshrl.u32 %v670_v9, 16  ;;  %v725_v13 = vshll.u32 %v670_v9, 16  ;;  %v731_v14 = vshll.u32 %v671_v10, 16  ;;  %v735_v15 = vshrl.u32 %v671_v10, 16  ;;  %v694_v17 = vld [vmem:[%s7377_s26 + $0x60] sm:$0xf] }
  0x1f   : > { %v695_v18 = vld [vmem:[%s7377_s26 + $0x64] sm:$0xf]  ;;  %v696_v23 = vld [vmem:[%s7377_s26 + $0x68] sm:$0x1]  ;;  %v743_v24 = vrot.slane %v741_v16, 5  ;;  %v914_v25 = vshrl.u32 %v694_v17, 16 }
  0x20   : > { %v724_v19 = vrot.slane %v722_v12, 4  ;;  %v727_v20 = vrot.slane %v725_v13, 5  ;;  %v733_v21 = vrot.slane %v731_v14, 5  ;;  %v737_v22 = vrot.slane %v735_v15, 4  ;;  %v7073_v28 = vld [vmem:[%s7377_s26] sm:$0xff]  ;;  %v7082_v10 = vld [vmem:[%s7377_s26 + $0x6c] sm:$0xff] }
  0x21   : > { %v917_v26 = vshll.u32 %v694_v17, 16  ;;  %v923_v27 = vshll.u32 %v695_v18, 16  ;;  %v927_v31 = vshrl.u32 %v695_v18, 16  ;;  %v933_v32 = vshll.u32 %v696_v23, 16  ;;  %v674_v34 = vld [vmem:[%s7377_s26 + $0x10] sm:$0xf]  ;;  %6417 = vmatmul.msk.bf16.vlgmr.msra.gmra.mxu0 %vm464_vm1, %v7073_v28 }
  0x22   : > { %v728_v29 = vor.u32 %v727_v20, %v724_v19  ;;  %v738_v30 = vor.u32 %v737_v22, %v733_v21  ;;  %v916_v36 = vrot.slane %v914_v25, 4  ;;  %v675_v45 = vld [vmem:[%s7377_s26 + $0x14] sm:$0x1]  ;;  %v748_v46 = vrot.slane %v746_v39, 4  ;;  %v697_v53 = vld [vmem:[%s7377_s26 + $0x6c] sm:$0xf] }
  0x23   : > { %v919_v37 = vrot.slane %v917_v26, 5  ;;  %v925_v38 = vrot.slane %v923_v27, 5  ;;  %v929_v42 = vrot.slane %v927_v31, 4  ;;  %v935_v43 = vrot.slane %v933_v32, 5  ;;  %v698_v1 = vld [vmem:[%s7377_s26 + $0x70] sm:$0xf] }
  0x24   : > { %v729_v40 = vrot.slane %v728_v29, 4  ;;  %v739_v41 = vrot.slane %v738_v30, 4  ;;  %v749_v47 = vshll.u32 %v673_v33, 16  ;;  %v755_v48 = vshll.u32 %v674_v34, 16  ;;  %v699_v2 = vld [vmem:[%s7377_s26 + $0x74] sm:$0x1] }
  0x25   : > { %v920_v44 = vor.u32 %v919_v37, %v916_v36  ;;  %v930_v51 = vor.u32 %v929_v42, %v925_v38  ;;  %v759_v52 = vshrl.u32 %v674_v34, 16  ;;  %v765_v61 = vshll.u32 %v675_v45, 16  ;;  %v6644_v8 = vld [vmem:[%s9985_s1 + $0x8] sm:$0x3]  ;;  %v6725_v18 = vld [vmem:[%s9985_s1 + $0xa] sm:$0x3] }
  0x26   : > { %v734_v49 = vsel %vm7392_vm4, %v729_v40, %v733_v21  ;;  %v744_v50 = vsel %vm7392_vm4, %v739_v41, %v743_v24  ;;  %v751_v57 = vrot.slane %v749_v47, 5  ;;  %v757_v59 = vrot.slane %v755_v48, 5  ;;  %v676_v22 = vld [vmem:[%s7377_s26 + $0x18] sm:$0xf]  ;;  %v677_v23 = vld [vmem:[%s7377_s26 + $0x1c] sm:$0xf] }
  0x27   : > { %v1139_v54 = vunpack.c.l.b16 %v734_v49  ;;  %v1140_v55 = vunpack.c.l.b16 %v744_v50  ;;  %v921_v56 = vrot.slane %v920_v44, 4  ;;  %v931_v58 = vrot.slane %v930_v51, 4  ;;  %v7074_v30 = vld [vmem:[%s7377_s26 + $0xc] sm:$0xff]  ;;  %v700_v37 = vld [vmem:[%s7377_s26 + $0x78] sm:$0xf]  ;;  %s6199_s28 = sshll.u32 %s6195_s19, 4  ;;  %s6200_s28 = int_to_ptr.hbm [resolvable:$true] %s6199_s28 }
  0x28   : > { %v761_v60 = vrot.slane %v759_v52, 4  ;;  %v752_v0 = vor.u32 %v751_v57, %v748_v46  ;;  %v938_v3 = vshrl.u32 %v697_v53, 16  ;;  %v767_v7 = vrot.slane %v765_v61, 5  ;;  %v701_v45 = vld [vmem:[%s7377_s26 + $0x7c] sm:$0xf] }
  0x29   : > { %v1171_v62 = vpack.c.b16 %v1140_v55, %v1139_v54  ;;  %v926_v63 = vsel %vm7392_vm4, %v921_v56, %v925_v38  ;;  %v936_v4 = vsel %vm7392_vm4, %v931_v58, %v935_v43  ;;  %v941_v13 = vshll.u32 %v697_v53, 16  ;;  %v678_v47 = vld [vmem:[%s7377_s26 + $0x20] sm:$0x1] }
  0x2a   : > { %v1155_v5 = vunpack.c.l.b16 %v926_v63  ;;  %v762_v6 = vor.u32 %v761_v60, %v757_v59  ;;  %v1156_v9 = vunpack.c.l.b16 %v936_v4  ;;  %v753_v11 = vrot.slane %v752_v0, 4  ;;  %v7083_v4 = vld [vmem:[%s7377_s26 + $0x78] sm:$0xff] }
  0x2b   : > { %6434 = vmatmul.msk.bf16.vlgmr.msra.gmra.mxu1 %vm464_vm1, %v1171_v62  ;;  %v940_v12 = vrot.slane %v938_v3, 4  ;;  %v947_v15 = vshll.u32 %v698_v1, 16  ;;  %v951_v16 = vshrl.u32 %v698_v1, 16  ;;  %v957_v17 = vshll.u32 %v699_v2, 16  ;;  %v702_v1 = vld [vmem:[%s7377_s26 + $0x80] sm:$0x1] }
  0x2c   : > { %v763_v14 = vrot.slane %v762_v6, 4  ;;  %v1179_v19 = vpack.c.b16 %v1156_v9, %v1155_v5  ;;  %v943_v20 = vrot.slane %v941_v13, 5  ;;  %v2802_v21 = vsel %vm513_vm0, %v6644_v8, 0  ;;  %v679_v8 = vld [vmem:[%s7377_s26 + $0x24] sm:$0xf] }
  0x2d   : > { %v758_v24 = vsel %vm7392_vm4, %v753_v11, %v757_v59  ;;  %v949_v26 = vrot.slane %v947_v15, 5  ;;  %v953_v27 = vrot.slane %v951_v16, 4  ;;  %2811 = vmatpush.bf16.msrb.mxu0 %v2802_v21  ;;  %6426 = vmatmul.msk.bf16.gmra.mxu2 %vm464_vm1, %v7082_v10  ;;  %v959_v29 = vrot.slane %v957_v17, 5  ;;  %v680_v11 = vld [vmem:[%s7377_s26 + $0x28] sm:$0xf]  ;;  %v7075_v17 = vld [vmem:[%s7377_s26 + $0x18] sm:$0xff] }
  0x2e   : > { %v768_v25 = vsel %vm7392_vm4, %v763_v14, %v767_v7  ;;  %6442 = vmatmul.msk.bf16.vlgmr.msra.gmra.mxu3 %vm464_vm1, %v1179_v19  ;;  %v944_v28 = vor.u32 %v943_v20, %v940_v12  ;;  %v3296_v31 = vsel %vm513_vm0, %v6725_v18, 0  ;;  %v770_v33 = vshrl.u32 %v676_v22, 16 }
  0x2f   : > { %v954_v32 = vor.u32 %v953_v27, %v949_v26  ;;  %3305 = vmatpush.bf16.msrb.mxu1 %v3296_v31  ;;  %v773_v34 = vshll.u32 %v676_v22, 16  ;;  %v779_v36 = vshll.u32 %v677_v23, 16  ;;  %v1141_v38 = vunpack.c.l.b16 %v758_v24  ;;  %v703_v22 = vld [vmem:[%s7377_s26 + $0x84] sm:$0xf] }
  0x30   : > { %v1142_v39 = vunpack.c.l.b16 %v768_v25  ;;  %v945_v40 = vrot.slane %v944_v28, 4  ;;  %v783_v41 = vshrl.u32 %v677_v23, 16  ;;  %v772_v43 = vrot.slane %v770_v33, 4  ;;  %v704_v23 = vld [vmem:[%s7377_s26 + $0x88] sm:$0xf] }
  0x31   : > { %v955_v42 = vrot.slane %v954_v32, 4  ;;  %v775_v44 = vrot.slane %v773_v34, 5  ;;  %6418 = vmatmul.msk.bf16.gmra.mxu0 %vm464_vm1, %v7074_v30  ;;  %v781_v48 = vrot.slane %v779_v36, 5  ;;  %v962_v50 = vshrl.u32 %v700_v37, 16 }
  0x32   : > { %v950_v46 = vsel %vm7392_vm4, %v945_v40, %v949_v26  ;;  %v785_v49 = vrot.slane %v783_v41, 4  ;;  %v965_v52 = vshll.u32 %v700_v37, 16  ;;  %v1172_v53 = vpack.c.b16 %v1142_v39, %v1141_v38 }
  0x33   : > { %v960_v51 = vsel %vm7392_vm4, %v955_v42, %v959_v29  ;;  %v971_v54 = vshll.u32 %v701_v45, 16  ;;  %v1157_v55 = vunpack.c.l.b16 %v950_v46  ;;  %v776_v56 = vor.u32 %v775_v44, %v772_v43  ;;  %v681_v29 = vld [vmem:[%s7377_s26 + $0x2c] sm:$0x1] }
  0x34   : > { %v789_v57 = vshll.u32 %v678_v47, 16  ;;  %v975_v58 = vshrl.u32 %v701_v45, 16  ;;  %v1158_v59 = vunpack.c.l.b16 %v960_v51  ;;  %v786_v60 = vor.u32 %v785_v49, %v781_v48  ;;  %v682_v49 = vld [vmem:[%s7377_s26 + $0x30] sm:$0xf] }
  0x35   : > { %v964_v61 = vrot.slane %v962_v50, 4  ;;  %v967_v62 = vrot.slane %v965_v52, 5  ;;  %v973_v63 = vrot.slane %v971_v54, 5  ;;  %v777_v2 = vrot.slane %v776_v56, 4  ;;  %v683_v50 = vld [vmem:[%s7377_s26 + $0x34] sm:$0xf] }
  0x36   : > { %v977_v0 = vrot.slane %v975_v58, 4  ;;  %v1180_v3 = vpack.c.b16 %v1158_v59, %v1157_v55  ;;  %v787_v5 = vrot.slane %v786_v60, 4  ;;  %v791_v6 = vrot.slane %v789_v57, 5  ;;  %v7084_v52 = vld [vmem:[%s7377_s26 + $0x84] sm:$0xff] }
  0x37   : > { %v968_v7 = vor.u32 %v967_v62, %v964_v61  ;;  %v981_v10 = vshll.u32 %v702_v1, 16  ;;  %v782_v12 = vsel %vm7392_vm4, %v777_v2, %v781_v48  ;;  %v794_v13 = vshrl.u32 %v679_v8, 16  ;;  %v705_v48 = vld [vmem:[%s7377_s26 + $0x8c] sm:$0x1]  ;;  %v7076_v1 = vld [vmem:[%s7377_s26 + $0x24] sm:$0xff] }
  0x38   : > { %v978_v9 = vor.u32 %v977_v0, %v973_v63  ;;  %v797_v14 = vshll.u32 %v679_v8, 16  ;;  %v792_v15 = vsel %vm7392_vm4, %v787_v5, %v791_v6  ;;  %v803_v18 = vshll.u32 %v680_v11, 16  ;;  %v707_v2 = vld [vmem:[%s7377_s26 + $0x94] sm:$0xf] }
  0x39   : > { %v969_v16 = vrot.slane %v968_v7, 4  ;;  %v807_v19 = vshrl.u32 %v680_v11, 16  ;;  %v983_v21 = vrot.slane %v981_v10, 5  ;;  %v1143_v24 = vunpack.c.l.b16 %v782_v12  ;;  %v684_v11 = vld [vmem:[%s7377_s26 + $0x38] sm:$0x1] }
  0x3a   : > { %v979_v20 = vrot.slane %v978_v9, 4  ;;  %v1144_v25 = vunpack.c.l.b16 %v792_v15  ;;  %v796_v26 = vrot.slane %v794_v13, 4  ;;  %v799_v27 = vrot.slane %v797_v14, 5 }
  0x3b   : > { %6435 = vmatmul.msk.bf16.gmra.mxu1 %vm464_vm1, %v1172_v53  ;;  %v974_v28 = vsel %vm7392_vm4, %v969_v16, %v973_v63  ;;  %v805_v30 = vrot.slane %v803_v18, 5  ;;  %v809_v31 = vrot.slane %v807_v19, 4  ;;  %v986_v32 = vshrl.u32 %v703_v22, 16  ;;  %v706_v63 = vld [vmem:[%s7377_s26 + $0x90] sm:$0xf] }
  0x3c   : > { %v984_v33 = vsel %vm7392_vm4, %v979_v20, %v983_v21  ;;  %v989_v34 = vshll.u32 %v703_v22, 16  ;;  %v995_v36 = vshll.u32 %v704_v23, 16  ;;  %v999_v37 = vshrl.u32 %v704_v23, 16 }
  0x3d   : > { %6427 = vmatmul.msk.bf16.gmra.mxu2 %vm464_vm1, %v7083_v4  ;;  %v1173_v38 = vpack.c.b16 %v1144_v25, %v1143_v24  ;;  %v813_v39 = vshll.u32 %v681_v29, 16  ;;  %v1159_v40 = vunpack.c.l.b16 %v974_v28  ;;  %v1160_v41 = vunpack.c.l.b16 %v984_v33 }
  0x3e   : > { %6443 = vmatmul.msk.bf16.gmra.mxu3 %vm464_vm1, %v1180_v3  ;;  %v800_v42 = vor.u32 %v799_v27, %v796_v26  ;;  %v988_v43 = vrot.slane %v986_v32, 4  ;;  %v810_v44 = vor.u32 %v809_v31, %v805_v30  ;;  %v991_v45 = vrot.slane %v989_v34, 5 }
  0x3f   : > { %v997_v46 = vrot.slane %v995_v36, 5  ;;  %v1001_v47 = vrot.slane %v999_v37, 4  ;;  %v1181_v51 = vpack.c.b16 %v1160_v41, %v1159_v40  ;;  %v815_v54 = vrot.slane %v813_v39, 5  ;;  %v7085_v39 = vld [vmem:[%s7377_s26 + $0x90] sm:$0xff]  ;;  %v685_v40 = vld [vmem:[%s7377_s26 + $0x3c] sm:$0xf] }
  0x40   : > { %v801_v53 = vrot.slane %v800_v42, 4  ;;  %v811_v55 = vrot.slane %v810_v44, 4  ;;  %v992_v56 = vor.u32 %v991_v45, %v988_v43  ;;  %v1005_v58 = vshll.u32 %v705_v48, 16  ;;  %v686_v41 = vld [vmem:[%s7377_s26 + $0x40] sm:$0xf] }
  0x41   : > { %6419 = vmatmul.msk.bf16.gmra.mxu0 %vm464_vm1, %v7075_v17  ;;  %v1002_v57 = vor.u32 %v1001_v47, %v997_v46  ;;  %v818_v59 = vshrl.u32 %v682_v49, 16  ;;  %v821_v60 = vshll.u32 %v682_v49, 16  ;;  %v827_v61 = vshll.u32 %v683_v50, 16  ;;  %v7077_v47 = vld [vmem:[%s7377_s26 + $0x30] sm:$0xff] }
  0x42   : > { %v831_v62 = vshrl.u32 %v683_v50, 16  ;;  %v806_v0 = vsel %vm7392_vm4, %v801_v53, %v805_v30  ;;  %v816_v3 = vsel %vm7392_vm4, %v811_v55, %v815_v54  ;;  %v993_v4 = vrot.slane %v992_v56, 4  ;;  %v708_v30 = vld [vmem:[%s7377_s26 + $0x98] sm:$0x1]  ;;  %v710_v53 = vld [vmem:[%s7377_s26 + $0xa0] sm:$0xf] }
  0x43   : > { %v1003_v5 = vrot.slane %v1002_v57, 4  ;;  %v1007_v6 = vrot.slane %v1005_v58, 5  ;;  %v820_v7 = vrot.slane %v818_v59, 4  ;;  %v823_v8 = vrot.slane %v821_v60, 5 }
  0x44   : > { %v829_v9 = vrot.slane %v827_v61, 5  ;;  %v1010_v10 = vshrl.u32 %v706_v63, 16  ;;  %v833_v12 = vrot.slane %v831_v62, 4  ;;  %v1013_v13 = vshll.u32 %v706_v63, 16  ;;  %v687_v62 = vld [vmem:[%s7377_s26 + $0x44] sm:$0x1] }
  0x45   : > { %v1019_v14 = vshll.u32 %v707_v2, 16  ;;  %v1023_v15 = vshrl.u32 %v707_v2, 16  ;;  %v1145_v16 = vunpack.c.l.b16 %v806_v0  ;;  %v1146_v17 = vunpack.c.l.b16 %v816_v3 }
  0x46   : > { %v998_v18 = vsel %vm7392_vm4, %v993_v4, %v997_v46  ;;  %v1008_v19 = vsel %vm7392_vm4, %v1003_v5, %v1007_v6  ;;  %v824_v20 = vor.u32 %v823_v8, %v820_v7  ;;  %v837_v21 = vshll.u32 %v684_v11, 16 }
  0x47   : > { %v1012_v22 = vrot.slane %v1010_v10, 4  ;;  %v834_v23 = vor.u32 %v833_v12, %v829_v9  ;;  %v1015_v24 = vrot.slane %v1013_v13, 5  ;;  %v1021_v25 = vrot.slane %v1019_v14, 5  ;;  %v711_v13 = vld [vmem:[%s7377_s26 + $0xa4] sm:$0x1] }
  0x48   : > { %v1025_v26 = vrot.slane %v1023_v15, 4  ;;  %v1174_v27 = vpack.c.b16 %v1146_v17, %v1145_v16  ;;  %v1161_v28 = vunpack.c.l.b16 %v998_v18  ;;  %v1162_v29 = vunpack.c.l.b16 %v1008_v19  ;;  %v688_v14 = vld [vmem:[%s7377_s26 + $0x48] sm:$0xf]  ;;  %v7086_v16 = vld [vmem:[%s7377_s26 + $0x9c] sm:$0xff]  ;;  %v689_v19 = vld [vmem:[%s7377_s26 + $0x4c] sm:$0xf] }
  0x49   : > { %v825_v31 = vrot.slane %v824_v20, 4  ;;  %v839_v32 = vrot.slane %v837_v21, 5  ;;  %v835_v33 = vrot.slane %v834_v23, 4  ;;  %v1016_v34 = vor.u32 %v1015_v24, %v1012_v22 }
  0x4a   : > { %v1026_v36 = vor.u32 %v1025_v26, %v1021_v25  ;;  %v1029_v37 = vshll.u32 %v708_v30, 16  ;;  %v842_v48 = vshrl.u32 %v685_v40, 16  ;;  %v845_v49 = vshll.u32 %v685_v40, 16  ;;  %v7078_v30 = vld [vmem:[%s7377_s26 + $0x3c] sm:$0xff] }
  0x4b   : > { %6436 = vmatmul.msk.bf16.gmra.mxu1 %vm464_vm1, %v1173_v38  ;;  %v1182_v38 = vpack.c.b16 %v1162_v29, %v1161_v28  ;;  %v830_v42 = vsel %vm7392_vm4, %v825_v31, %v829_v9  ;;  %v840_v43 = vsel %vm7392_vm4, %v835_v33, %v839_v32  ;;  %v1017_v44 = vrot.slane %v1016_v34, 4  ;;  %v712_v28 = vld [vmem:[%s7377_s26 + $0xa8] sm:$0xf] }
  0x4c   : > { %v1027_v45 = vrot.slane %v1026_v36, 4  ;;  %v1031_v46 = vrot.slane %v1029_v37, 5  ;;  %v851_v50 = vshll.u32 %v686_v41, 16  ;;  %v1147_v54 = vunpack.c.l.b16 %v830_v42 }
  0x4d   : > { %6428 = vmatmul.msk.bf16.gmra.mxu2 %vm464_vm1, %v7084_v52  ;;  %v709_v52 = vld [vmem:[%s7377_s26 + $0x9c] sm:$0xf]  ;;  %v1148_v55 = vunpack.c.l.b16 %v840_v43  ;;  %v1022_v56 = vsel %vm7392_vm4, %v1017_v44, %v1021_v25  ;;  %v844_v58 = vrot.slane %v842_v48, 4  ;;  %v847_v59 = vrot.slane %v845_v49, 5 }
  0x4e   : > { %6444 = vmatmul.msk.bf16.gmra.mxu3 %vm464_vm1, %v1181_v51  ;;  %v855_v51 = vshrl.u32 %v686_v41, 16  ;;  %v1032_v57 = vsel %vm7392_vm4, %v1027_v45, %v1031_v46  ;;  %v853_v60 = vrot.slane %v851_v50, 5  ;;  %v1034_v63 = vshrl.u32 %v709_v52, 16  ;;  %v690_v45 = vld [vmem:[%s7377_s26 + $0x50] sm:$0x1] }
  0x4f   : > { %v1037_v0 = vshll.u32 %v709_v52, 16  ;;  %v1047_v2 = vshrl.u32 %v710_v53, 16  ;;  %v1175_v3 = vpack.c.b16 %v1148_v55, %v1147_v54  ;;  %v1163_v4 = vunpack.c.l.b16 %v1022_v56 }
  0x50   : > { %v857_v61 = vrot.slane %v855_v51, 4  ;;  %v1164_v5 = vunpack.c.l.b16 %v1032_v57  ;;  %v848_v6 = vor.u32 %v847_v59, %v844_v58  ;;  %v861_v8 = vshll.u32 %v687_v62, 16 }
  0x51   : > { %6420 = vmatmul.msk.bf16.gmra.mxu0 %vm464_vm1, %v7076_v1  ;;  %v1043_v1 = vshll.u32 %v710_v53, 16  ;;  %v1036_v9 = vrot.slane %v1034_v63, 4  ;;  %v1039_v10 = vrot.slane %v1037_v0, 5  ;;  %v1049_v12 = vrot.slane %v1047_v2, 4  ;;  %v7087_v2 = vld [vmem:[%s7377_s26 + $0xa8] sm:$0xff] }
  0x52   : > { %v858_v7 = vor.u32 %v857_v61, %v853_v60  ;;  %v1183_v15 = vpack.c.b16 %v1164_v5, %v1163_v4  ;;  %v849_v17 = vrot.slane %v848_v6, 4  ;;  %v863_v18 = vrot.slane %v861_v8, 5  ;;  %v714_v61 = vld [vmem:[%s7377_s26 + $0xb0] sm:$0x1]  ;;  %v692_v4 = vld [vmem:[%s7377_s26 + $0x58] sm:$0xf] }
  0x53   : > { %v1045_v11 = vrot.slane %v1043_v1, 5  ;;  %v1040_v21 = vor.u32 %v1039_v10, %v1036_v9  ;;  %v1053_v23 = vshll.u32 %v711_v13, 16  ;;  %v866_v24 = vshrl.u32 %v688_v14, 16 }
  0x54   : > { %v859_v20 = vrot.slane %v858_v7, 4  ;;  %v869_v25 = vshll.u32 %v688_v14, 16  ;;  %v875_v26 = vshll.u32 %v689_v19, 16  ;;  %v854_v29 = vsel %vm7392_vm4, %v849_v17, %v853_v60  ;;  %v715_v7 = vld [vmem:[%s7377_s26 + $0xb4] sm:$0xf] }
  0x55   : > { %v1050_v22 = vor.u32 %v1049_v12, %v1045_v11  ;;  %v1041_v32 = vrot.slane %v1040_v21, 4  ;;  %v1055_v34 = vrot.slane %v1053_v23, 5  ;;  %v868_v36 = vrot.slane %v866_v24, 4 }
  0x56   : > { %v864_v31 = vsel %vm7392_vm4, %v859_v20, %v863_v18  ;;  %v871_v37 = vrot.slane %v869_v25, 5  ;;  %v1061_v40 = vshll.u32 %v712_v28, 16  ;;  %v877_v41 = vrot.slane %v875_v26, 5  ;;  %v693_v26 = vld [vmem:[%s7377_s26 + $0x5c] sm:$0x1] }
  0x57   : > { %v1051_v33 = vrot.slane %v1050_v22, 4  ;;  %v1149_v43 = vunpack.c.l.b16 %v854_v29  ;;  %v1150_v44 = vunpack.c.l.b16 %v864_v31  ;;  %v1046_v46 = vsel %vm7392_vm4, %v1041_v32, %v1045_v11  ;;  %v7079_v11 = vld [vmem:[%s7377_s26 + $0x48] sm:$0xff] }
  0x58   : > { %v872_v50 = vor.u32 %v871_v37, %v868_v36  ;;  %v1063_v52 = vrot.slane %v1061_v40, 5  ;;  %v885_v54 = vshll.u32 %v690_v45, 16  ;;  %v1165_v56 = vunpack.c.l.b16 %v1046_v46 }
  0x59   : > { %v1176_v55 = vpack.c.b16 %v1150_v44, %v1149_v43  ;;  %v1077_v6 = vshll.u32 %v714_v61, 16  ;;  %v899_v14 = vshll.u32 %v692_v4, 16  ;;  %v1082_v17 = vshrl.u32 %v715_v7, 16  ;;  %v1391_v61 = vld [vmem:[%s7377_s26] sm:$0xe] }
  0x5a   : > { %v873_v60 = vrot.slane %v872_v50, 4  ;;  %v887_v0 = vrot.slane %v885_v54, 5  ;;  %v1085_v18 = vshll.u32 %v715_v7, 16  ;;  %v7088_v50 = vld [vmem:[%s7377_s26 + $0xb4] sm:$0xff] }
  0x5b   : > { %6437 = vmatmul.msk.bf16.gmra.mxu1 %vm464_vm1, %v1174_v27  ;;  %v879_v27 = vshrl.u32 %v689_v19, 16  ;;  %v6774_v19 = vld [vmem:[%s9985_s1 + $0xc] sm:$0x3]  ;;  %v1079_v21 = vrot.slane %v1077_v6, 5  ;;  %v7542_v32 = vrot.slane %v899_v14, 5  ;;  %v6450_v6 = vrot.slane %v1391_v61, 9 }
  0x5c   : > { %v878_v8 = vsel %vm7392_vm4, %v873_v60, %v877_v41  ;;  %v3647_v22 = vsel %vm513_vm0, %v6774_v19, 0  ;;  %v1087_v36 = vrot.slane %v1085_v18, 5  ;;  %v6601_v61 = vld [vmem:[%s7377_s26 + $0x20] sm:$0x1] }
  0x5d   : > { %6429 = vmatmul.msk.bf16.gmra.mxu2 %vm464_vm1, %v7085_v39  ;;  %v1058_v39 = vshrl.u32 %v712_v28, 16  ;;  %v881_v42 = vrot.slane %v879_v27, 4  ;;  %v1151_v23 = vunpack.c.l.b16 %v878_v8  ;;  %v7268_v27 = vmov 0.0  }
  0x5e   : > { %6445 = vmatmul.msk.bf16.gmra.mxu3 %vm464_vm1, %v1182_v38  ;;  %v713_v38 = vld [vmem:[%s7377_s26 + $0xac] sm:$0xf]  ;;  %3656 = vmatpush.bf16.msra.mxu2 %v3647_v22  ;;  %303 = vst.msk [vmem:[#allocation2 + $0x80] sm:$0xff] %vm286_vm5, %v7268_v27 }
  0x5f   : > { %v1067_v48 = vshll.u32 %v713_v38, 16  ;;  %v1071_v49 = vshrl.u32 %v713_v38, 16  ;;  %v1060_v51 = vrot.slane %v1058_v39, 4  ;;  %v882_v53 = vor.u32 %v881_v42, %v877_v41  ;;  %287 = vst.msk [vmem:[#allocation2] sm:$0xff] %vm286_vm5, %v7268_v27  ;;  %v717_v39 = vld [vmem:[%s7377_s26 + $0xbc] sm:$0x1] }
  0x60   : > { %288 = vst.msk [vmem:[#allocation2 + $0x8] sm:$0xff] %vm286_vm5, %v7268_v27  ;;  %v909_v38 = vshll.u32 %v693_v26, 16 }
  0x61   : > { %6421 = vmatmul.msk.bf16.gmra.mxu0 %vm464_vm1, %v7077_v47  ;;  %v1056_v47 = vsel %vm7392_vm4, %v1051_v33, %v1055_v34  ;;  %v1069_v58 = vrot.slane %v1067_v48, 5  ;;  %v1073_v59 = vrot.slane %v1071_v49, 4  ;;  %v1064_v62 = vor.u32 %v1063_v52, %v1060_v51  ;;  %289 = vst.msk [vmem:[#allocation2 + $0x10] sm:$0xff] %vm286_vm5, %v7268_v27  ;;  %v1392_v48 = vld [vmem:[%s7377_s26 + $0x4] sm:$0xf] }
  0x62   : > { %v1166_v57 = vunpack.c.l.b16 %v1056_v47  ;;  %v883_v63 = vrot.slane %v882_v53, 4  ;;  %v1084_v34 = vrot.slane %v1082_v17, 4  ;;  %290 = vst.msk [vmem:[#allocation2 + $0x18] sm:$0xff] %vm286_vm5, %v7268_v27  ;;  %v1101_v49 = vshll.u32 %v717_v39, 16  ;;  %v6596_v52 = vld [vmem:[%s7377_s26 + $0xc] sm:$0xf] }
  0x63   : > { %v1074_v5 = vor.u32 %v1073_v59, %v1069_v58  ;;  %v1065_v9 = vrot.slane %v1064_v62, 4  ;;  %291 = vst.msk [vmem:[#allocation2 + $0x20] sm:$0xff] %vm286_vm5, %v7268_v27  ;;  %v911_v51 = vrot.slane %v909_v38, 5  ;;  %v2291_v62 = vshll.u32 %v6596_v52, 16 }
  0x64   : > { %v1184_v1 = vpack.c.b16 %v1166_v57, %v1165_v56  ;;  %v888_v10 = vsel %vm7392_vm4, %v883_v63, %v887_v0  ;;  %v1088_v47 = vor.u32 %v1087_v36, %v1084_v34  ;;  %292 = vst.msk [vmem:[#allocation2 + $0x28] sm:$0xff] %vm286_vm5, %v7268_v27  ;;  %v6597_v56 = vld [vmem:[%s7377_s26 + $0x10] sm:$0xf]  ;;  %v2288_v57 = vshrl.u32 %v6596_v52, 16  ;;  %v1393_v0 = vld [vmem:[%s7377_s26 + $0x8] sm:$0x1] }
  0x65   : > { %v1075_v20 = vrot.slane %v1074_v5, 4  ;;  %v1152_v24 = vunpack.c.l.b16 %v888_v10  ;;  %v1070_v25 = vsel %vm7392_vm4, %v1065_v9, %v1069_v58  ;;  %293 = vst.msk [vmem:[#allocation2 + $0x30] sm:$0xff] %vm286_vm5, %v7268_v27  ;;  %v1103_v63 = vrot.slane %v1101_v49, 5  ;;  %v6661_v36 = vld [vmem:[%s7377_s26 + $0xc] sm:$0xe] }
  0x66   : > { %v1167_v40 = vunpack.c.l.b16 %v1070_v25  ;;  %294 = vst.msk [vmem:[#allocation2 + $0x38] sm:$0xff] %vm286_vm5, %v7268_v27  ;;  %v1089_v60 = vrot.slane %v1088_v47, 4  ;;  %v2301_v8 = vshrl.u32 %v6597_v56, 16  ;;  %v1394_v49 = vld [vmem:[%s7377_s26 + $0xc] sm:$0xe] }
  0x67   : > { %v1080_v37 = vsel %vm7392_vm4, %v1075_v20, %v1079_v21  ;;  %v1177_v44 = vpack.c.b16 %v1152_v24, %v1151_v23  ;;  %295 = vst.msk [vmem:[#allocation2 + $0x40] sm:$0xff] %vm286_vm5, %v7268_v27  ;;  %v6662_v21 = vld [vmem:[%s7377_s26 + $0x10] sm:$0xf] }
  0x68   : > { %v1168_v45 = vunpack.c.l.b16 %v1080_v37  ;;  %296 = vst.msk [vmem:[#allocation2 + $0x48] sm:$0xff] %vm286_vm5, %v7268_v27  ;;  %v2303_v18 = vrot.slane %v2301_v8, 4  ;;  %v367_v8 = vld [vmem:[#allocation2 + $0x80] sm:$0xff] }
  0x69   : > { %297 = vst.msk [vmem:[#allocation2 + $0x50] sm:$0xff] %vm286_vm5, %v7268_v27 }
  0x6a   : > { %v1185_v58 = vpack.c.b16 %v1168_v45, %v1167_v40  ;;  %298 = vst.msk [vmem:[#allocation2 + $0x58] sm:$0xff] %vm286_vm5, %v7268_v27  ;;  %v6663_v40 = vld [vmem:[%s7377_s26 + $0x14] sm:$0x1] }
  0x6b   : > { %6438 = vmatmul.msk.bf16.gmra.mxu1 %vm464_vm1, %v1175_v3  ;;  %v691_v3 = vld [vmem:[%s7377_s26 + $0x54] sm:$0xf]  ;;  %299 = vst.msk [vmem:[#allocation2 + $0x60] sm:$0xff] %vm286_vm5, %v7268_v27 }
  0x6c   : > { %v890_v12 = vshrl.u32 %v691_v3, 16  ;;  %v893_v13 = vshll.u32 %v691_v3, 16  ;;  %v2293_v3 = vrot.slane %v2291_v62, 5  ;;  %300 = vst.msk [vmem:[#allocation2 + $0x68] sm:$0xff] %vm286_vm5, %v7268_v27 }
  0x6d   : > { %6430 = vmatmul.msk.bf16.gmra.mxu2 %vm464_vm1, %v7086_v16  ;;  %v903_v16 = vshrl.u32 %v692_v4, 16  ;;  %v2297_v4 = vshll.u32 %v6597_v56, 16  ;;  %301 = vst.msk [vmem:[#allocation2 + $0x70] sm:$0xff] %vm286_vm5, %v7268_v27  ;;  %v6600_v56 = vld [vmem:[%s7377_s26 + $0x1c] sm:$0xf] }
  0x6e   : > { %6446 = vmatmul.msk.bf16.gmra.mxu3 %vm464_vm1, %v1183_v15  ;;  %v716_v15 = vld [vmem:[%s7377_s26 + $0xb8] sm:$0xf]  ;;  %v892_v28 = vrot.slane %v890_v12, 4  ;;  %v895_v29 = vrot.slane %v893_v13, 5  ;;  %v6903_v13 = vld [vmem:[%s9985_s1 + $0xe] sm:$0x3] }
  0x6f   : > { %v1095_v31 = vshrl.u32 %v716_v15, 16  ;;  %v905_v33 = vrot.slane %v903_v16, 4  ;;  %v7080_v12 = vld [vmem:[%s7377_s26 + $0x54] sm:$0xff]  ;;  %v2299_v14 = vrot.slane %v2297_v4, 5  ;;  %v4365_v16 = vsel %vm513_vm0, %v6903_v13, 0  ;;  %302 = vst.msk [vmem:[#allocation2 + $0x78] sm:$0xff] %vm286_vm5, %v7268_v27 }
  0x70   : > { %v896_v41 = vor.u32 %v895_v29, %v892_v28  ;;  %4374 = vmatpush.bf16.msra.mxu3 %v4365_v16  ;;  %304 = vst.msk [vmem:[#allocation2 + $0x88] sm:$0xff] %vm286_vm5, %v7268_v27  ;;  %v2331_v13 = vshll.u32 %v6601_v61, 16 }
  0x71   : > { %6422 = vmatmul.msk.bf16.gmra.mxu0 %vm464_vm1, %v7078_v30  ;;  %v1091_v30 = vshll.u32 %v716_v15, 16  ;;  %v1097_v43 = vrot.slane %v1095_v31, 4  ;;  %v906_v46 = vor.u32 %v905_v33, %v7542_v32  ;;  %v2304_v22 = vor.u32 %v2303_v18, %v2299_v14  ;;  %305 = vst.msk [vmem:[#allocation2 + $0x90] sm:$0xff] %vm286_vm5, %v7268_v27 }
  0x72   : > { %v897_v53 = vrot.slane %v896_v41, 4  ;;  %306 = vst.msk [vmem:[#allocation2 + $0x98] sm:$0xff] %vm286_vm5, %v7268_v27  ;;  %v1395_v41 = vld [vmem:[%s7377_s26 + $0x10] sm:$0xf] }
  0x73   : > { %v7553_v42 = vrot.slane %v1091_v30, 5  ;;  %v907_v59 = vrot.slane %v906_v46, 4  ;;  %v2305_v30 = vrot.slane %v2304_v22, 4  ;;  %307 = vst.msk [vmem:[#allocation2 + $0xa0] sm:$0xff] %vm286_vm5, %v7268_v27  ;;  %v6599_v46 = vld [vmem:[%s7377_s26 + $0x18] sm:$0xf] }
  0x74   : > { %v902_v9 = vsel %vm7392_vm4, %v897_v53, %v7542_v32  ;;  %v3055_v32 = vrot.slane %v6662_v21, 5  ;;  %308 = vst.msk [vmem:[#allocation2 + $0xa8] sm:$0xff] %vm286_vm5, %v7268_v27  ;;  %v1396_v53 = vld [vmem:[%s7377_s26 + $0x14] sm:$0x1]  ;;  %v6665_v22 = vld [vmem:[%s7377_s26 + $0x1c] sm:$0xf] }
  0x75   : > { %v1098_v54 = vor.u32 %v1097_v43, %v7553_v42  ;;  %v912_v10 = vsel %vm7392_vm4, %v907_v59, %v911_v51  ;;  %v1153_v20 = vunpack.c.l.b16 %v902_v9  ;;  %v1094_v24 = vsel %vm7392_vm4, %v1089_v60, %v7553_v42  ;;  %309 = vst.msk [vmem:[#allocation2 + $0xb0] sm:$0xff] %vm286_vm5, %v7268_v27 }
  0x76   : > { %v1154_v23 = vunpack.c.l.b16 %v912_v10  ;;  %v1169_v33 = vunpack.c.l.b16 %v1094_v24  ;;  %310 = vst.msk [vmem:[#allocation2 + $0xb8] sm:$0xff] %vm286_vm5, %v7268_v27  ;;  %v3057_v45 = vrot.slane %v3055_v32, 4  ;;  %v2312_v51 = vshrl.u32 %v6599_v46, 16 }
  0x77   : > { %v1099_v5 = vrot.slane %v1098_v54, 4  ;;  %311 = vst.msk [vmem:[#allocation2 + $0xc0] sm:$0xff] %vm286_vm5, %v7268_v27  ;;  %v6451_v60 = vrot.slane %v1394_v49, 9 }
  0x78   : > { %v1178_v37 = vpack.c.b16 %v1154_v23, %v1153_v20  ;;  %312 = vst.msk [vmem:[#allocation2 + $0xc8] sm:$0xff] %vm286_vm5, %v7268_v27 }
  0x79   : > { %v1104_v25 = vsel %vm7392_vm4, %v1099_v5, %v1103_v63  ;;  %313 = vst.msk [vmem:[#allocation2 + $0xd0] sm:$0xff] %vm286_vm5, %v7268_v27  ;;  %v351_v63 = vld [vmem:[#allocation2] sm:$0xff] }
  0x7a   : > { %v1170_v34 = vunpack.c.l.b16 %v1104_v25  ;;  %314 = vst.msk [vmem:[#allocation2 + $0xd8] sm:$0xff] %vm286_vm5, %v7268_v27  ;;  %v2333_v25 = vrot.slane %v2331_v13, 5 }
  0x7b   : > { %6439 = vmatmul.msk.bf16.gmra.mxu1 %vm464_vm1, %v1176_v55  ;;  %v1492_v55 = vrot.slane %v1392_v48, 5  ;;  %v3058_v48 = vrot.slane %v6663_v40, 5  ;;  %315 = vst.msk [vmem:[#allocation2 + $0xe0] sm:$0xff] %vm286_vm5, %v7268_v27 }
  0x7c   : > { %v1186_v47 = vpack.c.b16 %v1170_v34, %v1169_v33  ;;  %316 = vst.msk [vmem:[#allocation2 + $0xe8] sm:$0xff] %vm286_vm5, %v7268_v27  ;;  %v6666_v34 = vld [vmem:[%s7377_s26 + $0x20] sm:$0x1] }
  0x7d   : > { %6431 = vmatmul.msk.bf16.gmra.mxu2 %vm464_vm1, %v7087_v2  ;;  %v6598_v2 = vld [vmem:[%s7377_s26 + $0x14] sm:$0x1]  ;;  %v1494_v7 = vrot.slane %v1492_v55, 4  ;;  %v1493_v26 = vsel %vm7598_vm8, %v6450_v6, %v1492_v55  ;;  %317 = vst.msk [vmem:[#allocation2 + $0xf0] sm:$0xff] %vm286_vm5, %v7268_v27  ;;  %v3059_v4 = vsel %vm7598_vm8, %v3057_v45, %v3058_v48  ;;  %v6984_v6 = vld [vmem:[%s9985_s1 + $0x10] sm:$0x3] }
  0x7e   : > { %6447 = vmatmul.msk.bf16.gmra.mxu3 %vm464_vm1, %v1184_v1  ;;  %v2290_v1 = vrot.slane %v2288_v57, 4  ;;  %v2307_v19 = vshll.u32 %v6598_v2, 16  ;;  %v1636_v38 = vunpack.c.l.b16 %v1493_v26  ;;  %v2315_v57 = vshll.u32 %v6599_v46, 16  ;;  %318 = vst.msk [vmem:[#allocation2 + $0xf8] sm:$0xff] %vm286_vm5, %v7268_v27  ;;  %v6602_v46 = vld [vmem:[%s7377_s26 + $0x24] sm:$0xf] }
  0x7f   : > { %v2321_v2 = vshll.u32 %v6600_v56, 16  ;;  %v4859_v10 = vsel %vm513_vm0, %v6984_v6, 0  ;;  %v3200_v21 = vunpack.c.l.b16 %v3059_v4  ;;  %v7089_v48 = vld [vmem:[%s7377_s26 + $0xc] sm:$0xff] }
  0x80   : > { %v2294_v17 = vor.u32 %v2293_v3, %v2290_v1  ;;  %v2309_v31 = vrot.slane %v2307_v19, 5  ;;  %v2317_v62 = vrot.slane %v2315_v57, 5  ;;  %v1502_v1 = vrot.slane %v1396_v53, 5  ;;  %4868 = vmatpush.bf16.msra.mxu0 %v4859_v10 }
  0x81   : > { %6423 = vmatmul.msk.bf16.gmra.mxu0 %vm464_vm1, %v7079_v11  ;;  %v1495_v11 = vrot.slane %v1393_v0, 5  ;;  %v2325_v3 = vshrl.u32 %v6600_v56, 16 }
  0x82   : > { %v2295_v29 = vrot.slane %v2294_v17, 4  ;;  %v2310_v43 = vsel %vm7392_vm4, %v2305_v30, %v2309_v31  ;;  %v6664_v30 = vld [vmem:[%s7377_s26 + $0x18] sm:$0xe]  ;;  %v3062_v31 = vrot.slane %v6665_v22, 5 }
  0x83   : > { %v1496_v28 = vsel %vm7598_vm8, %v1494_v7, %v1495_v11  ;;  %v2706_v55 = vunpack.c.l.b16 %v2310_v43  ;;  %v2323_v11 = vrot.slane %v2321_v2, 5  ;;  %v6710_v45 = vrot.slane %v6664_v30, 9  ;;  %v353_v2 = vld [vmem:[#allocation2 + $0x10] sm:$0xff] }
  0x84   : > { %v1637_v39 = vunpack.c.l.b16 %v1496_v28  ;;  %v2300_v42 = vsel %vm7392_vm4, %v2295_v29, %v2299_v14  ;;  %v352_v29 = vld [vmem:[#allocation2 + $0x8] sm:$0xff]  ;;  %v3064_v49 = vrot.slane %v3062_v31, 4 }
  0x85   : > { %v2705_v54 = vunpack.c.l.b16 %v2300_v42 }
  0x86   : > { %v1668_v52 = vpack.c.b16 %v1637_v39, %v1636_v38  ;;  %v368_v39 = vld [vmem:[#allocation2 + $0x88] sm:$0xff] }
  0x87   : > { %v2737_v5 = vpack.c.b16 %v2706_v55, %v2705_v54  ;;  %v1397_v55 = vld [vmem:[%s7377_s26 + $0x18] sm:$0xe] }
  0x8b   : > { %6440 = vmatmul.msk.bf16.gmra.mxu1 %vm464_vm1, %v1177_v44  ;;  %v6709_v44 = vrot.slane %v6661_v36, 9  ;;  %v1398_v36 = vld [vmem:[%s7377_s26 + $0x1c] sm:$0xf] }
  0x8d   : > { %6432 = vmatmul.msk.bf16.gmra.mxu2 %vm464_vm1, %v7088_v50  ;;  %v1499_v50 = vrot.slane %v1395_v41, 5  ;;  %v3056_v59 = vsel %vm7598_vm8, %v6709_v44, %v3055_v32  ;;  %v5723_v32 = vld [vmem:[%s9986_s2] sm:$0x3] }
  0x8e   : > { %6448 = vmatmul.msk.bf16.gmra.mxu3 %vm464_vm1, %v1185_v58  ;;  %v2314_v58 = vrot.slane %v2312_v51, 4  ;;  %v3199_v27 = vunpack.c.l.b16 %v3056_v59  ;;  %v1506_v51 = vrot.slane %v1398_v36, 5  ;;  %v2339_v59 = vshll.u32 %v6602_v46, 16  ;;  %v7715_v36 = vld [vmem:[%s7377_s26 + $0x28] sm:$0xf] }
  0x8f   : > { %v1501_v0 = vrot.slane %v1499_v50, 4  ;;  %v1500_v17 = vsel %vm7598_vm8, %v6451_v60, %v1499_v50  ;;  %v3065_v50 = vrot.slane %v6666_v34, 5  ;;  %v1399_v60 = vld [vmem:[%s7377_s26 + $0x20] sm:$0x1]  ;;  %v6668_v34 = vld [vmem:[%s7377_s26 + $0x28] sm:$0xf] }
  0x90   : > { %v2318_v7 = vor.u32 %v2317_v62, %v2314_v58  ;;  %v1638_v26 = vunpack.c.l.b16 %v1500_v17  ;;  %v3231_v33 = vpack.c.b16 %v3200_v21, %v3199_v27  ;;  %v6603_v58 = vld [vmem:[%s7377_s26 + $0x28] sm:$0xf]  ;;  %v6604_v62 = vld [vmem:[%s7377_s26 + $0x2c] sm:$0x1] }
  0x91   : > { %6424 = vmatmul.msk.bf16.gmra.mxu0 %vm464_vm1, %v7080_v12  ;;  %v2327_v12 = vrot.slane %v2325_v3, 4  ;;  %v1503_v18 = vsel %vm7598_vm8, %v1501_v0, %v1502_v1  ;;  %v3063_v1 = vsel %vm7598_vm8, %v6710_v45, %v3062_v31  ;;  %v6452_v3 = vrot.slane %v1397_v55, 9 }
  0x92   : > { %v2319_v23 = vrot.slane %v2318_v7, 4  ;;  %v1639_v28 = vunpack.c.l.b16 %v1503_v18  ;;  %v2345_v4 = vshll.u32 %v6603_v58, 16  ;;  %v3066_v6 = vsel %vm7598_vm8, %v3064_v49, %v3065_v50  ;;  %v6669_v50 = vld [vmem:[%s7377_s26 + $0x2c] sm:$0x1] }
  0x93   : > { %v2328_v19 = vor.u32 %v2327_v12, %v2323_v11  ;;  %v1508_v7 = vrot.slane %v1506_v51, 4  ;;  %v369_v12 = vld [vmem:[#allocation2 + $0x90] sm:$0xff]  ;;  %v2355_v18 = vshll.u32 %v6604_v62, 16  ;;  %v3201_v21 = vunpack.c.l.b16 %v3063_v1 }
  0x94   : > { %v2324_v41 = vsel %vm7392_vm4, %v2319_v23, %v2323_v11  ;;  %v1669_v43 = vpack.c.b16 %v1639_v28, %v1638_v26  ;;  %v1507_v22 = vsel %vm7598_vm8, %v6452_v3, %v1506_v51  ;;  %v3202_v28 = vunpack.c.l.b16 %v3066_v6  ;;  %v1400_v51 = vld [vmem:[%s7377_s26 + $0x24] sm:$0xe] }
  0x95   : > { %v2329_v24 = vrot.slane %v2328_v19, 4  ;;  %v2707_v56 = vunpack.c.l.b16 %v2324_v41  ;;  %v6667_v41 = vld [vmem:[%s7377_s26 + $0x24] sm:$0xe]  ;;  %v3069_v45 = vrot.slane %v6668_v34, 5 }
  0x97   : > { %v2334_v42 = vsel %vm7392_vm4, %v2329_v24, %v2333_v25  ;;  %v3071_v3 = vrot.slane %v3069_v45, 4 }
  0x98   : > { %v2708_v57 = vunpack.c.l.b16 %v2334_v42 }
  0x9b   : > { %6441 = vmatmul.msk.bf16.gmra.mxu1 %vm464_vm1, %v1178_v37  ;;  %v5821_v37 = vsel %vm513_vm0, %v5723_v32, 0  ;;  %v2357_v32 = vrot.slane %v2355_v18, 5 }
  0x9c   : > { %5830 = vmatpush.bf16.msra.mxu1 %v5821_v37  ;;  %v1640_v37 = vunpack.c.l.b16 %v1507_v22 }
  0x9d   : > { %6467 = vmatmul.msk.bf16.vlgmr.msrb.gmra.mxu2 %vm464_vm1, %v1668_v52  ;;  %v2336_v52 = vshrl.u32 %v6602_v46, 16  ;;  %v1513_v46 = vrot.slane %v7715_v36, 5 }
  0x9e   : > { %6449 = vmatmul.msk.bf16.gmra.mxu3 %vm464_vm1, %v1186_v47  ;;  %v526_v9 = vpop.f32.mrf.mxu0 }
  0x9f   : > { %v606_v14 = vadd.f32 %v526_v9, %v351_v63  ;;  %v2338_v61 = vrot.slane %v2336_v52, 4  ;;  %v2341_v63 = vrot.slane %v2339_v59, 5  ;;  %v2738_v9 = vpack.c.b16 %v2708_v57, %v2707_v56  ;;  %v6605_v52 = vld [vmem:[%s7377_s26 + $0x30] sm:$0xf] }
  0xa0   : > { %v566_v16 = vpop.f32.mrf.mxu2  ;;  %v6711_v57 = vrot.slane %v6667_v41, 9  ;;  %v2360_v59 = vshrl.u32 %v6605_v52, 16  ;;  %v1515_v6 = vrot.slane %v1513_v46, 4 }
  0xa1   : > { %v622_v20 = vadd.f32 %v566_v16, %v367_v8  ;;  %638 = vst.msk [vmem:[#allocation2] sm:$0xff] %vm286_vm5, %v606_v14  ;;  %6645 = vmatmul.msk.bf16.vlgmr.msrb.gmra.mxu0 %vm464_vm1, %v2737_v5  ;;  %v2349_v5 = vshrl.u32 %v6603_v58, 16  ;;  %v1509_v8 = vrot.slane %v1399_v60, 5  ;;  %v2342_v14 = vor.u32 %v2341_v63, %v2338_v61  ;;  %v6606_v58 = vld [vmem:[%s7377_s26 + $0x34] sm:$0xf]  ;;  %v7090_v63 = vld [vmem:[%s7377_s26 + $0x18] sm:$0xff] }
  0xa2   : > { %v2347_v16 = vrot.slane %v2345_v4, 5  ;;  %v3072_v4 = vrot.slane %v6669_v50, 5  ;;  %v7754_v50 = vld [vmem:[%s7377_s26 + $0x34] sm:$0xf] }
  0xa3   : > { %654 = vst.msk [vmem:[#allocation2 + $0x80] sm:$0xff] %vm286_vm5, %v622_v20  ;;  %v2351_v17 = vrot.slane %v2349_v5, 4  ;;  %v2343_v30 = vrot.slane %v2342_v14, 4  ;;  %v6453_v5 = vrot.slane %v1400_v51, 9  ;;  %v2373_v14 = vshrl.u32 %v6606_v58, 16 }
  0xa4   : > { %v3073_v22 = vsel %vm7598_vm8, %v3071_v3, %v3072_v4 }
  0xa5   : > { %v2352_v23 = vor.u32 %v2351_v17, %v2347_v16 }
  0xa6   : > { %v528_v40 = vpop.f32.mrf.mxu0 }
  0xa7   : > { %v607_v44 = vadd.f32 %v528_v40, %v352_v29  ;;  %v1510_v29 = vsel %vm7598_vm8, %v1508_v7, %v1509_v8  ;;  %v2353_v31 = vrot.slane %v2352_v23, 4  ;;  %v3232_v40 = vpack.c.b16 %v3202_v28, %v3201_v21  ;;  %v371_v21 = vld [vmem:[#allocation2 + $0xa0] sm:$0xff] }
  0xa8   : > { %v1247_v38 = vpop.f32.mrf.mxu1  ;;  %v568_v47 = vpop.f32.mrf.mxu2  ;;  %v1105_v53 = vld [vmem:[#allocation2] sm:$0xff]  ;;  %v2362_v7 = vrot.slane %v2360_v59, 4  ;;  %v2363_v8 = vshll.u32 %v6605_v52, 16  ;;  %v372_v52 = vld [vmem:[#allocation2 + $0xa8] sm:$0xff]  ;;  %v6672_v59 = vld [vmem:[%s7377_s26 + $0x38] sm:$0x1] }
  0xa9   : > { %v623_v54 = vadd.f32 %v568_v47, %v368_v39  ;;  %639 = vst.msk [vmem:[#allocation2 + $0x8] sm:$0xff] %vm286_vm5, %v607_v44  ;;  %v1327_v0 = vadd.f32 %v1247_v38, %v1105_v53  ;;  %v1641_v38 = vunpack.c.l.b16 %v1510_v29  ;;  %v354_v39 = vld [vmem:[#allocation2 + $0x18] sm:$0xff]  ;;  %v2348_v47 = vsel %vm7392_vm4, %v2343_v30, %v2347_v16 }
  0xaa   : > { %v1121_v10 = vld [vmem:[#allocation2 + $0x80] sm:$0xff]  ;;  %v2709_v1 = vunpack.c.l.b16 %v2348_v47  ;;  %v3070_v16 = vsel %vm7598_vm8, %v6711_v57, %v3069_v45  ;;  %v2365_v18 = vrot.slane %v2363_v8, 5  ;;  %v356_v47 = vld [vmem:[#allocation2 + $0x28] sm:$0xff]  ;;  %v1403_v8 = vld [vmem:[%s7377_s26 + $0x30] sm:$0xe] }
  0xab   : > { %6726 = vmatmul.msk.bf16.vlgmr.msrb.gmra.mxu1 %vm464_vm1, %v3231_v33  ;;  %655 = vst.msk [vmem:[#allocation2 + $0x88] sm:$0xff] %vm286_vm5, %v623_v54  ;;  %v1670_v56 = vpack.c.b16 %v1641_v38, %v1640_v37 }
  0xac   : > { %1359 = vst.msk [vmem:[#allocation2] sm:$0xff] %vm286_vm5, %v1327_v0  ;;  %v1402_v0 = vld [vmem:[%s7377_s26 + $0x2c] sm:$0x1]  ;;  %v2366_v28 = vor.u32 %v2365_v18, %v2362_v7  ;;  %v7091_v7 = vld [vmem:[%s7377_s26 + $0x24] sm:$0xff] }
  0xad   : > { %6468 = vmatmul.msk.bf16.gmra.mxu2 %vm464_vm1, %v1669_v43  ;;  %v370_v43 = vld [vmem:[#allocation2 + $0x98] sm:$0xff] }
  0xae   : > { %6580 = vmatmul.msk.bf16.vlgmr.msrb.gmra.mxu3 %vm464_vm1, %v7089_v48  ;;  %v531_v13 = vpop.f32.mrf.mxu0  ;;  %v2358_v48 = vsel %vm7392_vm4, %v2353_v31, %v2357_v32  ;;  %v3203_v31 = vunpack.c.l.b16 %v3070_v16  ;;  %v1514_v32 = vsel %vm7598_vm8, %v6453_v5, %v1513_v46  ;;  %v2367_v41 = vrot.slane %v2366_v28, 4  ;;  %v6671_v46 = vld [vmem:[%s7377_s26 + $0x34] sm:$0xf] }
  0xaf   : > { %v608_v19 = vadd.f32 %v531_v13, %v353_v2  ;;  %v2710_v2 = vunpack.c.l.b16 %v2358_v48  ;;  %v6607_v13 = vld [vmem:[%s7377_s26 + $0x38] sm:$0x1] }
  0xb0   : > { %v1249_v11 = vpop.f32.mrf.mxu1  ;;  %v571_v27 = vpop.f32.mrf.mxu2  ;;  %v1106_v24 = vld [vmem:[#allocation2 + $0x8] sm:$0xff] }
  0xb1   : > { %v1287_v20 = vpop.f32.mrf.mxu3  ;;  %v624_v26 = vadd.f32 %v571_v27, %v369_v12  ;;  %640 = vst.msk [vmem:[#allocation2 + $0x10] sm:$0xff] %vm286_vm5, %v608_v19  ;;  %6646 = vmatmul.msk.bf16.gmra.mxu0 %vm464_vm1, %v2738_v9  ;;  %v1328_v33 = vadd.f32 %v1249_v11, %v1106_v24  ;;  %v2369_v9 = vshll.u32 %v6606_v58, 16  ;;  %v355_v11 = vld [vmem:[#allocation2 + $0x20] sm:$0xff]  ;;  %v1516_v12 = vrot.slane %v1402_v0, 5 }
  0xb2   : > { %v1343_v25 = vadd.f32 %v1287_v20, %v1121_v10  ;;  %v1122_v53 = vld [vmem:[#allocation2 + $0x88] sm:$0xff]  ;;  %v2739_v17 = vpack.c.b16 %v2710_v2, %v2709_v1  ;;  %v2375_v24 = vrot.slane %v2373_v14, 4  ;;  %v1520_v1 = vrot.slane %v7754_v50, 5  ;;  %v1405_v14 = vld [vmem:[%s7377_s26 + $0x38] sm:$0x1] }
  0xb3   : > { %656 = vst.msk [vmem:[#allocation2 + $0x90] sm:$0xff] %vm286_vm5, %v624_v26  ;;  %v2371_v19 = vrot.slane %v2369_v9, 5 }
  0xb4   : > { %1375 = vst.msk [vmem:[#allocation2 + $0x80] sm:$0xff] %vm286_vm5, %v1343_v25  ;;  %v2379_v25 = vshll.u32 %v6607_v13, 16  ;;  %v3079_v13 = vrot.slane %v6672_v59, 5  ;;  %v6675_v59 = vld [vmem:[%s7377_s26 + $0x44] sm:$0x1] }
  0xb5   : > { %1360 = vst.msk [vmem:[#allocation2 + $0x8] sm:$0xff] %vm286_vm5, %v1328_v33  ;;  %v1517_v33 = vsel %vm7598_vm8, %v1515_v6, %v1516_v12  ;;  %v2376_v34 = vor.u32 %v2375_v24, %v2371_v19  ;;  %v1523_v24 = vrot.slane %v1405_v14, 5  ;;  %v1408_v14 = vld [vmem:[%s7377_s26 + $0x44] sm:$0x1] }
  0xb6   : > { %v533_v44 = vpop.f32.mrf.mxu0  ;;  %v1643_v45 = vunpack.c.l.b16 %v1517_v33 }
  0xb7   : > { %v609_v49 = vadd.f32 %v533_v44, %v354_v39  ;;  %v3204_v39 = vunpack.c.l.b16 %v3073_v22  ;;  %v1642_v44 = vunpack.c.l.b16 %v1514_v32 }
  0xb8   : > { %v1252_v42 = vpop.f32.mrf.mxu1  ;;  %v573_v55 = vpop.f32.mrf.mxu2  ;;  %v1107_v60 = vld [vmem:[#allocation2 + $0x10] sm:$0xff] }
  0xb9   : > { %v1289_v54 = vpop.f32.mrf.mxu3  ;;  %v625_v62 = vadd.f32 %v573_v55, %v370_v43  ;;  %641 = vst.msk [vmem:[#allocation2 + $0x18] sm:$0xff] %vm286_vm5, %v609_v49  ;;  %v1329_v10 = vadd.f32 %v1252_v42, %v1107_v60  ;;  %v2377_v42 = vrot.slane %v2376_v34, 4  ;;  %v2381_v43 = vrot.slane %v2379_v25, 5  ;;  %v6670_v49 = vld [vmem:[%s7377_s26 + $0x30] sm:$0xe] }
  0xba   : > { %v1344_v61 = vadd.f32 %v1289_v54, %v1122_v53  ;;  %v1123_v20 = vld [vmem:[#allocation2 + $0x90] sm:$0xff]  ;;  %v3233_v48 = vpack.c.b16 %v3204_v39, %v3203_v31  ;;  %v3076_v54 = vrot.slane %v6671_v46, 5  ;;  %v2372_v55 = vsel %vm7392_vm4, %v2367_v41, %v2371_v19  ;;  %v6608_v60 = vld [vmem:[%s7377_s26 + $0x3c] sm:$0xf] }
  0xbb   : > { %6727 = vmatmul.msk.bf16.gmra.mxu1 %vm464_vm1, %v3232_v40  ;;  %657 = vst.msk [vmem:[#allocation2 + $0x98] sm:$0xff] %vm286_vm5, %v625_v62  ;;  %v1671_v57 = vpack.c.b16 %v1643_v45, %v1642_v44  ;;  %v6712_v0 = vrot.slane %v6670_v49, 9  ;;  %v2384_v2 = vshrl.u32 %v6608_v60, 16  ;;  %v2387_v3 = vshll.u32 %v6608_v60, 16 }
  0xbc   : > { %1376 = vst.msk [vmem:[#allocation2 + $0x88] sm:$0xff] %vm286_vm5, %v1344_v61  ;;  %v2711_v9 = vunpack.c.l.b16 %v2372_v55  ;;  %v3078_v12 = vrot.slane %v3076_v54, 4  ;;  %v7793_v55 = vld [vmem:[%s7377_s26 + $0x40] sm:$0xf] }
  0xbd   : > { %6469 = vmatmul.msk.bf16.gmra.mxu2 %vm464_vm1, %v1670_v56  ;;  %1361 = vst.msk [vmem:[#allocation2 + $0x10] sm:$0xff] %vm286_vm5, %v1329_v10  ;;  %v2382_v56 = vsel %vm7392_vm4, %v2377_v42, %v2381_v43  ;;  %v2386_v16 = vrot.slane %v2384_v2, 4  ;;  %v3077_v19 = vsel %vm7598_vm8, %v6712_v0, %v3076_v54  ;;  %v7783_v43 = vld [vmem:[%s7377_s26 + $0x40] sm:$0xf]  ;;  %v1527_v2 = vrot.slane %v7793_v55, 5 }
  0xbe   : > { %6581 = vmatmul.msk.bf16.gmra.mxu3 %vm464_vm1, %v7090_v63  ;;  %v536_v23 = vpop.f32.mrf.mxu0  ;;  %v2712_v10 = vunpack.c.l.b16 %v2382_v56  ;;  %v3080_v31 = vsel %vm7598_vm8, %v3078_v12, %v3079_v13  ;;  %v3205_v41 = vunpack.c.l.b16 %v3077_v19  ;;  %v3083_v54 = vrot.slane %v7783_v43, 5 }
  0xbf   : > { %v610_v26 = vadd.f32 %v536_v23, %v355_v11  ;;  %v6609_v11 = vld [vmem:[%s7377_s26 + $0x40] sm:$0xf]  ;;  %v1522_v23 = vrot.slane %v1520_v1, 4 }
  0xc0   : > { %v1254_v27 = vpop.f32.mrf.mxu1  ;;  %v576_v30 = vpop.f32.mrf.mxu2  ;;  %v1108_v36 = vld [vmem:[#allocation2 + $0x18] sm:$0xff]  ;;  %v2393_v22 = vshll.u32 %v6609_v11, 16  ;;  %v2740_v25 = vpack.c.b16 %v2712_v10, %v2711_v9  ;;  %v6611_v9 = vld [vmem:[%s7377_s26 + $0x48] sm:$0xf] }
  0xc1   : > { %v1292_v29 = vpop.f32.mrf.mxu3  ;;  %v626_v38 = vadd.f32 %v576_v30, %v371_v21  ;;  %642 = vst.msk [vmem:[#allocation2 + $0x20] sm:$0xff] %vm286_vm5, %v610_v26  ;;  %6647 = vmatmul.msk.bf16.gmra.mxu0 %vm464_vm1, %v2739_v17  ;;  %v1330_v40 = vadd.f32 %v1254_v27, %v1108_v36  ;;  %v2389_v17 = vrot.slane %v2387_v3, 5  ;;  %v6454_v27 = vrot.slane %v1403_v8, 9  ;;  %v6610_v21 = vld [vmem:[%s7377_s26 + $0x44] sm:$0x1]  ;;  %v373_v30 = vld [vmem:[#allocation2 + $0xb0] sm:$0xff] }
  0xc2   : > { %v1345_v37 = vadd.f32 %v1292_v29, %v1123_v20  ;;  %v1124_v61 = vld [vmem:[#allocation2 + $0x98] sm:$0xff]  ;;  %v357_v20 = vld [vmem:[#allocation2 + $0x30] sm:$0xff]  ;;  %v2397_v26 = vshrl.u32 %v6609_v11, 16  ;;  %v2395_v34 = vrot.slane %v2393_v22, 5  ;;  %v2403_v36 = vshll.u32 %v6610_v21, 16 }
  0xc3   : > { %658 = vst.msk [vmem:[#allocation2 + $0xa0] sm:$0xff] %vm286_vm5, %v626_v38  ;;  %v2390_v33 = vor.u32 %v2389_v17, %v2386_v16  ;;  %v1521_v42 = vsel %vm7598_vm8, %v6454_v27, %v1520_v1  ;;  %v1406_v8 = vld [vmem:[%s7377_s26 + $0x3c] sm:$0xe]  ;;  %v2408_v16 = vshrl.u32 %v6611_v9, 16  ;;  %v2411_v17 = vshll.u32 %v6611_v9, 16  ;;  %v7092_v27 = vld [vmem:[%s7377_s26 + $0x30] sm:$0xff] }
  0xc4   : > { %1377 = vst.msk [vmem:[#allocation2 + $0x90] sm:$0xff] %vm286_vm5, %v1345_v37  ;;  %v2399_v38 = vrot.slane %v2397_v26, 4  ;;  %v1644_v56 = vunpack.c.l.b16 %v1521_v42  ;;  %v1530_v26 = vrot.slane %v1408_v14, 5  ;;  %v6614_v14 = vld [vmem:[%s7377_s26 + $0x54] sm:$0xf] }
  0xc5   : > { %1362 = vst.msk [vmem:[#allocation2 + $0x18] sm:$0xff] %vm286_vm5, %v1330_v40  ;;  %v2391_v49 = vrot.slane %v2390_v33, 4 }
  0xc6   : > { %v538_v53 = vpop.f32.mrf.mxu0  ;;  %v2400_v50 = vor.u32 %v2399_v38, %v2395_v34 }
  0xc7   : > { %v611_v58 = vadd.f32 %v538_v53, %v356_v47  ;;  %v3206_v47 = vunpack.c.l.b16 %v3080_v31  ;;  %v6673_v53 = vld [vmem:[%s7377_s26 + $0x3c] sm:$0xe]  ;;  %v2396_v3 = vsel %vm7392_vm4, %v2391_v49, %v2395_v34  ;;  %v359_v31 = vld [vmem:[#allocation2 + $0x40] sm:$0xff] }
  0xc8   : > { %v1257_v51 = vpop.f32.mrf.mxu1  ;;  %v578_v63 = vpop.f32.mrf.mxu2  ;;  %v1109_v4 = vld [vmem:[#allocation2 + $0x20] sm:$0xff]  ;;  %v2401_v60 = vrot.slane %v2400_v50, 4  ;;  %v6713_v1 = vrot.slane %v6673_v53, 9  ;;  %v2713_v21 = vunpack.c.l.b16 %v2396_v3  ;;  %v6676_v3 = vld [vmem:[%s7377_s26 + $0x48] sm:$0xe] }
  0xc9   : > { %v1294_v62 = vpop.f32.mrf.mxu3  ;;  %v627_v6 = vadd.f32 %v578_v63, %v372_v52  ;;  %643 = vst.msk [vmem:[#allocation2 + $0x28] sm:$0xff] %vm286_vm5, %v611_v58  ;;  %v1331_v18 = vadd.f32 %v1257_v51, %v1109_v4  ;;  %v2405_v51 = vrot.slane %v2403_v36, 5  ;;  %v358_v58 = vld [vmem:[#allocation2 + $0x38] sm:$0xff] }
  0xca   : > { %v1346_v5 = vadd.f32 %v1294_v62, %v1124_v61  ;;  %v1125_v28 = vld [vmem:[#allocation2 + $0xa0] sm:$0xff]  ;;  %v3234_v61 = vpack.c.b16 %v3206_v47, %v3205_v41  ;;  %v374_v63 = vld [vmem:[#allocation2 + $0xb8] sm:$0xff]  ;;  %v3084_v36 = vsel %vm7598_vm8, %v6713_v1, %v3083_v54  ;;  %v360_v1 = vld [vmem:[#allocation2 + $0x48] sm:$0xff] }
  0xcb   : > { %6728 = vmatmul.msk.bf16.gmra.mxu1 %vm464_vm1, %v3233_v48  ;;  %659 = vst.msk [vmem:[#allocation2 + $0xa8] sm:$0xff] %vm286_vm5, %v627_v6  ;;  %v1524_v48 = vsel %vm7598_vm8, %v1522_v23, %v1523_v24  ;;  %v2406_v4 = vsel %vm7392_vm4, %v2401_v60, %v2405_v51  ;;  %v3085_v6 = vrot.slane %v3083_v54, 4  ;;  %v6612_v23 = vld [vmem:[%s7377_s26 + $0x4c] sm:$0xf]  ;;  %v6455_v24 = vrot.slane %v1406_v8, 9  ;;  %v375_v41 = vld [vmem:[#allocation2 + $0xc0] sm:$0xff] }
  0xcc   : > { %1378 = vst.msk [vmem:[#allocation2 + $0x98] sm:$0xff] %vm286_vm5, %v1346_v5  ;;  %v2714_v22 = vunpack.c.l.b16 %v2406_v4  ;;  %v2417_v33 = vshll.u32 %v6612_v23, 16  ;;  %v2421_v34 = vshrl.u32 %v6612_v23, 16  ;;  %v7831_v4 = vld [vmem:[%s7377_s26 + $0x4c] sm:$0xf] }
  0xcd   : > { %6470 = vmatmul.msk.bf16.gmra.mxu2 %vm464_vm1, %v1671_v57  ;;  %1363 = vst.msk [vmem:[#allocation2 + $0x20] sm:$0xff] %vm286_vm5, %v1331_v18  ;;  %v1645_v57 = vunpack.c.l.b16 %v1524_v48  ;;  %v1528_v50 = vsel %vm7598_vm8, %v6455_v24, %v1527_v2 }
  0xce   : > { %6582 = vmatmul.msk.bf16.gmra.mxu3 %vm464_vm1, %v7091_v7  ;;  %v541_v32 = vpop.f32.mrf.mxu0  ;;  %v3086_v7 = vrot.slane %v6675_v59, 5  ;;  %v2741_v38 = vpack.c.b16 %v2714_v22, %v2713_v21  ;;  %v2435_v21 = vshll.u32 %v6614_v14, 16 }
  0xcf   : > { %v612_v37 = vadd.f32 %v541_v32, %v357_v20  ;;  %v1672_v13 = vpack.c.b16 %v1645_v57, %v1644_v56  ;;  %v6613_v32 = vld [vmem:[%s7377_s26 + $0x50] sm:$0x1]  ;;  %v3207_v56 = vunpack.c.l.b16 %v3084_v36 }
  0xd0   : > { %v1259_v29 = vpop.f32.mrf.mxu1  ;;  %v581_v40 = vpop.f32.mrf.mxu2  ;;  %v1110_v44 = vld [vmem:[#allocation2 + $0x28] sm:$0xff]  ;;  %v2437_v36 = vrot.slane %v2435_v21, 5 }
  0xd1   : > { %v1297_v39 = vpop.f32.mrf.mxu3  ;;  %v628_v46 = vadd.f32 %v581_v40, %v373_v30  ;;  %644 = vst.msk [vmem:[#allocation2 + $0x30] sm:$0xff] %vm286_vm5, %v612_v37  ;;  %6648 = vmatmul.msk.bf16.gmra.mxu0 %vm464_vm1, %v2740_v25  ;;  %v1332_v52 = vadd.f32 %v1259_v29, %v1110_v44  ;;  %v1529_v25 = vrot.slane %v1527_v2, 4  ;;  %v2413_v29 = vrot.slane %v2411_v17, 5 }
  0xd2   : > { %v1347_v45 = vadd.f32 %v1297_v39, %v1125_v28  ;;  %v1126_v10 = vld [vmem:[#allocation2 + $0xa8] sm:$0xff]  ;;  %v2410_v28 = vrot.slane %v2408_v16, 4  ;;  %v3087_v37 = vsel %vm7598_vm8, %v3085_v6, %v3086_v7  ;;  %v2419_v44 = vrot.slane %v2417_v33, 5  ;;  %v1411_v33 = vld [vmem:[%s7377_s26 + $0x50] sm:$0x1] }
  0xd3   : > { %660 = vst.msk [vmem:[#allocation2 + $0xb0] sm:$0xff] %vm286_vm5, %v628_v46  ;;  %v2427_v46 = vshll.u32 %v6613_v32, 16  ;;  %v1531_v51 = vsel %vm7598_vm8, %v1529_v25, %v1530_v26  ;;  %v3208_v57 = vunpack.c.l.b16 %v3087_v37  ;;  %v376_v6 = vld [vmem:[#allocation2 + $0xc8] sm:$0xff]  ;;  %v7093_v25 = vld [vmem:[%s7377_s26 + $0x3c] sm:$0xff] }
  0xd4   : > { %1379 = vst.msk [vmem:[#allocation2 + $0xa0] sm:$0xff] %vm286_vm5, %v1347_v45  ;;  %v2414_v43 = vor.u32 %v2413_v29, %v2410_v28  ;;  %v2423_v45 = vrot.slane %v2421_v34, 4  ;;  %v1409_v26 = vld [vmem:[%s7377_s26 + $0x48] sm:$0xe] }
  0xd5   : > { %1364 = vst.msk [vmem:[#allocation2 + $0x28] sm:$0xff] %vm286_vm5, %v1332_v52  ;;  %v2429_v60 = vrot.slane %v2427_v46, 5  ;;  %v3235_v2 = vpack.c.b16 %v3208_v57, %v3207_v56 }
  0xd6   : > { %v543_v0 = vpop.f32.mrf.mxu0  ;;  %v2424_v52 = vor.u32 %v2423_v45, %v2419_v44 }
  0xd7   : > { %v613_v5 = vadd.f32 %v543_v0, %v358_v58  ;;  %v2415_v58 = vrot.slane %v2414_v43, 4  ;;  %v6677_v0 = vld [vmem:[%s7377_s26 + $0x4c] sm:$0xf] }
  0xd8   : > { %v1262_v62 = vpop.f32.mrf.mxu1  ;;  %v583_v12 = vpop.f32.mrf.mxu2  ;;  %v1111_v18 = vld [vmem:[#allocation2 + $0x30] sm:$0xff]  ;;  %v2425_v59 = vrot.slane %v2424_v52, 4  ;;  %v3090_v8 = vrot.slane %v6677_v0, 5 }
  0xd9   : > { %v1299_v11 = vpop.f32.mrf.mxu3  ;;  %v629_v20 = vadd.f32 %v583_v12, %v374_v63  ;;  %645 = vst.msk [vmem:[#allocation2 + $0x38] sm:$0xff] %vm286_vm5, %v613_v5  ;;  %v1333_v30 = vadd.f32 %v1262_v62, %v1111_v18  ;;  %v1646_v62 = vunpack.c.l.b16 %v1528_v50  ;;  %v1647_v63 = vunpack.c.l.b16 %v1531_v51 }
  0xda   : > { %v1348_v19 = vadd.f32 %v1299_v11, %v1126_v10  ;;  %v1127_v39 = vld [vmem:[#allocation2 + $0xb0] sm:$0xff]  ;;  %v2420_v9 = vsel %vm7392_vm4, %v2415_v58, %v2419_v44  ;;  %v2430_v10 = vsel %vm7392_vm4, %v2425_v59, %v2429_v60  ;;  %v1537_v44 = vrot.slane %v1411_v33, 5 }
  0xdb   : > { %6729 = vmatmul.msk.bf16.gmra.mxu1 %vm464_vm1, %v3234_v61  ;;  %661 = vst.msk [vmem:[#allocation2 + $0xb8] sm:$0xff] %vm286_vm5, %v629_v20  ;;  %v1673_v11 = vpack.c.b16 %v1647_v63, %v1646_v62  ;;  %v1534_v20 = vrot.slane %v7831_v4, 5  ;;  %v2715_v28 = vunpack.c.l.b16 %v2420_v9  ;;  %v2716_v29 = vunpack.c.l.b16 %v2430_v10 }
  0xdc   : > { %1380 = vst.msk [vmem:[#allocation2 + $0xa8] sm:$0xff] %vm286_vm5, %v1348_v19  ;;  %v6714_v19 = vrot.slane %v6676_v3, 9 }
  0xdd   : > { %6471 = vmatmul.msk.bf16.gmra.mxu2 %vm464_vm1, %v1672_v13  ;;  %1365 = vst.msk [vmem:[#allocation2 + $0x30] sm:$0xff] %vm286_vm5, %v1333_v30  ;;  %v6678_v13 = vld [vmem:[%s7377_s26 + $0x50] sm:$0x1]  ;;  %v6615_v30 = vld [vmem:[%s7377_s26 + $0x58] sm:$0xf]  ;;  %v1536_v43 = vrot.slane %v1534_v20, 4  ;;  %v2742_v45 = vpack.c.b16 %v2716_v29, %v2715_v28 }
  0xde   : > { %6583 = vmatmul.msk.bf16.gmra.mxu3 %vm464_vm1, %v7092_v27  ;;  %v546_v42 = vpop.f32.mrf.mxu0  ;;  %v2432_v27 = vshrl.u32 %v6614_v14, 16  ;;  %v3093_v32 = vrot.slane %v6678_v13, 5  ;;  %v2445_v46 = vshrl.u32 %v6615_v30, 16  ;;  %v7869_v13 = vld [vmem:[%s7377_s26 + $0x58] sm:$0xf] }
  0xdf   : > { %v614_v47 = vadd.f32 %v546_v42, %v359_v31  ;;  %v3092_v31 = vrot.slane %v3090_v8, 4  ;;  %v2441_v42 = vshll.u32 %v6615_v30, 16 }
  0xe0   : > { %v1264_v40 = vpop.f32.mrf.mxu1  ;;  %v586_v49 = vpop.f32.mrf.mxu2  ;;  %v1112_v53 = vld [vmem:[#allocation2 + $0x38] sm:$0xff]  ;;  %v2434_v34 = vrot.slane %v2432_v27, 4  ;;  %v2447_v56 = vrot.slane %v2445_v46, 4 }
  0xe1   : > { %v1302_v48 = vpop.f32.mrf.mxu3  ;;  %v630_v55 = vadd.f32 %v586_v49, %v375_v41  ;;  %646 = vst.msk [vmem:[#allocation2 + $0x40] sm:$0xff] %vm286_vm5, %v614_v47  ;;  %6649 = vmatmul.msk.bf16.gmra.mxu0 %vm464_vm1, %v2741_v38  ;;  %v1334_v61 = vadd.f32 %v1264_v40, %v1112_v53  ;;  %v3091_v38 = vsel %vm7598_vm8, %v6714_v19, %v3090_v8  ;;  %v6456_v40 = vrot.slane %v1409_v26, 9  ;;  %v6616_v41 = vld [vmem:[%s7377_s26 + $0x5c] sm:$0x1]  ;;  %v377_v49 = vld [vmem:[#allocation2 + $0xd0] sm:$0xff] }
  0xe2   : > { %v1349_v54 = vadd.f32 %v1302_v48, %v1127_v39  ;;  %v1128_v16 = vld [vmem:[#allocation2 + $0xb8] sm:$0xff]  ;;  %v361_v39 = vld [vmem:[#allocation2 + $0x50] sm:$0xff]  ;;  %v3094_v50 = vsel %vm7598_vm8, %v3092_v31, %v3093_v32  ;;  %v2438_v52 = vor.u32 %v2437_v36, %v2434_v34  ;;  %v2443_v53 = vrot.slane %v2441_v42, 5  ;;  %v6617_v26 = vld [vmem:[%s7377_s26 + $0x60] sm:$0xf] }
  0xe3   : > { %662 = vst.msk [vmem:[#allocation2 + $0xc0] sm:$0xff] %vm286_vm5, %v630_v55  ;;  %v3209_v59 = vunpack.c.l.b16 %v3091_v38  ;;  %v1535_v60 = vsel %vm7598_vm8, %v6456_v40, %v1534_v20  ;;  %v6681_v8 = vld [vmem:[%s7377_s26 + $0x5c] sm:$0x1]  ;;  %v1412_v32 = vld [vmem:[%s7377_s26 + $0x54] sm:$0xe]  ;;  %v2456_v33 = vshrl.u32 %v6617_v26, 16 }
  0xe4   : > { %1381 = vst.msk [vmem:[#allocation2 + $0xb0] sm:$0xff] %vm286_vm5, %v1349_v54  ;;  %v2451_v54 = vshll.u32 %v6616_v41, 16  ;;  %v2439_v3 = vrot.slane %v2438_v52, 4  ;;  %v2448_v4 = vor.u32 %v2447_v56, %v2443_v53  ;;  %v1648_v10 = vunpack.c.l.b16 %v1535_v60  ;;  %v6618_v42 = vld [vmem:[%s7377_s26 + $0x64] sm:$0xf] }
  0xe5   : > { %1366 = vst.msk [vmem:[#allocation2 + $0x38] sm:$0xff] %vm286_vm5, %v1334_v61  ;;  %v6680_v61 = vld [vmem:[%s7377_s26 + $0x58] sm:$0xf]  ;;  %v2459_v34 = vshll.u32 %v6617_v26, 16  ;;  %v2469_v52 = vshrl.u32 %v6618_v42, 16 }
  0xe6   : > { %v548_v7 = vpop.f32.mrf.mxu0  ;;  %v3097_v9 = vrot.slane %v6680_v61, 5  ;;  %v2449_v14 = vrot.slane %v2448_v4, 4  ;;  %v2444_v27 = vsel %vm7392_vm4, %v2439_v3, %v2443_v53 }
  0xe7   : > { %v615_v12 = vadd.f32 %v548_v7, %v360_v1  ;;  %v3210_v1 = vunpack.c.l.b16 %v3094_v50  ;;  %v6679_v7 = vld [vmem:[%s7377_s26 + $0x54] sm:$0xe]  ;;  %v2717_v40 = vunpack.c.l.b16 %v2444_v27  ;;  %v2461_v46 = vrot.slane %v2459_v34, 5  ;;  %v6619_v50 = vld [vmem:[%s7377_s26 + $0x68] sm:$0x1] }
  0xe8   : > { %v1267_v5 = vpop.f32.mrf.mxu1  ;;  %v588_v18 = vpop.f32.mrf.mxu2  ;;  %v1113_v22 = vld [vmem:[#allocation2 + $0x40] sm:$0xff]  ;;  %v6715_v20 = vrot.slane %v6679_v7, 9 }
  0xe9   : > { %v1304_v17 = vpop.f32.mrf.mxu3  ;;  %v631_v24 = vadd.f32 %v588_v18, %v376_v6  ;;  %647 = vst.msk [vmem:[#allocation2 + $0x48] sm:$0xff] %vm286_vm5, %v615_v12  ;;  %v1335_v37 = vadd.f32 %v1267_v5, %v1113_v22  ;;  %v2453_v5 = vrot.slane %v2451_v54, 5  ;;  %v362_v12 = vld [vmem:[#allocation2 + $0x58] sm:$0xff]  ;;  %v6682_v27 = vld [vmem:[%s7377_s26 + $0x60] sm:$0xe] }
  0xea   : > { %v1350_v23 = vadd.f32 %v1304_v17, %v1128_v16  ;;  %v1129_v47 = vld [vmem:[#allocation2 + $0xc0] sm:$0xff]  ;;  %v3236_v16 = vpack.c.b16 %v3210_v1, %v3209_v59  ;;  %v378_v18 = vld [vmem:[#allocation2 + $0xd8] sm:$0xff] }
  0xeb   : > { %6730 = vmatmul.msk.bf16.gmra.mxu1 %vm464_vm1, %v3235_v2  ;;  %663 = vst.msk [vmem:[#allocation2 + $0xc8] sm:$0xff] %vm286_vm5, %v631_v24  ;;  %v1538_v2 = vsel %vm7598_vm8, %v1536_v43, %v1537_v44  ;;  %v2454_v21 = vsel %vm7392_vm4, %v2449_v14, %v2453_v5  ;;  %v3100_v24 = vrot.slane %v6681_v8, 5  ;;  %v1414_v43 = vld [vmem:[%s7377_s26 + $0x5c] sm:$0x1]  ;;  %v6457_v44 = vrot.slane %v1412_v32, 9  ;;  %v379_v59 = vld [vmem:[#allocation2 + $0xe0] sm:$0xff] }
  0xec   : > { %1382 = vst.msk [vmem:[#allocation2 + $0xb8] sm:$0xff] %vm286_vm5, %v1350_v23  ;;  %v3099_v23 = vrot.slane %v3097_v9, 4  ;;  %v2718_v41 = vunpack.c.l.b16 %v2454_v21  ;;  %v6716_v32 = vrot.slane %v6682_v27, 9 }
  0xed   : > { %6472 = vmatmul.msk.bf16.gmra.mxu2 %vm464_vm1, %v1673_v11  ;;  %1367 = vst.msk [vmem:[#allocation2 + $0x40] sm:$0xff] %vm286_vm5, %v1335_v37  ;;  %v1649_v11 = vunpack.c.l.b16 %v1538_v2 }
  0xee   : > { %6584 = vmatmul.msk.bf16.gmra.mxu3 %vm464_vm1, %v7093_v25  ;;  %v551_v51 = vpop.f32.mrf.mxu0  ;;  %v1541_v25 = vrot.slane %v7869_v13, 5  ;;  %v3101_v53 = vsel %vm7598_vm8, %v3099_v23, %v3100_v24  ;;  %v2743_v56 = vpack.c.b16 %v2718_v41, %v2717_v40  ;;  %v380_v24 = vld [vmem:[#allocation2 + $0xe8] sm:$0xff] }
  0xef   : > { %v616_v55 = vadd.f32 %v551_v51, %v361_v39  ;;  %v1674_v31 = vpack.c.b16 %v1649_v11, %v1648_v10  ;;  %v7094_v39 = vld [vmem:[%s7377_s26 + $0x48] sm:$0xff]  ;;  %v2465_v51 = vshll.u32 %v6618_v42, 16  ;;  %v3212_v10 = vunpack.c.l.b16 %v3101_v53  ;;  %v6622_v53 = vld [vmem:[%s7377_s26 + $0x74] sm:$0x1] }
  0xf0   : > { %v1269_v48 = vpop.f32.mrf.mxu1  ;;  %v591_v58 = vpop.f32.mrf.mxu2  ;;  %v1114_v62 = vld [vmem:[#allocation2 + $0x48] sm:$0xff]  ;;  %v1543_v54 = vrot.slane %v1541_v25, 4  ;;  %v1542_v5 = vsel %vm7598_vm8, %v6457_v44, %v1541_v25 }
  0xf1   : > { %v1307_v57 = vpop.f32.mrf.mxu3  ;;  %v632_v0 = vadd.f32 %v591_v58, %v377_v49  ;;  %648 = vst.msk [vmem:[#allocation2 + $0x50] sm:$0xff] %vm286_vm5, %v616_v55  ;;  %6650 = vmatmul.msk.bf16.gmra.mxu0 %vm464_vm1, %v2742_v45  ;;  %v1336_v6 = vadd.f32 %v1269_v48, %v1114_v62  ;;  %v2458_v45 = vrot.slane %v2456_v33, 4  ;;  %v3098_v48 = vsel %vm7598_vm8, %v6715_v20, %v3097_v9  ;;  %v363_v49 = vld [vmem:[#allocation2 + $0x60] sm:$0xff]  ;;  %v364_v20 = vld [vmem:[#allocation2 + $0x68] sm:$0xff] }
  0xf2   : > { %v1351_v63 = vadd.f32 %v1307_v57, %v1129_v47  ;;  %v1130_v28 = vld [vmem:[#allocation2 + $0xc8] sm:$0xff]  ;;  %v1544_v55 = vrot.slane %v1414_v43, 5  ;;  %v2467_v62 = vrot.slane %v2465_v51, 5  ;;  %v3211_v4 = vunpack.c.l.b16 %v3098_v48 }
  0xf3   : > { %664 = vst.msk [vmem:[#allocation2 + $0xd0] sm:$0xff] %vm286_vm5, %v632_v0  ;;  %v2462_v61 = vor.u32 %v2461_v46, %v2458_v45  ;;  %v2475_v0 = vshll.u32 %v6619_v50, 16  ;;  %v6620_v33 = vld [vmem:[%s7377_s26 + $0x6c] sm:$0xf]  ;;  %v7095_v45 = vld [vmem:[%s7377_s26 + $0x54] sm:$0xff] }
  0xf4   : > { %1383 = vst.msk [vmem:[#allocation2 + $0xc0] sm:$0xff] %vm286_vm5, %v1351_v63  ;;  %v2471_v63 = vrot.slane %v2469_v52, 4  ;;  %v1545_v11 = vsel %vm7598_vm8, %v1543_v54, %v1544_v55  ;;  %v3237_v21 = vpack.c.b16 %v3212_v10, %v3211_v4  ;;  %v2480_v41 = vshrl.u32 %v6620_v33, 16  ;;  %v1417_v46 = vld [vmem:[%s7377_s26 + $0x68] sm:$0x1] }
  0xf5   : > { %1368 = vst.msk [vmem:[#allocation2 + $0x48] sm:$0xff] %vm286_vm5, %v1336_v6  ;;  %v2477_v14 = vrot.slane %v2475_v0, 5  ;;  %v2483_v55 = vshll.u32 %v6620_v33, 16  ;;  %v6687_v33 = vld [vmem:[%s7377_s26 + $0x74] sm:$0x1] }
  0xf6   : > { %v553_v19 = vpop.f32.mrf.mxu0  ;;  %v2472_v6 = vor.u32 %v2471_v63, %v2467_v62  ;;  %v2482_v54 = vrot.slane %v2480_v41, 4 }
  0xf7   : > { %v617_v22 = vadd.f32 %v553_v19, %v362_v12  ;;  %v2463_v12 = vrot.slane %v2462_v61, 4  ;;  %v1651_v19 = vunpack.c.l.b16 %v1545_v11  ;;  %v2485_v0 = vrot.slane %v2483_v55, 5  ;;  %v7096_v55 = vld [vmem:[%s7377_s26 + $0x60] sm:$0xff] }
  0xf8   : > { %v1272_v17 = vpop.f32.mrf.mxu1  ;;  %v593_v30 = vpop.f32.mrf.mxu2  ;;  %v1115_v36 = vld [vmem:[#allocation2 + $0x50] sm:$0xff]  ;;  %v2473_v13 = vrot.slane %v2472_v6, 4 }
  0xf9   : > { %v1309_v29 = vpop.f32.mrf.mxu3  ;;  %v633_v38 = vadd.f32 %v593_v30, %v378_v18  ;;  %649 = vst.msk [vmem:[#allocation2 + $0x58] sm:$0xff] %vm286_vm5, %v617_v22  ;;  %v1337_v47 = vadd.f32 %v1272_v17, %v1115_v36  ;;  %v6683_v17 = vld [vmem:[%s7377_s26 + $0x64] sm:$0xf]  ;;  %v1650_v18 = vunpack.c.l.b16 %v1542_v5  ;;  %v2486_v10 = vor.u32 %v2485_v0, %v2482_v54 }
  0xfa   : > { %v1352_v37 = vadd.f32 %v1309_v29, %v1130_v28  ;;  %v1131_v57 = vld [vmem:[#allocation2 + $0xd0] sm:$0xff]  ;;  %v7905_v22 = vld [vmem:[%s7377_s26 + $0x64] sm:$0xf]  ;;  %v3104_v26 = vrot.slane %v6683_v17, 5  ;;  %v2468_v28 = vsel %vm7392_vm4, %v2463_v12, %v2467_v62  ;;  %v2478_v29 = vsel %vm7392_vm4, %v2473_v13, %v2477_v14 }
  0xfb   : > { %6731 = vmatmul.msk.bf16.gmra.mxu1 %vm464_vm1, %v3236_v16  ;;  %665 = vst.msk [vmem:[#allocation2 + $0xd8] sm:$0xff] %vm286_vm5, %v633_v38  ;;  %v1675_v38 = vpack.c.b16 %v1651_v19, %v1650_v18  ;;  %v1548_v40 = vrot.slane %v7905_v22, 5  ;;  %v2720_v48 = vunpack.c.l.b16 %v2478_v29  ;;  %v366_v29 = vld [vmem:[#allocation2 + $0x78] sm:$0xff] }
  0xfc   : > { %1384 = vst.msk [vmem:[#allocation2 + $0xc8] sm:$0xff] %vm286_vm5, %v1352_v37  ;;  %v3106_v50 = vrot.slane %v3104_v26, 4  ;;  %v3105_v62 = vsel %vm7598_vm8, %v6716_v32, %v3104_v26 }
  0xfd   : > { %6473 = vmatmul.msk.bf16.gmra.mxu2 %vm464_vm1, %v1674_v31  ;;  %1369 = vst.msk [vmem:[#allocation2 + $0x50] sm:$0xff] %vm286_vm5, %v1337_v47  ;;  %v6684_v31 = vld [vmem:[%s7377_s26 + $0x68] sm:$0x1]  ;;  %v2719_v47 = vunpack.c.l.b16 %v2468_v28  ;;  %v3213_v13 = vunpack.c.l.b16 %v3105_v62  ;;  %v6625_v62 = vld [vmem:[%s7377_s26 + $0x80] sm:$0x1] }
  0xfe   : > { %6585 = vmatmul.msk.bf16.gmra.mxu3 %vm464_vm1, %v7094_v39  ;;  %v556_v60 = vpop.f32.mrf.mxu0  ;;  %v1415_v39 = vld [vmem:[%s7377_s26 + $0x60] sm:$0xe]  ;;  %v3107_v51 = vrot.slane %v6684_v31, 5 }
  0xff   : > { %v618_v1 = vadd.f32 %v556_v60, %v363_v49  ;;  %v6621_v49 = vld [vmem:[%s7377_s26 + $0x70] sm:$0xf]  ;;  %v6458_v52 = vrot.slane %v1415_v39, 9  ;;  %v2744_v63 = vpack.c.b16 %v2720_v48, %v2719_v47 }
 0x100   : > { %v1274_v58 = vpop.f32.mrf.mxu1  ;;  %v596_v3 = vpop.f32.mrf.mxu2  ;;  %v1116_v7 = vld [vmem:[#allocation2 + $0x58] sm:$0xff]  ;;  %v2489_v60 = vshll.u32 %v6621_v49, 16  ;;  %v2493_v61 = vshrl.u32 %v6621_v49, 16  ;;  %v3108_v4 = vsel %vm7598_vm8, %v3106_v50, %v3107_v51  ;;  %v3114_v49 = vrot.slane %v6687_v33, 5 }
 0x101   : > { %v1312_v2 = vpop.f32.mrf.mxu3  ;;  %v634_v9 = vadd.f32 %v596_v3, %v379_v59  ;;  %650 = vst.msk [vmem:[#allocation2 + $0x60] sm:$0xff] %vm286_vm5, %v618_v1  ;;  %6651 = vmatmul.msk.bf16.gmra.mxu0 %vm464_vm1, %v2743_v56  ;;  %v1338_v16 = vadd.f32 %v1274_v58, %v1116_v7  ;;  %v1550_v58 = vrot.slane %v1548_v40, 4  ;;  %v1551_v59 = vrot.slane %v1417_v46, 5  ;;  %v381_v3 = vld [vmem:[#allocation2 + $0xf0] sm:$0xff]  ;;  %v6689_v33 = vld [vmem:[%s7377_s26 + $0x7c] sm:$0xf] }
 0x102   : > { %v1353_v8 = vadd.f32 %v1312_v2, %v1131_v57  ;;  %v1132_v34 = vld [vmem:[#allocation2 + $0xd8] sm:$0xff]  ;;  %v365_v57 = vld [vmem:[#allocation2 + $0x70] sm:$0xff]  ;;  %v2491_v6 = vrot.slane %v2489_v60, 5  ;;  %v2495_v7 = vrot.slane %v2493_v61, 4  ;;  %v1549_v14 = vsel %vm7598_vm8, %v6458_v52, %v1548_v40 }
 0x103   : > { %666 = vst.msk [vmem:[#allocation2 + $0xe0] sm:$0xff] %vm286_vm5, %v634_v9  ;;  %v3214_v27 = vunpack.c.l.b16 %v3108_v4  ;;  %v1652_v26 = vunpack.c.l.b16 %v1549_v14  ;;  %v1420_v60 = vld [vmem:[%s7377_s26 + $0x74] sm:$0x1] }
 0x104   : > { %1385 = vst.msk [vmem:[#allocation2 + $0xd0] sm:$0xff] %vm286_vm5, %v1353_v8  ;;  %v2499_v8 = vshll.u32 %v6622_v53, 16  ;;  %v2496_v17 = vor.u32 %v2495_v7, %v2491_v6  ;;  %v1558_v7 = vrot.slane %v1420_v60, 5 }
 0x105   : > { %1370 = vst.msk [vmem:[#allocation2 + $0x58] sm:$0xff] %vm286_vm5, %v1338_v16  ;;  %v1552_v16 = vsel %vm7598_vm8, %v1550_v58, %v1551_v59  ;;  %v3238_v32 = vpack.c.b16 %v3214_v27, %v3213_v13  ;;  %v6624_v59 = vld [vmem:[%s7377_s26 + $0x7c] sm:$0xf] }
 0x106   : > { %v558_v25 = vpop.f32.mrf.mxu0  ;;  %v1653_v28 = vunpack.c.l.b16 %v1552_v16  ;;  %v2513_v4 = vshll.u32 %v6624_v59, 16  ;;  %v2523_v16 = vshll.u32 %v6625_v62, 16  ;;  %v6627_v62 = vld [vmem:[%s7377_s26 + $0x88] sm:$0xf] }
 0x107   : > { %v619_v30 = vadd.f32 %v558_v25, %v364_v20  ;;  %v2501_v25 = vrot.slane %v2499_v8, 5 }
 0x108   : > { %v1277_v23 = vpop.f32.mrf.mxu1  ;;  %v598_v37 = vpop.f32.mrf.mxu2  ;;  %v1117_v42 = vld [vmem:[#allocation2 + $0x60] sm:$0xff]  ;;  %v1676_v41 = vpack.c.b16 %v1653_v28, %v1652_v26  ;;  %v2515_v13 = vrot.slane %v2513_v4, 5 }
 0x109   : > { %v1314_v36 = vpop.f32.mrf.mxu3  ;;  %v635_v44 = vadd.f32 %v598_v37, %v380_v24  ;;  %651 = vst.msk [vmem:[#allocation2 + $0x68] sm:$0xff] %vm286_vm5, %v619_v30  ;;  %v1339_v56 = vadd.f32 %v1277_v23, %v1117_v42  ;;  %v2487_v23 = vrot.slane %v2486_v10, 4  ;;  %v2497_v24 = vrot.slane %v2496_v17, 4  ;;  %v6685_v30 = vld [vmem:[%s7377_s26 + $0x6c] sm:$0xe]  ;;  %v382_v37 = vld [vmem:[#allocation2 + $0xf8] sm:$0xff] }
 0x10a   : > { %v1354_v43 = vadd.f32 %v1314_v36, %v1132_v34  ;;  %v1133_v1 = vld [vmem:[#allocation2 + $0xe0] sm:$0xff]  ;;  %v1419_v34 = vld [vmem:[%s7377_s26 + $0x70] sm:$0xf] }
 0x10b   : > { %6732 = vmatmul.msk.bf16.gmra.mxu1 %vm464_vm1, %v3237_v21  ;;  %667 = vst.msk [vmem:[#allocation2 + $0xe8] sm:$0xff] %vm286_vm5, %v635_v44  ;;  %v6686_v21 = vld [vmem:[%s7377_s26 + $0x70] sm:$0xf]  ;;  %v2492_v39 = vsel %vm7392_vm4, %v2487_v23, %v2491_v6  ;;  %v2502_v40 = vsel %vm7392_vm4, %v2497_v24, %v2501_v25  ;;  %v6623_v44 = vld [vmem:[%s7377_s26 + $0x78] sm:$0xf]  ;;  %v1555_v50 = vrot.slane %v1419_v34, 5 }
 0x10c   : > { %1386 = vst.msk [vmem:[#allocation2 + $0xd8] sm:$0xff] %vm286_vm5, %v1354_v43  ;;  %v3111_v31 = vrot.slane %v6686_v21, 5  ;;  %v6717_v43 = vrot.slane %v6685_v30, 9  ;;  %v2504_v51 = vshrl.u32 %v6623_v44, 16  ;;  %v2722_v58 = vunpack.c.l.b16 %v2502_v40 }
 0x10d   : > { %6474 = vmatmul.msk.bf16.gmra.mxu2 %vm464_vm1, %v1675_v38  ;;  %1371 = vst.msk [vmem:[#allocation2 + $0x60] sm:$0xff] %vm286_vm5, %v1339_v56  ;;  %v1418_v56 = vld [vmem:[%s7377_s26 + $0x6c] sm:$0xe]  ;;  %v2507_v0 = vshll.u32 %v6623_v44, 16  ;;  %v1557_v6 = vrot.slane %v1555_v50, 4 }
 0x10e   : > { %6586 = vmatmul.msk.bf16.gmra.mxu3 %vm464_vm1, %v7095_v45  ;;  %v561_v5 = vpop.f32.mrf.mxu0  ;;  %v3113_v48 = vrot.slane %v3111_v31, 4  ;;  %v3112_v61 = vsel %vm7598_vm8, %v6717_v43, %v3111_v31 }
 0x10f   : > { %v620_v9 = vadd.f32 %v561_v5, %v365_v57  ;;  %v2721_v57 = vunpack.c.l.b16 %v2492_v39  ;;  %v2517_v5 = vshrl.u32 %v6624_v59, 16  ;;  %v3215_v27 = vunpack.c.l.b16 %v3112_v61  ;;  %v1422_v39 = vld [vmem:[%s7377_s26 + $0x7c] sm:$0xf]  ;;  %v1423_v59 = vld [vmem:[%s7377_s26 + $0x80] sm:$0x1] }
 0x110   : > { %v1279_v2 = vpop.f32.mrf.mxu1  ;;  %v601_v12 = vpop.f32.mrf.mxu2  ;;  %v1118_v18 = vld [vmem:[#allocation2 + $0x68] sm:$0xff]  ;;  %v1559_v28 = vsel %vm7598_vm8, %v1557_v6, %v1558_v7  ;;  %v1565_v6 = vrot.slane %v1423_v59, 5  ;;  %v2537_v7 = vshll.u32 %v6627_v62, 16 }
 0x111   : > { %v1317_v11 = vpop.f32.mrf.mxu3  ;;  %v636_v20 = vadd.f32 %v601_v12, %v381_v3  ;;  %652 = vst.msk [vmem:[#allocation2 + $0x70] sm:$0xff] %vm286_vm5, %v620_v9  ;;  %6652 = vmatmul.msk.bf16.gmra.mxu0 %vm464_vm1, %v2744_v63  ;;  %v1340_v22 = vadd.f32 %v1279_v2, %v1118_v18  ;;  %v2506_v63 = vrot.slane %v2504_v51, 4  ;;  %v3115_v2 = vsel %vm7598_vm8, %v3113_v48, %v3114_v49 }
 0x112   : > { %v1355_v19 = vadd.f32 %v1317_v11, %v1133_v1  ;;  %v1134_v45 = vld [vmem:[#allocation2 + $0xe8] sm:$0xff]  ;;  %v6459_v3 = vrot.slane %v1418_v56, 9  ;;  %v2745_v8 = vpack.c.b16 %v2722_v58, %v2721_v57  ;;  %v2509_v9 = vrot.slane %v2507_v0, 5 }
 0x113   : > { %668 = vst.msk [vmem:[#allocation2 + $0xf0] sm:$0xff] %vm286_vm5, %v636_v20  ;;  %v2519_v14 = vrot.slane %v2517_v5, 4  ;;  %v3216_v21 = vunpack.c.l.b16 %v3115_v2  ;;  %v7097_v58 = vld [vmem:[%s7377_s26 + $0x6c] sm:$0xff] }
 0x114   : > { %1387 = vst.msk [vmem:[#allocation2 + $0xe0] sm:$0xff] %vm286_vm5, %v1355_v19  ;;  %v2510_v17 = vor.u32 %v2509_v9, %v2506_v63  ;;  %v1602_v19 = vld [vmem:[#allocation2] sm:$0xff]  ;;  %v6628_v2 = vld [vmem:[%s7377_s26 + $0x8c] sm:$0x1] }
 0x115   : > { %1372 = vst.msk [vmem:[#allocation2 + $0x68] sm:$0xff] %vm286_vm5, %v1340_v22  ;;  %v1556_v22 = vsel %vm7598_vm8, %v6459_v3, %v1555_v50  ;;  %v2520_v23 = vor.u32 %v2519_v14, %v2515_v13 }
 0x116   : > { %v563_v38 = vpop.f32.mrf.mxu0  ;;  %v2511_v30 = vrot.slane %v2510_v17, 4  ;;  %v1654_v34 = vunpack.c.l.b16 %v1556_v22  ;;  %v2539_v17 = vrot.slane %v2537_v7, 5  ;;  %v1604_v22 = vld [vmem:[#allocation2 + $0x10] sm:$0xff] }
 0x117   : > { %v621_v42 = vadd.f32 %v563_v38, %v366_v29  ;;  %v2521_v31 = vrot.slane %v2520_v23, 4  ;;  %v6688_v38 = vld [vmem:[%s7377_s26 + $0x78] sm:$0xe] }
 0x118   : > { %v1282_v36 = vpop.f32.mrf.mxu1  ;;  %v603_v47 = vpop.f32.mrf.mxu2  ;;  %v1119_v52 = vld [vmem:[#allocation2 + $0x70] sm:$0xff]  ;;  %v2516_v43 = vsel %vm7392_vm4, %v2511_v30, %v2515_v13 }
 0x119   : > { %v1319_v46 = vpop.f32.mrf.mxu3  ;;  %v637_v54 = vadd.f32 %v603_v47, %v382_v37  ;;  %653 = vst.msk [vmem:[#allocation2 + $0x78] sm:$0xff] %vm286_vm5, %v621_v42  ;;  %v1341_v1 = vadd.f32 %v1282_v36, %v1119_v52  ;;  %v1655_v36 = vunpack.c.l.b16 %v1559_v28  ;;  %v3239_v37 = vpack.c.b16 %v3216_v21, %v3215_v27  ;;  %v6626_v47 = vld [vmem:[%s7377_s26 + $0x84] sm:$0xf] }
 0x11a   : > { %v1356_v53 = vadd.f32 %v1319_v46, %v1134_v45  ;;  %v1135_v10 = vld [vmem:[#allocation2 + $0xf0] sm:$0xff]  ;;  %v3118_v42 = vrot.slane %v6689_v33, 5  ;;  %v1603_v45 = vld [vmem:[#allocation2 + $0x8] sm:$0xff]  ;;  %v6690_v46 = vld [vmem:[%s7377_s26 + $0x80] sm:$0x1]  ;;  %v6718_v52 = vrot.slane %v6688_v38, 9  ;;  %v2723_v60 = vunpack.c.l.b16 %v2516_v43 }
 0x11b   : > { %6733 = vmatmul.msk.bf16.gmra.mxu1 %vm464_vm1, %v3238_v32  ;;  %669 = vst.msk [vmem:[#allocation2 + $0xf8] sm:$0xff] %vm286_vm5, %v637_v54  ;;  %v2525_v32 = vrot.slane %v2523_v16, 5  ;;  %v1677_v51 = vpack.c.b16 %v1655_v36, %v1654_v34  ;;  %v1562_v54 = vrot.slane %v1422_v39, 5  ;;  %v3121_v0 = vrot.slane %v6690_v46, 5  ;;  %v6691_v39 = vld [vmem:[%s7377_s26 + $0x84] sm:$0xe] }
 0x11c   : > { %1388 = vst.msk [vmem:[#allocation2 + $0xe8] sm:$0xff] %vm286_vm5, %v1356_v53  ;;  %v1421_v53 = vld [vmem:[%s7377_s26 + $0x78] sm:$0xe]  ;;  %v3120_v63 = vrot.slane %v3118_v42, 4  ;;  %v2531_v4 = vshll.u32 %v6626_v47, 16  ;;  %v3119_v9 = vsel %vm7598_vm8, %v6718_v52, %v3118_v42 }
 0x11d   : > { %6475 = vmatmul.msk.bf16.gmra.mxu2 %vm464_vm1, %v1676_v41  ;;  %1373 = vst.msk [vmem:[#allocation2 + $0x70] sm:$0xff] %vm286_vm5, %v1341_v1  ;;  %v2526_v44 = vsel %vm7392_vm4, %v2521_v31, %v2525_v32  ;;  %v6460_v1 = vrot.slane %v1421_v53, 9  ;;  %v1564_v5 = vrot.slane %v1562_v54, 4  ;;  %v3217_v30 = vunpack.c.l.b16 %v3119_v9  ;;  %v6692_v32 = vld [vmem:[%s7377_s26 + $0x88] sm:$0xf] }
 0x11e   : > { %6587 = vmatmul.msk.bf16.gmra.mxu3 %vm464_vm1, %v7096_v55  ;;  %v7965_v12 = vpop.f32.mrf.mxu0  ;;  %v2528_v55 = vshrl.u32 %v6626_v47, 16  ;;  %v2724_v61 = vunpack.c.l.b16 %v2526_v44  ;;  %v3122_v14 = vsel %vm7598_vm8, %v3120_v63, %v3121_v0  ;;  %v3125_v42 = vrot.slane %v6692_v32, 5  ;;  %v6693_v44 = vld [vmem:[%s7377_s26 + $0x8c] sm:$0x1]  ;;  %v6629_v52 = vld [vmem:[%s7377_s26 + $0x90] sm:$0xf] }
 0x11f   : > { %v3218_v31 = vunpack.c.l.b16 %v3122_v14  ;;  %v7098_v63 = vld [vmem:[%s7377_s26 + $0x78] sm:$0xff]  ;;  %v1424_v0 = vld [vmem:[%s7377_s26 + $0x84] sm:$0xe] }
 0x120   : > { %v1284_v11 = vpop.f32.mrf.mxu1  ;;  %v1744_v20 = vpop.f32.mrf.mxu2  ;;  %v1120_v24 = vld [vmem:[#allocation2 + $0x78] sm:$0xff]  ;;  %v2530_v3 = vrot.slane %v2528_v55, 4  ;;  %v6461_v14 = vrot.slane %v1424_v0, 9 }
 0x121   : > { %v1322_v18 = vpop.f32.mrf.mxu3  ;;  %v1824_v26 = vadd.f32 %v1744_v20, %v1602_v19  ;;  %6653 = vmatmul.msk.bf16.gmra.mxu0 %vm464_vm1, %v2745_v8  ;;  %v1342_v29 = vadd.f32 %v1284_v11, %v1120_v24  ;;  %v2541_v8 = vshrl.u32 %v6627_v62, 16  ;;  %v2533_v11 = vrot.slane %v2531_v4, 5  ;;  %v1605_v55 = vld [vmem:[#allocation2 + $0x18] sm:$0xff] }
 0x122   : > { %v1357_v25 = vadd.f32 %v1322_v18, %v1135_v10  ;;  %v1136_v48 = vld [vmem:[#allocation2 + $0xf8] sm:$0xff]  ;;  %v2746_v10 = vpack.c.b16 %v2724_v61, %v2723_v60  ;;  %v2547_v19 = vshll.u32 %v6628_v2, 16  ;;  %v1563_v24 = vsel %vm7598_vm8, %v6460_v1, %v1562_v54 }
 0x123   : > { %1856 = vst.msk [vmem:[#allocation2] sm:$0xff] %vm286_vm5, %v1824_v26  ;;  %v2543_v18 = vrot.slane %v2541_v8, 4  ;;  %v2534_v20 = vor.u32 %v2533_v11, %v2530_v3  ;;  %v3240_v43 = vpack.c.b16 %v3218_v31, %v3217_v30  ;;  %v2552_v60 = vshrl.u32 %v6629_v52, 16  ;;  %v6630_v3 = vld [vmem:[%s7377_s26 + $0x94] sm:$0xf]  ;;  %v1606_v30 = vld [vmem:[#allocation2 + $0x20] sm:$0xff] }
 0x124   : > { %1389 = vst.msk [vmem:[#allocation2 + $0xf0] sm:$0xff] %vm286_vm5, %v1357_v25  ;;  %v1566_v25 = vsel %vm7598_vm8, %v1564_v5, %v1565_v6  ;;  %v2549_v36 = vrot.slane %v2547_v19, 5  ;;  %v1426_v5 = vld [vmem:[%s7377_s26 + $0x8c] sm:$0x1]  ;;  %v6631_v8 = vld [vmem:[%s7377_s26 + $0x98] sm:$0x1] }
 0x125   : > { %1374 = vst.msk [vmem:[#allocation2 + $0x78] sm:$0xff] %vm286_vm5, %v1342_v29  ;;  %v2544_v26 = vor.u32 %v2543_v18, %v2539_v17  ;;  %v2535_v33 = vrot.slane %v2534_v20, 4  ;;  %v1657_v38 = vunpack.c.l.b16 %v1566_v25  ;;  %v2554_v9 = vrot.slane %v2552_v60, 4 }
 0x126   : > { %v7980_v41 = vpop.f32.mrf.mxu0  ;;  %v2565_v18 = vshrl.u32 %v6630_v3, 16  ;;  %v1572_v19 = vrot.slane %v1426_v5, 5  ;;  %v2571_v25 = vshll.u32 %v6631_v8, 16 }
 0x127   : > { %v2545_v34 = vrot.slane %v2544_v26, 4 }
 0x128   : > { %v7978_v40 = vpop.f32.mrf.mxu1  ;;  %v1746_v50 = vpop.f32.mrf.mxu2 }
 0x129   : > { %v1324_v49 = vpop.f32.mrf.mxu3  ;;  %v1825_v57 = vadd.f32 %v1746_v50, %v1603_v45  ;;  %v1425_v45 = vld [vmem:[%s7377_s26 + $0x88] sm:$0xf] }
 0x12a   : > { %v1358_v56 = vadd.f32 %v1324_v49, %v1136_v48  ;;  %v1921_v27 = vld [vmem:[#allocation2] sm:$0xff]  ;;  %v2540_v48 = vsel %vm7392_vm4, %v2535_v33, %v2539_v17  ;;  %v2550_v49 = vsel %vm7392_vm4, %v2545_v34, %v2549_v36  ;;  %v1569_v59 = vrot.slane %v1425_v45, 5  ;;  %v6695_v34 = vld [vmem:[%s7377_s26 + $0x94] sm:$0xf] }
 0x12b   : > { %6734 = vmatmul.msk.bf16.gmra.mxu1 %vm464_vm1, %v3239_v37  ;;  %1857 = vst.msk [vmem:[#allocation2 + $0x8] sm:$0xff] %vm286_vm5, %v1825_v57  ;;  %v1656_v37 = vunpack.c.l.b16 %v1563_v24  ;;  %v3127_v57 = vrot.slane %v3125_v42, 4  ;;  %v2725_v1 = vunpack.c.l.b16 %v2540_v48  ;;  %v2726_v2 = vunpack.c.l.b16 %v2550_v49 }
 0x12c   : > { %1390 = vst.msk [vmem:[#allocation2 + $0xf8] sm:$0xff] %vm286_vm5, %v1358_v56  ;;  %v2561_v17 = vshll.u32 %v6630_v3, 16  ;;  %v2567_v24 = vrot.slane %v2565_v18, 4  ;;  %v2573_v48 = vrot.slane %v2571_v25, 5 }
 0x12d   : > { %6476 = vmatmul.msk.bf16.gmra.mxu2 %vm464_vm1, %v1677_v51  ;;  %v1678_v50 = vpack.c.b16 %v1657_v38, %v1656_v37  ;;  %v6719_v51 = vrot.slane %v6691_v39, 9  ;;  %v2747_v20 = vpack.c.b16 %v2726_v2, %v2725_v1  ;;  %v1570_v39 = vsel %vm7598_vm8, %v6461_v14, %v1569_v59  ;;  %v6632_v2 = vld [vmem:[%s7377_s26 + $0x9c] sm:$0xf]  ;;  %v1429_v14 = vld [vmem:[%s7377_s26 + $0x98] sm:$0x1] }
 0x12e   : > { %6588 = vmatmul.msk.bf16.gmra.mxu3 %vm464_vm1, %v7097_v58  ;;  %v8004_v16 = vpop.f32.mrf.mxu0  ;;  %v3128_v58 = vrot.slane %v6693_v44, 5  ;;  %v2576_v8 = vshrl.u32 %v6632_v2, 16 }
 0x12f   : > { %v3126_v7 = vsel %vm7598_vm8, %v6719_v51, %v3125_v42  ;;  %v3132_v51 = vrot.slane %v6695_v34, 5 }
 0x130   : > { %v8000_v13 = vpop.f32.mrf.mxu1  ;;  %v1749_v23 = vpop.f32.mrf.mxu2  ;;  %v3129_v11 = vsel %vm7598_vm8, %v3127_v57, %v3128_v58  ;;  %v3219_v32 = vunpack.c.l.b16 %v3126_v7  ;;  %v1428_v57 = vld [vmem:[%s7377_s26 + $0x94] sm:$0xf]  ;;  %v2578_v25 = vrot.slane %v2576_v8, 4 }
 0x131   : > { %v2095_v21 = vpop.f32.mrf.mxu3  ;;  %v1826_v29 = vadd.f32 %v1749_v23, %v1604_v22  ;;  %6654 = vmatmul.msk.bf16.gmra.mxu0 %vm464_vm1, %v2746_v10  ;;  %v2555_v10 = vshll.u32 %v6629_v52, 16  ;;  %v2563_v23 = vrot.slane %v2561_v17, 5  ;;  %v3220_v33 = vunpack.c.l.b16 %v3129_v11  ;;  %v7099_v11 = vld [vmem:[%s7377_s26 + $0x84] sm:$0xff] }
 0x132   : > { %v2175_v28 = vadd.f32 %v2095_v21, %v1921_v27  ;;  %v1922_v53 = vld [vmem:[#allocation2 + $0x8] sm:$0xff]  ;;  %v1658_v52 = vunpack.c.l.b16 %v1570_v39  ;;  %v3134_v0 = vrot.slane %v3132_v51, 4  ;;  %v1576_v7 = vrot.slane %v1428_v57, 5 }
 0x133   : > { %1858 = vst.msk [vmem:[#allocation2 + $0x10] sm:$0xff] %vm286_vm5, %v1826_v29  ;;  %v2557_v27 = vrot.slane %v2555_v10, 5  ;;  %v2568_v36 = vor.u32 %v2567_v24, %v2563_v23  ;;  %v6634_v24 = vld [vmem:[%s7377_s26 + $0xa4] sm:$0x1] }
 0x134   : > { %2207 = vst.msk [vmem:[#allocation2] sm:$0xff] %vm286_vm5, %v2175_v28 }
 0x135   : > { %v2558_v26 = vor.u32 %v2557_v27, %v2554_v9  ;;  %v2569_v45 = vrot.slane %v2568_v36, 4 }
 0x136   : > { %v8019_v47 = vpop.f32.mrf.mxu0 }
 0x137   : > { %v2559_v44 = vrot.slane %v2558_v26, 4  ;;  %v2579_v26 = vshll.u32 %v6632_v2, 16  ;;  %v6697_v2 = vld [vmem:[%s7377_s26 + $0x9c] sm:$0xe] }
 0x138   : > { %v8017_v46 = vpop.f32.mrf.mxu1  ;;  %v1751_v56 = vpop.f32.mrf.mxu2 }
 0x139   : > { %v2097_v54 = vpop.f32.mrf.mxu3  ;;  %v1827_v62 = vadd.f32 %v1751_v56, %v1605_v55  ;;  %v3241_v56 = vpack.c.b16 %v3220_v33, %v3219_v32  ;;  %v2581_v34 = vrot.slane %v2579_v26, 5 }
 0x13a   : > { %v2176_v61 = vadd.f32 %v2097_v54, %v1922_v53  ;;  %v1923_v28 = vld [vmem:[#allocation2 + $0x10] sm:$0xff]  ;;  %v6696_v54 = vld [vmem:[%s7377_s26 + $0x98] sm:$0x1] }
 0x13b   : > { %6735 = vmatmul.msk.bf16.gmra.mxu1 %vm464_vm1, %v3240_v43  ;;  %v2671_v4 = vld [vmem:[#allocation2] sm:$0xff]  ;;  %1859 = vst.msk [vmem:[#allocation2 + $0x18] sm:$0xff] %vm286_vm5, %v1827_v62  ;;  %v2574_v62 = vsel %vm7392_vm4, %v2569_v45, %v2573_v48  ;;  %v3135_v1 = vrot.slane %v6696_v54, 5 }
 0x13c   : > { %v2893_v6 = vadd.f32 %v7965_v12, %v2671_v4  ;;  %2208 = vst.msk [vmem:[#allocation2 + $0x8] sm:$0xff] %vm286_vm5, %v2176_v61  ;;  %v1571_v12 = vrot.slane %v1569_v59, 4  ;;  %v2564_v61 = vsel %vm7392_vm4, %v2559_v44, %v2563_v23  ;;  %v2728_v18 = vunpack.c.l.b16 %v2574_v62 }
 0x13d   : > { %6477 = vmatmul.msk.bf16.gmra.mxu2 %vm464_vm1, %v1678_v50  ;;  %v6694_v50 = vld [vmem:[%s7377_s26 + $0x90] sm:$0xe]  ;;  %v2727_v17 = vunpack.c.l.b16 %v2564_v61  ;;  %v2582_v44 = vor.u32 %v2581_v34, %v2578_v25 }
 0x13e   : > { %2925 = vst.msk [vmem:[#allocation2] sm:$0xff] %vm286_vm5, %v2893_v6  ;;  %6589 = vmatmul.msk.bf16.gmra.mxu3 %vm464_vm1, %v7098_v63  ;;  %v8044_v22 = vpop.f32.mrf.mxu0  ;;  %v1573_v42 = vsel %vm7598_vm8, %v1571_v12, %v1572_v19  ;;  %v6720_v60 = vrot.slane %v6694_v50, 9  ;;  %v1607_v63 = vld [vmem:[#allocation2 + $0x28] sm:$0xff]  ;;  %v1427_v6 = vld [vmem:[%s7377_s26 + $0x90] sm:$0xe] }
 0x13f   : > { %v1659_v53 = vunpack.c.l.b16 %v1573_v42  ;;  %v6633_v12 = vld [vmem:[%s7377_s26 + $0xa0] sm:$0xf]  ;;  %v6462_v23 = vrot.slane %v1427_v6, 9  ;;  %v2748_v33 = vpack.c.b16 %v2728_v18, %v2727_v17  ;;  %v2595_v42 = vshll.u32 %v6634_v24, 16  ;;  %v6635_v18 = vld [vmem:[%s7377_s26 + $0xa8] sm:$0xf] }
 0x140   : > { %v8042_v21 = vpop.f32.mrf.mxu1  ;;  %v1754_v31 = vpop.f32.mrf.mxu2  ;;  %v8105_v6 = vld [vmem:[%s7377_s26 + $0xa0] sm:$0xf]  ;;  %v6721_v17 = vrot.slane %v6697_v2, 9  ;;  %v2600_v24 = vshrl.u32 %v6635_v18, 16 }
 0x141   : > { %v2100_v29 = vpop.f32.mrf.mxu3  ;;  %v1828_v38 = vadd.f32 %v1754_v31, %v1606_v30  ;;  %6655 = vmatmul.msk.bf16.gmra.mxu0 %vm464_vm1, %v2747_v20  ;;  %v1679_v5 = vpack.c.b16 %v1659_v53, %v1658_v52  ;;  %v3133_v20 = vsel %vm7598_vm8, %v6720_v60, %v3132_v51  ;;  %v2585_v30 = vshll.u32 %v6633_v12, 16 }
 0x142   : > { %v2177_v37 = vadd.f32 %v2100_v29, %v1923_v28  ;;  %v1924_v3 = vld [vmem:[#allocation2 + $0x18] sm:$0xff]  ;;  %v1578_v28 = vrot.slane %v1576_v7, 4  ;;  %v1579_v29 = vrot.slane %v1429_v14, 5  ;;  %v2589_v31 = vshrl.u32 %v6633_v12, 16 }
 0x143   : > { %v2672_v43 = vld [vmem:[#allocation2 + $0x8] sm:$0xff]  ;;  %1860 = vst.msk [vmem:[#allocation2 + $0x20] sm:$0xff] %vm286_vm5, %v1828_v38  ;;  %v2587_v38 = vrot.slane %v2585_v30, 5  ;;  %v1577_v51 = vsel %vm7598_vm8, %v6462_v23, %v1576_v7  ;;  %v2583_v60 = vrot.slane %v2582_v44, 4  ;;  %v2597_v62 = vrot.slane %v2595_v42, 5 }
 0x144   : > { %v2894_v49 = vadd.f32 %v7980_v41, %v2672_v43  ;;  %2209 = vst.msk [vmem:[#allocation2 + $0x10] sm:$0xff] %vm286_vm5, %v2177_v37  ;;  %v2591_v39 = vrot.slane %v2589_v31, 4  ;;  %v1580_v52 = vsel %vm7598_vm8, %v1578_v28, %v1579_v29  ;;  %v1583_v23 = vrot.slane %v8105_v6, 5  ;;  %v7100_v28 = vld [vmem:[%s7377_s26 + $0x90] sm:$0xff]  ;;  %v1430_v29 = vld [vmem:[%s7377_s26 + $0x9c] sm:$0xe] }
 0x145   : > { %v3165_v55 = vld [vmem:[#allocation2] sm:$0xff]  ;;  %v2602_v42 = vrot.slane %v2600_v24, 4 }
 0x146   : > { %2926 = vst.msk [vmem:[#allocation2 + $0x8] sm:$0xff] %vm286_vm5, %v2894_v49  ;;  %v3387_v58 = vadd.f32 %v7978_v40, %v3165_v55  ;;  %v8062_v41 = vpop.f32.mrf.mxu0  ;;  %v1608_v49 = vld [vmem:[#allocation2 + $0x30] sm:$0xff]  ;;  %v2592_v53 = vor.u32 %v2591_v39, %v2587_v38 }
 0x147   : > { %v6637_v39 = vld [vmem:[%s7377_s26 + $0xb0] sm:$0x1] }
 0x148   : > { %v8060_v59 = vpop.f32.mrf.mxu1  ;;  %v1756_v4 = vpop.f32.mrf.mxu2  ;;  %3419 = vst.msk [vmem:[#allocation2] sm:$0xff] %vm286_vm5, %v3387_v58  ;;  %v2593_v61 = vrot.slane %v2592_v53, 4 }
 0x149   : > { %v2102_v40 = vpop.f32.mrf.mxu3  ;;  %v1829_v10 = vadd.f32 %v1756_v4, %v1607_v63 }
 0x14a   : > { %v2178_v9 = vadd.f32 %v2102_v40, %v1924_v3  ;;  %v1925_v45 = vld [vmem:[#allocation2 + $0x20] sm:$0xff] }
 0x14b   : > { %6736 = vmatmul.msk.bf16.gmra.mxu1 %vm464_vm1, %v3241_v56  ;;  %v2673_v19 = vld [vmem:[#allocation2 + $0x10] sm:$0xff]  ;;  %1861 = vst.msk [vmem:[#allocation2 + $0x28] sm:$0xff] %vm286_vm5, %v1829_v10  ;;  %v3221_v56 = vunpack.c.l.b16 %v3133_v20  ;;  %v2598_v10 = vsel %vm7392_vm4, %v2593_v61, %v2597_v62 }
 0x14c   : > { %v2895_v27 = vadd.f32 %v8004_v16, %v2673_v19  ;;  %2210 = vst.msk [vmem:[#allocation2 + $0x18] sm:$0xff] %vm286_vm5, %v2178_v9  ;;  %v3136_v16 = vsel %vm7598_vm8, %v3134_v0, %v3135_v1  ;;  %v1660_v0 = vunpack.c.l.b16 %v1577_v51  ;;  %v1661_v1 = vunpack.c.l.b16 %v1580_v52 }
 0x14d   : > { %v3166_v32 = vld [vmem:[#allocation2 + $0x8] sm:$0xff]  ;;  %6478 = vmatmul.msk.bf16.gmra.mxu2 %vm464_vm1, %v1679_v5  ;;  %v3222_v57 = vunpack.c.l.b16 %v3136_v16  ;;  %v6699_v5 = vld [vmem:[%s7377_s26 + $0xa4] sm:$0x1]  ;;  %v2588_v9 = vsel %vm7392_vm4, %v2583_v60, %v2587_v38  ;;  %v2730_v31 = vunpack.c.l.b16 %v2598_v10 }
 0x14e   : > { %2927 = vst.msk [vmem:[#allocation2 + $0x10] sm:$0xff] %vm286_vm5, %v2895_v27  ;;  %6590 = vmatmul.msk.bf16.gmra.mxu3 %vm464_vm1, %v7099_v11  ;;  %v8088_v37 = vpop.f32.mrf.mxu0  ;;  %v3388_v43 = vadd.f32 %v8000_v13, %v3166_v32  ;;  %v6698_v13 = vld [vmem:[%s7377_s26 + $0xa0] sm:$0xf]  ;;  %v1609_v11 = vld [vmem:[#allocation2 + $0x38] sm:$0xff]  ;;  %v1680_v14 = vpack.c.b16 %v1661_v1, %v1660_v0  ;;  %v3142_v27 = vrot.slane %v6699_v5, 5  ;;  %v2729_v30 = vunpack.c.l.b16 %v2588_v9 }
 0x14f   : > { %v3139_v3 = vrot.slane %v6698_v13, 5  ;;  %v3242_v4 = vpack.c.b16 %v3222_v57, %v3221_v56  ;;  %v6636_v32 = vld [vmem:[%s7377_s26 + $0xac] sm:$0xf]  ;;  %v2619_v13 = vshll.u32 %v6637_v39, 16  ;;  %v1433_v39 = vld [vmem:[%s7377_s26 + $0xa8] sm:$0xe] }
 0x150   : > { %v8086_v36 = vpop.f32.mrf.mxu1  ;;  %v1759_v50 = vpop.f32.mrf.mxu2  ;;  %3420 = vst.msk [vmem:[#allocation2 + $0x8] sm:$0xff] %vm286_vm5, %v3388_v43  ;;  %v2603_v43 = vshll.u32 %v6635_v18, 16  ;;  %v2749_v52 = vpack.c.b16 %v2730_v31, %v2729_v30  ;;  %v1611_v30 = vld [vmem:[#allocation2 + $0x48] sm:$0xff] }
 0x151   : > { %v2105_v48 = vpop.f32.mrf.mxu3  ;;  %v1830_v55 = vadd.f32 %v1759_v50, %v1608_v49  ;;  %6656 = vmatmul.msk.bf16.gmra.mxu0 %vm464_vm1, %v2748_v33  ;;  %v3141_v20 = vrot.slane %v3139_v3, 4  ;;  %v1432_v33 = vld [vmem:[%s7377_s26 + $0xa4] sm:$0x1]  ;;  %v3140_v38 = vsel %vm7598_vm8, %v6721_v17, %v3139_v3  ;;  %v2613_v49 = vshrl.u32 %v6636_v32, 16  ;;  %v6701_v3 = vld [vmem:[%s7377_s26 + $0xac] sm:$0xf] }
 0x152   : > { %v2179_v54 = vadd.f32 %v2105_v48, %v1925_v45  ;;  %v1926_v12 = vld [vmem:[#allocation2 + $0x28] sm:$0xff]  ;;  %v6463_v45 = vrot.slane %v1430_v29, 9  ;;  %v2609_v48 = vshll.u32 %v6636_v32, 16  ;;  %v1586_v51 = vrot.slane %v1432_v33, 5 }
 0x153   : > { %v2674_v58 = vld [vmem:[#allocation2 + $0x18] sm:$0xff]  ;;  %1862 = vst.msk [vmem:[#allocation2 + $0x30] sm:$0xff] %vm286_vm5, %v1830_v55  ;;  %v3143_v44 = vsel %vm7598_vm8, %v3141_v20, %v3142_v27  ;;  %v2605_v53 = vrot.slane %v2603_v43, 5  ;;  %v2615_v57 = vrot.slane %v2613_v49, 4  ;;  %v3223_v1 = vunpack.c.l.b16 %v3140_v38  ;;  %v6700_v17 = vld [vmem:[%s7377_s26 + $0xa8] sm:$0xe] }
 0x154   : > { %v2896_v63 = vadd.f32 %v8019_v47, %v2674_v58  ;;  %2211 = vst.msk [vmem:[#allocation2 + $0x20] sm:$0xff] %vm286_vm5, %v2179_v54  ;;  %v2611_v56 = vrot.slane %v2609_v48, 5  ;;  %v3224_v2 = vunpack.c.l.b16 %v3143_v44  ;;  %v1584_v6 = vsel %vm7598_vm8, %v6463_v45, %v1583_v23  ;;  %v7101_v48 = vld [vmem:[%s7377_s26 + $0x9c] sm:$0xff]  ;;  %v1435_v49 = vld [vmem:[%s7377_s26 + $0xb0] sm:$0x1] }
 0x155   : > { %v3167_v40 = vld [vmem:[#allocation2 + $0x10] sm:$0xff]  ;;  %v2606_v60 = vor.u32 %v2605_v53, %v2602_v42  ;;  %v3146_v18 = vrot.slane %v6701_v3, 5 }
 0x156   : > { %2928 = vst.msk [vmem:[#allocation2 + $0x18] sm:$0xff] %vm286_vm5, %v2896_v63  ;;  %v3389_v7 = vadd.f32 %v8017_v46, %v3167_v40  ;;  %v8110_v47 = vpop.f32.mrf.mxu0  ;;  %v1610_v63 = vld [vmem:[#allocation2 + $0x40] sm:$0xff]  ;;  %v2616_v40 = vor.u32 %v2615_v57, %v2611_v56  ;;  %v3243_v27 = vpack.c.b16 %v3224_v2, %v3223_v1  ;;  %v6464_v57 = vrot.slane %v1433_v39, 9  ;;  %v8200_v39 = vld [vmem:[%s7377_s26 + $0xb8] sm:$0xf] }
 0x157   : > { %v2607_v9 = vrot.slane %v2606_v60, 4  ;;  %v3148_v31 = vrot.slane %v3146_v18, 4 }
 0x158   : > { %v8108_v8 = vpop.f32.mrf.mxu1  ;;  %v1761_v46 = vpop.f32.mrf.mxu2  ;;  %3421 = vst.msk [vmem:[#allocation2 + $0x10] sm:$0xff] %vm286_vm5, %v3389_v7  ;;  %v2617_v10 = vrot.slane %v2616_v40, 4 }
 0x159   : > { %v2107_v19 = vpop.f32.mrf.mxu3  ;;  %v1831_v26 = vadd.f32 %v1761_v46, %v1609_v11  ;;  %v2621_v11 = vrot.slane %v2619_v13, 5  ;;  %v6702_v46 = vld [vmem:[%s7377_s26 + $0xb0] sm:$0x1]  ;;  %v6640_v13 = vld [vmem:[%s7377_s26 + $0xbc] sm:$0x1] }
 0x15a   : > { %v2180_v25 = vadd.f32 %v2107_v19, %v1926_v12  ;;  %v1927_v61 = vld [vmem:[#allocation2 + $0x30] sm:$0xff]  ;;  %v1662_v12 = vunpack.c.l.b16 %v1584_v6  ;;  %v3149_v32 = vrot.slane %v6702_v46, 5 }
 0x15b   : > { %6737 = vmatmul.msk.bf16.gmra.mxu1 %vm464_vm1, %v3242_v4  ;;  %v2675_v16 = vld [vmem:[#allocation2 + $0x20] sm:$0xff]  ;;  %1863 = vst.msk [vmem:[#allocation2 + $0x38] sm:$0xff] %vm286_vm5, %v1831_v26  ;;  %v6722_v26 = vrot.slane %v6700_v17, 9  ;;  %v2622_v29 = vsel %vm7392_vm4, %v2617_v10, %v2621_v11 }
 0x15c   : > { %v2897_v34 = vadd.f32 %v8044_v22, %v2675_v16  ;;  %2212 = vst.msk [vmem:[#allocation2 + $0x28] sm:$0xff] %vm286_vm5, %v2180_v25  ;;  %v1585_v22 = vrot.slane %v1583_v23, 4  ;;  %v1434_v23 = vld [vmem:[%s7377_s26 + $0xac] sm:$0xf]  ;;  %v6638_v16 = vld [vmem:[%s7377_s26 + $0xb4] sm:$0xf] }
 0x15d   : > { %v3168_v50 = vld [vmem:[#allocation2 + $0x18] sm:$0xff]  ;;  %6479 = vmatmul.msk.bf16.gmra.mxu2 %vm464_vm1, %v1680_v14  ;;  %v1590_v42 = vrot.slane %v1434_v23, 5  ;;  %v2624_v43 = vshrl.u32 %v6638_v16, 16  ;;  %v3147_v53 = vsel %vm7598_vm8, %v6722_v26, %v3146_v18  ;;  %v2627_v60 = vshll.u32 %v6638_v16, 16  ;;  %v6703_v16 = vld [vmem:[%s7377_s26 + $0xb4] sm:$0xe] }
 0x15e   : > { %2929 = vst.msk [vmem:[#allocation2 + $0x20] sm:$0xff] %vm286_vm5, %v2897_v34  ;;  %6591 = vmatmul.msk.bf16.gmra.mxu3 %vm464_vm1, %v7100_v28  ;;  %v8137_v55 = vpop.f32.mrf.mxu0  ;;  %v3390_v58 = vadd.f32 %v8042_v21, %v3168_v50  ;;  %v1587_v21 = vsel %vm7598_vm8, %v1585_v22, %v1586_v51  ;;  %v2612_v28 = vsel %vm7392_vm4, %v2607_v9, %v2611_v56  ;;  %v2732_v22 = vunpack.c.l.b16 %v2622_v29  ;;  %v6639_v51 = vld [vmem:[%s7377_s26 + $0xb8] sm:$0xf] }
 0x15f   : > { %v1663_v19 = vunpack.c.l.b16 %v1587_v21  ;;  %v2731_v50 = vunpack.c.l.b16 %v2612_v28  ;;  %v2629_v3 = vrot.slane %v2627_v60, 5  ;;  %v2643_v21 = vshll.u32 %v6640_v13, 16 }
 0x160   : > { %v8135_v54 = vpop.f32.mrf.mxu1  ;;  %v1764_v0 = vpop.f32.mrf.mxu2  ;;  %3422 = vst.msk [vmem:[#allocation2 + $0x18] sm:$0xff] %vm286_vm5, %v3390_v58  ;;  %v2626_v58 = vrot.slane %v2624_v43, 4  ;;  %v1591_v18 = vsel %vm7598_vm8, %v6464_v57, %v1590_v42  ;;  %v3225_v23 = vunpack.c.l.b16 %v3147_v53  ;;  %v1613_v53 = vld [vmem:[#allocation2 + $0x58] sm:$0xff]  ;;  %v1597_v13 = vrot.slane %v8200_v39, 5 }
 0x161   : > { %v2110_v62 = vpop.f32.mrf.mxu3  ;;  %v1832_v5 = vadd.f32 %v1764_v0, %v1610_v63  ;;  %6657 = vmatmul.msk.bf16.gmra.mxu0 %vm464_vm1, %v2749_v52  ;;  %v1681_v38 = vpack.c.b16 %v1663_v19, %v1662_v12  ;;  %v2633_v63 = vshll.u32 %v6639_v51, 16  ;;  %v2637_v0 = vshrl.u32 %v6639_v51, 16  ;;  %v6704_v19 = vld [vmem:[%s7377_s26 + $0xb8] sm:$0xf]  ;;  %v6642_v51 = vld [vmem:[%s7377_s26 + $0xc4] sm:$0xf] }
 0x162   : > { %v2181_v4 = vadd.f32 %v2110_v62, %v1927_v61  ;;  %v1928_v33 = vld [vmem:[#allocation2 + $0x38] sm:$0xff]  ;;  %v1592_v61 = vrot.slane %v1590_v42, 4  ;;  %v1593_v62 = vrot.slane %v1435_v49, 5  ;;  %v2750_v2 = vpack.c.b16 %v2732_v22, %v2731_v50  ;;  %v6641_v22 = vld [vmem:[%s7377_s26 + $0xc0] sm:$0xf] }
 0x163   : > { %v2676_v7 = vld [vmem:[#allocation2 + $0x28] sm:$0xff]  ;;  %1864 = vst.msk [vmem:[#allocation2 + $0x40] sm:$0xff] %vm286_vm5, %v1832_v5  ;;  %v2635_v5 = vrot.slane %v2633_v63, 5  ;;  %v2639_v6 = vrot.slane %v2637_v0, 4  ;;  %v2630_v9 = vor.u32 %v2629_v3, %v2626_v58  ;;  %v2645_v29 = vrot.slane %v2643_v21, 5 }
 0x164   : > { %v2898_v14 = vadd.f32 %v8062_v41, %v2676_v7  ;;  %2213 = vst.msk [vmem:[#allocation2 + $0x30] sm:$0xff] %vm286_vm5, %v2181_v4  ;;  %v1594_v12 = vsel %vm7598_vm8, %v1592_v61, %v1593_v62  ;;  %v2648_v58 = vshrl.u32 %v6641_v22, 16  ;;  %v2651_v60 = vshll.u32 %v6641_v22, 16  ;;  %v7102_v63 = vld [vmem:[%s7377_s26 + $0xa8] sm:$0xff]  ;;  %v1436_v0 = vld [vmem:[%s7377_s26 + $0xb4] sm:$0xe] }
 0x165   : > { %v3169_v20 = vld [vmem:[#allocation2 + $0x20] sm:$0xff]  ;;  %v2640_v46 = vor.u32 %v2639_v6, %v2635_v5  ;;  %v2631_v26 = vrot.slane %v2630_v9, 4  ;;  %v2657_v21 = vshll.u32 %v6642_v51, 16 }
 0x166   : > { %2930 = vst.msk [vmem:[#allocation2 + $0x28] sm:$0xff] %vm286_vm5, %v2898_v14  ;;  %v3391_v24 = vadd.f32 %v8060_v59, %v3169_v20  ;;  %v8157_v41 = vpop.f32.mrf.mxu0  ;;  %v1612_v14 = vld [vmem:[#allocation2 + $0x50] sm:$0xff]  ;;  %v2653_v6 = vrot.slane %v2651_v60, 5 }
 0x167   : > { %v2641_v28 = vrot.slane %v2640_v46, 4 }
 0x168   : > { %v8155_v25 = vpop.f32.mrf.mxu1  ;;  %v1766_v34 = vpop.f32.mrf.mxu2  ;;  %3423 = vst.msk [vmem:[#allocation2 + $0x20] sm:$0xff] %vm286_vm5, %v3391_v24 }
 0x169   : > { %v2112_v59 = vpop.f32.mrf.mxu3  ;;  %v1833_v45 = vadd.f32 %v1766_v34, %v1611_v30 }
 0x16a   : > { %v2182_v44 = vadd.f32 %v2112_v59, %v1928_v33  ;;  %v1929_v10 = vld [vmem:[#allocation2 + $0x40] sm:$0xff]  ;;  %v3153_v33 = vrot.slane %v6704_v19, 5 }
 0x16b   : > { %6738 = vmatmul.msk.bf16.gmra.mxu1 %vm464_vm1, %v3243_v27  ;;  %v2677_v52 = vld [vmem:[#allocation2 + $0x30] sm:$0xff]  ;;  %1865 = vst.msk [vmem:[#allocation2 + $0x48] sm:$0xff] %vm286_vm5, %v1833_v45  ;;  %v2636_v45 = vsel %vm7392_vm4, %v2631_v26, %v2635_v5  ;;  %v2650_v5 = vrot.slane %v2648_v58, 4 }
 0x16c   : > { %v2899_v56 = vadd.f32 %v8088_v37, %v2677_v52  ;;  %2214 = vst.msk [vmem:[#allocation2 + $0x38] sm:$0xff] %vm286_vm5, %v2182_v44  ;;  %v3150_v37 = vsel %vm7598_vm8, %v3148_v31, %v3149_v32  ;;  %v1664_v31 = vunpack.c.l.b16 %v1591_v18  ;;  %v1665_v32 = vunpack.c.l.b16 %v1594_v12 }
 0x16d   : > { %v3170_v1 = vld [vmem:[#allocation2 + $0x28] sm:$0xff]  ;;  %6480 = vmatmul.msk.bf16.gmra.mxu2 %vm464_vm1, %v1681_v38  ;;  %v6705_v38 = vld [vmem:[%s7377_s26 + $0xbc] sm:$0x1]  ;;  %v6723_v44 = vrot.slane %v6703_v16, 9  ;;  %v3155_v50 = vrot.slane %v3153_v33, 4  ;;  %v8227_v18 = vrot.slane %v2657_v21, 5 }
 0x16e   : > { %2931 = vst.msk [vmem:[#allocation2 + $0x30] sm:$0xff] %vm286_vm5, %v2899_v56  ;;  %6592 = vmatmul.msk.bf16.gmra.mxu3 %vm464_vm1, %v7101_v48  ;;  %v8183_v4 = vpop.f32.mrf.mxu0  ;;  %v3392_v7 = vadd.f32 %v8086_v36, %v3170_v1  ;;  %v3226_v36 = vunpack.c.l.b16 %v3150_v37  ;;  %v2646_v48 = vsel %vm7392_vm4, %v2641_v28, %v2645_v29  ;;  %v1682_v49 = vpack.c.b16 %v1665_v32, %v1664_v31  ;;  %v1438_v1 = vld [vmem:[%s7377_s26 + $0xbc] sm:$0x1]  ;;  %v1614_v31 = vld [vmem:[#allocation2 + $0x60] sm:$0xff] }
 0x16f   : > { %v3156_v57 = vrot.slane %v6705_v38, 5  ;;  %v2733_v37 = vunpack.c.l.b16 %v2636_v45  ;;  %v1600_v46 = vrot.slane %v1438_v1, 5 }
 0x170   : > { %v8181_v40 = vpop.f32.mrf.mxu1  ;;  %v1769_v17 = vpop.f32.mrf.mxu2  ;;  %3424 = vst.msk [vmem:[#allocation2 + $0x28] sm:$0xff] %vm286_vm5, %v3392_v7  ;;  %v3244_v34 = vpack.c.b16 %v3226_v36, %v3225_v23  ;;  %v2661_v7 = vshrl.u32 %v6642_v51, 16 }
 0x171   : > { %v2115_v11 = vpop.f32.mrf.mxu3  ;;  %v1834_v27 = vadd.f32 %v1769_v17, %v1612_v14  ;;  %6658 = vmatmul.msk.bf16.gmra.mxu0 %vm464_vm1, %v2750_v2  ;;  %v2734_v2 = vunpack.c.l.b16 %v2646_v48  ;;  %v3157_v14 = vsel %vm7598_vm8, %v3155_v50, %v3156_v57  ;;  %v6465_v17 = vrot.slane %v1436_v0, 9 }
 0x172   : > { %v2183_v20 = vadd.f32 %v2115_v11, %v1929_v10  ;;  %v3154_v10 = vsel %vm7598_vm8, %v6723_v44, %v3153_v33  ;;  %v6643_v11 = vld [vmem:[%s7377_s26 + $0xc8] sm:$0x1]  ;;  %v2663_v12 = vrot.slane %v2661_v7, 4  ;;  %v3228_v33 = vunpack.c.l.b16 %v3157_v14 }
 0x173   : > { %v2678_v24 = vld [vmem:[#allocation2 + $0x38] sm:$0xff]  ;;  %1866 = vst.msk [vmem:[#allocation2 + $0x50] sm:$0xff] %vm286_vm5, %v1834_v27  ;;  %v2667_v28 = vshll.u32 %v6643_v11, 16  ;;  %v3227_v16 = vunpack.c.l.b16 %v3154_v10  ;;  %v1598_v38 = vsel %vm7598_vm8, %v6465_v17, %v1597_v13 }
 0x174   : > { %v2900_v30 = vadd.f32 %v8110_v47, %v2678_v24  ;;  %2215 = vst.msk [vmem:[#allocation2 + $0x40] sm:$0xff] %vm286_vm5, %v2183_v20  ;;  %v2751_v20 = vpack.c.b16 %v2734_v2, %v2733_v37  ;;  %v2654_v24 = vor.u32 %v2653_v6, %v2650_v5  ;;  %v2664_v26 = vor.u32 %v2663_v12, %v8227_v18  ;;  %v6856_v6 = vld [vmem:[%s7377_s26 + $0x1c] sm:$0xf]  ;;  %v7103_v11 = vld [vmem:[%s7377_s26 + $0xb4] sm:$0xff]  ;;  %v7002_v12 = vld [vmem:[%s7377_s26 + $0x10] sm:$0xf] }
 0x175   : > { %v3171_v59 = vld [vmem:[#allocation2 + $0x30] sm:$0xff]  ;;  %v2669_v48 = vrot.slane %v2667_v28, 5  ;;  %v1666_v22 = vunpack.c.l.b16 %v1598_v38 }
 0x176   : > { %2932 = vst.msk [vmem:[#allocation2 + $0x38] sm:$0xff] %vm286_vm5, %v2900_v30  ;;  %v3393_v42 = vadd.f32 %v8108_v8, %v3171_v59  ;;  %v8205_v43 = vpop.f32.mrf.mxu0  ;;  %v1930_v8 = vld [vmem:[#allocation2 + $0x48] sm:$0xff]  ;;  %v6707_v59 = vld [vmem:[%s7377_s26 + $0xc4] sm:$0xf]  ;;  %v2655_v44 = vrot.slane %v2654_v24, 4  ;;  %v2665_v45 = vrot.slane %v2664_v26, 4 }
 0x177   : > { %v3160_v50 = vrot.slane %v6707_v59, 5  ;;  %v5353_v59 = vshrl.u32 %v7002_v12, 16 }
 0x178   : > { %v8203_v47 = vpop.f32.mrf.mxu1  ;;  %3425 = vst.msk [vmem:[#allocation2 + $0x30] sm:$0xff] %vm286_vm5, %v3393_v42  ;;  %v1771_v56 = vpop.f32.mrf.mxu2  ;;  %v2670_v60 = vsel %vm7392_vm4, %v2665_v45, %v2669_v48 }
 0x179   : > { %v2117_v52 = vpop.f32.mrf.mxu3  ;;  %v1835_v62 = vadd.f32 %v1771_v56, %v1613_v53  ;;  %v6708_v53 = vld [vmem:[%s7377_s26 + $0xc8] sm:$0x1]  ;;  %v6855_v56 = vld [vmem:[%s7377_s26 + $0x18] sm:$0xf]  ;;  %v2736_v17 = vunpack.c.l.b16 %v2670_v60 }
 0x17a   : > { %v2184_v61 = vadd.f32 %v2117_v52, %v1930_v8  ;;  %v1931_v29 = vld [vmem:[#allocation2 + $0x50] sm:$0xff]  ;;  %v6706_v8 = vld [vmem:[%s7377_s26 + $0xc0] sm:$0xe]  ;;  %v3245_v52 = vpack.c.b16 %v3228_v33, %v3227_v16  ;;  %v3163_v5 = vrot.slane %v6708_v53, 5  ;;  %v3851_v21 = vshrl.u32 %v6855_v56, 16 }
 0x17b   : > { %6739 = vmatmul.msk.bf16.gmra.mxu1 %vm464_vm1, %v3244_v34  ;;  %v2679_v3 = vld [vmem:[#allocation2 + $0x40] sm:$0xff]  ;;  %1867 = vst.msk [vmem:[#allocation2 + $0x58] sm:$0xff] %vm286_vm5, %v1835_v62  ;;  %v6724_v62 = vrot.slane %v6706_v8, 9  ;;  %v3854_v7 = vshll.u32 %v6855_v56, 16 }
 0x17c   : > { %v2901_v9 = vadd.f32 %v8137_v55, %v2679_v3  ;;  %2216 = vst.msk [vmem:[#allocation2 + $0x48] sm:$0xff] %vm286_vm5, %v2184_v61  ;;  %v1599_v55 = vrot.slane %v1597_v13, 4  ;;  %v1615_v61 = vld [vmem:[#allocation2 + $0x68] sm:$0xff]  ;;  %v3853_v24 = vrot.slane %v3851_v21, 4  ;;  %v6857_v8 = vld [vmem:[%s7377_s26 + $0x20] sm:$0x1] }
 0x17d   : > { %v3172_v19 = vld [vmem:[#allocation2 + $0x38] sm:$0xff]  ;;  %6481 = vmatmul.msk.bf16.gmra.mxu2 %vm464_vm1, %v1682_v49  ;;  %v3856_v26 = vrot.slane %v3854_v7, 5  ;;  %v6858_v7 = vld [vmem:[%s7377_s26 + $0x24] sm:$0xf] }
 0x17e   : > { %2933 = vst.msk [vmem:[#allocation2 + $0x40] sm:$0xff] %vm286_vm5, %v2901_v9  ;;  %6593 = vmatmul.msk.bf16.gmra.mxu3 %vm464_vm1, %v7102_v63  ;;  %v3394_v27 = vadd.f32 %v8135_v54, %v3172_v19  ;;  %v8235_v36 = vpop.f32.mrf.mxu0  ;;  %v1601_v39 = vsel %vm7598_vm8, %v1599_v55, %v1600_v46  ;;  %v3162_v63 = vrot.slane %v3160_v50, 4  ;;  %v3860_v55 = vshll.u32 %v6856_v6, 16 }
 0x17f   : > { %v1667_v51 = vunpack.c.l.b16 %v1601_v39  ;;  %v3864_v46 = vshrl.u32 %v6856_v6, 16  ;;  %v6920_v39 = vld [vmem:[%s7377_s26 + $0x18] sm:$0xe] }
 0x180   : > { %v8233_v23 = vpop.f32.mrf.mxu1  ;;  %3426 = vst.msk [vmem:[#allocation2 + $0x38] sm:$0xff] %vm286_vm5, %v3394_v27  ;;  %v1774_v32 = vpop.f32.mrf.mxu2  ;;  %v3161_v27 = vsel %vm7598_vm8, %v6724_v62, %v3160_v50  ;;  %v5355_v62 = vrot.slane %v5353_v59, 4 }
 0x181   : > { %v2120_v30 = vpop.f32.mrf.mxu3  ;;  %v1836_v54 = vadd.f32 %v1774_v32, %v1614_v31  ;;  %6659 = vmatmul.msk.bf16.gmra.mxu0 %vm464_vm1, %v2751_v20  ;;  %v1683_v3 = vpack.c.b16 %v1667_v51, %v1666_v22  ;;  %v6921_v20 = vld [vmem:[%s7377_s26 + $0x1c] sm:$0xf]  ;;  %v5349_v32 = vshll.u32 %v7002_v12, 16  ;;  %v3866_v38 = vrot.slane %v3864_v46, 4 }
 0x182   : > { %v2185_v34 = vadd.f32 %v2120_v30, %v1931_v29  ;;  %v1932_v1 = vld [vmem:[#allocation2 + $0x58] sm:$0xff]  ;;  %v3229_v22 = vunpack.c.l.b16 %v3161_v27  ;;  %v7104_v27 = vld [vmem:[%s7377_s26 + $0xc0] sm:$0xff] }
 0x183   : > { %v2680_v42 = vld [vmem:[#allocation2 + $0x48] sm:$0xff]  ;;  %1868 = vst.msk [vmem:[#allocation2 + $0x60] sm:$0xff] %vm286_vm5, %v1836_v54  ;;  %v8283_v54 = vrot.slane %v3860_v55, 5 }
 0x184   : > { %v2902_v49 = vadd.f32 %v8157_v41, %v2680_v42  ;;  %2217 = vst.msk [vmem:[#allocation2 + $0x50] sm:$0xff] %vm286_vm5, %v2185_v34  ;;  %v2660_v41 = vsel %vm7392_vm4, %v2655_v44, %v8227_v18  ;;  %v7001_v18 = vld [vmem:[%s7377_s26 + $0xc] sm:$0xf]  ;;  %v4618_v34 = vrot.slane %v6921_v20, 5  ;;  %v6922_v42 = vld [vmem:[%s7377_s26 + $0x20] sm:$0x1] }
 0x185   : > { %v3173_v57 = vld [vmem:[#allocation2 + $0x40] sm:$0xff]  ;;  %v2735_v14 = vunpack.c.l.b16 %v2660_v41  ;;  %v5340_v28 = vshrl.u32 %v7001_v18, 16  ;;  %v5343_v31 = vshll.u32 %v7001_v18, 16  ;;  %v7003_v41 = vld [vmem:[%s7377_s26 + $0x14] sm:$0x1] }
 0x186   : > { %2934 = vst.msk [vmem:[#allocation2 + $0x48] sm:$0xff] %vm286_vm5, %v2902_v49  ;;  %v8254_v58 = vpop.f32.mrf.mxu0  ;;  %v3395_v0 = vadd.f32 %v8155_v25, %v3173_v57  ;;  %v1616_v49 = vld [vmem:[#allocation2 + $0x70] sm:$0xff]  ;;  %v5359_v21 = vshll.u32 %v7003_v41, 16 }
 0x187   : > { %v2752_v30 = vpack.c.b16 %v2736_v17, %v2735_v14  ;;  %v5342_v53 = vrot.slane %v5340_v28, 4  ;;  %v5345_v60 = vrot.slane %v5343_v31, 5  ;;  %v3875_v28 = vshrl.u32 %v6858_v7, 16  ;;  %v7105_v31 = vld [vmem:[%s7377_s26 + $0x18] sm:$0xff] }
 0x188   : > { %v8252_v13 = vpop.f32.mrf.mxu1  ;;  %v1776_v2 = vpop.f32.mrf.mxu2  ;;  %3427 = vst.msk [vmem:[#allocation2 + $0x40] sm:$0xff] %vm286_vm5, %v3395_v0  ;;  %v4620_v0 = vrot.slane %v4618_v34, 4 }
 0x189   : > { %v2122_v37 = vpop.f32.mrf.mxu3  ;;  %v1837_v10 = vadd.f32 %v1776_v2, %v1615_v61  ;;  %v8291_v61 = vrot.slane %v5349_v32, 5  ;;  %v3867_v2 = vor.u32 %v3866_v38, %v8283_v54  ;;  %v7005_v38 = vld [vmem:[%s7377_s26 + $0x1c] sm:$0xf] }
 0x18a   : > { %v2186_v9 = vadd.f32 %v2122_v37, %v1932_v1  ;;  %v1933_v45 = vld [vmem:[#allocation2 + $0x60] sm:$0xff]  ;;  %v4621_v1 = vrot.slane %v6922_v42, 5 }
 0x18b   : > { %6740 = vmatmul.msk.bf16.gmra.mxu1 %vm464_vm1, %v3245_v52  ;;  %v2681_v25 = vld [vmem:[#allocation2 + $0x50] sm:$0xff]  ;;  %1869 = vst.msk [vmem:[#allocation2 + $0x68] sm:$0xff] %vm286_vm5, %v1837_v10  ;;  %v3857_v52 = vor.u32 %v3856_v26, %v3853_v24  ;;  %v5356_v14 = vor.u32 %v5355_v62, %v8291_v61  ;;  %v3868_v12 = vrot.slane %v3867_v2, 4  ;;  %v6859_v26 = vld [vmem:[%s7377_s26 + $0x28] sm:$0xf] }
 0x18c   : > { %v2903_v19 = vadd.f32 %v8183_v4, %v2681_v25  ;;  %2218 = vst.msk [vmem:[#allocation2 + $0x58] sm:$0xff] %vm286_vm5, %v2186_v9  ;;  %v3164_v4 = vsel %vm7598_vm8, %v3162_v63, %v3163_v5  ;;  %v6968_v63 = vrot.slane %v6920_v39, 9  ;;  %v4622_v18 = vsel %vm7598_vm8, %v4620_v0, %v4621_v1  ;;  %v1617_v25 = vld [vmem:[#allocation2 + $0x78] sm:$0xff]  ;;  %v6860_v1 = vld [vmem:[%s7377_s26 + $0x2c] sm:$0x1] }
 0x18d   : > { %v3174_v29 = vld [vmem:[#allocation2 + $0x48] sm:$0xff]  ;;  %6482 = vmatmul.msk.bf16.gmra.mxu2 %vm464_vm1, %v1683_v3  ;;  %v3230_v51 = vunpack.c.l.b16 %v3164_v4  ;;  %v3870_v3 = vshll.u32 %v6857_v8, 16  ;;  %v8298_v5 = vrot.slane %v3857_v52, 4  ;;  %v4763_v59 = vunpack.c.l.b16 %v4622_v18  ;;  %v7006_v2 = vld [vmem:[%s7377_s26 + $0x20] sm:$0x1] }
 0x18e   : > { %2935 = vst.msk [vmem:[#allocation2 + $0x50] sm:$0xff] %vm286_vm5, %v2903_v19  ;;  %6594 = vmatmul.msk.bf16.gmra.mxu3 %vm464_vm1, %v7103_v11  ;;  %v8281_v33 = vpop.f32.mrf.mxu0  ;;  %v3396_v44 = vadd.f32 %v8181_v40, %v3174_v29  ;;  %v5346_v11 = vor.u32 %v5345_v60, %v5342_v53  ;;  %v4619_v17 = vsel %vm7598_vm8, %v6968_v63, %v4618_v34  ;;  %v7004_v34 = vld [vmem:[%s7377_s26 + $0x18] sm:$0xf]  ;;  %v5373_v52 = vshll.u32 %v7005_v38, 16 }
 0x18f   : > { %v3246_v6 = vpack.c.b16 %v3230_v51, %v3229_v22  ;;  %v3872_v19 = vrot.slane %v3870_v3, 5  ;;  %v3863_v24 = vsel %vm7392_vm4, %v8298_v5, %v8283_v54  ;;  %v4762_v32 = vunpack.c.l.b16 %v4619_v17  ;;  %v8328_v22 = vld [vmem:[%s7377_s26 + $0x28] sm:$0xf] }
 0x190   : > { %v8279_v16 = vpop.f32.mrf.mxu1  ;;  %v1779_v50 = vpop.f32.mrf.mxu2  ;;  %3428 = vst.msk [vmem:[#allocation2 + $0x48] sm:$0xff] %vm286_vm5, %v3396_v44  ;;  %v5347_v42 = vrot.slane %v5346_v11, 4  ;;  %v5357_v44 = vrot.slane %v5356_v14, 4  ;;  %v5364_v51 = vshrl.u32 %v7004_v34, 16  ;;  %v5367_v8 = vshll.u32 %v7004_v34, 16 }
 0x191   : > { %v2125_v48 = vpop.f32.mrf.mxu3  ;;  %v1838_v57 = vadd.f32 %v1779_v50, %v1616_v49  ;;  %6660 = vmatmul.msk.bf16.gmra.mxu0 %vm464_vm1, %v2752_v30  ;;  %v3884_v49 = vshll.u32 %v6859_v26, 16  ;;  %v3888_v50 = vshrl.u32 %v6859_v26, 16  ;;  %v5377_v53 = vshrl.u32 %v7005_v38, 16 }
 0x192   : > { %v2187_v56 = vadd.f32 %v2125_v48, %v1933_v45  ;;  %v1934_v55 = vld [vmem:[#allocation2 + $0x68] sm:$0xff]  ;;  %v5361_v45 = vrot.slane %v5359_v21, 5  ;;  %v3878_v48 = vshll.u32 %v6858_v7, 16  ;;  %v5352_v62 = vsel %vm7392_vm4, %v5347_v42, %v8291_v61  ;;  %v6923_v7 = vld [vmem:[%s7377_s26 + $0x24] sm:$0xe] }
 0x193   : > { %v2682_v40 = vld [vmem:[#allocation2 + $0x58] sm:$0xff]  ;;  %1870 = vst.msk [vmem:[#allocation2 + $0x70] sm:$0xff] %vm286_vm5, %v1838_v57  ;;  %v3877_v57 = vrot.slane %v3875_v28, 4  ;;  %v4625_v3 = vrot.slane %v8328_v22, 5  ;;  %v8347_v5 = vunpack.c.l.b16 %v3863_v24  ;;  %v3890_v21 = vrot.slane %v3888_v50, 4 }
 0x194   : > { %v2904_v37 = vadd.f32 %v8205_v43, %v2682_v40  ;;  %2219 = vst.msk [vmem:[#allocation2 + $0x60] sm:$0xff] %vm286_vm5, %v2187_v56  ;;  %v1618_v40 = vld [vmem:[#allocation2 + $0x80] sm:$0xff]  ;;  %v5362_v63 = vsel %vm7392_vm4, %v5357_v44, %v5361_v45  ;;  %v5366_v17 = vrot.slane %v5364_v51, 4  ;;  %v5369_v18 = vrot.slane %v5367_v8, 5 }
 0x195   : > { %v3175_v9 = vld [vmem:[#allocation2 + $0x50] sm:$0xff]  ;;  %v3894_v24 = vshll.u32 %v6860_v1, 16  ;;  %v6969_v26 = vrot.slane %v6923_v7, 9  ;;  %v4627_v28 = vrot.slane %v4625_v3, 4  ;;  %v7007_v51 = vld [vmem:[%s7377_s26 + $0x24] sm:$0xf] }
 0x196   : > { %2936 = vst.msk [vmem:[#allocation2 + $0x58] sm:$0xff] %vm286_vm5, %v2904_v37  ;;  %v8304_v43 = vpop.f32.mrf.mxu0  ;;  %v3397_v29 = vadd.f32 %v8203_v47, %v3175_v9  ;;  %v3873_v47 = vsel %vm7392_vm4, %v3868_v12, %v3872_v19  ;;  %v3880_v37 = vrot.slane %v3878_v48, 5  ;;  %v6925_v9 = vld [vmem:[%s7377_s26 + $0x2c] sm:$0x1]  ;;  %v5379_v12 = vrot.slane %v5377_v53, 4  ;;  %v7106_v1 = vld [vmem:[%s7377_s26 + $0x24] sm:$0xff] }
 0x197   : > { %v4626_v48 = vsel %vm7598_vm8, %v6969_v26, %v4625_v3  ;;  %v3896_v50 = vrot.slane %v3894_v24, 5  ;;  %v1619_v53 = vld [vmem:[#allocation2 + $0x88] sm:$0xff]  ;;  %v5388_v7 = vshrl.u32 %v7007_v51, 16 }
 0x198   : > { %v8302_v10 = vpop.f32.mrf.mxu1  ;;  %v1781_v20 = vpop.f32.mrf.mxu2  ;;  %3429 = vst.msk [vmem:[#allocation2 + $0x50] sm:$0xff] %vm286_vm5, %v3397_v29  ;;  %v4628_v29 = vrot.slane %v6925_v9, 5  ;;  %v7008_v3 = vld [vmem:[%s7377_s26 + $0x28] sm:$0xf] }
 0x199   : > { %v2127_v46 = vpop.f32.mrf.mxu3  ;;  %v1839_v30 = vadd.f32 %v1781_v20, %v1617_v25  ;;  %v8355_v25 = vrot.slane %v5373_v52, 5  ;;  %v5725_v20 = vunpack.c.l.b16 %v5362_v63 }
 0x19a   : > { %v2188_v4 = vadd.f32 %v2127_v46, %v1934_v55  ;;  %v1935_v61 = vld [vmem:[#allocation2 + $0x70] sm:$0xff]  ;;  %v5724_v46 = vunpack.c.l.b16 %v5352_v62 }
 0x19b   : > { %6741 = vmatmul.msk.bf16.gmra.mxu1 %vm464_vm1, %v3246_v6  ;;  %v2683_v39 = vld [vmem:[#allocation2 + $0x60] sm:$0xff]  ;;  %1871 = vst.msk [vmem:[#allocation2 + $0x78] sm:$0xff] %vm286_vm5, %v1839_v30  ;;  %v8351_v6 = vrot.slane %v3884_v49, 5  ;;  %v3881_v30 = vor.u32 %v3880_v37, %v3877_v57  ;;  %v5380_v34 = vor.u32 %v5379_v12, %v8355_v25  ;;  %v4764_v37 = vunpack.c.l.b16 %v4626_v48 }
 0x19c   : > { %v2905_v54 = vadd.f32 %v8235_v36, %v2683_v39  ;;  %2220 = vst.msk [vmem:[#allocation2 + $0x68] sm:$0xff] %vm286_vm5, %v2188_v4  ;;  %v4794_v36 = vpack.c.b16 %v4763_v59, %v4762_v32  ;;  %v5383_v32 = vshll.u32 %v7006_v2, 16  ;;  %v5370_v59 = vor.u32 %v5369_v18, %v5366_v17  ;;  %v6861_v39 = vld [vmem:[%s7377_s26 + $0x30] sm:$0xf] }
 0x19d   : > { %v3176_v56 = vld [vmem:[#allocation2 + $0x58] sm:$0xff]  ;;  %6839 = vmatmul.msk.bf16.vlgmr.msra.gmra.mxu2 %vm464_vm1, %v7105_v31  ;;  %v3891_v31 = vor.u32 %v3890_v21, %v8351_v6  ;;  %v5756_v38 = vpack.c.b16 %v5725_v20, %v5724_v46  ;;  %v5381_v57 = vrot.slane %v5380_v34, 4  ;;  %v3902_v21 = vshll.u32 %v6861_v39, 16  ;;  %v1620_v34 = vld [vmem:[#allocation2 + $0x90] sm:$0xff] }
 0x19e   : > { %2937 = vst.msk [vmem:[#allocation2 + $0x60] sm:$0xff] %vm286_vm5, %v2905_v54  ;;  %6595 = vmatmul.msk.bf16.gmra.mxu3 %vm464_vm1, %v7104_v27  ;;  %v3398_v41 = vadd.f32 %v8233_v23, %v3176_v56  ;;  %v8342_v0 = vpop.f32.mrf.mxu0  ;;  %v8349_v23 = vunpack.c.l.b16 %v3873_v47  ;;  %v4629_v54 = vsel %vm7598_vm8, %v4627_v28, %v4628_v29  ;;  %v3882_v47 = vrot.slane %v3881_v30, 4  ;;  %v6926_v30 = vld [vmem:[%s7377_s26 + $0x30] sm:$0xe] }
 0x19f   : > { %v3892_v49 = vrot.slane %v3891_v31, 4  ;;  %v5385_v22 = vrot.slane %v5383_v32, 5  ;;  %v4765_v2 = vunpack.c.l.b16 %v4629_v54  ;;  %v5397_v18 = vshll.u32 %v7008_v3, 16  ;;  %v6928_v31 = vld [vmem:[%s7377_s26 + $0x38] sm:$0x1] }
 0x1a0   : > { %v8335_v60 = vpop.f32.mrf.mxu1  ;;  %v1784_v14 = vpop.f32.mrf.mxu2  ;;  %3430 = vst.msk [vmem:[#allocation2 + $0x58] sm:$0xff] %vm286_vm5, %v3398_v41  ;;  %v3899_v41 = vshrl.u32 %v6861_v39, 16  ;;  %v5401_v12 = vshrl.u32 %v7008_v3, 16  ;;  %v3904_v24 = vrot.slane %v3902_v21, 5  ;;  %v5390_v28 = vrot.slane %v5388_v7, 4 }
 0x1a1   : > { %v2130_v11 = vpop.f32.mrf.mxu3  ;;  %v1840_v55 = vadd.f32 %v1784_v14, %v1618_v40  ;;  %6985 = vmatmul.msk.bf16.vlgmr.msra.gmra.mxu0 %vm464_vm1, %v4794_v36  ;;  %v5371_v36 = vrot.slane %v5370_v59, 4  ;;  %v6927_v14 = vld [vmem:[%s7377_s26 + $0x34] sm:$0xf] }
 0x1a2   : > { %v2189_v19 = vadd.f32 %v2130_v11, %v1935_v61  ;;  %v1936_v8 = vld [vmem:[#allocation2 + $0x78] sm:$0xff]  ;;  %v3897_v61 = vsel %vm7392_vm4, %v3892_v49, %v3896_v50  ;;  %v5391_v11 = vshll.u32 %v7007_v51, 16  ;;  %v4632_v29 = vrot.slane %v6927_v14, 5 }
 0x1a3   : > { %v2684_v27 = vld [vmem:[#allocation2 + $0x68] sm:$0xff]  ;;  %1872 = vst.msk [vmem:[#allocation2 + $0x80] sm:$0xff] %vm286_vm5, %v1840_v55  ;;  %v5376_v17 = vsel %vm7392_vm4, %v5371_v36, %v8355_v25  ;;  %v3901_v55 = vrot.slane %v3899_v41, 4  ;;  %v8410_v39 = vunpack.c.l.b16 %v3897_v61  ;;  %v6863_v50 = vld [vmem:[%s7377_s26 + $0x38] sm:$0x1] }
 0x1a4   : > { %v2906_v4 = vadd.f32 %v8254_v58, %v2684_v27  ;;  %2221 = vst.msk [vmem:[#allocation2 + $0x70] sm:$0xff] %vm286_vm5, %v2189_v19  ;;  %v4300_v58 = vpack.c.b16 %v8349_v23, %v8347_v5  ;;  %v6862_v23 = vld [vmem:[%s7377_s26 + $0x34] sm:$0xf]  ;;  %v6864_v61 = vld [vmem:[%s7377_s26 + $0x3c] sm:$0xf] }
 0x1a5   : > { %v3177_v42 = vld [vmem:[#allocation2 + $0x60] sm:$0xff]  ;;  %v3908_v46 = vshll.u32 %v6862_v23, 16  ;;  %v3912_v26 = vshrl.u32 %v6862_v23, 16 }
 0x1a6   : > { %2938 = vst.msk [vmem:[#allocation2 + $0x68] sm:$0xff] %vm286_vm5, %v2906_v4  ;;  %v8370_v45 = vpop.f32.mrf.mxu0  ;;  %v3399_v40 = vadd.f32 %v8252_v13, %v3177_v42  ;;  %v3887_v13 = vsel %vm7392_vm4, %v3882_v47, %v8351_v6  ;;  %v4795_v6 = vpack.c.b16 %v4765_v2, %v4764_v37  ;;  %v5393_v4 = vrot.slane %v5391_v11, 5  ;;  %v6865_v11 = vld [vmem:[%s7377_s26 + $0x40] sm:$0xf] }
 0x1a7   : > { %v8412_v42 = vrot.slane %v5397_v18, 5  ;;  %v5726_v47 = vunpack.c.l.b16 %v5376_v17  ;;  %v3914_v41 = vrot.slane %v3912_v26, 4 }
 0x1a8   : > { %v8366_v44 = vpop.f32.mrf.mxu1  ;;  %v1786_v56 = vpop.f32.mrf.mxu2  ;;  %3431 = vst.msk [vmem:[#allocation2 + $0x60] sm:$0xff] %vm286_vm5, %v3399_v40  ;;  %v5394_v40 = vor.u32 %v5393_v4, %v5390_v28  ;;  %v7011_v4 = vld [vmem:[%s7377_s26 + $0x34] sm:$0xf] }
 0x1a9   : > { %v2132_v52 = vpop.f32.mrf.mxu3  ;;  %v1841_v63 = vadd.f32 %v1786_v56, %v1619_v53  ;;  %v4634_v53 = vrot.slane %v4632_v29, 4  ;;  %v4635_v56 = vrot.slane %v6928_v31, 5 }
 0x1aa   : > { %v2190_v62 = vadd.f32 %v2132_v52, %v1936_v8  ;;  %v1937_v32 = vld [vmem:[#allocation2 + $0x80] sm:$0xff]  ;;  %v3905_v8 = vor.u32 %v3904_v24, %v3901_v55  ;;  %v6970_v52 = vrot.slane %v6926_v30, 9  ;;  %v7107_v24 = vld [vmem:[%s7377_s26 + $0x30] sm:$0xff] }
 0x1ab   : > { %7049 = vmatmul.msk.bf16.vlgmr.msra.gmra.mxu1 %vm464_vm1, %v5756_v38  ;;  %v2685_v5 = vld [vmem:[#allocation2 + $0x70] sm:$0xff]  ;;  %1873 = vst.msk [vmem:[#allocation2 + $0x88] sm:$0xff] %vm286_vm5, %v1841_v63  ;;  %v4636_v21 = vsel %vm7598_vm8, %v4634_v53, %v4635_v56 }
 0x1ac   : > { %v2907_v9 = vadd.f32 %v8281_v33, %v2685_v5  ;;  %2222 = vst.msk [vmem:[#allocation2 + $0x78] sm:$0xff] %vm286_vm5, %v2190_v62  ;;  %v5386_v33 = vsel %vm7392_vm4, %v5381_v57, %v5385_v22  ;;  %v7009_v22 = vld [vmem:[%s7377_s26 + $0x2c] sm:$0x1]  ;;  %v8419_v57 = vrot.slane %v3908_v46, 5  ;;  %v3918_v62 = vshll.u32 %v6863_v50, 16 }
 0x1ad   : > { %v3178_v19 = vld [vmem:[#allocation2 + $0x68] sm:$0xff]  ;;  %6840 = vmatmul.msk.bf16.gmra.mxu2 %vm464_vm1, %v7106_v1  ;;  %v5727_v49 = vunpack.c.l.b16 %v5386_v33  ;;  %v5407_v1 = vshll.u32 %v7009_v22, 16  ;;  %v3906_v5 = vrot.slane %v3905_v8, 4  ;;  %v4633_v23 = vsel %vm7598_vm8, %v6970_v52, %v4632_v29  ;;  %v1621_v33 = vld [vmem:[#allocation2 + $0x98] sm:$0xff]  ;;  %v7010_v29 = vld [vmem:[%s7377_s26 + $0x30] sm:$0xf] }
 0x1ae   : > { %2939 = vst.msk [vmem:[#allocation2 + $0x70] sm:$0xff] %vm286_vm5, %v2907_v9  ;;  %6904 = vmatmul.msk.bf16.vlgmr.msra.gmra.mxu3 %vm464_vm1, %v4300_v58  ;;  %v3400_v20 = vadd.f32 %v8279_v16, %v3178_v19  ;;  %v8403_v27 = vpop.f32.mrf.mxu0  ;;  %v8408_v16 = vunpack.c.l.b16 %v3887_v13  ;;  %v5403_v58 = vrot.slane %v5401_v12, 4  ;;  %v3915_v9 = vor.u32 %v3914_v41, %v8419_v57  ;;  %v6866_v52 = vld [vmem:[%s7377_s26 + $0x44] sm:$0x1] }
 0x1af   : > { %v5757_v37 = vpack.c.b16 %v5727_v49, %v5726_v47  ;;  %v8435_v13 = vrot.slane %v5394_v40, 4  ;;  %v8439_v12 = vrot.slane %v3918_v62, 5  ;;  %v4766_v26 = vunpack.c.l.b16 %v4633_v23 }
 0x1b0   : > { %v8401_v25 = vpop.f32.mrf.mxu1  ;;  %3432 = vst.msk [vmem:[#allocation2 + $0x68] sm:$0xff] %vm286_vm5, %v3400_v20  ;;  %v1789_v38 = vpop.f32.mrf.mxu2  ;;  %v5404_v63 = vor.u32 %v5403_v58, %v8412_v42  ;;  %v4301_v7 = vpack.c.b16 %v8410_v39, %v8408_v16  ;;  %v4767_v28 = vunpack.c.l.b16 %v4636_v21  ;;  %v3911_v31 = vsel %vm7392_vm4, %v3906_v5, %v8419_v57  ;;  %v6930_v58 = vld [vmem:[%s7377_s26 + $0x40] sm:$0xf] }
 0x1b1   : > { %v2135_v59 = vpop.f32.mrf.mxu3  ;;  %v1842_v54 = vadd.f32 %v1789_v38, %v1620_v34  ;;  %6986 = vmatmul.msk.bf16.gmra.mxu0 %vm464_vm1, %v4795_v6  ;;  %v5409_v6 = vrot.slane %v5407_v1, 5  ;;  %v3932_v34 = vshll.u32 %v6865_v11, 16  ;;  %v3916_v38 = vrot.slane %v3915_v9, 4 }
 0x1b2   : > { %v2191_v48 = vadd.f32 %v2135_v59, %v1937_v32  ;;  %v1938_v14 = vld [vmem:[#allocation2 + $0x88] sm:$0xff]  ;;  %v5405_v19 = vrot.slane %v5404_v63, 4  ;;  %v3923_v32 = vshrl.u32 %v6864_v61, 16  ;;  %v3926_v59 = vshll.u32 %v6864_v61, 16  ;;  %v6929_v63 = vld [vmem:[%s7377_s26 + $0x3c] sm:$0xe] }
 0x1b3   : > { %v2686_v51 = vld [vmem:[#allocation2 + $0x78] sm:$0xff]  ;;  %1874 = vst.msk [vmem:[#allocation2 + $0x90] sm:$0xff] %vm286_vm5, %v1842_v54  ;;  %v5400_v16 = vsel %vm7392_vm4, %v8435_v13, %v8412_v42  ;;  %v3936_v39 = vshrl.u32 %v6865_v11, 16  ;;  %v5415_v54 = vshll.u32 %v7010_v29, 16  ;;  %v5421_v47 = vshll.u32 %v7011_v4, 16 }
 0x1b4   : > { %v2908_v36 = vadd.f32 %v8304_v43, %v2686_v51  ;;  %2223 = vst.msk [vmem:[#allocation2 + $0x80] sm:$0xff] %vm286_vm5, %v2191_v48  ;;  %v5412_v48 = vshrl.u32 %v7010_v29, 16  ;;  %v5425_v49 = vshrl.u32 %v7011_v4, 16  ;;  %v4796_v42 = vpack.c.b16 %v4767_v28, %v4766_v26 }
 0x1b5   : > { %v3179_v2 = vld [vmem:[#allocation2 + $0x70] sm:$0xff]  ;;  %v3925_v53 = vrot.slane %v3923_v32, 4  ;;  %v3928_v56 = vrot.slane %v3926_v59, 5  ;;  %v4639_v57 = vrot.slane %v6930_v58, 5  ;;  %v3921_v41 = vsel %vm7392_vm4, %v3916_v38, %v8439_v12 }
 0x1b6   : > { %2940 = vst.msk [vmem:[#allocation2 + $0x78] sm:$0xff] %vm286_vm5, %v2908_v36  ;;  %v8426_v43 = vpop.f32.mrf.mxu0  ;;  %v3401_v55 = vadd.f32 %v8302_v10, %v3179_v2  ;;  %v8469_v36 = vrot.slane %v3932_v34, 5  ;;  %v8474_v40 = vunpack.c.l.b16 %v3911_v31  ;;  %v3938_v62 = vrot.slane %v3936_v39, 4  ;;  %v1622_v2 = vld [vmem:[#allocation2 + $0xa0] sm:$0xff]  ;;  %v7013_v39 = vld [vmem:[%s7377_s26 + $0x3c] sm:$0xf] }
 0x1b7   : > { %v5414_v23 = vrot.slane %v5412_v48, 4  ;;  %v5417_v21 = vrot.slane %v5415_v54, 5  ;;  %v5427_v9 = vrot.slane %v5425_v49, 4  ;;  %v5728_v11 = vunpack.c.l.b16 %v5400_v16  ;;  %v1623_v54 = vld [vmem:[#allocation2 + $0xa8] sm:$0xff] }
 0x1b8   : > { %v8424_v3 = vpop.f32.mrf.mxu1  ;;  %v1791_v18 = vpop.f32.mrf.mxu2  ;;  %3433 = vst.msk [vmem:[#allocation2 + $0x70] sm:$0xff] %vm286_vm5, %v3401_v55  ;;  %v6971_v12 = vrot.slane %v6929_v63, 9  ;;  %v5436_v63 = vshrl.u32 %v7013_v39, 16 }
 0x1b9   : > { %v2137_v17 = vpop.f32.mrf.mxu3  ;;  %v1843_v20 = vadd.f32 %v1791_v18, %v1621_v33  ;;  %v4273_v18 = vunpack.c.l.b16 %v3921_v41  ;;  %v5418_v26 = vor.u32 %v5417_v21, %v5414_v23  ;;  %v7014_v41 = vld [vmem:[%s7377_s26 + $0x40] sm:$0xf] }
 0x1ba   : > { %v2192_v46 = vadd.f32 %v2137_v17, %v1938_v14  ;;  %v1939_v1 = vld [vmem:[#allocation2 + $0x90] sm:$0xff]  ;;  %v7012_v17 = vld [vmem:[%s7377_s26 + $0x38] sm:$0x1]  ;;  %v4640_v32 = vsel %vm7598_vm8, %v6971_v12, %v4639_v57  ;;  %v5445_v21 = vshll.u32 %v7014_v41, 16  ;;  %v5438_v12 = vrot.slane %v5436_v63, 4 }
 0x1bb   : > { %7050 = vmatmul.msk.bf16.gmra.mxu1 %vm464_vm1, %v5757_v37  ;;  %v2687_v30 = vld [vmem:[#allocation2 + $0x80] sm:$0xff]  ;;  %1875 = vst.msk [vmem:[#allocation2 + $0x98] sm:$0xff] %vm286_vm5, %v1843_v20  ;;  %v3939_v20 = vor.u32 %v3938_v62, %v8469_v36  ;;  %v5431_v29 = vshll.u32 %v7012_v17, 16  ;;  %v4302_v34 = vpack.c.b16 %v4273_v18, %v8474_v40  ;;  %v5419_v49 = vrot.slane %v5418_v26, 4  ;;  %v6867_v62 = vld [vmem:[%s7377_s26 + $0x48] sm:$0xf] }
 0x1bc   : > { %v2909_v10 = vadd.f32 %v8342_v0, %v2687_v30  ;;  %2224 = vst.msk [vmem:[#allocation2 + $0x88] sm:$0xff] %vm286_vm5, %v2192_v46  ;;  %v5410_v0 = vsel %vm7392_vm4, %v5405_v19, %v5409_v6  ;;  %v4641_v19 = vrot.slane %v4639_v57, 4  ;;  %v3929_v46 = vor.u32 %v3928_v56, %v3925_v53  ;;  %v7108_v53 = vld [vmem:[%s7377_s26 + $0x3c] sm:$0xff] }
 0x1bd   : > { %v3180_v50 = vld [vmem:[#allocation2 + $0x78] sm:$0xff]  ;;  %6841 = vmatmul.msk.bf16.gmra.mxu2 %vm464_vm1, %v7107_v24  ;;  %v5729_v14 = vunpack.c.l.b16 %v5410_v0  ;;  %v3942_v24 = vshll.u32 %v6866_v52, 16  ;;  %v3940_v38 = vrot.slane %v3939_v20, 4  ;;  %v5433_v0 = vrot.slane %v5431_v29, 5  ;;  %v6932_v20 = vld [vmem:[%s7377_s26 + $0x48] sm:$0xe] }
 0x1be   : > { %2941 = vst.msk [vmem:[#allocation2 + $0x80] sm:$0xff] %vm286_vm5, %v2909_v10  ;;  %6905 = vmatmul.msk.bf16.gmra.mxu3 %vm464_vm1, %v4301_v7  ;;  %v3402_v22 = vadd.f32 %v8335_v60, %v3180_v50  ;;  %v8466_v8 = vpop.f32.mrf.mxu0  ;;  %v6931_v60 = vld [vmem:[%s7377_s26 + $0x44] sm:$0x1]  ;;  %v8479_v7 = vrot.slane %v5421_v47, 5  ;;  %v3930_v10 = vrot.slane %v3929_v46, 4  ;;  %v4768_v56 = vunpack.c.l.b16 %v4640_v32 }
 0x1bf   : > { %v4642_v6 = vrot.slane %v6931_v60, 5  ;;  %v5758_v4 = vpack.c.b16 %v5729_v14, %v5728_v11  ;;  %v3944_v16 = vrot.slane %v3942_v24, 5  ;;  %v3950_v11 = vshll.u32 %v6867_v62, 16  ;;  %v6934_v24 = vld [vmem:[%s7377_s26 + $0x50] sm:$0x1] }
 0x1c0   : > { %v8464_v51 = vpop.f32.mrf.mxu1  ;;  %3434 = vst.msk [vmem:[#allocation2 + $0x78] sm:$0xff] %vm286_vm5, %v3402_v22  ;;  %v1794_v5 = vpop.f32.mrf.mxu2  ;;  %v5428_v28 = vor.u32 %v5427_v9, %v8479_v7  ;;  %v5424_v23 = vsel %vm7392_vm4, %v5419_v49, %v8479_v7  ;;  %v5449_v9 = vshrl.u32 %v7014_v41, 16  ;;  %v7015_v32 = vld [vmem:[%s7377_s26 + $0x44] sm:$0x1]  ;;  %v4649_v49 = vrot.slane %v6934_v24, 5 }
 0x1c1   : > { %v2140_v37 = vpop.f32.mrf.mxu3  ;;  %v1844_v61 = vadd.f32 %v1794_v5, %v1622_v2  ;;  %6987 = vmatmul.msk.bf16.gmra.mxu0 %vm464_vm1, %v4796_v42  ;;  %v4643_v59 = vsel %vm7598_vm8, %v4641_v19, %v4642_v6  ;;  %v5439_v2 = vshll.u32 %v7013_v39, 16  ;;  %v8514_v5 = vld [vmem:[%s7377_s26 + $0x4c] sm:$0xf]  ;;  %v3952_v39 = vrot.slane %v3950_v11, 5 }
 0x1c2   : > { %v2193_v13 = vadd.f32 %v2140_v37, %v1939_v1  ;;  %v1940_v58 = vld [vmem:[#allocation2 + $0x98] sm:$0xff]  ;;  %v5429_v50 = vrot.slane %v5428_v28, 4  ;;  %v4769_v57 = vunpack.c.l.b16 %v4643_v59  ;;  %v3945_v1 = vsel %vm7392_vm4, %v3940_v38, %v3944_v16  ;;  %v6868_v37 = vld [vmem:[%s7377_s26 + $0x4c] sm:$0xf]  ;;  %v1624_v28 = vld [vmem:[#allocation2 + $0xb0] sm:$0xff] }
 0x1c3   : > { %v2688_v33 = vld [vmem:[#allocation2 + $0x88] sm:$0xff]  ;;  %1876 = vst.msk [vmem:[#allocation2 + $0xa0] sm:$0xff] %vm286_vm5, %v1844_v61  ;;  %v3947_v61 = vshrl.u32 %v6867_v62, 16  ;;  %v3960_v18 = vshrl.u32 %v6868_v37, 16  ;;  %v4646_v19 = vrot.slane %v8514_v5, 5  ;;  %v5441_v46 = vrot.slane %v5439_v2, 5 }
 0x1c4   : > { %v2910_v55 = vadd.f32 %v8370_v45, %v2688_v33  ;;  %2225 = vst.msk [vmem:[#allocation2 + $0x90] sm:$0xff] %vm286_vm5, %v2193_v13  ;;  %v3956_v33 = vshll.u32 %v6868_v37, 16  ;;  %v8539_v59 = vrot.slane %v5445_v21, 5  ;;  %v7017_v24 = vld [vmem:[%s7377_s26 + $0x4c] sm:$0xf] }
 0x1c5   : > { %v3181_v30 = vld [vmem:[#allocation2 + $0x80] sm:$0xff]  ;;  %v3949_v16 = vrot.slane %v3947_v61, 4 }
 0x1c6   : > { %2942 = vst.msk [vmem:[#allocation2 + $0x88] sm:$0xff] %vm286_vm5, %v2910_v55  ;;  %v8491_v45 = vpop.f32.mrf.mxu0  ;;  %v3403_v42 = vadd.f32 %v8366_v44, %v3181_v30  ;;  %v3935_v44 = vsel %vm7392_vm4, %v3930_v10, %v8469_v36  ;;  %v4797_v36 = vpack.c.b16 %v4769_v57, %v4768_v56  ;;  %v8533_v55 = vunpack.c.l.b16 %v3945_v1  ;;  %v6870_v57 = vld [vmem:[%s7377_s26 + $0x54] sm:$0xf] }
 0x1c7   : > { %v8531_v6 = vunpack.c.l.b16 %v3935_v44  ;;  %v3953_v63 = vor.u32 %v3952_v39, %v3949_v16  ;;  %v3971_v61 = vshrl.u32 %v6870_v57, 16  ;;  %v3974_v11 = vshll.u32 %v6870_v57, 16  ;;  %v1626_v57 = vld [vmem:[#allocation2 + $0xc0] sm:$0xff] }
 0x1c8   : > { %v8489_v31 = vpop.f32.mrf.mxu1  ;;  %v1796_v47 = vpop.f32.mrf.mxu2  ;;  %3435 = vst.msk [vmem:[#allocation2 + $0x80] sm:$0xff] %vm286_vm5, %v3403_v42  ;;  %v5442_v42 = vor.u32 %v5441_v46, %v5438_v12  ;;  %v7109_v12 = vld [vmem:[%s7377_s26 + $0x48] sm:$0xff]  ;;  %v5469_v39 = vshll.u32 %v7017_v24, 16 }
 0x1c9   : > { %v2142_v48 = vpop.f32.mrf.mxu3  ;;  %v1845_v52 = vadd.f32 %v1796_v47, %v1623_v54  ;;  %v6972_v54 = vrot.slane %v6932_v20, 9  ;;  %v4648_v47 = vrot.slane %v4646_v19, 4  ;;  %v3954_v20 = vrot.slane %v3953_v63, 4 }
 0x1ca   : > { %v2194_v22 = vadd.f32 %v2142_v48, %v1940_v58  ;;  %v8542_v48 = vrot.slane %v3956_v33, 5  ;;  %v5443_v2 = vrot.slane %v5442_v42, 4 }
 0x1cb   : > { %7051 = vmatmul.msk.bf16.gmra.mxu1 %vm464_vm1, %v5758_v4  ;;  %v2689_v40 = vld [vmem:[#allocation2 + $0x90] sm:$0xff]  ;;  %1877 = vst.msk [vmem:[#allocation2 + $0xa8] sm:$0xff] %vm286_vm5, %v1845_v52  ;;  %v5730_v4 = vunpack.c.l.b16 %v5424_v23  ;;  %v4650_v44 = vsel %vm7598_vm8, %v4648_v47, %v4649_v49  ;;  %v7016_v23 = vld [vmem:[%s7377_s26 + $0x48] sm:$0xf] }
 0x1cc   : > { %v2911_v60 = vadd.f32 %v8403_v27, %v2689_v40  ;;  %2226 = vst.msk [vmem:[#allocation2 + $0x98] sm:$0xff] %vm286_vm5, %v2194_v22  ;;  %v5434_v27 = vsel %vm7392_vm4, %v5429_v50, %v5433_v0  ;;  %v3962_v0 = vrot.slane %v3960_v18, 4  ;;  %v5455_v22 = vshll.u32 %v7015_v32, 16  ;;  %v6869_v52 = vld [vmem:[%s7377_s26 + $0x50] sm:$0x1] }
 0x1cd   : > { %v3182_v13 = vld [vmem:[#allocation2 + $0x88] sm:$0xff]  ;;  %6842 = vmatmul.msk.bf16.gmra.mxu2 %vm464_vm1, %v7108_v53  ;;  %v5731_v30 = vunpack.c.l.b16 %v5434_v27  ;;  %v3966_v37 = vshll.u32 %v6869_v52, 16  ;;  %v6937_v52 = vld [vmem:[%s7377_s26 + $0x5c] sm:$0x1] }
 0x1ce   : > { %2943 = vst.msk [vmem:[#allocation2 + $0x90] sm:$0xff] %vm286_vm5, %v2911_v60  ;;  %6906 = vmatmul.msk.bf16.gmra.mxu3 %vm464_vm1, %v4302_v34  ;;  %v3404_v14 = vadd.f32 %v8401_v25, %v3182_v13  ;;  %v8528_v17 = vpop.f32.mrf.mxu0  ;;  %v1941_v25 = vld [vmem:[#allocation2 + $0xa0] sm:$0xff]  ;;  %v5451_v34 = vrot.slane %v5449_v9, 4  ;;  %v4647_v60 = vsel %vm7598_vm8, %v6972_v54, %v4646_v19  ;;  %v3963_v1 = vor.u32 %v3962_v0, %v8542_v48  ;;  %v1625_v9 = vld [vmem:[#allocation2 + $0xb8] sm:$0xff] }
 0x1cf   : > { %v5759_v56 = vpack.c.b16 %v5731_v30, %v5730_v4  ;;  %v5457_v5 = vrot.slane %v5455_v22, 5  ;;  %v4770_v19 = vunpack.c.l.b16 %v4647_v60  ;;  %v8572_v4 = vld [vmem:[%s7377_s26 + $0x58] sm:$0xf]  ;;  %v5448_v30 = vsel %vm7392_vm4, %v5443_v2, %v8539_v59  ;;  %v6935_v22 = vld [vmem:[%s7377_s26 + $0x54] sm:$0xe] }
 0x1d0   : > { %v8526_v7 = vpop.f32.mrf.mxu1  ;;  %3436 = vst.msk [vmem:[#allocation2 + $0x88] sm:$0xff] %vm286_vm5, %v3404_v14  ;;  %v1799_v29 = vpop.f32.mrf.mxu2  ;;  %v5452_v53 = vor.u32 %v5451_v34, %v8539_v59  ;;  %v3973_v34 = vrot.slane %v3971_v61, 4  ;;  %v4653_v0 = vrot.slane %v8572_v4, 5  ;;  %v5732_v63 = vunpack.c.l.b16 %v5448_v30 }
 0x1d1   : > { %v2145_v26 = vpop.f32.mrf.mxu3  ;;  %v1846_v38 = vadd.f32 %v1799_v29, %v1624_v28  ;;  %6988 = vmatmul.msk.bf16.gmra.mxu0 %vm464_vm1, %v4797_v36  ;;  %v3968_v28 = vrot.slane %v3966_v37, 5  ;;  %v5463_v29 = vshll.u32 %v7016_v23, 16  ;;  %v6872_v37 = vld [vmem:[%s7377_s26 + $0x5c] sm:$0x1] }
 0x1d2   : > { %v2195_v10 = vadd.f32 %v2145_v26, %v1941_v25  ;;  %v1942_v27 = vld [vmem:[#allocation2 + $0xa8] sm:$0xff]  ;;  %v5453_v36 = vrot.slane %v5452_v53, 4  ;;  %v5460_v25 = vshrl.u32 %v7016_v23, 16  ;;  %v8600_v23 = vrot.slane %v5469_v39, 5 }
 0x1d3   : > { %v2690_v58 = vld [vmem:[#allocation2 + $0x98] sm:$0xff]  ;;  %1878 = vst.msk [vmem:[#allocation2 + $0xb0] sm:$0xff] %vm286_vm5, %v1846_v38  ;;  %v5465_v42 = vrot.slane %v5463_v29, 5  ;;  %v6873_v29 = vld [vmem:[%s7377_s26 + $0x60] sm:$0xf] }
 0x1d4   : > { %v2912_v50 = vadd.f32 %v8426_v43, %v2690_v58  ;;  %2227 = vst.msk [vmem:[#allocation2 + $0xa0] sm:$0xff] %vm286_vm5, %v2195_v10  ;;  %v4303_v43 = vpack.c.b16 %v8533_v55, %v8531_v6  ;;  %v4771_v6 = vunpack.c.l.b16 %v4650_v44  ;;  %v6871_v55 = vld [vmem:[%s7377_s26 + $0x58] sm:$0xf]  ;;  %v5458_v32 = vsel %vm7392_vm4, %v5453_v36, %v5457_v5  ;;  %v7018_v5 = vld [vmem:[%s7377_s26 + $0x50] sm:$0x1] }
 0x1d5   : > { %v3183_v41 = vld [vmem:[#allocation2 + $0x90] sm:$0xff]  ;;  %v3976_v10 = vrot.slane %v3974_v11, 5  ;;  %v3980_v16 = vshll.u32 %v6871_v55, 16  ;;  %v3984_v47 = vshrl.u32 %v6871_v55, 16  ;;  %v5462_v49 = vrot.slane %v5460_v25, 4 }
 0x1d6   : > { %2944 = vst.msk [vmem:[#allocation2 + $0x98] sm:$0xff] %vm286_vm5, %v2912_v50  ;;  %v8555_v62 = vpop.f32.mrf.mxu0  ;;  %v3405_v14 = vadd.f32 %v8424_v3, %v3183_v41  ;;  %v3964_v3 = vrot.slane %v3963_v1, 4  ;;  %v4798_v38 = vpack.c.b16 %v4771_v6, %v4770_v19  ;;  %v5473_v50 = vshrl.u32 %v7017_v24, 16 }
 0x1d7   : > { %v3959_v41 = vsel %vm7392_vm4, %v3954_v20, %v8542_v48  ;;  %v5733_v60 = vunpack.c.l.b16 %v5458_v32  ;;  %v3977_v2 = vor.u32 %v3976_v10, %v3973_v34  ;;  %v4656_v36 = vrot.slane %v6937_v52, 5  ;;  %v1627_v32 = vld [vmem:[#allocation2 + $0xc8] sm:$0xff] }
 0x1d8   : > { %v8551_v40 = vpop.f32.mrf.mxu1  ;;  %v1801_v13 = vpop.f32.mrf.mxu2  ;;  %3437 = vst.msk [vmem:[#allocation2 + $0x90] sm:$0xff] %vm286_vm5, %v3405_v14  ;;  %v8604_v61 = vrot.slane %v3980_v16, 5  ;;  %v3986_v11 = vrot.slane %v3984_v47, 4  ;;  %v5466_v14 = vor.u32 %v5465_v42, %v5462_v49  ;;  %v5479_v19 = vshll.u32 %v7018_v5, 16  ;;  %v7110_v47 = vld [vmem:[%s7377_s26 + $0x54] sm:$0xff] }
 0x1d9   : > { %v2147_v21 = vpop.f32.mrf.mxu3  ;;  %v1847_v18 = vadd.f32 %v1801_v13, %v1625_v9  ;;  %v6973_v9 = vrot.slane %v6935_v22, 9  ;;  %v4655_v13 = vrot.slane %v4653_v0, 4  ;;  %v5760_v6 = vpack.c.b16 %v5733_v60, %v5732_v63  ;;  %v7020_v42 = vld [vmem:[%s7377_s26 + $0x58] sm:$0xf]  ;;  %v8637_v63 = vld [vmem:[%s7377_s26 + $0x64] sm:$0xf] }
 0x1da   : > { %v2196_v33 = vadd.f32 %v2147_v21, %v1942_v27  ;;  %v1943_v53 = vld [vmem:[#allocation2 + $0xb0] sm:$0xff]  ;;  %v5475_v21 = vrot.slane %v5473_v50, 4  ;;  %v3978_v20 = vrot.slane %v3977_v2, 4 }
 0x1db   : > { %7052 = vmatmul.msk.bf16.gmra.mxu1 %vm464_vm1, %v5759_v56  ;;  %v2691_v46 = vld [vmem:[#allocation2 + $0xa0] sm:$0xff]  ;;  %1879 = vst.msk [vmem:[#allocation2 + $0xb8] sm:$0xff] %vm286_vm5, %v1847_v18  ;;  %v4654_v25 = vsel %vm7598_vm8, %v6973_v9, %v4653_v0  ;;  %v7019_v0 = vld [vmem:[%s7377_s26 + $0x54] sm:$0xf] }
 0x1dc   : > { %v2913_v26 = vadd.f32 %v8466_v8, %v2691_v46  ;;  %2228 = vst.msk [vmem:[#allocation2 + $0xa8] sm:$0xff] %vm286_vm5, %v2196_v33  ;;  %v4276_v33 = vunpack.c.l.b16 %v3959_v41  ;;  %v5476_v24 = vor.u32 %v5475_v21, %v8600_v23  ;;  %v4772_v49 = vunpack.c.l.b16 %v4654_v25 }
 0x1dd   : > { %v3184_v8 = vld [vmem:[#allocation2 + $0x98] sm:$0xff]  ;;  %6843 = vmatmul.msk.bf16.gmra.mxu2 %vm464_vm1, %v7109_v12  ;;  %v3990_v12 = vshll.u32 %v6872_v37, 16  ;;  %v3983_v52 = vsel %vm7392_vm4, %v3978_v20, %v8604_v61  ;;  %v5484_v60 = vshrl.u32 %v7019_v0, 16  ;;  %v5497_v37 = vshrl.u32 %v7020_v42, 16 }
 0x1de   : > { %2945 = vst.msk [vmem:[#allocation2 + $0xa0] sm:$0xff] %vm286_vm5, %v2913_v26  ;;  %6907 = vmatmul.msk.bf16.gmra.mxu3 %vm464_vm1, %v4303_v43  ;;  %v3406_v58 = vadd.f32 %v8464_v51, %v3184_v8  ;;  %v8586_v54 = vpop.f32.mrf.mxu0  ;;  %v3969_v43 = vsel %vm7392_vm4, %v3964_v3, %v3968_v28  ;;  %v4657_v26 = vsel %vm7598_vm8, %v4655_v13, %v4656_v36  ;;  %v5467_v28 = vrot.slane %v5466_v14, 4  ;;  %v6875_v13 = vld [vmem:[%s7377_s26 + $0x68] sm:$0x1] }
 0x1df   : > { %v4277_v18 = vunpack.c.l.b16 %v3969_v43  ;;  %v3987_v3 = vor.u32 %v3986_v11, %v8604_v61  ;;  %v8619_v8 = vrot.slane %v3990_v12, 5  ;;  %v4773_v50 = vunpack.c.l.b16 %v4657_v26  ;;  %v6940_v12 = vld [vmem:[%s7377_s26 + $0x68] sm:$0x1] }
 0x1e0   : > { %v8584_v59 = vpop.f32.mrf.mxu1  ;;  %3438 = vst.msk [vmem:[#allocation2 + $0x98] sm:$0xff] %vm286_vm5, %v3406_v58  ;;  %v1804_v51 = vpop.f32.mrf.mxu2  ;;  %v5472_v41 = vsel %vm7392_vm4, %v5467_v28, %v8600_v23  ;;  %v3998_v43 = vshll.u32 %v6873_v29, 16  ;;  %v4660_v61 = vrot.slane %v8637_v63, 5  ;;  %v8655_v14 = vunpack.c.l.b16 %v3983_v52 }
 0x1e1   : > { %v2150_v56 = vpop.f32.mrf.mxu3  ;;  %v1848_v1 = vadd.f32 %v1804_v51, %v1626_v57  ;;  %6989 = vmatmul.msk.bf16.gmra.mxu0 %vm464_vm1, %v4798_v38  ;;  %v4304_v10 = vpack.c.b16 %v4277_v18, %v4276_v33  ;;  %v5481_v38 = vrot.slane %v5479_v19, 5  ;;  %v3995_v57 = vshrl.u32 %v6873_v29, 16  ;;  %v6938_v18 = vld [vmem:[%s7377_s26 + $0x60] sm:$0xe] }
 0x1e2   : > { %v2197_v44 = vadd.f32 %v2150_v56, %v1943_v53  ;;  %v1944_v4 = vld [vmem:[#allocation2 + $0xb8] sm:$0xff]  ;;  %v5477_v53 = vrot.slane %v5476_v24, 4  ;;  %v6874_v56 = vld [vmem:[%s7377_s26 + $0x64] sm:$0xf]  ;;  %v3988_v51 = vrot.slane %v3987_v3, 4  ;;  %v5734_v33 = vunpack.c.l.b16 %v5472_v41 }
 0x1e3   : > { %v2692_v27 = vld [vmem:[#allocation2 + $0xa8] sm:$0xff]  ;;  %1880 = vst.msk [vmem:[#allocation2 + $0xc0] sm:$0xff] %vm286_vm5, %v1848_v1  ;;  %v5493_v1 = vshll.u32 %v7020_v42, 16  ;;  %v4004_v5 = vshll.u32 %v6874_v56, 16  ;;  %v3997_v36 = vrot.slane %v3995_v57, 4  ;;  %v5486_v24 = vrot.slane %v5484_v60, 4 }
 0x1e4   : > { %v2914_v48 = vadd.f32 %v8491_v45, %v2692_v27  ;;  %2229 = vst.msk [vmem:[#allocation2 + $0xb0] sm:$0xff] %vm286_vm5, %v2197_v44  ;;  %v5487_v44 = vshll.u32 %v7019_v0, 16  ;;  %v5482_v21 = vsel %vm7392_vm4, %v5477_v53, %v5481_v38  ;;  %v3993_v11 = vsel %vm7392_vm4, %v3988_v51, %v8619_v8  ;;  %v6876_v60 = vld [vmem:[%s7377_s26 + $0x6c] sm:$0xf] }
 0x1e5   : > { %v3185_v55 = vld [vmem:[#allocation2 + $0xa0] sm:$0xff]  ;;  %v8660_v26 = vrot.slane %v5493_v1, 5  ;;  %v5499_v3 = vrot.slane %v5497_v37, 4  ;;  %v6974_v8 = vrot.slane %v6938_v18, 9  ;;  %v4662_v38 = vrot.slane %v4660_v61, 4 }
 0x1e6   : > { %2946 = vst.msk [vmem:[#allocation2 + $0xa8] sm:$0xff] %vm286_vm5, %v2914_v48  ;;  %v8610_v45 = vpop.f32.mrf.mxu0  ;;  %v3407_v16 = vadd.f32 %v8489_v31, %v3185_v55  ;;  %v4008_v48 = vshrl.u32 %v6874_v56, 16  ;;  %v1628_v55 = vld [vmem:[#allocation2 + $0xd0] sm:$0xff]  ;;  %v5489_v25 = vrot.slane %v5487_v44, 5 }
 0x1e7   : > { %v5500_v0 = vor.u32 %v5499_v3, %v8660_v26  ;;  %v6877_v44 = vld [vmem:[%s7377_s26 + $0x70] sm:$0xf] }
 0x1e8   : > { %v8608_v46 = vpop.f32.mrf.mxu1  ;;  %v1806_v34 = vpop.f32.mrf.mxu2  ;;  %3439 = vst.msk [vmem:[#allocation2 + $0xa0] sm:$0xff] %vm286_vm5, %v3407_v16  ;;  %v4663_v16 = vrot.slane %v6940_v12, 5  ;;  %v4019_v12 = vshrl.u32 %v6876_v60, 16 }
 0x1e9   : > { %v2152_v30 = vpop.f32.mrf.mxu3  ;;  %v1849_v58 = vadd.f32 %v1806_v34, %v1627_v32  ;;  %v7021_v32 = vld [vmem:[%s7377_s26 + $0x5c] sm:$0x1] }
 0x1ea   : > { %v2198_v39 = vadd.f32 %v2152_v30, %v1944_v4  ;;  %v1945_v19 = vld [vmem:[#allocation2 + $0xc0] sm:$0xff]  ;;  %v5735_v4 = vunpack.c.l.b16 %v5482_v21  ;;  %v8663_v30 = vrot.slane %v4004_v5, 5  ;;  %v5503_v42 = vshll.u32 %v7021_v32, 16 }
 0x1eb   : > { %7053 = vmatmul.msk.bf16.gmra.mxu1 %vm464_vm1, %v5760_v6  ;;  %v2693_v22 = vld [vmem:[#allocation2 + $0xb0] sm:$0xff]  ;;  %1881 = vst.msk [vmem:[#allocation2 + $0xc8] sm:$0xff] %vm286_vm5, %v1849_v58  ;;  %v4279_v58 = vunpack.c.l.b16 %v3993_v11  ;;  %v4664_v51 = vsel %vm7598_vm8, %v4662_v38, %v4663_v16  ;;  %v5501_v5 = vrot.slane %v5500_v0, 4  ;;  %v7022_v21 = vld [vmem:[%s7377_s26 + $0x60] sm:$0xf]  ;;  %v4021_v38 = vrot.slane %v4019_v12, 4 }
 0x1ec   : > { %v2915_v31 = vadd.f32 %v8528_v17, %v2693_v22  ;;  %2230 = vst.msk [vmem:[#allocation2 + $0xb8] sm:$0xff] %vm286_vm5, %v2198_v39  ;;  %v4799_v17 = vpack.c.b16 %v4773_v50, %v4772_v49  ;;  %v4014_v49 = vshll.u32 %v6875_v13, 16  ;;  %v5490_v50 = vor.u32 %v5489_v25, %v5486_v24  ;;  %v6941_v0 = vld [vmem:[%s7377_s26 + $0x6c] sm:$0xe] }
 0x1ed   : > { %v3186_v2 = vld [vmem:[#allocation2 + $0xa8] sm:$0xff]  ;;  %6844 = vmatmul.msk.bf16.gmra.mxu2 %vm464_vm1, %v7110_v47  ;;  %v5761_v22 = vpack.c.b16 %v5735_v4, %v5734_v33  ;;  %v4305_v41 = vpack.c.b16 %v4279_v58, %v8655_v14  ;;  %v4775_v14 = vunpack.c.l.b16 %v4664_v51  ;;  %v7023_v33 = vld [vmem:[%s7377_s26 + $0x64] sm:$0xf]  ;;  %v5511_v24 = vshll.u32 %v7022_v21, 16  ;;  %v6942_v4 = vld [vmem:[%s7377_s26 + $0x70] sm:$0xf] }
 0x1ee   : > { %2947 = vst.msk [vmem:[#allocation2 + $0xb0] sm:$0xff] %vm286_vm5, %v2915_v31  ;;  %6908 = vmatmul.msk.bf16.gmra.mxu3 %vm464_vm1, %v4304_v10  ;;  %v3408_v23 = vadd.f32 %v8526_v7, %v3186_v2  ;;  %v8648_v9 = vpop.f32.mrf.mxu0  ;;  %v4000_v7 = vrot.slane %v3998_v43, 5  ;;  %v4010_v10 = vrot.slane %v4008_v48, 4  ;;  %v4661_v31 = vsel %vm7598_vm8, %v6974_v8, %v4660_v61  ;;  %v7111_v61 = vld [vmem:[%s7377_s26 + $0x60] sm:$0xff]  ;;  %v6878_v8 = vld [vmem:[%s7377_s26 + $0x74] sm:$0x1] }
 0x1ef   : > { %v8681_v63 = vrot.slane %v4014_v49, 5  ;;  %v4774_v11 = vunpack.c.l.b16 %v4661_v31  ;;  %v4667_v58 = vrot.slane %v6942_v4, 5  ;;  %v5513_v31 = vrot.slane %v5511_v24, 5  ;;  %v7025_v24 = vld [vmem:[%s7377_s26 + $0x6c] sm:$0xf] }
 0x1f0   : > { %v8644_v27 = vpop.f32.mrf.mxu1  ;;  %3440 = vst.msk [vmem:[#allocation2 + $0xa8] sm:$0xff] %vm286_vm5, %v3408_v23  ;;  %v1809_v20 = vpop.f32.mrf.mxu2  ;;  %v4001_v47 = vor.u32 %v4000_v7, %v3997_v36  ;;  %v4011_v57 = vor.u32 %v4010_v10, %v8663_v30  ;;  %v5505_v23 = vrot.slane %v5503_v42, 5 }
 0x1f1   : > { %v2155_v6 = vpop.f32.mrf.mxu3  ;;  %v1850_v29 = vadd.f32 %v1809_v20, %v1628_v55  ;;  %6990 = vmatmul.msk.bf16.gmra.mxu0 %vm464_vm1, %v4799_v17  ;;  %v5491_v17 = vrot.slane %v5490_v50, 4  ;;  %v5508_v20 = vshrl.u32 %v7022_v21, 16 }
 0x1f2   : > { %v2199_v28 = vadd.f32 %v2155_v6, %v1945_v19  ;;  %v4002_v43 = vrot.slane %v4001_v47, 4  ;;  %v1946_v1 = vld [vmem:[#allocation2 + $0xc8] sm:$0xff]  ;;  %v4012_v18 = vrot.slane %v4011_v57, 4  ;;  %v4022_v19 = vshll.u32 %v6876_v60, 16 }
 0x1f3   : > { %v2694_v34 = vld [vmem:[#allocation2 + $0xb8] sm:$0xff]  ;;  %1882 = vst.msk [vmem:[#allocation2 + $0xd0] sm:$0xff] %vm286_vm5, %v1850_v29  ;;  %v4028_v6 = vshll.u32 %v6877_v44, 16  ;;  %v5496_v3 = vsel %vm7392_vm4, %v5491_v17, %v8660_v26  ;;  %v5521_v29 = vshrl.u32 %v7023_v33, 16  ;;  %v5506_v32 = vsel %vm7392_vm4, %v5501_v5, %v5505_v23 }
 0x1f4   : > { %v2916_v39 = vadd.f32 %v8555_v62, %v2694_v34  ;;  %2231 = vst.msk [vmem:[#allocation2 + $0xc0] sm:$0xff] %vm286_vm5, %v2199_v28  ;;  %v1629_v62 = vld [vmem:[#allocation2 + $0xd8] sm:$0xff]  ;;  %v4007_v25 = vsel %vm7392_vm4, %v4002_v43, %v8663_v30  ;;  %v5517_v28 = vshll.u32 %v7023_v33, 16  ;;  %v4800_v30 = vpack.c.b16 %v4775_v14, %v4774_v11 }
 0x1f5   : > { %v3187_v52 = vld [vmem:[#allocation2 + $0xb0] sm:$0xff]  ;;  %v4024_v16 = vrot.slane %v4022_v19, 5  ;;  %v4017_v47 = vsel %vm7392_vm4, %v4012_v18, %v8681_v63  ;;  %v8717_v49 = vunpack.c.l.b16 %v4007_v25  ;;  %v5510_v57 = vrot.slane %v5508_v20, 4 }
 0x1f6   : > { %2948 = vst.msk [vmem:[#allocation2 + $0xb8] sm:$0xff] %vm286_vm5, %v2916_v39  ;;  %v8673_v56 = vpop.f32.mrf.mxu0  ;;  %v3409_v13 = vadd.f32 %v8551_v40, %v3187_v52  ;;  %v4032_v40 = vshrl.u32 %v6877_v44, 16  ;;  %v8712_v39 = vrot.slane %v4028_v6, 5  ;;  %v1630_v52 = vld [vmem:[#allocation2 + $0xe0] sm:$0xff]  ;;  %v8722_v51 = vrot.slane %v5517_v28, 5  ;;  %v1631_v28 = vld [vmem:[#allocation2 + $0xe8] sm:$0xff] }
 0x1f7   : > { %v5736_v63 = vunpack.c.l.b16 %v5496_v3  ;;  %v5737_v44 = vunpack.c.l.b16 %v5506_v32  ;;  %v6975_v17 = vrot.slane %v6941_v0, 9  ;;  %v4669_v5 = vrot.slane %v4667_v58, 4 }
 0x1f8   : > { %v8671_v53 = vpop.f32.mrf.mxu1  ;;  %v1811_v2 = vpop.f32.mrf.mxu2  ;;  %3441 = vst.msk [vmem:[#allocation2 + $0xb0] sm:$0xff] %vm286_vm5, %v3409_v13  ;;  %v4034_v50 = vrot.slane %v4032_v40, 4  ;;  %v4025_v13 = vor.u32 %v4024_v16, %v4021_v38  ;;  %v7112_v38 = vld [vmem:[%s7377_s26 + $0x6c] sm:$0xff]  ;;  %v5532_v0 = vshrl.u32 %v7025_v24, 16 }
 0x1f9   : > { %v2157_v37 = vpop.f32.mrf.mxu3  ;;  %v1851_v48 = vadd.f32 %v1811_v2, %v1629_v62  ;;  %v4281_v2 = vunpack.c.l.b16 %v4017_v47  ;;  %v5762_v33 = vpack.c.b16 %v5737_v44, %v5736_v63  ;;  %v4668_v12 = vsel %vm7598_vm8, %v6975_v17, %v4667_v58  ;;  %v7026_v47 = vld [vmem:[%s7377_s26 + $0x70] sm:$0xf]  ;;  %v6945_v63 = vld [vmem:[%s7377_s26 + $0x7c] sm:$0xf] }
 0x1fa   : > { %v2200_v36 = vadd.f32 %v2157_v37, %v1946_v1  ;;  %v1947_v42 = vld [vmem:[#allocation2 + $0xd0] sm:$0xff]  ;;  %v7024_v1 = vld [vmem:[%s7377_s26 + $0x68] sm:$0x1]  ;;  %v4776_v16 = vunpack.c.l.b16 %v4668_v12  ;;  %v5534_v17 = vrot.slane %v5532_v0, 4 }
 0x1fb   : > { %7054 = vmatmul.msk.bf16.gmra.mxu1 %vm464_vm1, %v5761_v22  ;;  %v2695_v7 = vld [vmem:[#allocation2 + $0xc0] sm:$0xff]  ;;  %1883 = vst.msk [vmem:[#allocation2 + $0xd8] sm:$0xff] %vm286_vm5, %v1851_v48  ;;  %v4038_v48 = vshll.u32 %v6878_v8, 16  ;;  %v5527_v14 = vshll.u32 %v7024_v1, 16  ;;  %v4306_v6 = vpack.c.b16 %v4281_v2, %v8717_v49 }
 0x1fc   : > { %v2917_v55 = vadd.f32 %v8586_v54, %v2695_v7  ;;  %2232 = vst.msk [vmem:[#allocation2 + $0xc8] sm:$0xff] %vm286_vm5, %v2200_v36  ;;  %v4035_v36 = vor.u32 %v4034_v50, %v8712_v39  ;;  %v6879_v50 = vld [vmem:[%s7377_s26 + $0x78] sm:$0xf] }
 0x1fd   : > { %v3188_v54 = vld [vmem:[#allocation2 + $0xb8] sm:$0xff]  ;;  %6845 = vmatmul.msk.bf16.gmra.mxu2 %vm464_vm1, %v7111_v61  ;;  %v5514_v61 = vor.u32 %v5513_v31, %v5510_v57  ;;  %v4040_v20 = vrot.slane %v4038_v48, 5  ;;  %v5529_v32 = vrot.slane %v5527_v14, 5  ;;  %v5541_v57 = vshll.u32 %v7026_v47, 16 }
 0x1fe   : > { %2949 = vst.msk [vmem:[#allocation2 + $0xc0] sm:$0xff] %vm286_vm5, %v2917_v55  ;;  %6909 = vmatmul.msk.bf16.gmra.mxu3 %vm464_vm1, %v4305_v41  ;;  %v3410_v34 = vadd.f32 %v8584_v59, %v3188_v54  ;;  %v8709_v26 = vpop.f32.mrf.mxu0  ;;  %v6943_v59 = vld [vmem:[%s7377_s26 + $0x74] sm:$0x1]  ;;  %v5523_v41 = vrot.slane %v5521_v29, 4  ;;  %v4026_v55 = vrot.slane %v4025_v13, 4  ;;  %v4036_v40 = vrot.slane %v4035_v36, 4 }
 0x1ff   : > { %v4670_v23 = vrot.slane %v6943_v59, 5  ;;  %v5515_v4 = vrot.slane %v5514_v61, 4  ;;  %v5545_v31 = vshrl.u32 %v7026_v47, 16  ;;  %v6944_v13 = vld [vmem:[%s7377_s26 + $0x78] sm:$0xe] }
 0x200   : > { %v8707_v10 = vpop.f32.mrf.mxu1  ;;  %3442 = vst.msk [vmem:[#allocation2 + $0xb8] sm:$0xff] %vm286_vm5, %v3410_v34  ;;  %v1814_v62 = vpop.f32.mrf.mxu2  ;;  %v5524_v11 = vor.u32 %v5523_v41, %v8722_v51  ;;  %v6946_v36 = vld [vmem:[%s7377_s26 + $0x80] sm:$0x1]  ;;  %v6882_v47 = vld [vmem:[%s7377_s26 + $0x84] sm:$0xf] }
 0x201   : > { %v2160_v22 = vpop.f32.mrf.mxu3  ;;  %v1852_v60 = vadd.f32 %v1814_v62, %v1630_v52  ;;  %6991 = vmatmul.msk.bf16.gmra.mxu0 %vm464_vm1, %v4800_v30  ;;  %v4671_v19 = vsel %vm7598_vm8, %v4669_v5, %v4670_v23  ;;  %v5535_v52 = vshll.u32 %v7025_v24, 16  ;;  %v5520_v62 = vsel %vm7392_vm4, %v5515_v4, %v8722_v51 }
 0x202   : > { %v2201_v43 = vadd.f32 %v2160_v22, %v1947_v42  ;;  %v1948_v25 = vld [vmem:[#allocation2 + $0xd8] sm:$0xff]  ;;  %v5525_v54 = vrot.slane %v5524_v11, 4  ;;  %v4777_v58 = vunpack.c.l.b16 %v4671_v19  ;;  %v4041_v42 = vsel %vm7392_vm4, %v4036_v40, %v4040_v20  ;;  %v1632_v11 = vld [vmem:[#allocation2 + $0xf0] sm:$0xff] }
 0x203   : > { %v2696_v37 = vld [vmem:[#allocation2 + $0xc8] sm:$0xff]  ;;  %1884 = vst.msk [vmem:[#allocation2 + $0xe0] sm:$0xff] %vm286_vm5, %v1852_v60  ;;  %v6880_v22 = vld [vmem:[%s7377_s26 + $0x7c] sm:$0xf]  ;;  %v4046_v60 = vshll.u32 %v6879_v50, 16  ;;  %v4674_v5 = vrot.slane %v6945_v63, 5  ;;  %v8776_v14 = vunpack.c.l.b16 %v4041_v42 }
 0x204   : > { %v2918_v21 = vadd.f32 %v8610_v45, %v2696_v37  ;;  %2233 = vst.msk [vmem:[#allocation2 + $0xd0] sm:$0xff] %vm286_vm5, %v2201_v43  ;;  %v4043_v43 = vshrl.u32 %v6879_v50, 16  ;;  %v4052_v37 = vshll.u32 %v6880_v22, 16  ;;  %v4056_v2 = vshrl.u32 %v6880_v22, 16  ;;  %v7027_v40 = vld [vmem:[%s7377_s26 + $0x74] sm:$0x1] }
 0x205   : > { %v3189_v7 = vld [vmem:[#allocation2 + $0xc0] sm:$0xff]  ;;  %v5547_v12 = vrot.slane %v5545_v31, 4  ;;  %v6976_v20 = vrot.slane %v6944_v13, 9 }
 0x206   : > { %2950 = vst.msk [vmem:[#allocation2 + $0xc8] sm:$0xff] %vm286_vm5, %v2918_v21  ;;  %v8734_v45 = vpop.f32.mrf.mxu0  ;;  %v3411_v30 = vadd.f32 %v8608_v46, %v3189_v7  ;;  %v4031_v46 = vsel %vm7392_vm4, %v4026_v55, %v8712_v39  ;;  %v4801_v39 = vpack.c.b16 %v4777_v58, %v4776_v16  ;;  %v5537_v21 = vrot.slane %v5535_v52, 5 }
 0x207   : > { %v8771_v23 = vunpack.c.l.b16 %v4031_v46  ;;  %v8778_v7 = vrot.slane %v5541_v57, 5  ;;  %v7028_v57 = vld [vmem:[%s7377_s26 + $0x78] sm:$0xf] }
 0x208   : > { %v8732_v18 = vpop.f32.mrf.mxu1  ;;  %v1816_v29 = vpop.f32.mrf.mxu2  ;;  %3443 = vst.msk [vmem:[#allocation2 + $0xc0] sm:$0xff] %vm286_vm5, %v3411_v30  ;;  %v4058_v30 = vrot.slane %v4056_v2, 4 }
 0x209   : > { %v2162_v3 = vpop.f32.mrf.mxu3  ;;  %v1853_v8 = vadd.f32 %v1816_v29, %v1631_v28  ;;  %v4676_v28 = vrot.slane %v4674_v5, 4  ;;  %v4677_v29 = vrot.slane %v6946_v36, 5  ;;  %v4307_v22 = vpack.c.b16 %v8776_v14, %v8771_v23 }
 0x20a   : > { %v2202_v34 = vadd.f32 %v2162_v3, %v1948_v25  ;;  %v1949_v48 = vld [vmem:[#allocation2 + $0xe0] sm:$0xff]  ;;  %v4045_v25 = vrot.slane %v4043_v43, 4  ;;  %v4048_v3 = vrot.slane %v4046_v60, 5  ;;  %v4070_v23 = vshll.u32 %v6882_v47, 16 }
 0x20b   : > { %7055 = vmatmul.msk.bf16.gmra.mxu1 %vm464_vm1, %v5762_v33  ;;  %v2697_v49 = vld [vmem:[#allocation2 + $0xd0] sm:$0xff]  ;;  %1885 = vst.msk [vmem:[#allocation2 + $0xe8] sm:$0xff] %vm286_vm5, %v1853_v8  ;;  %v5738_v33 = vunpack.c.l.b16 %v5520_v62  ;;  %v5548_v8 = vor.u32 %v5547_v12, %v8778_v7  ;;  %v4678_v42 = vsel %vm7598_vm8, %v4676_v28, %v4677_v29  ;;  %v5559_v12 = vshll.u32 %v7028_v57, 16 }
 0x20c   : > { %v2919_v59 = vadd.f32 %v8648_v9, %v2697_v49  ;;  %2234 = vst.msk [vmem:[#allocation2 + $0xd8] sm:$0xff] %vm286_vm5, %v2202_v34  ;;  %v5530_v9 = vsel %vm7392_vm4, %v5525_v54, %v5529_v32  ;;  %v6881_v54 = vld [vmem:[%s7377_s26 + $0x80] sm:$0x1]  ;;  %v8785_v32 = vrot.slane %v4052_v37, 5  ;;  %v5538_v34 = vor.u32 %v5537_v21, %v5534_v17  ;;  %v7113_v17 = vld [vmem:[%s7377_s26 + $0x78] sm:$0xff] }
 0x20d   : > { %v3190_v41 = vld [vmem:[#allocation2 + $0xc8] sm:$0xff]  ;;  %6846 = vmatmul.msk.bf16.gmra.mxu2 %vm464_vm1, %v7112_v38  ;;  %v5739_v55 = vunpack.c.l.b16 %v5530_v9  ;;  %v5551_v38 = vshll.u32 %v7027_v40, 16  ;;  %v4062_v46 = vshll.u32 %v6881_v54, 16  ;;  %v5549_v43 = vrot.slane %v5548_v8, 4  ;;  %v7029_v21 = vld [vmem:[%s7377_s26 + $0x7c] sm:$0xf] }
 0x20e   : > { %2951 = vst.msk [vmem:[#allocation2 + $0xd0] sm:$0xff] %vm286_vm5, %v2919_v59  ;;  %6910 = vmatmul.msk.bf16.gmra.mxu3 %vm464_vm1, %v4306_v6  ;;  %v3412_v51 = vadd.f32 %v8644_v27, %v3190_v41  ;;  %v8769_v1 = vpop.f32.mrf.mxu0  ;;  %v4049_v59 = vor.u32 %v4048_v3, %v4045_v25  ;;  %v4059_v52 = vor.u32 %v4058_v30, %v8785_v32  ;;  %v8803_v62 = vrot.slane %v5538_v34, 4  ;;  %v6883_v9 = vld [vmem:[%s7377_s26 + $0x88] sm:$0xf]  ;;  %v1633_v41 = vld [vmem:[#allocation2 + $0xf8] sm:$0xff] }
 0x20f   : > { %v5763_v58 = vpack.c.b16 %v5739_v55, %v5738_v33  ;;  %v5553_v60 = vrot.slane %v5551_v38, 5  ;;  %v4064_v33 = vrot.slane %v4062_v46, 5  ;;  %v5565_v55 = vshll.u32 %v7029_v21, 16  ;;  %v6948_v3 = vld [vmem:[%s7377_s26 + $0x88] sm:$0xf] }
 0x210   : > { %v8767_v44 = vpop.f32.mrf.mxu1  ;;  %3444 = vst.msk [vmem:[#allocation2 + $0xc8] sm:$0xff] %vm286_vm5, %v3412_v51  ;;  %v1819_v27 = vpop.f32.mrf.mxu2  ;;  %v4067_v51 = vshrl.u32 %v6882_v47, 16  ;;  %v4050_v36 = vrot.slane %v4049_v59, 4  ;;  %v4060_v14 = vrot.slane %v4059_v52, 4  ;;  %v5569_v40 = vshrl.u32 %v7029_v21, 16 }
 0x211   : > { %v2165_v61 = vpop.f32.mrf.mxu3  ;;  %v1854_v6 = vadd.f32 %v1819_v27, %v1632_v11  ;;  %6992 = vmatmul.msk.bf16.gmra.mxu0 %vm464_vm1, %v4801_v39  ;;  %v5556_v11 = vshrl.u32 %v7028_v57, 16  ;;  %v4072_v25 = vrot.slane %v4070_v23, 5  ;;  %v4681_v8 = vrot.slane %v6948_v3, 5  ;;  %v7114_v3 = vld [vmem:[%s7377_s26 + $0x84] sm:$0xff] }
 0x212   : > { %v2203_v19 = vadd.f32 %v2165_v61, %v1949_v48  ;;  %v4076_v48 = vshll.u32 %v6883_v9, 16  ;;  %v4080_v61 = vshrl.u32 %v6883_v9, 16  ;;  %v5561_v38 = vrot.slane %v5559_v12, 5 }
 0x213   : > { %v2698_v24 = vld [vmem:[#allocation2 + $0xd8] sm:$0xff]  ;;  %1886 = vst.msk [vmem:[#allocation2 + $0xf0] sm:$0xff] %vm286_vm5, %v1854_v6  ;;  %v5554_v6 = vsel %vm7392_vm4, %v5549_v43, %v5553_v60  ;;  %v5558_v34 = vrot.slane %v5556_v11, 4  ;;  %v4055_v59 = vsel %vm7392_vm4, %v4050_v36, %v8785_v32  ;;  %v4065_v46 = vsel %vm7392_vm4, %v4060_v14, %v4064_v33 }
 0x214   : > { %v2920_v4 = vadd.f32 %v8673_v56, %v2698_v24  ;;  %2235 = vst.msk [vmem:[#allocation2 + $0xe0] sm:$0xff] %vm286_vm5, %v2203_v19  ;;  %v4675_v56 = vsel %vm7598_vm8, %v6976_v20, %v4674_v5  ;;  %v4779_v5 = vunpack.c.l.b16 %v4678_v42  ;;  %v5544_v19 = vsel %vm7392_vm4, %v8803_v62, %v8778_v7 }
 0x215   : > { %v3191_v16 = vld [vmem:[#allocation2 + $0xd0] sm:$0xff]  ;;  %v4778_v63 = vunpack.c.l.b16 %v4675_v56  ;;  %v4069_v24 = vrot.slane %v4067_v51, 4  ;;  %v8830_v54 = vrot.slane %v4076_v48, 5  ;;  %v4082_v30 = vrot.slane %v4080_v61, 4 }
 0x216   : > { %2952 = vst.msk [vmem:[#allocation2 + $0xd8] sm:$0xff] %vm286_vm5, %v2920_v4  ;;  %v3413_v49 = vadd.f32 %v8671_v53, %v3191_v16  ;;  %v8796_v0 = vpop.f32.mrf.mxu0  ;;  %v1950_v53 = vld [vmem:[#allocation2 + $0xe8] sm:$0xff]  ;;  %v6947_v16 = vld [vmem:[%s7377_s26 + $0x84] sm:$0xe]  ;;  %v8840_v42 = vrot.slane %v5565_v55, 5  ;;  %v5740_v9 = vunpack.c.l.b16 %v5544_v19  ;;  %v5741_v57 = vunpack.c.l.b16 %v5554_v6 }
 0x217   : > { %v4802_v20 = vpack.c.b16 %v4779_v5, %v4778_v63  ;;  %v6884_v4 = vld [vmem:[%s7377_s26 + $0x8c] sm:$0x1]  ;;  %v4683_v43 = vrot.slane %v4681_v8, 4  ;;  %v4073_v63 = vor.u32 %v4072_v25, %v4069_v24  ;;  %v4083_v51 = vor.u32 %v4082_v30, %v8830_v54  ;;  %v7031_v30 = vld [vmem:[%s7377_s26 + $0x84] sm:$0xf] }
 0x218   : > { %v8794_v50 = vpop.f32.mrf.mxu1  ;;  %3445 = vst.msk [vmem:[#allocation2 + $0xd0] sm:$0xff] %vm286_vm5, %v3413_v49  ;;  %v1821_v39 = vpop.f32.mrf.mxu2  ;;  %v5764_v21 = vpack.c.b16 %v5741_v57, %v5740_v9  ;;  %v3485_v6 = vld [vmem:[#allocation2 + $0x8] sm:$0xff]  ;;  %v3486_v57 = vld [vmem:[#allocation2 + $0x10] sm:$0xff] }
 0x219   : > { %v2167_v31 = vpop.f32.mrf.mxu3  ;;  %v1855_v2 = vadd.f32 %v1821_v39, %v1633_v41  ;;  %v4086_v41 = vshll.u32 %v6884_v4, 16  ;;  %v6977_v39 = vrot.slane %v6947_v16, 9  ;;  %v4084_v14 = vrot.slane %v4083_v51, 4  ;;  %v6950_v51 = vld [vmem:[%s7377_s26 + $0x90] sm:$0xe] }
 0x21a   : > { %v2204_v37 = vadd.f32 %v2167_v31, %v1950_v53  ;;  %v1951_v56 = vld [vmem:[#allocation2 + $0xf0] sm:$0xff]  ;;  %v7030_v53 = vld [vmem:[%s7377_s26 + $0x80] sm:$0x1] }
 0x21b   : > { %7056 = vmatmul.msk.bf16.gmra.mxu1 %vm464_vm1, %v5763_v58  ;;  %v2699_v13 = vld [vmem:[#allocation2 + $0xe0] sm:$0xff]  ;;  %1887 = vst.msk [vmem:[#allocation2 + $0xf8] sm:$0xff] %vm286_vm5, %v1855_v2  ;;  %v6949_v58 = vld [vmem:[%s7377_s26 + $0x8c] sm:$0x1]  ;;  %v4284_v2 = vunpack.c.l.b16 %v4055_v59  ;;  %v4682_v61 = vsel %vm7598_vm8, %v6977_v39, %v4681_v8  ;;  %v4088_v33 = vrot.slane %v4086_v41, 5 }
 0x21c   : > { %v2921_v27 = vadd.f32 %v8709_v26, %v2699_v13  ;;  %2236 = vst.msk [vmem:[#allocation2 + $0xe8] sm:$0xff] %vm286_vm5, %v2204_v37  ;;  %v4684_v32 = vrot.slane %v6949_v58, 5  ;;  %v5562_v37 = vor.u32 %v5561_v38, %v5558_v34  ;;  %v7032_v34 = vld [vmem:[%s7377_s26 + $0x88] sm:$0xf] }
 0x21d   : > { %v3192_v26 = vld [vmem:[#allocation2 + $0xd8] sm:$0xff]  ;;  %6847 = vmatmul.msk.bf16.gmra.mxu2 %vm464_vm1, %v7113_v17  ;;  %v4285_v17 = vunpack.c.l.b16 %v4065_v46  ;;  %v4089_v58 = vsel %vm7392_vm4, %v4084_v14, %v4088_v33  ;;  %v5589_v59 = vshll.u32 %v7032_v34, 16  ;;  %v5593_v46 = vshrl.u32 %v7032_v34, 16  ;;  %v7033_v14 = vld [vmem:[%s7377_s26 + $0x8c] sm:$0x1] }
 0x21e   : > { %2953 = vst.msk [vmem:[#allocation2 + $0xe0] sm:$0xff] %vm286_vm5, %v2921_v27  ;;  %6911 = vmatmul.msk.bf16.gmra.mxu3 %vm464_vm1, %v4307_v22  ;;  %v3414_v7 = vadd.f32 %v8707_v10, %v3192_v26  ;;  %v8827_v29 = vpop.f32.mrf.mxu0  ;;  %v3484_v10 = vld [vmem:[#allocation2] sm:$0xff]  ;;  %v5571_v22 = vrot.slane %v5569_v40, 4  ;;  %v4685_v11 = vsel %vm7598_vm8, %v4683_v43, %v4684_v32  ;;  %v4074_v27 = vrot.slane %v4073_v63, 4 }
 0x21f   : > { %v5563_v12 = vrot.slane %v5562_v37, 4  ;;  %v4308_v40 = vpack.c.b16 %v4285_v17, %v4284_v2  ;;  %v4781_v4 = vunpack.c.l.b16 %v4685_v11 }
 0x220   : > { %v8825_v28 = vpop.f32.mrf.mxu1  ;;  %3446 = vst.msk [vmem:[#allocation2 + $0xd8] sm:$0xff] %vm286_vm5, %v3414_v7  ;;  %v3658_v49 = vpop.f32.mrf.mxu2  ;;  %v5572_v5 = vor.u32 %v5571_v22, %v8840_v42  ;;  %v4780_v7 = vunpack.c.l.b16 %v4682_v61  ;;  %v4079_v16 = vsel %vm7392_vm4, %v4074_v27, %v8830_v54 }
 0x221   : > { %v2170_v47 = vpop.f32.mrf.mxu3  ;;  %v3738_v62 = vadd.f32 %v3658_v49, %v3484_v10  ;;  %6993 = vmatmul.msk.bf16.gmra.mxu0 %vm464_vm1, %v4802_v20  ;;  %v6886_v10 = vld [vmem:[%s7377_s26 + $0x94] sm:$0xf]  ;;  %v5580_v49 = vshrl.u32 %v7031_v30, 16  ;;  %v8902_v32 = vunpack.c.l.b16 %v4079_v16  ;;  %v3487_v16 = vld [vmem:[#allocation2 + $0x18] sm:$0xff] }
 0x222   : > { %v2205_v52 = vadd.f32 %v2170_v47, %v1951_v56  ;;  %v5573_v26 = vrot.slane %v5572_v5, 4  ;;  %v5568_v56 = vsel %vm7392_vm4, %v5563_v12, %v8840_v42  ;;  %v6885_v47 = vld [vmem:[%s7377_s26 + $0x90] sm:$0xf]  ;;  %v4803_v42 = vpack.c.b16 %v4781_v4, %v4780_v7 }
 0x223   : > { %v2700_v31 = vld [vmem:[#allocation2 + $0xe8] sm:$0xff]  ;;  %3770 = vst.msk [vmem:[#allocation2] sm:$0xff] %vm286_vm5, %v3738_v62  ;;  %v4094_v41 = vshll.u32 %v6885_v47, 16  ;;  %v4100_v39 = vshll.u32 %v6886_v10, 16  ;;  %v4104_v63 = vshrl.u32 %v6886_v10, 16  ;;  %v5582_v5 = vrot.slane %v5580_v49, 4 }
 0x224   : > { %v2922_v60 = vadd.f32 %v8734_v45, %v2700_v31  ;;  %2237 = vst.msk [vmem:[#allocation2 + $0xf0] sm:$0xff] %vm286_vm5, %v2205_v52  ;;  %v5575_v45 = vshll.u32 %v7030_v53, 16  ;;  %v6951_v52 = vld [vmem:[%s7377_s26 + $0x94] sm:$0xf]  ;;  %v4091_v31 = vshrl.u32 %v6885_v47, 16  ;;  %v5742_v11 = vunpack.c.l.b16 %v5568_v56 }
 0x225   : > { %v3193_v23 = vld [vmem:[#allocation2 + $0xe0] sm:$0xff]  ;;  %v4688_v43 = vrot.slane %v6951_v52, 5  ;;  %v5599_v7 = vshll.u32 %v7033_v14, 16  ;;  %v7034_v49 = vld [vmem:[%s7377_s26 + $0x90] sm:$0xf] }
 0x226   : > { %2954 = vst.msk [vmem:[#allocation2 + $0xe8] sm:$0xff] %vm286_vm5, %v2922_v60  ;;  %v3415_v13 = vadd.f32 %v8732_v18, %v3193_v23  ;;  %v8861_v48 = vpop.f32.mrf.mxu0  ;;  %v1952_v18 = vld [vmem:[#allocation2 + $0xf8] sm:$0xff]  ;;  %v5577_v20 = vrot.slane %v5575_v45, 5  ;;  %v8904_v60 = vunpack.c.l.b16 %v4089_v58  ;;  %v8908_v23 = vrot.slane %v5589_v59, 5  ;;  %v6954_v14 = vld [vmem:[%s7377_s26 + $0xa0] sm:$0xf] }
 0x227   : > { %v4093_v12 = vrot.slane %v4091_v31, 4 }
 0x228   : > { %v8859_v36 = vpop.f32.mrf.mxu1  ;;  %v3660_v55 = vpop.f32.mrf.mxu2  ;;  %3447 = vst.msk [vmem:[#allocation2 + $0xe0] sm:$0xff] %vm286_vm5, %v3415_v13  ;;  %v5578_v54 = vsel %vm7392_vm4, %v5573_v26, %v5577_v20  ;;  %v8915_v26 = vrot.slane %v4100_v39, 5  ;;  %v4106_v20 = vrot.slane %v4104_v63, 4  ;;  %v4309_v58 = vpack.c.b16 %v8904_v60, %v8902_v32  ;;  %v7035_v63 = vld [vmem:[%s7377_s26 + $0x94] sm:$0xf] }
 0x229   : > { %5912 = vst.msk [vmem:[%s8854_s9] sm:$0xff] %vm286_vm5, %v8859_v36  ;;  %v2172_v19 = vpop.f32.mrf.mxu3  ;;  %v3739_v25 = vadd.f32 %v3660_v55, %v3485_v6  ;;  %v5743_v27 = vunpack.c.l.b16 %v5578_v54 }
 0x22a   : > { %v2206_v24 = vadd.f32 %v2172_v19, %v1952_v18  ;;  %v4234_v37 = vld [vmem:[#allocation2] sm:$0xff]  ;;  %v6978_v18 = vrot.slane %v6950_v51, 9  ;;  %v4690_v19 = vrot.slane %v4688_v43, 4  ;;  %v4107_v47 = vor.u32 %v4106_v20, %v8915_v26 }
 0x22b   : > { %7057 = vmatmul.msk.bf16.gmra.mxu1 %vm464_vm1, %v5764_v21  ;;  %v2701_v8 = vld [vmem:[#allocation2 + $0xf0] sm:$0xff]  ;;  %3771 = vst.msk [vmem:[#allocation2 + $0x8] sm:$0xff] %vm286_vm5, %v3739_v25  ;;  %v5595_v21 = vrot.slane %v5593_v46, 4  ;;  %v5765_v4 = vpack.c.b16 %v5743_v27, %v5742_v11  ;;  %v5604_v51 = vshrl.u32 %v7034_v49, 16  ;;  %v5613_v27 = vshll.u32 %v7035_v63, 16 }
 0x22c   : > { %v2923_v38 = vadd.f32 %v8769_v1, %v2701_v8  ;;  %2238 = vst.msk [vmem:[#allocation2 + $0xf8] sm:$0xff] %vm286_vm5, %v2206_v24  ;;  %v5583_v1 = vshll.u32 %v7031_v30, 16  ;;  %v6887_v24 = vld [vmem:[%s7377_s26 + $0x98] sm:$0x1]  ;;  %v6888_v30 = vld [vmem:[%s7377_s26 + $0x9c] sm:$0xf]  ;;  %v4689_v8 = vsel %vm7598_vm8, %v6978_v18, %v4688_v43 }
 0x22d   : > { %v3194_v22 = vld [vmem:[#allocation2 + $0xe8] sm:$0xff]  ;;  %6848 = vmatmul.msk.bf16.gmra.mxu2 %vm464_vm1, %v7114_v3  ;;  %v5596_v3 = vor.u32 %v5595_v21, %v8908_v23  ;;  %v4110_v10 = vshll.u32 %v6887_v24, 16  ;;  %v4115_v52 = vshrl.u32 %v6888_v30, 16  ;;  %v4782_v39 = vunpack.c.l.b16 %v4689_v8  ;;  %v6955_v24 = vld [vmem:[%s7377_s26 + $0xa4] sm:$0x1] }
 0x22e   : > { %2955 = vst.msk [vmem:[#allocation2 + $0xf0] sm:$0xff] %vm286_vm5, %v2923_v38  ;;  %6912 = vmatmul.msk.bf16.gmra.mxu3 %vm464_vm1, %v4308_v40  ;;  %v3416_v62 = vadd.f32 %v8767_v44, %v3194_v22  ;;  %v8897_v53 = vpop.f32.mrf.mxu0  ;;  %v6952_v44 = vld [vmem:[%s7377_s26 + $0x98] sm:$0x1]  ;;  %v5585_v45 = vrot.slane %v5583_v1, 5  ;;  %v4096_v40 = vrot.slane %v4094_v41, 5  ;;  %v7115_v41 = vld [vmem:[%s7377_s26 + $0x90] sm:$0xff] }
 0x22f   : > { %v4691_v6 = vrot.slane %v6952_v44, 5  ;;  %v5597_v54 = vrot.slane %v5596_v3, 4  ;;  %v4118_v60 = vshll.u32 %v6888_v30, 16  ;;  %v4117_v11 = vrot.slane %v4115_v52, 4  ;;  %v6890_v52 = vld [vmem:[%s7377_s26 + $0xa4] sm:$0x1] }
 0x230   : > { %v8895_v9 = vpop.f32.mrf.mxu1  ;;  %v3663_v17 = vpop.f32.mrf.mxu2  ;;  %3448 = vst.msk [vmem:[#allocation2 + $0xe8] sm:$0xff] %vm286_vm5, %v3416_v62  ;;  %v5586_v25 = vor.u32 %v5585_v45, %v5582_v5  ;;  %v4097_v56 = vor.u32 %v4096_v40, %v4093_v12  ;;  %v4108_v5 = vrot.slane %v4107_v47, 4  ;;  %v4112_v45 = vrot.slane %v4110_v10, 5  ;;  %v7036_v47 = vld [vmem:[%s7377_s26 + $0x98] sm:$0x1] }
 0x231   : > { %5913 = vst.msk [vmem:[%s8854_s9 + $0x8] sm:$0xff] %vm286_vm5, %v8895_v9  ;;  %v4376_v2 = vpop.f32.mrf.mxu3  ;;  %v3740_v61 = vadd.f32 %v3663_v17, %v3486_v57  ;;  %6994 = vmatmul.msk.bf16.gmra.mxu0 %vm464_vm1, %v4803_v42  ;;  %v4692_v38 = vsel %vm7598_vm8, %v4690_v19, %v4691_v6  ;;  %v5601_v42 = vrot.slane %v5599_v7, 5  ;;  %v4120_v18 = vrot.slane %v4118_v60, 5  ;;  %v3488_v7 = vld [vmem:[#allocation2 + $0x20] sm:$0xff] }
 0x232   : > { %v4456_v13 = vadd.f32 %v4376_v2, %v4234_v37  ;;  %v4235_v1 = vld [vmem:[#allocation2 + $0x8] sm:$0xff]  ;;  %v5587_v22 = vrot.slane %v5586_v25, 4  ;;  %v4783_v43 = vunpack.c.l.b16 %v4692_v38  ;;  %v4098_v37 = vrot.slane %v4097_v56, 4 }
 0x233   : > { %v2702_v33 = vld [vmem:[#allocation2 + $0xf8] sm:$0xff]  ;;  %3772 = vst.msk [vmem:[#allocation2 + $0x10] sm:$0xff] %vm286_vm5, %v3740_v61  ;;  %v5607_v2 = vshll.u32 %v7034_v49, 16  ;;  %v6889_v61 = vld [vmem:[%s7377_s26 + $0xa0] sm:$0xf]  ;;  %v5606_v19 = vrot.slane %v5604_v51, 4  ;;  %v4113_v30 = vsel %vm7392_vm4, %v4108_v5, %v4112_v45 }
 0x234   : > { %v2924_v55 = vadd.f32 %v8796_v0, %v2702_v33  ;;  %4488 = vst.msk [vmem:[#allocation2] sm:$0xff] %vm286_vm5, %v4456_v13  ;;  %v5592_v21 = vsel %vm7392_vm4, %v5587_v22, %v8908_v23  ;;  %v5602_v13 = vsel %vm7392_vm4, %v5597_v54, %v5601_v42  ;;  %v5617_v6 = vshrl.u32 %v7035_v63, 16 }
 0x235   : > { %v3195_v62 = vld [vmem:[#allocation2 + $0xf0] sm:$0xff]  ;;  %v4103_v40 = vsel %vm7392_vm4, %v4098_v37, %v8915_v26  ;;  %v5609_v20 = vrot.slane %v5607_v2, 5  ;;  %v5744_v8 = vunpack.c.l.b16 %v5592_v21  ;;  %v4124_v38 = vshll.u32 %v6889_v61, 16  ;;  %v3489_v2 = vld [vmem:[#allocation2 + $0x28] sm:$0xff] }
 0x236   : > { %2956 = vst.msk [vmem:[#allocation2 + $0xf8] sm:$0xff] %vm286_vm5, %v2924_v55  ;;  %v8924_v34 = vpop.f32.mrf.mxu0  ;;  %v3417_v17 = vadd.f32 %v8794_v50, %v3195_v62  ;;  %v4804_v50 = vpack.c.b16 %v4783_v43, %v4782_v39  ;;  %v4695_v55 = vrot.slane %v6954_v14, 5  ;;  %v5745_v56 = vunpack.c.l.b16 %v5602_v13  ;;  %v7038_v14 = vld [vmem:[%s7377_s26 + $0xa0] sm:$0xf] }
 0x237   : > { %v8973_v10 = vrot.slane %v5613_v27, 5  ;;  %v4698_v22 = vrot.slane %v6955_v24, 5  ;;  %v4288_v42 = vunpack.c.l.b16 %v4103_v40  ;;  %v4121_v62 = vor.u32 %v4120_v18, %v4117_v11  ;;  %v7037_v27 = vld [vmem:[%s7377_s26 + $0x9c] sm:$0xf]  ;;  %v6892_v24 = vld [vmem:[%s7377_s26 + $0xac] sm:$0xf] }
 0x238   : > { %v8922_v0 = vpop.f32.mrf.mxu1  ;;  %v3665_v46 = vpop.f32.mrf.mxu2  ;;  %3449 = vst.msk [vmem:[#allocation2 + $0xf0] sm:$0xff] %vm286_vm5, %v3417_v17  ;;  %v8988_v39 = vrot.slane %v4124_v38, 5  ;;  %v4134_v5 = vshll.u32 %v6890_v52, 16 }
 0x239   : > { %5914 = vst.msk [vmem:[%s8854_s9 + $0x10] sm:$0xff] %vm286_vm5, %v8922_v0  ;;  %v4378_v59 = vpop.f32.mrf.mxu3  ;;  %v3741_v31 = vadd.f32 %v3665_v46, %v3487_v16  ;;  %v4128_v16 = vshrl.u32 %v6889_v61, 16  ;;  %v4697_v46 = vrot.slane %v4695_v55, 4  ;;  %v9006_v17 = vrot.slane %v4121_v62, 4 }
 0x23a   : > { %v4457_v57 = vadd.f32 %v4378_v59, %v4235_v1  ;;  %v4236_v25 = vld [vmem:[#allocation2 + $0x10] sm:$0xff]  ;;  %v5619_v1 = vrot.slane %v5617_v6, 4 }
 0x23b   : > { %7058 = vmatmul.msk.bf16.gmra.mxu1 %vm464_vm1, %v5765_v4  ;;  %v4728_v32 = vld [vmem:[#allocation2] sm:$0xff]  ;;  %3773 = vst.msk [vmem:[#allocation2 + $0x18] sm:$0xff] %vm286_vm5, %v3741_v31  ;;  %v4130_v43 = vrot.slane %v4128_v16, 4  ;;  %v4699_v37 = vsel %vm7598_vm8, %v4697_v46, %v4698_v22  ;;  %v5641_v16 = vshrl.u32 %v7038_v14, 16  ;;  %v6957_v22 = vld [vmem:[%s7377_s26 + $0xac] sm:$0xf] }
 0x23c   : > { %v4950_v44 = vadd.f32 %v8827_v29, %v4728_v32  ;;  %4489 = vst.msk [vmem:[#allocation2 + $0x8] sm:$0xff] %vm286_vm5, %v4457_v57  ;;  %v5610_v57 = vor.u32 %v5609_v20, %v5606_v19  ;;  %v5623_v32 = vshll.u32 %v7036_v47, 16  ;;  %v5620_v51 = vor.u32 %v5619_v1, %v8973_v10  ;;  %v7116_v19 = vld [vmem:[%s7377_s26 + $0x9c] sm:$0xff]  ;;  %v7039_v46 = vld [vmem:[%s7377_s26 + $0xa4] sm:$0x1] }
 0x23d   : > { %v3196_v29 = vld [vmem:[#allocation2 + $0xf8] sm:$0xff]  ;;  %6849 = vmatmul.msk.bf16.gmra.mxu2 %vm464_vm1, %v7115_v41  ;;  %v4289_v41 = vunpack.c.l.b16 %v4113_v30  ;;  %v4148_v47 = vshll.u32 %v6892_v24, 16 }
 0x23e   : > { %4982 = vst.msk [vmem:[#allocation2] sm:$0xff] %vm286_vm5, %v4950_v44  ;;  %6913 = vmatmul.msk.bf16.gmra.mxu3 %vm464_vm1, %v4309_v58  ;;  %v3418_v23 = vadd.f32 %v8825_v28, %v3196_v29  ;;  %v8957_v12 = vpop.f32.mrf.mxu0  ;;  %v6953_v28 = vld [vmem:[%s7377_s26 + $0x9c] sm:$0xe]  ;;  %v5611_v45 = vrot.slane %v5610_v57, 4  ;;  %v5625_v11 = vrot.slane %v5623_v32, 5  ;;  %v5621_v20 = vrot.slane %v5620_v51, 4 }
 0x23f   : > { %v6979_v59 = vrot.slane %v6953_v28, 9  ;;  %v4310_v29 = vpack.c.b16 %v4289_v41, %v4288_v42  ;;  %v6891_v28 = vld [vmem:[%s7377_s26 + $0xa8] sm:$0xf]  ;;  %v4702_v57 = vrot.slane %v6957_v22, 5 }
 0x240   : > { %v8955_v33 = vpop.f32.mrf.mxu1  ;;  %v3668_v4 = vpop.f32.mrf.mxu2  ;;  %3450 = vst.msk [vmem:[#allocation2 + $0xf8] sm:$0xff] %vm286_vm5, %v3418_v23  ;;  %v5616_v38 = vsel %vm7392_vm4, %v5611_v45, %v8973_v10  ;;  %v5626_v10 = vsel %vm7392_vm4, %v5621_v20, %v5625_v11  ;;  %v7040_v22 = vld [vmem:[%s7377_s26 + $0xa8] sm:$0xf] }
 0x241   : > { %5915 = vst.msk [vmem:[%s8854_s9 + $0x18] sm:$0xff] %vm286_vm5, %v8955_v33  ;;  %v4381_v3 = vpop.f32.mrf.mxu3  ;;  %v3742_v26 = vadd.f32 %v3668_v4, %v3488_v7  ;;  %6995 = vmatmul.msk.bf16.gmra.mxu0 %vm464_vm1, %v4804_v50  ;;  %v4696_v44 = vsel %vm7598_vm8, %v6979_v59, %v4695_v55  ;;  %v4131_v50 = vor.u32 %v4130_v43, %v8988_v39  ;;  %v4785_v55 = vunpack.c.l.b16 %v4699_v37 }
 0x242   : > { %v4458_v58 = vadd.f32 %v4381_v3, %v4236_v25  ;;  %v4237_v21 = vld [vmem:[#allocation2 + $0x18] sm:$0xff]  ;;  %v4784_v6 = vunpack.c.l.b16 %v4696_v44  ;;  %v5628_v3 = vshrl.u32 %v7037_v27, 16  ;;  %v5631_v7 = vshll.u32 %v7037_v27, 16 }
 0x243   : > { %v4729_v49 = vld [vmem:[#allocation2 + $0x8] sm:$0xff]  ;;  %3774 = vst.msk [vmem:[#allocation2 + $0x20] sm:$0xff] %vm286_vm5, %v3742_v26  ;;  %v5637_v4 = vshll.u32 %v7038_v14, 16  ;;  %v4132_v30 = vrot.slane %v4131_v50, 4  ;;  %v4139_v26 = vshrl.u32 %v6891_v28, 16  ;;  %v4152_v59 = vshrl.u32 %v6892_v24, 16 }
 0x244   : > { %v4951_v54 = vadd.f32 %v8861_v48, %v4729_v49  ;;  %4490 = vst.msk [vmem:[#allocation2 + $0x10] sm:$0xff] %vm286_vm5, %v4458_v58  ;;  %v5766_v48 = vpack.c.b16 %v5745_v56, %v5744_v8  ;;  %v4136_v8 = vrot.slane %v4134_v5, 5  ;;  %v4142_v56 = vshll.u32 %v6891_v28, 16  ;;  %v6958_v5 = vld [vmem:[%s7377_s26 + $0xb0] sm:$0x1] }
 0x245   : > { %v8985_v31 = vld [vmem:[#allocation2] sm:$0xff]  ;;  %v5630_v42 = vrot.slane %v5628_v3, 4  ;;  %v5633_v52 = vrot.slane %v5631_v7, 5  ;;  %v9040_v62 = vrot.slane %v5637_v4, 5  ;;  %v5746_v44 = vunpack.c.l.b16 %v5616_v38 }
 0x246   : > { %10014 = vst [vmem:[#allocation9_spill] sm:$0xff] %v8985_v31  ;;  %v8996_v63 = vpop.f32.mrf.mxu0  ;;  %v4137_v51 = vsel %vm7392_vm4, %v4132_v30, %v4136_v8  ;;  %v5643_v37 = vrot.slane %v5641_v16, 4  ;;  %v4144_v50 = vrot.slane %v4142_v56, 5  ;;  %v4704_v27 = vrot.slane %v4702_v57, 4  ;;  %v3491_v30 = vld [vmem:[#allocation2 + $0x38] sm:$0xff] }
 0x247   : > { %5046 = vst.msk [vmem:[%s8980_s12] sm:$0xff] %vm286_vm5, %v8985_v31  ;;  %v4154_v20 = vrot.slane %v4152_v59, 4 }
 0x248   : > { %4983 = vst.msk [vmem:[#allocation2 + $0x8] sm:$0xff] %vm286_vm5, %v4951_v54  ;;  %v8994_v60 = vpop.f32.mrf.mxu1  ;;  %v3670_v61 = vpop.f32.mrf.mxu2  ;;  %v3490_v54 = vld [vmem:[#allocation2 + $0x30] sm:$0xff]  ;;  %v5644_v28 = vor.u32 %v5643_v37, %v9040_v62 }
 0x249   : > { %5916 = vst.msk [vmem:[%s8854_s9 + $0x20] sm:$0xff] %vm286_vm5, %v8994_v60  ;;  %v4383_v13 = vpop.f32.mrf.mxu3  ;;  %v3743_v18 = vadd.f32 %v3670_v61, %v3489_v2  ;;  %v6956_v2 = vld [vmem:[%s7377_s26 + $0xa8] sm:$0xe]  ;;  %v4141_v61 = vrot.slane %v4139_v26, 4 }
 0x24a   : > { %v4459_v23 = vadd.f32 %v4383_v13, %v4237_v21  ;;  %v4238_v41 = vld [vmem:[#allocation2 + $0x20] sm:$0xff]  ;;  %v5747_v13 = vunpack.c.l.b16 %v5626_v10  ;;  %v6980_v11 = vrot.slane %v6956_v2, 9  ;;  %v5645_v59 = vrot.slane %v5644_v28, 4 }
 0x24b   : > { %7059 = vmatmul.msk.bf16.gmra.mxu1 %vm464_vm1, %v5766_v48  ;;  %v4730_v40 = vld [vmem:[#allocation2 + $0x10] sm:$0xff]  ;;  %3775 = vst.msk [vmem:[#allocation2 + $0x28] sm:$0xff] %vm286_vm5, %v3743_v18  ;;  %v4127_v48 = vsel %vm7392_vm4, %v9006_v17, %v8988_v39  ;;  %v4705_v39 = vrot.slane %v6958_v5, 5  ;;  %v5647_v18 = vshll.u32 %v7039_v46, 16  ;;  %v4145_v3 = vor.u32 %v4144_v50, %v4141_v61 }
 0x24c   : > { %v4952_v25 = vadd.f32 %v8897_v53, %v4730_v40  ;;  %4491 = vst.msk [vmem:[#allocation2 + $0x18] sm:$0xff] %vm286_vm5, %v4459_v23  ;;  %v4805_v53 = vpack.c.b16 %v4785_v55, %v4784_v6  ;;  %v4290_v14 = vunpack.c.l.b16 %v4127_v48  ;;  %v5634_v23 = vor.u32 %v5633_v52, %v5630_v42  ;;  %v6893_v55 = vld [vmem:[%s7377_s26 + $0xb0] sm:$0x1]  ;;  %v6894_v46 = vld [vmem:[%s7377_s26 + $0xb4] sm:$0xf]  ;;  %v7117_v52 = vld [vmem:[%s7377_s26 + $0xa8] sm:$0xff] }
 0x24d   : > { %6850 = vmatmul.msk.bf16.gmra.mxu2 %vm464_vm1, %v7116_v19  ;;  %v4291_v6 = vunpack.c.l.b16 %v4137_v51  ;;  %v9057_v40 = vrot.slane %v4148_v47, 5  ;;  %v4703_v7 = vsel %vm7598_vm8, %v6980_v11, %v4702_v57  ;;  %v4706_v4 = vsel %vm7598_vm8, %v4704_v27, %v4705_v39  ;;  %v7041_v48 = vld [vmem:[%s7377_s26 + $0xac] sm:$0xf] }
 0x24e   : > { %4984 = vst.msk [vmem:[#allocation2 + $0x10] sm:$0xff] %vm286_vm5, %v4952_v25  ;;  %6914 = vmatmul.msk.bf16.gmra.mxu3 %vm464_vm1, %v4310_v29  ;;  %v9033_v1 = vpop.f32.mrf.mxu0  ;;  %v4158_v8 = vshll.u32 %v6893_v55, 16  ;;  %v5635_v38 = vrot.slane %v5634_v23, 4  ;;  %v5649_v16 = vrot.slane %v5647_v18, 5  ;;  %v4786_v57 = vunpack.c.l.b16 %v4703_v7  ;;  %v6960_v23 = vld [vmem:[%s7377_s26 + $0xb8] sm:$0xf] }
 0x24f   : > { %v9021_v58 = vld [vmem:[#allocation2 + $0x8] sm:$0xff]  ;;  %v4311_v47 = vpack.c.b16 %v4291_v6, %v4290_v14  ;;  %v4155_v10 = vor.u32 %v4154_v20, %v9057_v40  ;;  %v4163_v37 = vshrl.u32 %v6894_v46, 16  ;;  %v5652_v2 = vshrl.u32 %v7040_v22, 16  ;;  %v3492_v18 = vld [vmem:[#allocation2 + $0x40] sm:$0xff] }
 0x250   : > { %10015 = vst [vmem:[#allocation10_spill] sm:$0xff] %v9021_v58  ;;  %v9029_v49 = vpop.f32.mrf.mxu1  ;;  %v3673_v32 = vpop.f32.mrf.mxu2  ;;  %v5655_v5 = vshll.u32 %v7040_v22, 16  ;;  %v4166_v50 = vshll.u32 %v6894_v46, 16  ;;  %v5661_v11 = vshll.u32 %v7041_v48, 16  ;;  %v5665_v14 = vshrl.u32 %v7041_v48, 16 }
 0x251   : > { %5047 = vst.msk [vmem:[%s8980_s12 + $0x8] sm:$0xff] %vm286_vm5, %v9021_v58  ;;  %v4386_v43 = vpop.f32.mrf.mxu3  ;;  %v3744_v21 = vadd.f32 %v3673_v32, %v3490_v54  ;;  %6996 = vmatmul.msk.bf16.gmra.mxu0 %vm464_vm1, %v4805_v53  ;;  %v4146_v32 = vrot.slane %v4145_v3, 4  ;;  %v4165_v6 = vrot.slane %v4163_v37, 4  ;;  %v5654_v20 = vrot.slane %v5652_v2, 4 }
 0x252   : > { %5917 = vst.msk [vmem:[%s8854_s9 + $0x28] sm:$0xff] %vm286_vm5, %v9029_v49  ;;  %v4460_v45 = vadd.f32 %v4386_v43, %v4238_v41  ;;  %v4239_v53 = vld [vmem:[#allocation2 + $0x28] sm:$0xff]  ;;  %v4787_v41 = vunpack.c.l.b16 %v4706_v4  ;;  %v5657_v28 = vrot.slane %v5655_v5, 5 }
 0x253   : > { %v4731_v29 = vld [vmem:[#allocation2 + $0x18] sm:$0xff]  ;;  %3776 = vst.msk [vmem:[#allocation2 + $0x30] sm:$0xff] %vm286_vm5, %v3744_v21  ;;  %v4160_v21 = vrot.slane %v4158_v8, 5  ;;  %v6959_v8 = vld [vmem:[%s7377_s26 + $0xb4] sm:$0xe] }
 0x254   : > { %v4953_v17 = vadd.f32 %v8924_v34, %v4731_v29  ;;  %4492 = vst.msk [vmem:[#allocation2 + $0x20] sm:$0xff] %vm286_vm5, %v4460_v45  ;;  %v5767_v34 = vpack.c.b16 %v5747_v13, %v5746_v44  ;;  %v6895_v44 = vld [vmem:[%s7377_s26 + $0xb8] sm:$0xf]  ;;  %v4156_v45 = vrot.slane %v4155_v10, 4  ;;  %v5640_v13 = vsel %vm7392_vm4, %v5635_v38, %v9040_v62  ;;  %v6961_v38 = vld [vmem:[%s7377_s26 + $0xbc] sm:$0x1] }
 0x255   : > { %v9053_v19 = vld [vmem:[#allocation2 + $0x10] sm:$0xff]  ;;  %v4806_v29 = vpack.c.b16 %v4787_v41, %v4786_v57  ;;  %v4151_v62 = vsel %vm7392_vm4, %v4146_v32, %v9057_v40  ;;  %v4176_v55 = vshrl.u32 %v6895_v44, 16  ;;  %v5748_v4 = vunpack.c.l.b16 %v5640_v13  ;;  %v6896_v32 = vld [vmem:[%s7377_s26 + $0xbc] sm:$0x1] }
 0x256   : > { %10016 = vst [vmem:[#allocation11_spill] sm:$0xff] %v9053_v19  ;;  %v9066_v25 = vpop.f32.mrf.mxu0  ;;  %v4161_v40 = vsel %vm7392_vm4, %v4156_v45, %v4160_v21  ;;  %v6981_v46 = vrot.slane %v6959_v8, 9  ;;  %v7042_v57 = vld [vmem:[%s7377_s26 + $0xb0] sm:$0x1] }
 0x257   : > { %5048 = vst.msk [vmem:[%s8980_s12 + $0x10] sm:$0xff] %vm286_vm5, %v9053_v19  ;;  %v5671_v21 = vshll.u32 %v7042_v57, 16 }
 0x258   : > { %4985 = vst.msk [vmem:[#allocation2 + $0x18] sm:$0xff] %vm286_vm5, %v4953_v17  ;;  %v9064_v24 = vpop.f32.mrf.mxu1  ;;  %v3675_v56 = vpop.f32.mrf.mxu2  ;;  %v4172_v17 = vshll.u32 %v6895_v44, 16  ;;  %v5658_v44 = vor.u32 %v5657_v28, %v5654_v20 }
 0x259   : > { %5918 = vst.msk [vmem:[%s8854_s9 + $0x30] sm:$0xff] %vm286_vm5, %v9064_v24  ;;  %v4388_v26 = vpop.f32.mrf.mxu3  ;;  %v3745_v42 = vadd.f32 %v3675_v56, %v3491_v30  ;;  %v4168_v56 = vrot.slane %v4166_v50, 5  ;;  %v4182_v50 = vshll.u32 %v6896_v32, 16  ;;  %v5673_v8 = vrot.slane %v5671_v21, 5 }
 0x25a   : > { %v4461_v54 = vadd.f32 %v4388_v26, %v4239_v53  ;;  %v9123_v48 = vrot.slane %v4172_v17, 5 }
 0x25b   : > { %7060 = vmatmul.msk.bf16.gmra.mxu1 %vm464_vm1, %v5767_v34  ;;  %v4732_v43 = vld [vmem:[#allocation2 + $0x20] sm:$0xff]  ;;  %3777 = vst.msk [vmem:[#allocation2 + $0x38] sm:$0xff] %vm286_vm5, %v3745_v42  ;;  %v4240_v34 = vld [vmem:[#allocation2 + $0x30] sm:$0xff] }
 0x25c   : > { %v4954_v51 = vadd.f32 %v8957_v12, %v4732_v43  ;;  %4493 = vst.msk [vmem:[#allocation2 + $0x28] sm:$0xff] %vm286_vm5, %v4461_v54  ;;  %v5650_v12 = vsel %vm7392_vm4, %v5645_v59, %v5649_v16  ;;  %v4709_v16 = vrot.slane %v6960_v23, 5  ;;  %v5667_v59 = vrot.slane %v5665_v14, 4 }
 0x25d   : > { %6851 = vmatmul.msk.bf16.gmra.mxu2 %vm464_vm1, %v7117_v52  ;;  %v5749_v30 = vunpack.c.l.b16 %v5650_v12  ;;  %v4712_v54 = vrot.slane %v6961_v38, 5  ;;  %v4292_v52 = vunpack.c.l.b16 %v4151_v62  ;;  %v4293_v43 = vunpack.c.l.b16 %v4161_v40  ;;  %v6897_v38 = vld [vmem:[%s7377_s26 + $0xc0] sm:$0xf] }
 0x25e   : > { %4986 = vst.msk [vmem:[#allocation2 + $0x20] sm:$0xff] %vm286_vm5, %v4954_v51  ;;  %6915 = vmatmul.msk.bf16.gmra.mxu3 %vm464_vm1, %v4311_v47  ;;  %v9103_v39 = vpop.f32.mrf.mxu0  ;;  %v9114_v47 = vrot.slane %v5661_v11, 5  ;;  %v4711_v22 = vrot.slane %v4709_v16, 4  ;;  %v4178_v51 = vrot.slane %v4176_v55, 4  ;;  %v4710_v13 = vsel %vm7598_vm8, %v6981_v46, %v4709_v16  ;;  %v7044_v55 = vld [vmem:[%s7377_s26 + $0xb8] sm:$0xf] }
 0x25f   : > { %v9088_v61 = vld [vmem:[#allocation2 + $0x18] sm:$0xff]  ;;  %v5768_v37 = vpack.c.b16 %v5749_v30, %v5748_v4  ;;  %v4312_v14 = vpack.c.b16 %v4293_v43, %v4292_v52  ;;  %v4184_v46 = vrot.slane %v4182_v50, 5  ;;  %v4187_v52 = vshrl.u32 %v6897_v38, 16  ;;  %v3494_v43 = vld [vmem:[#allocation2 + $0x50] sm:$0xff] }
 0x260   : > { %10017 = vst [vmem:[#allocation12_spill] sm:$0xff] %v9088_v61  ;;  %v9098_v27 = vpop.f32.mrf.mxu1  ;;  %v3678_v7 = vpop.f32.mrf.mxu2  ;;  %v5668_v45 = vor.u32 %v5667_v59, %v9114_v47  ;;  %v4713_v12 = vsel %vm7598_vm8, %v4711_v22, %v4712_v54  ;;  %v4179_v23 = vor.u32 %v4178_v51, %v9123_v48  ;;  %v5689_v22 = vshrl.u32 %v7044_v55, 16 }
 0x261   : > { %5049 = vst.msk [vmem:[%s8980_s12 + $0x18] sm:$0xff] %vm286_vm5, %v9088_v61  ;;  %v4391_v3 = vpop.f32.mrf.mxu3  ;;  %v3746_v26 = vadd.f32 %v3678_v7, %v3492_v18  ;;  %6997 = vmatmul.msk.bf16.gmra.mxu0 %vm464_vm1, %v4806_v29  ;;  %v3493_v29 = vld [vmem:[#allocation2 + $0x48] sm:$0xff]  ;;  %v5659_v18 = vrot.slane %v5658_v44, 4  ;;  %v4789_v7 = vunpack.c.l.b16 %v4713_v12 }
 0x262   : > { %10018 = vst [vmem:[#allocation13_spill] sm:$0xff] %v9098_v27  ;;  %v4462_v53 = vadd.f32 %v4391_v3, %v4240_v34  ;;  %v4241_v11 = vld [vmem:[#allocation2 + $0x38] sm:$0xff]  ;;  %v4788_v3 = vunpack.c.l.b16 %v4710_v13  ;;  %v5669_v30 = vrot.slane %v5668_v45, 4  ;;  %v4180_v59 = vrot.slane %v4179_v23, 4  ;;  %v6964_v23 = vld [vmem:[%s7377_s26 + $0xc8] sm:$0x1] }
 0x263   : > { %5919 = vst.msk [vmem:[%s8854_s9 + $0x38] sm:$0xff] %vm286_vm5, %v9098_v27  ;;  %v4733_v10 = vld [vmem:[#allocation2 + $0x28] sm:$0xff]  ;;  %v7118_v34 = vld [vmem:[%s7377_s26 + $0xb4] sm:$0xff] }
 0x264   : > { %v4955_v42 = vadd.f32 %v8996_v63, %v4733_v10  ;;  %4494 = vst.msk [vmem:[#allocation2 + $0x30] sm:$0xff] %vm286_vm5, %v4462_v53  ;;  %v4169_v63 = vor.u32 %v4168_v56, %v4165_v6  ;;  %v7043_v6 = vld [vmem:[%s7377_s26 + $0xb4] sm:$0xf]  ;;  %v6898_v53 = vld [vmem:[%s7377_s26 + $0xc4] sm:$0xf]  ;;  %v5685_v10 = vshll.u32 %v7044_v55, 16  ;;  %v5674_v51 = vsel %vm7392_vm4, %v5669_v30, %v5673_v8 }
 0x265   : > { %v9119_v41 = vld [vmem:[#allocation2 + $0x20] sm:$0xff]  ;;  %3778 = vst.msk [vmem:[#allocation2 + $0x40] sm:$0xff] %vm286_vm5, %v3746_v26  ;;  %v5676_v26 = vshrl.u32 %v7043_v6, 16  ;;  %v5679_v56 = vshll.u32 %v7043_v6, 16  ;;  %v4200_v21 = vshrl.u32 %v6898_v53, 16  ;;  %v4719_v30 = vrot.slane %v6964_v23, 5 }
 0x266   : > { %5050 = vst.msk [vmem:[%s8980_s12 + $0x20] sm:$0xff] %vm286_vm5, %v9119_v41  ;;  %v9131_v5 = vpop.f32.mrf.mxu0  ;;  %v4170_v4 = vrot.slane %v4169_v63, 4  ;;  %v6963_v63 = vld [vmem:[%s7377_s26 + $0xc4] sm:$0xf] }
 0x267   : > { %4987 = vst.msk [vmem:[#allocation2 + $0x28] sm:$0xff] %vm286_vm5, %v4955_v42  ;;  %v4807_v42 = vpack.c.b16 %v4789_v7, %v4788_v3  ;;  %v5678_v13 = vrot.slane %v5676_v26, 4  ;;  %v5681_v12 = vrot.slane %v5679_v56, 5  ;;  %v6899_v56 = vld [vmem:[%s7377_s26 + $0xc8] sm:$0x1] }
 0x268   : > { %v9129_v2 = vpop.f32.mrf.mxu1  ;;  %v3680_v17 = vpop.f32.mrf.mxu2  ;;  %v4175_v32 = vsel %vm7392_vm4, %v4170_v4, %v9123_v48 }
 0x269   : > { %10019 = vst [vmem:[#allocation14_spill] sm:$0xff] %v9129_v2  ;;  %v4393_v62 = vpop.f32.mrf.mxu3  ;;  %v3747_v28 = vadd.f32 %v3680_v17, %v3493_v29  ;;  %v9175_v29 = vrot.slane %v5685_v10, 5  ;;  %v5691_v17 = vrot.slane %v5689_v22, 4  ;;  %v4202_v10 = vrot.slane %v4200_v21, 4 }
 0x26a   : > { %5920 = vst.msk [vmem:[%s8854_s9 + $0x40] sm:$0xff] %vm286_vm5, %v9129_v2  ;;  %v4463_v20 = vadd.f32 %v4393_v62, %v4241_v11  ;;  %v4185_v11 = vsel %vm7392_vm4, %v4180_v59, %v4184_v46  ;;  %v5682_v59 = vor.u32 %v5681_v12, %v5678_v13 }
 0x26b   : > { %7061 = vmatmul.msk.bf16.gmra.mxu1 %vm464_vm1, %v5768_v37  ;;  %v4734_v40 = vld [vmem:[#allocation2 + $0x30] sm:$0xff]  ;;  %3779 = vst.msk [vmem:[#allocation2 + $0x48] sm:$0xff] %vm286_vm5, %v3747_v28  ;;  %v4196_v37 = vshll.u32 %v6898_v53, 16  ;;  %v4189_v28 = vrot.slane %v4187_v52, 4  ;;  %v5692_v46 = vor.u32 %v5691_v17, %v9175_v29  ;;  %v7119_v17 = vld [vmem:[%s7377_s26 + $0xc0] sm:$0xff] }
 0x26c   : > { %v4956_v16 = vadd.f32 %v9033_v1, %v4734_v40  ;;  %4495 = vst.msk [vmem:[#allocation2 + $0x38] sm:$0xff] %vm286_vm5, %v4463_v20  ;;  %v5664_v1 = vsel %vm7392_vm4, %v5659_v18, %v9114_v47  ;;  %v4190_v47 = vshll.u32 %v6897_v38, 16  ;;  %v4242_v45 = vld [vmem:[#allocation2 + $0x40] sm:$0xff]  ;;  %v4716_v18 = vrot.slane %v6963_v63, 5 }
 0x26d   : > { %6852 = vmatmul.msk.bf16.gmra.mxu2 %vm464_vm1, %v7118_v34  ;;  %v5750_v62 = vunpack.c.l.b16 %v5664_v1  ;;  %v5751_v20 = vunpack.c.l.b16 %v5674_v51  ;;  %v7045_v34 = vld [vmem:[%s7377_s26 + $0xbc] sm:$0x1]  ;;  %v4294_v38 = vunpack.c.l.b16 %v4175_v32  ;;  %v9185_v53 = vrot.slane %v4196_v37, 5 }
 0x26e   : > { %v9151_v54 = vld [vmem:[#allocation2 + $0x28] sm:$0xff]  ;;  %4988 = vst.msk [vmem:[#allocation2 + $0x30] sm:$0xff] %vm286_vm5, %v4956_v16  ;;  %6916 = vmatmul.msk.bf16.gmra.mxu3 %vm464_vm1, %v4312_v14  ;;  %v9169_v44 = vpop.f32.mrf.mxu0  ;;  %v6962_v14 = vld [vmem:[%s7377_s26 + $0xc0] sm:$0xe]  ;;  %v4192_v7 = vrot.slane %v4190_v47, 5  ;;  %v4718_v4 = vrot.slane %v4716_v18, 4  ;;  %v4295_v16 = vunpack.c.l.b16 %v4185_v11 }
 0x26f   : > { %5051 = vst.msk [vmem:[%s8980_s12 + $0x28] sm:$0xff] %vm286_vm5, %v9151_v54  ;;  %v6982_v40 = vrot.slane %v6962_v14, 9  ;;  %v5695_v22 = vshll.u32 %v7045_v34, 16  ;;  %v4206_v47 = vshll.u32 %v6899_v56, 16  ;;  %v4203_v13 = vor.u32 %v4202_v10, %v9185_v53  ;;  %v7047_v34 = vld [vmem:[%s7377_s26 + $0xc4] sm:$0xf] }
 0x270   : > { %v9162_v57 = vpop.f32.mrf.mxu1  ;;  %v3683_v50 = vpop.f32.mrf.mxu2  ;;  %v4193_v52 = vor.u32 %v4192_v7, %v4189_v28  ;;  %v4720_v32 = vsel %vm7598_vm8, %v4718_v4, %v4719_v30  ;;  %v4313_v51 = vpack.c.b16 %v4295_v16, %v4294_v38  ;;  %v5683_v12 = vrot.slane %v5682_v59, 4  ;;  %v6901_v4 = vld [vmem:[%s7377_s26 + $0xd0] sm:$0xf] }
 0x271   : > { %5921 = vst.msk [vmem:[%s8854_s9 + $0x48] sm:$0xff] %vm286_vm5, %v9162_v57  ;;  %v4396_v48 = vpop.f32.mrf.mxu3  ;;  %v3748_v55 = vadd.f32 %v3683_v50, %v3494_v43  ;;  %6998 = vmatmul.msk.bf16.gmra.mxu0 %vm464_vm1, %v4807_v42  ;;  %v4717_v43 = vsel %vm7598_vm8, %v6982_v40, %v4716_v18  ;;  %v5697_v50 = vrot.slane %v5695_v22, 5  ;;  %v4791_v23 = vunpack.c.l.b16 %v4720_v32  ;;  %v6900_v40 = vld [vmem:[%s7377_s26 + $0xcc] sm:$0xf]  ;;  %v6966_v22 = vld [vmem:[%s7377_s26 + $0xd0] sm:$0xf] }
 0x272   : > { %v4464_v6 = vadd.f32 %v4396_v48, %v4242_v45  ;;  %v4243_v37 = vld [vmem:[#allocation2 + $0x48] sm:$0xff]  ;;  %v3495_v45 = vld [vmem:[#allocation2 + $0x58] sm:$0xff]  ;;  %v5693_v48 = vrot.slane %v5692_v46, 4  ;;  %v4790_v14 = vunpack.c.l.b16 %v4717_v43  ;;  %v4208_v28 = vrot.slane %v4206_v47, 5 }
 0x273   : > { %v4735_v3 = vld [vmem:[#allocation2 + $0x38] sm:$0xff]  ;;  %3780 = vst.msk [vmem:[#allocation2 + $0x50] sm:$0xff] %vm286_vm5, %v3748_v55  ;;  %v7046_v55 = vld [vmem:[%s7377_s26 + $0xc0] sm:$0xf]  ;;  %v5688_v7 = vsel %vm7392_vm4, %v5683_v12, %v9175_v29  ;;  %v5709_v59 = vshll.u32 %v7047_v34, 16  ;;  %v5713_v46 = vshrl.u32 %v7047_v34, 16 }
 0x274   : > { %v4957_v8 = vadd.f32 %v9066_v25, %v4735_v3  ;;  %4496 = vst.msk [vmem:[#allocation2 + $0x40] sm:$0xff] %vm286_vm5, %v4464_v6  ;;  %v5769_v25 = vpack.c.b16 %v5751_v20, %v5750_v62  ;;  %v4194_v6 = vrot.slane %v4193_v52, 4  ;;  %v4204_v3 = vrot.slane %v4203_v13, 4  ;;  %v6965_v13 = vld [vmem:[%s7377_s26 + $0xcc] sm:$0xe] }
 0x275   : > { %v9187_v26 = vld [vmem:[#allocation2 + $0x30] sm:$0xff]  ;;  %v5700_v38 = vshrl.u32 %v7046_v55, 16  ;;  %v5703_v16 = vshll.u32 %v7046_v55, 16  ;;  %v4211_v52 = vshrl.u32 %v6900_v40, 16  ;;  %v4214_v43 = vshll.u32 %v6900_v40, 16 }
 0x276   : > { %10020 = vst [vmem:[#allocation15_spill] sm:$0xff] %v9187_v26  ;;  %v9198_v42 = vpop.f32.mrf.mxu0  ;;  %v4199_v56 = vsel %vm7392_vm4, %v4194_v6, %v9185_v53  ;;  %v4220_v32 = vshll.u32 %v6901_v4, 16  ;;  %v4209_v53 = vsel %vm7392_vm4, %v4204_v3, %v4208_v28  ;;  %v6967_v12 = vld [vmem:[%s7377_s26 + $0xd4] sm:$0x1]  ;;  %v5715_v6 = vrot.slane %v5713_v46, 4 }
 0x277   : > { %5052 = vst.msk [vmem:[%s8980_s12 + $0x30] sm:$0xff] %vm286_vm5, %v9187_v26  ;;  %v6983_v55 = vrot.slane %v6965_v13, 9  ;;  %v4726_v34 = vrot.slane %v6967_v12, 5  ;;  %v4297_v40 = vunpack.c.l.b16 %v4209_v53  ;;  %v7120_v12 = vld [vmem:[%s7377_s26 + $0xcc] sm:$0xff] }
 0x278   : > { %4989 = vst.msk [vmem:[#allocation2 + $0x38] sm:$0xff] %vm286_vm5, %v4957_v8  ;;  %v9196_v1 = vpop.f32.mrf.mxu1  ;;  %v3685_v21 = vpop.f32.mrf.mxu2  ;;  %v4808_v8 = vpack.c.b16 %v4791_v23, %v4790_v14  ;;  %v5705_v14 = vrot.slane %v5703_v16, 5  ;;  %v9258_v16 = vrot.slane %v4220_v32, 5 }
 0x279   : > { %5922 = vst.msk [vmem:[%s8854_s9 + $0x50] sm:$0xff] %vm286_vm5, %v9196_v1  ;;  %v4398_v63 = vpop.f32.mrf.mxu3  ;;  %v3749_v62 = vadd.f32 %v3685_v21, %v3495_v45  ;;  %v5752_v45 = vunpack.c.l.b16 %v5688_v7  ;;  %v4296_v7 = vunpack.c.l.b16 %v4199_v56 }
 0x27a   : > { %v4465_v11 = vadd.f32 %v4398_v63, %v4243_v37  ;;  %v4244_v47 = vld [vmem:[#allocation2 + $0x50] sm:$0xff] }
 0x27b   : > { %7062 = vmatmul.msk.bf16.gmra.mxu1 %vm464_vm1, %v5769_v25  ;;  %v4736_v18 = vld [vmem:[#allocation2 + $0x40] sm:$0xff]  ;;  %3781 = vst.msk [vmem:[#allocation2 + $0x58] sm:$0xff] %vm286_vm5, %v3749_v62  ;;  %v7048_v62 = vld [vmem:[%s7377_s26 + $0xc8] sm:$0x1] }
 0x27c   : > { %v4958_v20 = vadd.f32 %v9103_v39, %v4736_v18  ;;  %4497 = vst.msk [vmem:[#allocation2 + $0x48] sm:$0xff] %vm286_vm5, %v4465_v11  ;;  %v5698_v39 = vsel %vm7392_vm4, %v5693_v48, %v5697_v50  ;;  %v3496_v25 = vld [vmem:[#allocation2 + $0x60] sm:$0xff]  ;;  %v4723_v48 = vrot.slane %v6966_v22, 5  ;;  %v9247_v18 = vrot.slane %v5709_v59, 5 }
 0x27d   : > { %6853 = vmatmul.msk.bf16.gmra.mxu2 %vm464_vm1, %v7119_v17  ;;  %v5753_v21 = vunpack.c.l.b16 %v5698_v39  ;;  %v5702_v17 = vrot.slane %v5700_v38, 4  ;;  %v4216_v39 = vrot.slane %v4214_v43, 5  ;;  %v6902_v38 = vld [vmem:[%s7377_s26 + $0xd4] sm:$0x1]  ;;  %v5719_v59 = vshll.u32 %v7048_v62, 16  ;;  %s6346_s26 = sshll.u32 %s9696_s15, 1 }
 0x27e   : > { %4990 = vst.msk [vmem:[#allocation2 + $0x40] sm:$0xff] %vm286_vm5, %v4958_v20  ;;  %6917 = vmatmul.msk.bf16.gmra.mxu3 %vm464_vm1, %v4313_v51  ;;  %v9235_v10 = vpop.f32.mrf.mxu0  ;;  %v4224_v51 = vshrl.u32 %v6901_v4, 16  ;;  %v4725_v20 = vrot.slane %v4723_v48, 4  ;;  %v4213_v4 = vrot.slane %v4211_v52, 4  ;;  %v4724_v52 = vsel %vm7598_vm8, %v6983_v55, %v4723_v48  ;;  %s9724_s13 = scalar_lea.vmem [#allocation5], %s6346_s26  ;;  %s9787_s14 = scalar_lea.vmem [#allocation3], %s6346_s26 }
 0x27f   : > { %v9220_v30 = vld [vmem:[#allocation2 + $0x38] sm:$0xff]  ;;  %v5706_v56 = vor.u32 %v5705_v14, %v5702_v17  ;;  %v5721_v14 = vrot.slane %v5719_v59, 5  ;;  %s6197_s20 = sshll.u32 %s9724_s13, 4  ;;  %s7192_s26 = scalar_lea.hbm %s9990_s6, 4  ;;  %s6198_s20 = int_to_ptr.vmem [resolvable:$true] %s6197_s20 }
 0x280   : > { %10021 = vst [vmem:[#allocation16_spill] sm:$0xff] %v9220_v30  ;;  %v9230_v29 = vpop.f32.mrf.mxu1  ;;  %v3688_v63 = vpop.f32.mrf.mxu2  ;;  %v4727_v43 = vsel %vm7598_vm8, %v4725_v20, %v4726_v34  ;;  %v4217_v53 = vor.u32 %v4216_v39, %v4213_v4 }
 0x281   : > { %5053 = vst.msk [vmem:[%s8980_s12 + $0x38] sm:$0xff] %vm286_vm5, %v9220_v30  ;;  %v4401_v37 = vpop.f32.mrf.mxu3  ;;  %v3750_v11 = vadd.f32 %v3688_v63, %v3496_v25  ;;  %6999 = vmatmul.msk.bf16.gmra.mxu0 %vm464_vm1, %v4808_v8  ;;  %v5770_v8 = vpack.c.b16 %v5753_v21, %v5752_v45  ;;  %v5716_v25 = vor.u32 %v5715_v6, %v9247_v18  ;;  %v4230_v45 = vshll.u32 %v6902_v38, 16  ;;  %v3498_v38 = vld [vmem:[#allocation2 + $0x70] sm:$0xff] }
 0x282   : > { %10022 = vst [vmem:[#allocation17_spill] sm:$0xff] %v9230_v29  ;;  %v4466_v50 = vadd.f32 %v4401_v37, %v4244_v47  ;;  %v4245_v32 = vld [vmem:[#allocation2 + $0x58] sm:$0xff]  ;;  %v3497_v47 = vld [vmem:[#allocation2 + $0x68] sm:$0xff]  ;;  %v4314_v63 = vpack.c.b16 %v4297_v40, %v4296_v7  ;;  %v4793_v48 = vunpack.c.l.b16 %v4727_v43  ;;  %v5707_v62 = vrot.slane %v5706_v56, 4 }
 0x283   : > { %5923 = vst.msk [vmem:[%s8854_s9 + $0x58] sm:$0xff] %vm286_vm5, %v9230_v29  ;;  %v4737_v23 = vld [vmem:[#allocation2 + $0x48] sm:$0xff]  ;;  %v5717_v17 = vrot.slane %v5716_v25, 4  ;;  %v4232_v55 = vrot.slane %v4230_v45, 5 }
 0x284   : > { %v4959_v28 = vadd.f32 %v9131_v5, %v4737_v23  ;;  %4498 = vst.msk [vmem:[#allocation2 + $0x50] sm:$0xff] %vm286_vm5, %v4466_v50  ;;  %v4226_v5 = vrot.slane %v4224_v51, 4  ;;  %v4792_v50 = vunpack.c.l.b16 %v4724_v52  ;;  %v5712_v7 = vsel %vm7392_vm4, %v5707_v62, %v9247_v18 }
 0x285   : > { %v9251_v3 = vld [vmem:[#allocation2 + $0x40] sm:$0xff]  ;;  %3782 = vst.msk [vmem:[#allocation2 + $0x60] sm:$0xff] %vm286_vm5, %v3750_v11  ;;  %v5722_v40 = vsel %vm7392_vm4, %v5717_v17, %v5721_v14  ;;  %v5754_v25 = vunpack.c.l.b16 %v5712_v7 }
 0x286   : > { %5054 = vst.msk [vmem:[%s8980_s12 + $0x40] sm:$0xff] %vm286_vm5, %v9251_v3  ;;  %v9263_v22 = vpop.f32.mrf.mxu0  ;;  %v4227_v11 = vor.u32 %v4226_v5, %v9258_v16  ;;  %v4809_v20 = vpack.c.b16 %v4793_v48, %v4792_v50  ;;  %v5755_v52 = vunpack.c.l.b16 %v5722_v40 }
 0x287   : > { %4991 = vst.msk [vmem:[#allocation2 + $0x48] sm:$0xff] %vm286_vm5, %v4959_v28 }
 0x288   : > { %v9261_v46 = vpop.f32.mrf.mxu1  ;;  %v3690_v37 = vpop.f32.mrf.mxu2  ;;  %v4228_v34 = vrot.slane %v4227_v11, 4 }
 0x289   : > { %10023 = vst [vmem:[#allocation18_spill] sm:$0xff] %v9261_v46  ;;  %v4403_v51 = vpop.f32.mrf.mxu3  ;;  %v3751_v13 = vadd.f32 %v3690_v37, %v3497_v47 }
 0x28a   : > { %5924 = vst.msk [vmem:[%s8854_s9 + $0x60] sm:$0xff] %vm286_vm5, %v9261_v46  ;;  %v4467_v21 = vadd.f32 %v4403_v51, %v4245_v32  ;;  %v4233_v32 = vsel %vm7392_vm4, %v4228_v34, %v4232_v55  ;;  %v3500_v55 = vld [vmem:[#allocation2 + $0x80] sm:$0xff] }
 0x28b   : > { %7063 = vmatmul.msk.bf16.gmra.mxu1 %vm464_vm1, %v5770_v8  ;;  %v4738_v15 = vld [vmem:[#allocation2 + $0x50] sm:$0xff]  ;;  %3783 = vst.msk [vmem:[#allocation2 + $0x68] sm:$0xff] %vm286_vm5, %v3751_v13 }
 0x28c   : > { %v4960_v23 = vadd.f32 %v9169_v44, %v4738_v15  ;;  %4499 = vst.msk [vmem:[#allocation2 + $0x58] sm:$0xff] %vm286_vm5, %v4467_v21  ;;  %v4218_v44 = vrot.slane %v4217_v53, 4  ;;  %v4246_v39 = vld [vmem:[#allocation2 + $0x60] sm:$0xff]  ;;  %v5771_v53 = vpack.c.b16 %v5755_v52, %v5754_v25  ;;  %v3499_v21 = vld [vmem:[#allocation2 + $0x78] sm:$0xff] }
 0x28d   : > { %6854 = vmatmul.msk.bf16.gmra.mxu2 %vm464_vm1, %v7120_v12 }
 0x28e   : > { %v9279_v6 = vld [vmem:[#allocation2 + $0x48] sm:$0xff]  ;;  %4992 = vst.msk [vmem:[#allocation2 + $0x50] sm:$0xff] %vm286_vm5, %v4960_v23  ;;  %6918 = vmatmul.msk.bf16.gmra.mxu3 %vm464_vm1, %v4314_v63  ;;  %v9294_v4 = vpop.f32.mrf.mxu0  ;;  %v4223_v43 = vsel %vm7392_vm4, %v4218_v44, %v9258_v16  ;;  %v4299_v63 = vunpack.c.l.b16 %v4233_v32 }
 0x28f   : > { %5055 = vst.msk [vmem:[%s8980_s12 + $0x48] sm:$0xff] %vm286_vm5, %v9279_v6  ;;  %v4298_v37 = vunpack.c.l.b16 %v4223_v43 }
 0x290   : > { %v9287_v28 = vpop.f32.mrf.mxu1  ;;  %v3693_v5 = vpop.f32.mrf.mxu2 }
 0x291   : > { %5925 = vst.msk [vmem:[%s8854_s9 + $0x68] sm:$0xff] %vm286_vm5, %v9287_v28  ;;  %v4406_v8 = vpop.f32.mrf.mxu3  ;;  %v3752_v56 = vadd.f32 %v3693_v5, %v3498_v38  ;;  %7000 = vmatmul.msk.bf16.gmra.mxu0 %vm464_vm1, %v4809_v20  ;;  %v4315_v48 = vpack.c.b16 %v4299_v63, %v4298_v37  ;;  %v3502_v63 = vld [vmem:[#allocation2 + $0x90] sm:$0xff] }
 0x292   : > { %v4468_v59 = vadd.f32 %v4406_v8, %v4246_v39 }
 0x293   : > { %v4739_v18 = vld [vmem:[#allocation2 + $0x58] sm:$0xff]  ;;  %3784 = vst.msk [vmem:[#allocation2 + $0x70] sm:$0xff] %vm286_vm5, %v3752_v56 }
 0x294   : > { %v4961_v51 = vadd.f32 %v9198_v42, %v4739_v18  ;;  %4500 = vst.msk [vmem:[#allocation2 + $0x60] sm:$0xff] %vm286_vm5, %v4468_v59  ;;  %v4247_v42 = vld [vmem:[#allocation2 + $0x68] sm:$0xff] }
 0x295   : > { %v9307_v47 = vld [vmem:[#allocation2 + $0x50] sm:$0xff]  ;;  %v3501_v59 = vld [vmem:[#allocation2 + $0x88] sm:$0xff] }
 0x296   : > { %5056 = vst.msk [vmem:[%s8980_s12 + $0x50] sm:$0xff] %vm286_vm5, %v9307_v47  ;;  %v4907_v35 = vpop.f32.mrf.mxu0 }
 0x297   : > { %4993 = vst.msk [vmem:[#allocation2 + $0x58] sm:$0xff] %vm286_vm5, %v4961_v51 }
 0x298   : > { %v9314_v16 = vpop.f32.mrf.mxu1  ;;  %v3695_v13 = vpop.f32.mrf.mxu2 }
 0x299   : > { %5926 = vst.msk [vmem:[%s8854_s9 + $0x70] sm:$0xff] %vm286_vm5, %v9314_v16  ;;  %v4408_v45 = vpop.f32.mrf.mxu3  ;;  %v3753_v50 = vadd.f32 %v3695_v13, %v3499_v21 }
 0x29a   : > { %v4469_v12 = vadd.f32 %v4408_v45, %v4247_v42 }
 0x29b   : > { %7064 = vmatmul.msk.bf16.gmra.mxu1 %vm464_vm1, %v5771_v53  ;;  %v4740_v15 = vld [vmem:[#allocation2 + $0x60] sm:$0xff]  ;;  %3785 = vst.msk [vmem:[#allocation2 + $0x78] sm:$0xff] %vm286_vm5, %v3753_v50 }
 0x29c   : > { %v4962_v11 = vadd.f32 %v9235_v10, %v4740_v15  ;;  %4501 = vst.msk [vmem:[#allocation2 + $0x68] sm:$0xff] %vm286_vm5, %v4469_v12  ;;  %v4248_v10 = vld [vmem:[#allocation2 + $0x70] sm:$0xff] }
 0x29e   : > { %v9323_v62 = vld [vmem:[#allocation2 + $0x58] sm:$0xff]  ;;  %4994 = vst.msk [vmem:[#allocation2 + $0x60] sm:$0xff] %vm286_vm5, %v4962_v11  ;;  %6919 = vmatmul.msk.bf16.gmra.mxu3 %vm464_vm1, %v4315_v48  ;;  %v4910_v14 = vpop.f32.mrf.mxu0 }
 0x29f   : > { %5057 = vst.msk [vmem:[%s8980_s12 + $0x58] sm:$0xff] %vm286_vm5, %v9323_v62  ;;  %v3503_v11 = vld [vmem:[#allocation2 + $0x98] sm:$0xff] }
 0x2a0   : > { %v9330_v17 = vpop.f32.mrf.mxu1  ;;  %v3698_v20 = vpop.f32.mrf.mxu2 }
 0x2a1   : > { %5927 = vst.msk [vmem:[%s8854_s9 + $0x78] sm:$0xff] %vm286_vm5, %v9330_v17  ;;  %v4411_v23 = vpop.f32.mrf.mxu3  ;;  %v3754_v34 = vadd.f32 %v3698_v20, %v3500_v55 }
 0x2a2   : > { %v4470_v44 = vadd.f32 %v4411_v23, %v4248_v10 }
 0x2a3   : > { %v4741_v7 = vld [vmem:[#allocation2 + $0x68] sm:$0xff]  ;;  %3786 = vst.msk [vmem:[#allocation2 + $0x80] sm:$0xff] %vm286_vm5, %v3754_v34 }
 0x2a4   : > { %v4963_v40 = vadd.f32 %v9263_v22, %v4741_v7  ;;  %4502 = vst.msk [vmem:[#allocation2 + $0x70] sm:$0xff] %vm286_vm5, %v4470_v44  ;;  %v4249_v22 = vld [vmem:[#allocation2 + $0x78] sm:$0xff] }
 0x2a5   : > { %v9337_v39 = vld [vmem:[#allocation2 + $0x60] sm:$0xff] }
 0x2a6   : > { %5058 = vst.msk [vmem:[%s8980_s12 + $0x60] sm:$0xff] %vm286_vm5, %v9337_v39  ;;  %v4912_v38 = vpop.f32.mrf.mxu0 }
 0x2a7   : > { %4995 = vst.msk [vmem:[#allocation2 + $0x68] sm:$0xff] %vm286_vm5, %v4963_v40 }
 0x2a8   : > { %v9344_v8 = vpop.f32.mrf.mxu1  ;;  %v3700_v56 = vpop.f32.mrf.mxu2 }
 0x2a9   : > { %10024 = vst [vmem:[#allocation19_spill] sm:$0xff] %v9344_v8  ;;  %v4413_v5 = vpop.f32.mrf.mxu3  ;;  %v3755_v52 = vadd.f32 %v3700_v56, %v3501_v59 }
 0x2aa   : > { %5928 = vst.msk [vmem:[%s8854_s9 + $0x80] sm:$0xff] %vm286_vm5, %v9344_v8  ;;  %v4471_v25 = vadd.f32 %v4413_v5, %v4249_v22  ;;  %v4250_v37 = vld [vmem:[#allocation2 + $0x80] sm:$0xff] }
 0x2ab   : > { %v4742_v18 = vld [vmem:[#allocation2 + $0x70] sm:$0xff]  ;;  %3787 = vst.msk [vmem:[#allocation2 + $0x88] sm:$0xff] %vm286_vm5, %v3755_v52  ;;  %v3504_v5 = vld [vmem:[#allocation2 + $0xa0] sm:$0xff] }
 0x2ac   : > { %v4964_v43 = vadd.f32 %v9294_v4, %v4742_v18  ;;  %4503 = vst.msk [vmem:[#allocation2 + $0x78] sm:$0xff] %vm286_vm5, %v4471_v25 }
 0x2ae   : > { %v9352_v32 = vld [vmem:[#allocation2 + $0x68] sm:$0xff]  ;;  %4996 = vst.msk [vmem:[#allocation2 + $0x70] sm:$0xff] %vm286_vm5, %v4964_v43  ;;  %v4915_v21 = vpop.f32.mrf.mxu0 }
 0x2af   : > { %5059 = vst.msk [vmem:[%s8980_s12 + $0x68] sm:$0xff] %vm286_vm5, %v9352_v32 }
 0x2b0   : > { %v9358_v51 = vpop.f32.mrf.mxu1  ;;  %v3703_v53 = vpop.f32.mrf.mxu2 }
 0x2b1   : > { %10025 = vst [vmem:[#allocation20_spill] sm:$0xff] %v9358_v51  ;;  %v4416_v4 = vpop.f32.mrf.mxu3  ;;  %v3756_v45 = vadd.f32 %v3703_v53, %v3502_v63  ;;  %v3505_v53 = vld [vmem:[#allocation2 + $0xa8] sm:$0xff] }
 0x2b2   : > { %5929 = vst.msk [vmem:[%s8854_s9 + $0x88] sm:$0xff] %vm286_vm5, %v9358_v51  ;;  %v4472_v42 = vadd.f32 %v4416_v4, %v4250_v37  ;;  %v4251_v15 = vld [vmem:[#allocation2 + $0x88] sm:$0xff] }
 0x2b3   : > { %v4743_v13 = vld [vmem:[#allocation2 + $0x78] sm:$0xff]  ;;  %3788 = vst.msk [vmem:[#allocation2 + $0x90] sm:$0xff] %vm286_vm5, %v3756_v45 }
 0x2b4   : > { %v4965_v12 = vadd.f32 %v4907_v35, %v4743_v13  ;;  %4504 = vst.msk [vmem:[#allocation2 + $0x80] sm:$0xff] %vm286_vm5, %v4472_v42 }
 0x2b5   : > { %v9364_v50 = vld [vmem:[#allocation2 + $0x70] sm:$0xff] }
 0x2b6   : > { %5060 = vst.msk [vmem:[%s8980_s12 + $0x70] sm:$0xff] %vm286_vm5, %v9364_v50  ;;  %v4917_v34 = vpop.f32.mrf.mxu0 }
 0x2b7   : > { %4997 = vst.msk [vmem:[#allocation2 + $0x78] sm:$0xff] %vm286_vm5, %v4965_v12 }
 0x2b8   : > { %v9371_v48 = vpop.f32.mrf.mxu1  ;;  %v3705_v10 = vpop.f32.mrf.mxu2 }
 0x2b9   : > { %5930 = vst.msk [vmem:[%s8854_s9 + $0x90] sm:$0xff] %vm286_vm5, %v9371_v48  ;;  %v4418_v35 = vpop.f32.mrf.mxu3  ;;  %v3757_v55 = vadd.f32 %v3705_v10, %v3503_v11 }
 0x2ba   : > { %v4473_v23 = vadd.f32 %v4418_v35, %v4251_v15 }
 0x2bb   : > { %v4744_v20 = vld [vmem:[#allocation2 + $0x80] sm:$0xff]  ;;  %3789 = vst.msk [vmem:[#allocation2 + $0x98] sm:$0xff] %vm286_vm5, %v3757_v55  ;;  %v3506_v55 = vld [vmem:[#allocation2 + $0xb0] sm:$0xff] }
 0x2bc   : > { %v4966_v44 = vadd.f32 %v4910_v14, %v4744_v20  ;;  %4505 = vst.msk [vmem:[#allocation2 + $0x88] sm:$0xff] %vm286_vm5, %v4473_v23  ;;  %v4252_v14 = vld [vmem:[#allocation2 + $0x90] sm:$0xff] }
 0x2be   : > { %v9378_v7 = vld [vmem:[#allocation2 + $0x78] sm:$0xff]  ;;  %4998 = vst.msk [vmem:[#allocation2 + $0x80] sm:$0xff] %vm286_vm5, %v4966_v44  ;;  %v4920_v37 = vpop.f32.mrf.mxu0 }
 0x2bf   : > { %5061 = vst.msk [vmem:[%s8980_s12 + $0x78] sm:$0xff] %vm286_vm5, %v9378_v7 }
 0x2c0   : > { %v9384_v40 = vpop.f32.mrf.mxu1  ;;  %v3708_v59 = vpop.f32.mrf.mxu2 }
 0x2c1   : > { %5931 = vst.msk [vmem:[%s8854_s9 + $0x98] sm:$0xff] %vm286_vm5, %v9384_v40  ;;  %v4421_v22 = vpop.f32.mrf.mxu3  ;;  %v3758_v25 = vadd.f32 %v3708_v59, %v3504_v5 }
 0x2c2   : > { %v4474_v56 = vadd.f32 %v4421_v22, %v4252_v14 }
 0x2c3   : > { %v4745_v52 = vld [vmem:[#allocation2 + $0x88] sm:$0xff]  ;;  %3790 = vst.msk [vmem:[#allocation2 + $0xa0] sm:$0xff] %vm286_vm5, %v3758_v25 }
 0x2c4   : > { %v4967_v18 = vadd.f32 %v4912_v38, %v4745_v52  ;;  %4506 = vst.msk [vmem:[#allocation2 + $0x90] sm:$0xff] %vm286_vm5, %v4474_v56  ;;  %v4253_v38 = vld [vmem:[#allocation2 + $0x98] sm:$0xff] }
 0x2c5   : > { %v9390_v43 = vld [vmem:[#allocation2 + $0x80] sm:$0xff] }
 0x2c6   : > { %5062 = vst.msk [vmem:[%s8980_s12 + $0x80] sm:$0xff] %vm286_vm5, %v9390_v43  ;;  %v4922_v10 = vpop.f32.mrf.mxu0 }
 0x2c7   : > { %4999 = vst.msk [vmem:[#allocation2 + $0x88] sm:$0xff] %vm286_vm5, %v4967_v18 }
 0x2c8   : > { %v9397_v4 = vpop.f32.mrf.mxu1  ;;  %v3710_v42 = vpop.f32.mrf.mxu2 }
 0x2c9   : > { %10026 = vst [vmem:[#allocation21_spill] sm:$0xff] %v9397_v4  ;;  %v4423_v63 = vpop.f32.mrf.mxu3  ;;  %v3759_v13 = vadd.f32 %v3710_v42, %v3505_v53 }
 0x2ca   : > { %5932 = vst.msk [vmem:[%s8854_s9 + $0xa0] sm:$0xff] %vm286_vm5, %v9397_v4  ;;  %v4475_v45 = vadd.f32 %v4423_v63, %v4253_v38 }
 0x2cb   : > { %v4746_v12 = vld [vmem:[#allocation2 + $0x90] sm:$0xff]  ;;  %3791 = vst.msk [vmem:[#allocation2 + $0xa8] sm:$0xff] %vm286_vm5, %v3759_v13  ;;  %v5945_v13 = vsel %vm286_vm5, %v8895_v9, 0.0 }
 0x2cc   : > { %v4968_v15 = vadd.f32 %v4915_v21, %v4746_v12  ;;  %4507 = vst.msk [vmem:[#allocation2 + $0x98] sm:$0xff] %vm286_vm5, %v4475_v45  ;;  %v4254_v21 = vld [vmem:[#allocation2 + $0xa0] sm:$0xff]  ;;  %v5944_v45 = vsel %vm286_vm5, %v8859_v36, 0.0 }
 0x2ce   : > { %v9404_v35 = vld [vmem:[#allocation2 + $0x88] sm:$0xff]  ;;  %5000 = vst.msk [vmem:[#allocation2 + $0x90] sm:$0xff] %vm286_vm5, %v4968_v15  ;;  %v4925_v53 = vpop.f32.mrf.mxu0 }
 0x2cf   : > { %5063 = vst.msk [vmem:[%s8980_s12 + $0x88] sm:$0xff] %vm286_vm5, %v9404_v35 }
 0x2d0   : > { %v9410_v11 = vpop.f32.mrf.mxu1  ;;  %v3713_v20 = vpop.f32.mrf.mxu2 }
 0x2d1   : > { %10027 = vst [vmem:[#allocation22_spill] sm:$0xff] %v9410_v11  ;;  %v4426_v23 = vpop.f32.mrf.mxu3  ;;  %v3760_v14 = vadd.f32 %v3713_v20, %v3506_v55  ;;  %v5947_v55 = vsel %vm286_vm5, %v8922_v0, 0.0 }
 0x2d2   : > { %5933 = vst.msk [vmem:[%s8854_s9 + $0xa8] sm:$0xff] %vm286_vm5, %v9410_v11  ;;  %v4476_v44 = vadd.f32 %v4426_v23, %v4254_v21  ;;  %v4255_v25 = vld [vmem:[#allocation2 + $0xa8] sm:$0xff]  ;;  %v5946_v21 = vadd.f32 %v5945_v13, %v5944_v45  ;;  %v5951_v13 = vsel %vm286_vm5, %v8994_v60, 0.0 }
 0x2d3   : > { %v4747_v22 = vld [vmem:[#allocation2 + $0x98] sm:$0xff]  ;;  %3792 = vst.msk [vmem:[#allocation2 + $0xb0] sm:$0xff] %vm286_vm5, %v3760_v14 }
 0x2d4   : > { %v4969_v5 = vadd.f32 %v4917_v34, %v4747_v22  ;;  %4508 = vst.msk [vmem:[#allocation2 + $0xa0] sm:$0xff] %vm286_vm5, %v4476_v44  ;;  %v3507_v34 = vld [vmem:[#allocation2 + $0xb8] sm:$0xff]  ;;  %v3508_v44 = vld [vmem:[#allocation2 + $0xc0] sm:$0xff] }
 0x2d5   : > { %v9416_v59 = vld [vmem:[#allocation2 + $0x90] sm:$0xff] }
 0x2d6   : > { %5064 = vst.msk [vmem:[%s8980_s12 + $0x90] sm:$0xff] %vm286_vm5, %v9416_v59 }
 0x2d7   : > { %5001 = vst.msk [vmem:[#allocation2 + $0x98] sm:$0xff] %vm286_vm5, %v4969_v5 }
 0x2d8   : > { %v9423_v56 = vpop.f32.mrf.mxu1  ;;  %v3715_v18 = vpop.f32.mrf.mxu2 }
 0x2d9   : > { %5934 = vst.msk [vmem:[%s8854_s9 + $0xb0] sm:$0xff] %vm286_vm5, %v9423_v56  ;;  %v4428_v52 = vpop.f32.mrf.mxu3  ;;  %v3761_v63 = vadd.f32 %v3715_v18, %v3507_v34  ;;  %v5949_v34 = vsel %vm286_vm5, %v8955_v33, 0.0 }
 0x2da   : > { %v4477_v38 = vadd.f32 %v4428_v52, %v4255_v25  ;;  %v5948_v25 = vadd.f32 %v5947_v55, %v5946_v21  ;;  %v3509_v21 = vld [vmem:[#allocation2 + $0xc8] sm:$0xff] }
 0x2db   : > { %v4748_v42 = vld [vmem:[#allocation2 + $0xa0] sm:$0xff]  ;;  %3793 = vst.msk [vmem:[#allocation2 + $0xb8] sm:$0xff] %vm286_vm5, %v3761_v63 }
 0x2dc   : > { %v4970_v12 = vadd.f32 %v4920_v37, %v4748_v42  ;;  %4509 = vst.msk [vmem:[#allocation2 + $0xa8] sm:$0xff] %vm286_vm5, %v4477_v38  ;;  %v4256_v37 = vld [vmem:[#allocation2 + $0xb0] sm:$0xff]  ;;  %v4927_v38 = vpop.f32.mrf.mxu0  ;;  %v5950_v42 = vadd.f32 %v5949_v34, %v5948_v25  ;;  %v5957_v34 = vsel %vm286_vm5, %v9098_v27, 0.0  ;;  %v5965_v27 = vsel %vm286_vm5, %v9230_v29, 0.0 }
 0x2de   : > { %v9434_v15 = vld [vmem:[#allocation2 + $0x98] sm:$0xff]  ;;  %5002 = vst.msk [vmem:[#allocation2 + $0xa0] sm:$0xff] %vm286_vm5, %v4970_v12 }
 0x2df   : > { %5065 = vst.msk [vmem:[%s8980_s12 + $0x98] sm:$0xff] %vm286_vm5, %v9434_v15 }
 0x2e0   : > { %v9440_v23 = vpop.f32.mrf.mxu1  ;;  %v3718_v14 = vpop.f32.mrf.mxu2 }
 0x2e1   : > { %5935 = vst.msk [vmem:[%s8854_s9 + $0xb8] sm:$0xff] %vm286_vm5, %v9440_v23  ;;  %v4431_v20 = vpop.f32.mrf.mxu3  ;;  %v3762_v5 = vadd.f32 %v3718_v14, %v3508_v44  ;;  %v5952_v14 = vadd.f32 %v5951_v13, %v5950_v42 }
 0x2e2   : > { %v4478_v22 = vadd.f32 %v4431_v20, %v4256_v37  ;;  %v5953_v37 = vsel %vm286_vm5, %v9029_v49, 0.0 }
 0x2e3   : > { %v4749_v52 = vld [vmem:[#allocation2 + $0xa8] sm:$0xff]  ;;  %3794 = vst.msk [vmem:[#allocation2 + $0xc0] sm:$0xff] %vm286_vm5, %v3762_v5  ;;  %v5955_v5 = vsel %vm286_vm5, %v9064_v24, 0.0 }
 0x2e4   : > { %v4971_v18 = vadd.f32 %v4922_v10, %v4749_v52  ;;  %4510 = vst.msk [vmem:[#allocation2 + $0xb0] sm:$0xff] %vm286_vm5, %v4478_v22  ;;  %v4257_v10 = vld [vmem:[#allocation2 + $0xb8] sm:$0xff]  ;;  %v5954_v52 = vadd.f32 %v5953_v37, %v5952_v14  ;;  %v3510_v37 = vld [vmem:[#allocation2 + $0xd0] sm:$0xff] }
 0x2e5   : > { %v9450_v63 = vld [vmem:[#allocation2 + $0xa0] sm:$0xff] }
 0x2e6   : > { %5066 = vst.msk [vmem:[%s8980_s12 + $0xa0] sm:$0xff] %vm286_vm5, %v9450_v63 }
 0x2e7   : > { %5003 = vst.msk [vmem:[#allocation2 + $0xa8] sm:$0xff] %vm286_vm5, %v4971_v18 }
 0x2e8   : > { %v9457_v45 = vpop.f32.mrf.mxu1  ;;  %v3720_v55 = vpop.f32.mrf.mxu2 }
 0x2e9   : > { %10028 = vst [vmem:[#allocation23_spill] sm:$0xff] %v9457_v45  ;;  %v4433_v12 = vpop.f32.mrf.mxu3  ;;  %v3763_v44 = vadd.f32 %v3720_v55, %v3509_v21 }
 0x2ea   : > { %5936 = vst.msk [vmem:[%s8854_s9 + $0xc0] sm:$0xff] %vm286_vm5, %v9457_v45  ;;  %v4479_v20 = vadd.f32 %v4433_v12, %v4257_v10  ;;  %v4930_v10 = vpop.f32.mrf.mxu0  ;;  %v5956_v12 = vadd.f32 %v5955_v5, %v5954_v52  ;;  %v4258_v21 = vld [vmem:[#allocation2 + $0xc0] sm:$0xff]  ;;  %v5963_v52 = vsel %vm286_vm5, %v9196_v1, 0.0 }
 0x2eb   : > { %v4750_v22 = vld [vmem:[#allocation2 + $0xb0] sm:$0xff]  ;;  %3795 = vst.msk [vmem:[#allocation2 + $0xc8] sm:$0xff] %vm286_vm5, %v3763_v44  ;;  %v5961_v44 = vsel %vm286_vm5, %v9162_v57, 0.0 }
 0x2ec   : > { %v4972_v25 = vadd.f32 %v4925_v53, %v4750_v22  ;;  %4511 = vst.msk [vmem:[#allocation2 + $0xb8] sm:$0xff] %vm286_vm5, %v4479_v20  ;;  %v5959_v53 = vsel %vm286_vm5, %v9129_v2, 0.0  ;;  %v5958_v13 = vadd.f32 %v5957_v34, %v5956_v12 }
 0x2ee   : > { %v9472_v18 = vld [vmem:[#allocation2 + $0xa8] sm:$0xff]  ;;  %5004 = vst.msk [vmem:[#allocation2 + $0xb0] sm:$0xff] %vm286_vm5, %v4972_v25  ;;  %v5960_v5 = vadd.f32 %v5959_v53, %v5958_v13 }
 0x2ef   : > { %5067 = vst.msk [vmem:[%s8980_s12 + $0xa8] sm:$0xff] %vm286_vm5, %v9472_v18 }
 0x2f0   : > { %v9478_v42 = vpop.f32.mrf.mxu1  ;;  %v3723_v20 = vpop.f32.mrf.mxu2  ;;  %v5962_v34 = vadd.f32 %v5961_v44, %v5960_v5  ;;  %v3511_v44 = vld [vmem:[#allocation2 + $0xd8] sm:$0xff] }
 0x2f1   : > { %5937 = vst.msk [vmem:[%s8854_s9 + $0xc8] sm:$0xff] %vm286_vm5, %v9478_v42  ;;  %v4436_v55 = vpop.f32.mrf.mxu3  ;;  %v3764_v22 = vadd.f32 %v3723_v20, %v3510_v37 }
 0x2f2   : > { %v4480_v14 = vadd.f32 %v4436_v55, %v4258_v21  ;;  %v5964_v21 = vadd.f32 %v5963_v52, %v5962_v34  ;;  %v4932_v13 = vpop.f32.mrf.mxu0  ;;  %v4259_v37 = vld [vmem:[#allocation2 + $0xc8] sm:$0xff]  ;;  %v5971_v34 = vsel %vm286_vm5, %v9314_v16, 0.0 }
 0x2f3   : > { %v4751_v25 = vld [vmem:[#allocation2 + $0xb8] sm:$0xff]  ;;  %3796 = vst.msk [vmem:[#allocation2 + $0xd0] sm:$0xff] %vm286_vm5, %v3764_v22  ;;  %v5969_v22 = vsel %vm286_vm5, %v9287_v28, 0.0 }
 0x2f4   : > { %v4973_v2 = vadd.f32 %v4927_v38, %v4751_v25  ;;  %4512 = vst.msk [vmem:[#allocation2 + $0xc0] sm:$0xff] %vm286_vm5, %v4480_v14  ;;  %v5967_v38 = vsel %vm286_vm5, %v9261_v46, 0.0  ;;  %v5966_v55 = vadd.f32 %v5965_v27, %v5964_v21  ;;  %v5973_v21 = vsel %vm286_vm5, %v9330_v17, 0.0 }
 0x2f5   : > { %v9490_v12 = vld [vmem:[#allocation2 + $0xb0] sm:$0xff] }
 0x2f6   : > { %5068 = vst.msk [vmem:[%s8980_s12 + $0xb0] sm:$0xff] %vm286_vm5, %v9490_v12  ;;  %v5968_v25 = vadd.f32 %v5967_v38, %v5966_v55 }
 0x2f7   : > { %5005 = vst.msk [vmem:[#allocation2 + $0xb8] sm:$0xff] %vm286_vm5, %v4973_v2 }
 0x2f8   : > { %v9499_v53 = vpop.f32.mrf.mxu1  ;;  %v3725_v14 = vpop.f32.mrf.mxu2  ;;  %v5970_v27 = vadd.f32 %v5969_v22, %v5968_v25 }
 0x2f9   : > { %5938 = vst.msk [vmem:[%s8854_s9 + $0xd0] sm:$0xff] %vm286_vm5, %v9499_v53  ;;  %v4438_v20 = vpop.f32.mrf.mxu3  ;;  %v3765_v2 = vadd.f32 %v3725_v14, %v3511_v44  ;;  %v3512_v14 = vld [vmem:[#allocation2 + $0xe0] sm:$0xff] }
 0x2fa   : > { %v4481_v5 = vadd.f32 %v4438_v20, %v4259_v37  ;;  %v5972_v37 = vadd.f32 %v5971_v34, %v5970_v27  ;;  %v4260_v20 = vld [vmem:[#allocation2 + $0xd0] sm:$0xff]  ;;  %v4935_v34 = vpop.f32.mrf.mxu0  ;;  %v5979_v27 = vsel %vm286_vm5, %v9371_v48, 0.0 }
 0x2fb   : > { %v4752_v52 = vld [vmem:[#allocation2 + $0xc0] sm:$0xff]  ;;  %3797 = vst.msk [vmem:[#allocation2 + $0xd8] sm:$0xff] %vm286_vm5, %v3765_v2 }
 0x2fc   : > { %v4974_v46 = vadd.f32 %v4930_v10, %v4752_v52  ;;  %4513 = vst.msk [vmem:[#allocation2 + $0xc8] sm:$0xff] %vm286_vm5, %v4481_v5  ;;  %v5975_v10 = vsel %vm286_vm5, %v9344_v8, 0.0  ;;  %v5974_v55 = vadd.f32 %v5973_v21, %v5972_v37 }
 0x2fe   : > { %v9514_v29 = vld [vmem:[#allocation2 + $0xb8] sm:$0xff]  ;;  %5006 = vst.msk [vmem:[#allocation2 + $0xc0] sm:$0xff] %vm286_vm5, %v4974_v46  ;;  %v5977_v46 = vsel %vm286_vm5, %v9358_v51, 0.0  ;;  %v5976_v25 = vadd.f32 %v5975_v10, %v5974_v55  ;;  %v5981_v51 = vsel %vm286_vm5, %v9384_v40, 0.0 }
 0x2ff   : > { %5069 = vst.msk [vmem:[%s8980_s12 + $0xb8] sm:$0xff] %vm286_vm5, %v9514_v29 }
 0x300   : > { %v9520_v38 = vpop.f32.mrf.mxu1  ;;  %v3728_v22 = vpop.f32.mrf.mxu2  ;;  %v5978_v21 = vadd.f32 %v5977_v46, %v5976_v25 }
 0x301   : > { %10029 = vst [vmem:[#allocation24_spill] sm:$0xff] %v9520_v38  ;;  %v4441_v44 = vpop.f32.mrf.mxu3  ;;  %v3766_v2 = vadd.f32 %v3728_v22, %v3512_v14  ;;  %v3513_v22 = vld [vmem:[#allocation2 + $0xe8] sm:$0xff] }
 0x302   : > { %5939 = vst.msk [vmem:[%s8854_s9 + $0xd8] sm:$0xff] %vm286_vm5, %v9520_v38  ;;  %v4482_v5 = vadd.f32 %v4441_v44, %v4260_v20  ;;  %v5980_v20 = vadd.f32 %v5979_v27, %v5978_v21  ;;  %v4261_v44 = vld [vmem:[#allocation2 + $0xd8] sm:$0xff]  ;;  %v5987_v27 = vsel %vm286_vm5, %v9423_v56, 0.0 }
 0x303   : > { %v4753_v52 = vld [vmem:[#allocation2 + $0xc8] sm:$0xff]  ;;  %3798 = vst.msk [vmem:[#allocation2 + $0xe0] sm:$0xff] %vm286_vm5, %v3766_v2 }
 0x304   : > { %v4975_v8 = vadd.f32 %v4932_v13, %v4753_v52  ;;  %4514 = vst.msk [vmem:[#allocation2 + $0xd0] sm:$0xff] %vm286_vm5, %v4482_v5  ;;  %v5983_v13 = vsel %vm286_vm5, %v9397_v4, 0.0  ;;  %v5982_v55 = vadd.f32 %v5981_v51, %v5980_v20  ;;  %v4937_v20 = vpop.f32.mrf.mxu0 }
 0x305   : > { %v9533_v37 = vld [vmem:[#allocation2 + $0xc0] sm:$0xff] }
 0x306   : > { %5007 = vst.msk [vmem:[#allocation2 + $0xc8] sm:$0xff] %vm286_vm5, %v4975_v8  ;;  %v5985_v8 = vsel %vm286_vm5, %v9410_v11, 0.0  ;;  %v5984_v25 = vadd.f32 %v5983_v13, %v5982_v55  ;;  %v5989_v11 = vsel %vm286_vm5, %v9440_v23, 0.0 }
 0x307   : > { %5070 = vst.msk [vmem:[%s8980_s12 + $0xc0] sm:$0xff] %vm286_vm5, %v9533_v37 }
 0x308   : > { %v9538_v10 = vpop.f32.mrf.mxu1  ;;  %v3730_v46 = vpop.f32.mrf.mxu2  ;;  %v5986_v51 = vadd.f32 %v5985_v8, %v5984_v25 }
 0x309   : > { %10030 = vst [vmem:[#allocation25_spill] sm:$0xff] %v9538_v10  ;;  %v4443_v14 = vpop.f32.mrf.mxu3  ;;  %v3767_v2 = vadd.f32 %v3730_v46, %v3513_v22  ;;  %v3514_v46 = vld [vmem:[#allocation2 + $0xf0] sm:$0xff] }
 0x30a   : > { %5940 = vst.msk [vmem:[%s8854_s9 + $0xe0] sm:$0xff] %vm286_vm5, %v9538_v10  ;;  %v4483_v5 = vadd.f32 %v4443_v14, %v4261_v44  ;;  %v5988_v44 = vadd.f32 %v5987_v27, %v5986_v51  ;;  %v4262_v14 = vld [vmem:[#allocation2 + $0xe0] sm:$0xff] }
 0x30b   : > { %v4754_v52 = vld [vmem:[#allocation2 + $0xd0] sm:$0xff]  ;;  %3799 = vst.msk [vmem:[#allocation2 + $0xe8] sm:$0xff] %vm286_vm5, %v3767_v2 }
 0x30c   : > { %v4976_v21 = vadd.f32 %v4935_v34, %v4754_v52  ;;  %4515 = vst.msk [vmem:[#allocation2 + $0xd8] sm:$0xff] %vm286_vm5, %v4483_v5  ;;  %v5991_v34 = vsel %vm286_vm5, %v9457_v45, 0.0  ;;  %v5990_v55 = vadd.f32 %v5989_v11, %v5988_v44  ;;  %v5993_v5 = vsel %vm286_vm5, %v9478_v42, 0.0 }
 0x30d   : > { %v9554_v4 = vld [vmem:[#allocation2 + $0xc8] sm:$0xff]  ;;  %v5079_v11 = vsel %vm286_vm5, %v9021_v58, 0.0 }
 0x30e   : > { %5008 = vst.msk [vmem:[#allocation2 + $0xd0] sm:$0xff] %vm286_vm5, %v4976_v21  ;;  %v5992_v52 = vadd.f32 %v5991_v34, %v5990_v55  ;;  %v5995_v21 = vsel %vm286_vm5, %v9499_v53, 0.0  ;;  %v5997_v34 = vsel %vm286_vm5, %v9520_v38, 0.0  ;;  %v5078_v55 = vsel %vm286_vm5, %v8985_v31, 0.0 }
 0x30f   : > { %5071 = vst.msk [vmem:[%s8980_s12 + $0xc8] sm:$0xff] %vm286_vm5, %v9554_v4  ;;  %v5085_v31 = vsel %vm286_vm5, %v9119_v41, 0.0 }
 0x310   : > { %v9559_v13 = vpop.f32.mrf.mxu1  ;;  %v3733_v8 = vpop.f32.mrf.mxu2  ;;  %v5994_v44 = vadd.f32 %v5993_v5, %v5992_v52  ;;  %v5999_v5 = vsel %vm286_vm5, %v9538_v10, 0.0 }
 0x311   : > { %5941 = vst.msk [vmem:[%s8854_s9 + $0xe8] sm:$0xff] %vm286_vm5, %v9559_v13  ;;  %v4446_v22 = vpop.f32.mrf.mxu3  ;;  %v3768_v25 = vadd.f32 %v3733_v8, %v3514_v46  ;;  %v5080_v8 = vadd.f32 %v5079_v11, %v5078_v55  ;;  %v6001_v11 = vsel %vm286_vm5, %v9559_v13, 0.0 }
 0x312   : > { %v4484_v2 = vadd.f32 %v4446_v22, %v4262_v14  ;;  %v5996_v14 = vadd.f32 %v5995_v21, %v5994_v44  ;;  %v4940_v22 = vpop.f32.mrf.mxu0  ;;  %v4263_v52 = vld [vmem:[#allocation2 + $0xe8] sm:$0xff]  ;;  %v3515_v21 = vld [vmem:[#allocation2 + $0xf8] sm:$0xff]  ;;  %v7269_v44 = vmov 256.0  }
 0x313   : > { %v4755_v27 = vld [vmem:[#allocation2 + $0xd8] sm:$0xff]  ;;  %3800 = vst.msk [vmem:[#allocation2 + $0xf0] sm:$0xff] %vm286_vm5, %v3768_v25  ;;  %7170 = vrcp.f32 %v7269_v44 }
 0x314   : > { %v4977_v51 = vadd.f32 %v4937_v20, %v4755_v27  ;;  %4516 = vst.msk [vmem:[#allocation2 + $0xe0] sm:$0xff] %vm286_vm5, %v4484_v2  ;;  %v5081_v20 = vsel %vm286_vm5, %v9053_v19, 0.0  ;;  %v5083_v2 = vsel %vm286_vm5, %v9088_v61, 0.0  ;;  %v5998_v25 = vadd.f32 %v5997_v34, %v5996_v14 }
 0x315   : > { %v9577_v45 = vld [vmem:[#allocation2 + $0xd0] sm:$0xff]  ;;  %v5082_v19 = vadd.f32 %v5081_v20, %v5080_v8  ;;  %v5087_v20 = vsel %vm286_vm5, %v9151_v54, 0.0 }
 0x316   : > { %5009 = vst.msk [vmem:[#allocation2 + $0xd8] sm:$0xff] %vm286_vm5, %v4977_v51  ;;  %v6000_v10 = vadd.f32 %v5999_v5, %v5998_v25 }
 0x317   : > { %5072 = vst.msk [vmem:[%s8980_s12 + $0xd0] sm:$0xff] %vm286_vm5, %v9577_v45  ;;  %v5084_v61 = vadd.f32 %v5083_v2, %v5082_v19  ;;  %v5089_v19 = vsel %vm286_vm5, %v9187_v26, 0.0 }
 0x318   : > { %v9586_v46 = vpop.f32.mrf.mxu1  ;;  %v3735_v51 = vpop.f32.mrf.mxu2  ;;  %v6002_v8 = vadd.f32 %v6001_v11, %v6000_v10 }
 0x319   : > { %5942 = vst.msk [vmem:[%s8854_s9 + $0xf0] sm:$0xff] %vm286_vm5, %v9586_v46  ;;  %v4448_v27 = vpop.f32.mrf.mxu3  ;;  %v3769_v58 = vadd.f32 %v3735_v51, %v3515_v21  ;;  %v6003_v14 = vsel %vm286_vm5, %v9586_v46, 0.0  ;;  %v7171_v5 = vpop.eup %7170 }
 0x31a   : > { %v4485_v55 = vadd.f32 %v4448_v27, %v4263_v52  ;;  %v5086_v27 = vadd.f32 %v5085_v31, %v5084_v61  ;;  %v5091_v31 = vsel %vm286_vm5, %v9220_v30, 0.0  ;;  %v4942_v61 = vpop.f32.mrf.mxu0  ;;  %v4264_v10 = vld [vmem:[#allocation2 + $0xf0] sm:$0xff]  ;;  %v5148_v11 = vmul.f32 256.0, %v7171_v5 }
 0x31b   : > { %v4756_v38 = vld [vmem:[#allocation2 + $0xe0] sm:$0xff]  ;;  %3801 = vst.msk [vmem:[#allocation2 + $0xf8] sm:$0xff] %vm286_vm5, %v3769_v58  ;;  %vm5152_vm9 = vweird.f32 %v7171_v5 }
 0x31c   : > { %v4978_v34 = vadd.f32 %v4940_v22, %v4756_v38  ;;  %4517 = vst.msk [vmem:[#allocation2 + $0xe8] sm:$0xff] %vm286_vm5, %v4485_v55  ;;  %v6004_v38 = vadd.f32 %v6003_v14, %v6002_v8  ;;  %v5088_v2 = vadd.f32 %v5087_v20, %v5086_v27  ;;  %v5093_v55 = vsel %vm286_vm5, %v9251_v3, 0.0 }
 0x31d   : > { %v9608_v52 = vld [vmem:[#allocation2 + $0xd8] sm:$0xff]  ;;  %v5095_v27 = vsel %vm286_vm5, %v9279_v6, 0.0 }
 0x31e   : > { %5010 = vst.msk [vmem:[#allocation2 + $0xe0] sm:$0xff] %vm286_vm5, %v4978_v34  ;;  %v5090_v51 = vadd.f32 %v5089_v19, %v5088_v2  ;;  %v5149_v19 = vsub.f32 1.0, %v5148_v11  ;;  %v5097_v2 = vsel %vm286_vm5, %v9307_v47, 0.0  ;;  %v5101_v11 = vsel %vm286_vm5, %v9337_v39, 0.0 }
 0x31f   : > { %5073 = vst.msk [vmem:[%s8980_s12 + $0xd8] sm:$0xff] %vm286_vm5, %v9608_v52 }
 0x320   : > { %v9613_v22 = vpop.f32.mrf.mxu1  ;;  %v5092_v20 = vadd.f32 %v5091_v31, %v5090_v51 }
 0x321   : > { %5943 = vst.msk [vmem:[%s8854_s9 + $0xf8] sm:$0xff] %vm286_vm5, %v9613_v22  ;;  %v6005_v58 = vsel %vm286_vm5, %v9613_v22, 0.0  ;;  %v4451_v25 = vpop.f32.mrf.mxu3  ;;  %s7186_s9 = sshra.s32 %s6200_s28, 4  ;;  %s7187_s9 = int_to_ptr.hbm [resolvable:$true] %s7186_s9 }
 0x322   : > { %v6006_v21 = vadd.f32 %v6005_v58, %v6004_v38  ;;  %v4486_v44 = vadd.f32 %v4451_v25, %v4264_v10  ;;  %v5094_v38 = vadd.f32 %v5093_v55, %v5092_v20  ;;  %v4265_v25 = vld [vmem:[#allocation2 + $0xf8] sm:$0xff]  ;;  %s7188_s10 = scalar_lea.hbm %s7187_s9, 2  ;;  %p7193_p0 = scmp.lt.s32.totalorder %s7187_s9, %s9990_s6 }
 0x323   : > { %v4757_v34 = vld [vmem:[#allocation2 + $0xe8] sm:$0xff]  ;;  %p7189_p11 = scmp.ne.s32.totalorder %s7187_s9, %s7188_s10  ;;  %p7194_p1 = scmp.lt.s32.totalorder %s7192_s26, %s7188_s10 }
 0x324   : > { %v6007_v14 = vrot.slane %v6006_v21, 4  ;;  %v4979_v8 = vadd.f32 %v4942_v61, %v4757_v34  ;;  %4518 = vst.msk [vmem:[#allocation2 + $0xf0] sm:$0xff] %vm286_vm5, %v4486_v44  ;;  %v5096_v31 = vadd.f32 %v5095_v27, %v5094_v38  ;;  %v5099_v61 = vsel %vm286_vm5, %v9323_v62, 0.0 }
 0x325   : > { %v9630_v26 = vld [vmem:[#allocation2 + $0xe0] sm:$0xff]  ;;  %v5150_v44 = vmul.f32 %v7171_v5, %v5149_v19  ;;  %v5103_v27 = vsel %vm286_vm5, %v9352_v32, 0.0  ;;  %p7190_p12 = pnand %p7189_p11, %p7343_p5  ;;  %p7195_p2 = por %p7194_p1, %p7193_p0 }
 0x326   : > { %v6008_v30 = vadd.f32 %v6007_v14, %v6006_v21  ;;  %5011 = vst.msk [vmem:[#allocation2 + $0xe8] sm:$0xff] %vm286_vm5, %v4979_v8  ;;  %v5098_v51 = vadd.f32 %v5097_v2, %v5096_v31  ;;  %v4945_v14 = vpop.f32.mrf.mxu0  ;;  %v5105_v2 = vsel %vm286_vm5, %v9364_v50, 0.0 }
 0x327   : > { %5074 = vst.msk [vmem:[%s8980_s12 + $0xe0] sm:$0xff] %vm286_vm5, %v9630_v26  ;;  %v5151_v19 = vadd.f32 %v7171_v5, %v5150_v44  ;;  %v5111_v44 = vsel %vm286_vm5, %v9404_v35, 0.0  ;;  %p7191_p13 = pneg %p7190_p12 }
 0x328   : > { %v6009_v58 = vrot.slane %v6008_v30, 2  ;;  %v5100_v20 = vadd.f32 %v5099_v61, %v5098_v51  ;;  %v5107_v61 = vsel %vm286_vm5, %v9378_v7, 0.0 }
 0x329   : > { %v4453_v21 = vpop.f32.mrf.mxu3  ;;  %v9655_v51 = vsel %vm5152_vm9, %v7171_v5, %v5151_v19  ;;  %v5113_v5 = vsel %vm286_vm5, %v9416_v59, 0.0  ;;  %v5117_v19 = vsel %vm286_vm5, %v9450_v63, 0.0  ;;  %p7196_p3 = pnand %p7195_p2, %p7191_p13 }
 0x32a   : > { %v6010_v10 = vadd.f32 %v6009_v58, %v6008_v30  ;;  %v4487_v55 = vadd.f32 %v4453_v21, %v4265_v25  ;;  %v5102_v58 = vadd.f32 %v5101_v11, %v5100_v20 }
 0x32b   : > { %v4758_v34 = vld [vmem:[#allocation2 + $0xf0] sm:$0xff] }
 0x32c   : > { %v4980_v8 = vadd.f32 %v4945_v14, %v4758_v34  ;;  %4519 = vst.msk [vmem:[#allocation2 + $0xf8] sm:$0xff] %vm286_vm5, %v4487_v55  ;;  %v6011_v38 = vrot.slane %v6010_v10, 1  ;;  %v5104_v31 = vadd.f32 %v5103_v27, %v5102_v58  ;;  %v5109_v55 = vsel %vm286_vm5, %v9390_v43, 0.0 }
 0x32d   : > { %v9645_v30 = vld [vmem:[#allocation2 + $0xe8] sm:$0xff] }
 0x32e   : > { %5012 = vst.msk [vmem:[#allocation2 + $0xf0] sm:$0xff] %vm286_vm5, %v4980_v8  ;;  %v6012_v25 = vadd.f32 %v6011_v38, %v6010_v10  ;;  %v5106_v21 = vadd.f32 %v5105_v2, %v5104_v31  ;;  %v5115_v8 = vsel %vm286_vm5, %v9434_v15, 0.0 }
 0x32f   : > { %5075 = vst.msk [vmem:[%s8980_s12 + $0xe8] sm:$0xff] %vm286_vm5, %v9645_v30 }
 0x330   : > { %v5108_v11 = vadd.f32 %v5107_v61, %v5106_v21  ;;  %v9662_v34 = vmul.f32 %v6012_v25, %v9655_v51  ;;  %v5119_v61 = vsel %vm286_vm5, %v9472_v18, 0.0 }
 0x332   : > { %v5110_v20 = vadd.f32 %v5109_v55, %v5108_v11  ;;  %v6014_v27 = vsub.f32 %v8859_v36, %v9662_v34  ;;  %v6015_v38 = vsub.f32 %v8895_v9, %v9662_v34  ;;  %v6016_v2 = vsub.f32 %v8922_v0, %v9662_v34  ;;  %6147 = vst.msk [vmem:[%s9724_s13] sm:$0x1] %vm5288_vm10, %v9662_v34 }
 0x333   : > { %v6017_v25 = vsub.f32 %v8955_v33, %v9662_v34  ;;  %v6018_v9 = vsub.f32 %v8994_v60, %v9662_v34  ;;  %v6019_v0 = vsub.f32 %v9029_v49, %v9662_v34  ;;  %v5123_v33 = vsel %vm286_vm5, %v9514_v29, 0.0 }
 0x334   : > { %v5112_v10 = vadd.f32 %v5111_v44, %v5110_v20  ;;  %v6046_v21 = vmul.f32 %v6014_v27, %v6014_v27  ;;  %v6047_v36 = vmul.f32 %v6015_v38, %v6015_v38  ;;  %v6048_v11 = vmul.f32 %v6016_v2, %v6016_v2 }
 0x335   : > { %v9664_v14 = vld [vmem:[#allocation2 + $0xf0] sm:$0xff]  ;;  %v5121_v20 = vsel %vm286_vm5, %v9490_v12, 0.0  ;;  %v6020_v38 = vsub.f32 %v9064_v24, %v9662_v34  ;;  %v5125_v2 = vsel %vm286_vm5, %v9533_v37, 0.0 }
 0x336   : > { %5076 = vst.msk [vmem:[%s8980_s12 + $0xf0] sm:$0xff] %vm286_vm5, %v9664_v14  ;;  %v5114_v58 = vadd.f32 %v5113_v5, %v5112_v10  ;;  %v6049_v5 = vmul.f32 %v6017_v25, %v6017_v25  ;;  %v6078_v10 = vsel %vm286_vm5, %v6046_v21, 0.0  ;;  %v6051_v21 = vmul.f32 %v6019_v0, %v6019_v0  ;;  %v10032_v24 = vld [vmem:[#allocation14_spill] sm:$0xff] }
 0x337   : > { %v5129_v0 = vsel %vm286_vm5, %v9577_v45, 0.0 }
 0x338   : > { %v5116_v31 = vadd.f32 %v5115_v8, %v5114_v58  ;;  %v6079_v8 = vsel %vm286_vm5, %v6047_v36, 0.0  ;;  %v6050_v58 = vmul.f32 %v6018_v9, %v6018_v9  ;;  %v6083_v36 = vsel %vm286_vm5, %v6049_v5, 0.0 }
 0x339   : > { %v6080_v27 = vadd.f32 %v6079_v8, %v6078_v10  ;;  %v6022_v9 = vsub.f32 %v10032_v24, %v9662_v34  ;;  %v4759_v10 = vld [vmem:[#allocation2 + $0xf8] sm:$0xff]  ;;  %v6023_v5 = vsub.f32 %v9162_v57, %v9662_v34 }
 0x33a   : > { %v5118_v55 = vadd.f32 %v5117_v19, %v5116_v31  ;;  %v6081_v19 = vsel %vm286_vm5, %v6048_v11, 0.0  ;;  %v6052_v11 = vmul.f32 %v6020_v38, %v6020_v38  ;;  %v5131_v38 = vsel %vm286_vm5, %v9608_v52, 0.0 }
 0x33b   : > { %v6082_v49 = vadd.f32 %v6081_v19, %v6080_v27  ;;  %v4947_v19 = vpop.f32.mrf.mxu0 }
 0x33c   : > { %v5120_v44 = vadd.f32 %v5119_v61, %v5118_v55  ;;  %v10031_v61 = vld [vmem:[#allocation13_spill] sm:$0xff] }
 0x33d   : > { %v6021_v25 = vsub.f32 %v10031_v61, %v9662_v34  ;;  %v6084_v55 = vadd.f32 %v6083_v36, %v6082_v49  ;;  %v4981_v36 = vadd.f32 %v4947_v19, %v4759_v10  ;;  %v10034_v10 = vld [vmem:[#allocation18_spill] sm:$0xff] }
 0x33e   : > { %v5122_v60 = vadd.f32 %v5121_v20, %v5120_v44  ;;  %v5127_v44 = vsel %vm286_vm5, %v9554_v4, 0.0  ;;  %v6085_v20 = vsel %vm286_vm5, %v6050_v58, 0.0  ;;  %v6024_v58 = vsub.f32 %v9196_v1, %v9662_v34 }
 0x33f   : > { %v6053_v27 = vmul.f32 %v6021_v25, %v6021_v25  ;;  %5013 = vst.msk [vmem:[#allocation2 + $0xf8] sm:$0xff] %vm286_vm5, %v4981_v36  ;;  %v5133_v25 = vsel %vm286_vm5, %v9630_v26, 0.0 }
 0x340   : > { %v5124_v31 = vadd.f32 %v5123_v33, %v5122_v60  ;;  %v6086_v33 = vadd.f32 %v6085_v20, %v6084_v55  ;;  %v6087_v60 = vsel %vm286_vm5, %v6051_v21, 0.0  ;;  %v10033_v21 = vld [vmem:[#allocation17_spill] sm:$0xff]  ;;  %v5135_v20 = vsel %vm286_vm5, %v9645_v30, 0.0 }
 0x341   : > { %v6025_v1 = vsub.f32 %v10033_v21, %v9662_v34  ;;  %v6091_v24 = vsel %vm286_vm5, %v6053_v27, 0.0  ;;  %v6029_v21 = vsub.f32 %v9330_v17, %v9662_v34 }
 0x342   : > { %v5126_v8 = vadd.f32 %v5125_v2, %v5124_v31  ;;  %v6088_v61 = vadd.f32 %v6087_v60, %v6086_v33  ;;  %v6054_v2 = vmul.f32 %v6022_v9, %v6022_v9  ;;  %v6089_v31 = vsel %vm286_vm5, %v6052_v11, 0.0 }
 0x343   : > { %v6056_v33 = vmul.f32 %v6024_v58, %v6024_v58  ;;  %v6057_v27 = vmul.f32 %v6025_v1, %v6025_v1 }
 0x344   : > { %v5128_v49 = vadd.f32 %v5127_v44, %v5126_v8  ;;  %v6090_v57 = vadd.f32 %v6089_v31, %v6088_v61  ;;  %v6055_v44 = vmul.f32 %v6023_v5, %v6023_v5  ;;  %v6026_v8 = vsub.f32 %v10034_v10, %v9662_v34 }
 0x345   : > { %v6027_v5 = vsub.f32 %v9287_v28, %v9662_v34  ;;  %v6028_v31 = vsub.f32 %v9314_v16, %v9662_v34 }
 0x346   : > { %v5130_v55 = vadd.f32 %v5129_v0, %v5128_v49  ;;  %v6092_v11 = vadd.f32 %v6091_v24, %v6090_v57  ;;  %v6093_v0 = vsel %vm286_vm5, %v6054_v2, 0.0  ;;  %v5137_v49 = vsel %vm286_vm5, %v9664_v14, 0.0  ;;  %v9748_v2 = vld [vmem:[#allocation2 + $0xf8] sm:$0xff] }
 0x347   : > { %v6095_v61 = vsel %vm286_vm5, %v6055_v44, 0.0  ;;  %v6058_v58 = vmul.f32 %v6026_v8, %v6026_v8  ;;  %5077 = vst.msk [vmem:[%s8980_s12 + $0xf8] sm:$0xff] %vm286_vm5, %v9748_v2  ;;  %v5139_v28 = vsel %vm286_vm5, %v9748_v2, 0.0  ;;  %v6059_v1 = vmul.f32 %v6027_v5, %v6027_v5 }
 0x348   : > { %v5132_v9 = vadd.f32 %v5131_v38, %v5130_v55  ;;  %v6094_v19 = vadd.f32 %v6093_v0, %v6092_v11  ;;  %v6097_v55 = vsel %vm286_vm5, %v6056_v33, 0.0  ;;  %v6099_v44 = vsel %vm286_vm5, %v6057_v27, 0.0  ;;  %v10036_v0 = vld [vmem:[#allocation20_spill] sm:$0xff] }
 0x349   : > { %v6101_v10 = vsel %vm286_vm5, %v6058_v58, 0.0  ;;  %v6032_v27 = vsub.f32 %v9371_v48, %v9662_v34  ;;  %v6033_v58 = vsub.f32 %v9384_v40, %v9662_v34 }
 0x34a   : > { %v5134_v60 = vadd.f32 %v5133_v25, %v5132_v9  ;;  %v6096_v38 = vadd.f32 %v6095_v61, %v6094_v19  ;;  %v10035_v9 = vld [vmem:[#allocation19_spill] sm:$0xff]  ;;  %v6061_v19 = vmul.f32 %v6029_v21, %v6029_v21  ;;  %v10037_v21 = vld [vmem:[#allocation21_spill] sm:$0xff] }
 0x34b   : > { %v6030_v11 = vsub.f32 %v10035_v9, %v9662_v34  ;;  %v10038_v9 = vld [vmem:[#allocation22_spill] sm:$0xff] }
 0x34c   : > { %v5136_v36 = vadd.f32 %v5135_v20, %v5134_v60  ;;  %v6098_v25 = vadd.f32 %v6097_v55, %v6096_v38  ;;  %v6060_v20 = vmul.f32 %v6028_v31, %v6028_v31  ;;  %v6031_v60 = vsub.f32 %v10036_v0, %v9662_v34 }
 0x34d   : > { %v6062_v61 = vmul.f32 %v6030_v11, %v6030_v11  ;;  %v6035_v11 = vsub.f32 %v10038_v9, %v9662_v34 }
 0x34e   : > { %v5138_v57 = vadd.f32 %v5137_v49, %v5136_v36  ;;  %v6100_v24 = vadd.f32 %v6099_v44, %v6098_v25  ;;  %v6103_v49 = vsel %vm286_vm5, %v6059_v1, 0.0  ;;  %v6105_v36 = vsel %vm286_vm5, %v6060_v20, 0.0 }
 0x34f   : > { %v6063_v55 = vmul.f32 %v6031_v60, %v6031_v60  ;;  %v6034_v1 = vsub.f32 %v10037_v21, %v9662_v34  ;;  %v6064_v44 = vmul.f32 %v6032_v27, %v6032_v27  ;;  %v6065_v20 = vmul.f32 %v6033_v58, %v6033_v58 }
 0x350   : > { %v5140_v16 = vadd.f32 %v5139_v28, %v5138_v57  ;;  %v6102_v33 = vadd.f32 %v6101_v10, %v6100_v24  ;;  %v6107_v57 = vsel %vm286_vm5, %v6061_v19, 0.0 }
 0x351   : > { %v6111_v40 = vsel %vm286_vm5, %v6063_v55, 0.0  ;;  %v6066_v0 = vmul.f32 %v6034_v1, %v6034_v1  ;;  %v6113_v60 = vsel %vm286_vm5, %v6064_v44, 0.0  ;;  %v6115_v27 = vsel %vm286_vm5, %v6065_v20, 0.0  ;;  %v10040_v1 = vld [vmem:[#allocation24_spill] sm:$0xff] }
 0x352   : > { %v5141_v8 = vrot.slane %v5140_v16, 4  ;;  %v6104_v5 = vadd.f32 %v6103_v49, %v6102_v33  ;;  %v6036_v33 = vsub.f32 %v9423_v56, %v9662_v34  ;;  %v6041_v44 = vsub.f32 %v10040_v1, %v9662_v34 }
 0x354   : > { %v5142_v17 = vadd.f32 %v5141_v8, %v5140_v16  ;;  %v6106_v31 = vadd.f32 %v6105_v36, %v6104_v5  ;;  %v6109_v16 = vsel %vm286_vm5, %v6062_v61, 0.0  ;;  %v6067_v5 = vmul.f32 %v6035_v11, %v6035_v11  ;;  %v10039_v61 = vld [vmem:[#allocation23_spill] sm:$0xff]  ;;  %v10041_v11 = vld [vmem:[#allocation25_spill] sm:$0xff] }
 0x355   : > { %v6038_v36 = vsub.f32 %v10039_v61, %v9662_v34  ;;  %v6042_v20 = vsub.f32 %v10041_v11, %v9662_v34 }
 0x356   : > { %v5143_v38 = vrot.slane %v5142_v17, 2  ;;  %v6108_v28 = vadd.f32 %v6107_v57, %v6106_v31  ;;  %v6119_v55 = vsel %vm286_vm5, %v6067_v5, 0.0  ;;  %v10044_v5 = vld [vmem:[#allocation11_spill] sm:$0xff] }
 0x357   : > { %v6074_v61 = vmul.f32 %v6042_v20, %v6042_v20 }
 0x358   : > { %v5144_v25 = vadd.f32 %v5143_v38, %v5142_v17  ;;  %v6110_v24 = vadd.f32 %v6109_v16, %v6108_v28  ;;  %v6037_v17 = vsub.f32 %v9440_v23, %v9662_v34  ;;  %v6117_v38 = vsel %vm286_vm5, %v6066_v0, 0.0 }
 0x359   : > { %v6039_v23 = vsub.f32 %v9478_v42, %v9662_v34  ;;  %v6070_v28 = vmul.f32 %v6038_v36, %v6038_v36 }
 0x35a   : > { %v5145_v48 = vrot.slane %v5144_v25, 1  ;;  %v6112_v8 = vadd.f32 %v6111_v40, %v6110_v24  ;;  %v6069_v58 = vmul.f32 %v6037_v17, %v6037_v17  ;;  %v6073_v17 = vmul.f32 %v6041_v44, %v6041_v44 }
 0x35b   : > { %v6071_v16 = vmul.f32 %v6039_v23, %v6039_v23  ;;  %v6133_v44 = vsel %vm286_vm5, %v6074_v61, 0.0 }
 0x35c   : > { %v5146_v10 = vadd.f32 %v5145_v48, %v5144_v25  ;;  %v6114_v49 = vadd.f32 %v6113_v60, %v6112_v8  ;;  %v6040_v25 = vsub.f32 %v9499_v53, %v9662_v34  ;;  %v6123_v24 = vsel %vm286_vm5, %v6069_v58, 0.0 }
 0x35d   : > { %v6125_v8 = vsel %vm286_vm5, %v6070_v28, 0.0 }
 0x35e   : > { %v9780_v19 = vmul.f32 %v9655_v51, %v5146_v10  ;;  %v6116_v56 = vadd.f32 %v6115_v27, %v6114_v49  ;;  %v6068_v51 = vmul.f32 %v6036_v33, %v6036_v33  ;;  %v6072_v10 = vmul.f32 %v6040_v25, %v6040_v25  ;;  %v10042_v33 = vld [vmem:[#allocation9_spill] sm:$0xff] }
 0x35f   : > { %v6131_v25 = vsel %vm286_vm5, %v6073_v17, 0.0 }
 0x360   : > { %5289 = vst.msk [vmem:[%s9787_s14] sm:$0x1] %vm5288_vm10, %v9780_v19  ;;  %v6118_v31 = vadd.f32 %v6117_v38, %v6116_v56  ;;  %v6121_v21 = vsel %vm286_vm5, %v6068_v51, 0.0  ;;  %v9806_v42 = vsub.f32 %v9645_v30, %v9780_v19  ;;  %v9810_v9 = vsub.f32 %v9664_v14, %v9780_v19  ;;  %v10043_v30 = vld [vmem:[#allocation10_spill] sm:$0xff]  ;;  %v10045_v38 = vld [vmem:[#allocation12_spill] sm:$0xff] }
 0x361   : > { %v9814_v53 = vsub.f32 %v9748_v2, %v9780_v19  ;;  %v5155_v0 = vsub.f32 %v10042_v33, %v9780_v19  ;;  %v5156_v60 = vsub.f32 %v10043_v30, %v9780_v19  ;;  %v6043_v14 = vsub.f32 %v9559_v13, %v9662_v34 }
 0x362   : > { %v6120_v57 = vadd.f32 %v6119_v55, %v6118_v31  ;;  %v6127_v2 = vsel %vm286_vm5, %v6071_v16, 0.0  ;;  %v5157_v27 = vsub.f32 %v10044_v5, %v9780_v19  ;;  %v6044_v56 = vsub.f32 %v9586_v46, %v9662_v34 }
 0x363   : > { %v6129_v51 = vsel %vm286_vm5, %v6072_v10, 0.0  ;;  %v5158_v23 = vsub.f32 %v10045_v38, %v9780_v19  ;;  %v5187_v31 = vmul.f32 %v5155_v0, %v5155_v0  ;;  %v5188_v58 = vmul.f32 %v5156_v60, %v5156_v60  ;;  %v10047_v60 = vld [vmem:[#allocation16_spill] sm:$0xff] }
 0x364   : > { %v6122_v48 = vadd.f32 %v6121_v21, %v6120_v57  ;;  %v6045_v13 = vsub.f32 %v9613_v22, %v9662_v34  ;;  %v6075_v57 = vmul.f32 %v6043_v14, %v6043_v14  ;;  %v5159_v28 = vsub.f32 %v9119_v41, %v9780_v19  ;;  %v10046_v41 = vld [vmem:[#allocation15_spill] sm:$0xff] }
 0x365   : > { %v5189_v46 = vmul.f32 %v5157_v27, %v5157_v27  ;;  %v6076_v21 = vmul.f32 %v6044_v56, %v6044_v56  ;;  %v5160_v16 = vsub.f32 %v9151_v54, %v9780_v19  ;;  %v5220_v22 = vsel %vm286_vm5, %v5188_v58, 0.0 }
 0x366   : > { %v6124_v40 = vadd.f32 %v6123_v24, %v6122_v48  ;;  %v5190_v48 = vmul.f32 %v5158_v23, %v5158_v23  ;;  %v5219_v24 = vsel %vm286_vm5, %v5187_v31, 0.0  ;;  %v6077_v34 = vmul.f32 %v6045_v13, %v6045_v13 }
 0x367   : > { %v5221_v20 = vadd.f32 %v5220_v22, %v5219_v24  ;;  %v5161_v10 = vsub.f32 %v10046_v41, %v9780_v19  ;;  %v5222_v33 = vsel %vm286_vm5, %v5189_v46, 0.0  ;;  %v6137_v54 = vsel %vm286_vm5, %v6076_v21, 0.0 }
 0x368   : > { %v6126_v49 = vadd.f32 %v6125_v8, %v6124_v40  ;;  %v6135_v40 = vsel %vm286_vm5, %v6075_v57, 0.0  ;;  %v5191_v8 = vmul.f32 %v5159_v28, %v5159_v28  ;;  %v5192_v14 = vmul.f32 %v5160_v16, %v5160_v16 }
 0x369   : > { %v5223_v30 = vadd.f32 %v5222_v33, %v5221_v20  ;;  %v5224_v17 = vsel %vm286_vm5, %v5190_v48, 0.0  ;;  %v6139_v27 = vsel %vm286_vm5, %v6077_v34, 0.0  ;;  %v5163_v56 = vsub.f32 %v9251_v3, %v9780_v19 }
 0x36a   : > { %v6128_v36 = vadd.f32 %v6127_v2, %v6126_v49  ;;  %v5162_v49 = vsub.f32 %v10047_v60, %v9780_v19  ;;  %v5193_v61 = vmul.f32 %v5161_v10, %v5161_v10  ;;  %v5164_v23 = vsub.f32 %v9279_v6, %v9780_v19 }
 0x36b   : > { %v5225_v5 = vadd.f32 %v5224_v17, %v5223_v30  ;;  %v5228_v58 = vsel %vm286_vm5, %v5192_v14, 0.0  ;;  %v5165_v57 = vsub.f32 %v9307_v47, %v9780_v19  ;;  %v5166_v21 = vsub.f32 %v9323_v62, %v9780_v19 }
 0x36c   : > { %v6130_v55 = vadd.f32 %v6129_v51, %v6128_v36  ;;  %v5226_v36 = vsel %vm286_vm5, %v5191_v8, 0.0  ;;  %v5194_v31 = vmul.f32 %v5162_v49, %v5162_v49  ;;  %v5230_v3 = vsel %vm286_vm5, %v5193_v61, 0.0 }
 0x36d   : > { %v5227_v38 = vadd.f32 %v5226_v36, %v5225_v5  ;;  %v5167_v48 = vsub.f32 %v9337_v39, %v9780_v19  ;;  %v5197_v24 = vmul.f32 %v5165_v57, %v5165_v57  ;;  %v5168_v34 = vsub.f32 %v9352_v32, %v9780_v19 }
 0x36e   : > { %v6132_v1 = vadd.f32 %v6131_v25, %v6130_v55  ;;  %v5195_v25 = vmul.f32 %v5163_v56, %v5163_v56  ;;  %v5232_v6 = vsel %vm286_vm5, %v5194_v31, 0.0  ;;  %v5169_v41 = vsub.f32 %v9364_v50, %v9780_v19 }
 0x36f   : > { %v5229_v55 = vadd.f32 %v5228_v58, %v5227_v38  ;;  %v5199_v10 = vmul.f32 %v5167_v48, %v5167_v48  ;;  %v5238_v39 = vsel %vm286_vm5, %v5197_v24, 0.0  ;;  %v5170_v32 = vsub.f32 %v9378_v7, %v9780_v19 }
 0x370   : > { %v6134_v11 = vadd.f32 %v6133_v44, %v6132_v1  ;;  %v5196_v1 = vmul.f32 %v5164_v23, %v5164_v23  ;;  %v5234_v47 = vsel %vm286_vm5, %v5195_v25, 0.0  ;;  %v5200_v33 = vmul.f32 %v5168_v34, %v5168_v34 }
 0x371   : > { %v5231_v46 = vadd.f32 %v5230_v3, %v5229_v55  ;;  %v5171_v50 = vsub.f32 %v9390_v43, %v9780_v19  ;;  %v5201_v60 = vmul.f32 %v5169_v41, %v5169_v41  ;;  %v5242_v49 = vsel %vm286_vm5, %v5199_v10, 0.0 }
 0x372   : > { %v6136_v0 = vadd.f32 %v6135_v40, %v6134_v11  ;;  %v5198_v11 = vmul.f32 %v5166_v21, %v5166_v21  ;;  %v5236_v20 = vsel %vm286_vm5, %v5196_v1, 0.0  ;;  %v5172_v17 = vsub.f32 %v9404_v35, %v9780_v19 }
 0x373   : > { %v5233_v16 = vadd.f32 %v5232_v6, %v5231_v46  ;;  %v5202_v7 = vmul.f32 %v5170_v32, %v5170_v32  ;;  %v5173_v43 = vsub.f32 %v9416_v59, %v9780_v19  ;;  %v5203_v56 = vmul.f32 %v5171_v50, %v5171_v50 }
 0x374   : > { %v6138_v2 = vadd.f32 %v6137_v54, %v6136_v0  ;;  %v5240_v0 = vsel %vm286_vm5, %v5198_v11, 0.0  ;;  %v5246_v61 = vsel %vm286_vm5, %v5201_v60, 0.0  ;;  %v5174_v35 = vsub.f32 %v9434_v15, %v9780_v19 }
 0x375   : > { %v5235_v22 = vadd.f32 %v5234_v47, %v5233_v16  ;;  %v5248_v38 = vsel %vm286_vm5, %v5202_v7, 0.0 }
 0x376   : > { %v6140_v51 = vadd.f32 %v6139_v27, %v6138_v2  ;;  %v5244_v2 = vsel %vm286_vm5, %v5200_v33, 0.0 }
 0x377   : > { %v5237_v40 = vadd.f32 %v5236_v20, %v5235_v22 }
 0x378   : > { %v6141_v13 = vrot.slane %v6140_v51, 4 }
 0x379   : > { %v5239_v8 = vadd.f32 %v5238_v39, %v5237_v40 }
 0x37a   : > { %v6142_v28 = vadd.f32 %v6141_v13, %v6140_v51  ;;  %v5204_v51 = vmul.f32 %v5172_v17, %v5172_v17 }
 0x37b   : > { %v5241_v54 = vadd.f32 %v5240_v0, %v5239_v8 }
 0x37c   : > { %v6143_v44 = vrot.slane %v6142_v28, 2 }
 0x37d   : > { %v5243_v14 = vadd.f32 %v5242_v49, %v5241_v54 }
 0x37e   : > { %v6144_v62 = vadd.f32 %v6143_v44, %v6142_v28 }
 0x37f   : > { %v5245_v5 = vadd.f32 %v5244_v2, %v5243_v14 }
 0x380   : > { %v6145_v30 = vrot.slane %v6144_v62, 1 }
 0x381   : > { %v5247_v36 = vadd.f32 %v5246_v61, %v5245_v5 }
 0x382   : > { %v6146_v27 = vadd.f32 %v6145_v30, %v6144_v62 }
 0x384   : > { %6148 = vst.msk [vmem:[%s9724_s13 + $0x1] sm:$0x1] %vm5288_vm10, %v6146_v27 }
 0x385   : > { %7199 = shalt.err (!%p7196_p3)
}
 0x386   : > { %7125 = dma.vmem_to_hbm [thread:$0]  (%p7343_p5), %s6198_s20, 32, %s6200_s28, %s6165_s29   ;;  %v5249_v59 = vadd.f32 %v5248_v38, %v5247_v36  ;;  %v5175_v15 = vsub.f32 %v9450_v63, %v9780_v19  ;;  %v5205_v23 = vmul.f32 %v5173_v43, %v5173_v43  ;;  %v5250_v31 = vsel %vm286_vm5, %v5203_v56, 0.0 }
 0x387   : > { %v5176_v13 = vsub.f32 %v9472_v18, %v9780_v19  ;;  %v5206_v55 = vmul.f32 %v5174_v35, %v5174_v35  ;;  %v5252_v57 = vsel %vm286_vm5, %v5204_v51, 0.0  ;;  %v5177_v3 = vsub.f32 %v9490_v12, %v9780_v19  ;;  %s6178_s20 = scalar_lea.hbm %s9988_s4, %s7067_s16  ;;  %s6180_s28 = sshll.u32 %s9787_s14, 4  ;;  %s6181_s28 = int_to_ptr.vmem [resolvable:$true] %s6180_s28 }
 0x388   : > { %v5251_v58 = vadd.f32 %v5250_v31, %v5249_v59  ;;  %v5207_v28 = vmul.f32 %v5175_v15, %v5175_v15  ;;  %v5254_v46 = vsel %vm286_vm5, %v5205_v23, 0.0  ;;  %v5178_v63 = vsub.f32 %v9514_v29, %v9780_v19  ;;  %s6182_s29 = sshll.u32 %s6178_s20, 4  ;;  %s6155_s9 = scalar_lea.sflag [#allocation4], %s9696_s15  ;;  %s6183_s29 = int_to_ptr.hbm [resolvable:$true] %s6182_s29 }
 0x389   : > { %v5208_v1 = vmul.f32 %v5176_v13, %v5176_v13  ;;  %v5256_v6 = vsel %vm286_vm5, %v5206_v55, 0.0  ;;  %v5179_v18 = vsub.f32 %v9533_v37, %v9780_v19  ;;  %v5209_v16 = vmul.f32 %v5177_v3, %v5177_v3  ;;  %s7214_s10 = sshra.s32 %s6183_s29, 4  ;;  %s7220_s16 = scalar_lea.hbm %s9988_s4, 4  ;;  %s7215_s10 = int_to_ptr.hbm [resolvable:$true] %s7214_s10 }
 0x38a   : > { %v5253_v25 = vadd.f32 %v5252_v57, %v5251_v58  ;;  %v5258_v48 = vsel %vm286_vm5, %v5207_v28, 0.0  ;;  %v5180_v12 = vsub.f32 %v9554_v4, %v9780_v19  ;;  %v5210_v47 = vmul.f32 %v5178_v63, %v5178_v63  ;;  %s7216_s11 = scalar_lea.hbm %s7215_s10, 2  ;;  %p7221_p9 = scmp.lt.s32.totalorder %s7215_s10, %s9988_s4 }
 0x38b   : > { %v5260_v22 = vsel %vm286_vm5, %v5208_v1, 0.0  ;;  %v5181_v29 = vsub.f32 %v9577_v45, %v9780_v19  ;;  %v5211_v11 = vmul.f32 %v5179_v18, %v5179_v18  ;;  %v5262_v20 = vsel %vm286_vm5, %v5209_v16, 0.0  ;;  %p7217_p4 = scmp.ne.s32.totalorder %s7215_s10, %s7216_s11  ;;  %p7222_p10 = scmp.lt.s32.totalorder %s7220_s16, %s7216_s11 }
 0x38c   : > { %v5255_v21 = vadd.f32 %v5254_v46, %v5253_v25  ;;  %v5182_v37 = vsub.f32 %v9608_v52, %v9780_v19  ;;  %v5212_v40 = vmul.f32 %v5180_v12, %v5180_v12  ;;  %v5264_v41 = vsel %vm286_vm5, %v5210_v47, 0.0 }
 0x38d   : > { %v5183_v4 = vsub.f32 %v9630_v26, %v9780_v19  ;;  %v5213_v39 = vmul.f32 %v5181_v29, %v5181_v29  ;;  %v5266_v8 = vsel %vm286_vm5, %v5211_v11, 0.0  ;;  %v5216_v52 = vmul.f32 %v9806_v42, %v9806_v42  ;;  %p7218_p7 = pnand %p7217_p4, %p7343_p5  ;;  %p7223_p11 = por %p7222_p10, %p7221_p9 }
 0x38e   : > { %v5257_v44 = vadd.f32 %v5256_v6, %v5255_v21  ;;  %v5214_v33 = vmul.f32 %v5182_v37, %v5182_v37  ;;  %v5268_v45 = vsel %vm286_vm5, %v5212_v40, 0.0  ;;  %v5217_v26 = vmul.f32 %v9810_v9, %v9810_v9 }
 0x38f   : > { %v5215_v30 = vmul.f32 %v5183_v4, %v5183_v4  ;;  %v5270_v54 = vsel %vm286_vm5, %v5213_v39, 0.0  ;;  %v5218_v17 = vmul.f32 %v9814_v53, %v9814_v53  ;;  %v5276_v7 = vsel %vm286_vm5, %v5216_v52, 0.0  ;;  %p7219_p8 = pneg %p7218_p7 }
 0x390   : > { %v5259_v24 = vadd.f32 %v5258_v48, %v5257_v44  ;;  %v5272_v60 = vsel %vm286_vm5, %v5214_v33, 0.0  ;;  %v5278_v42 = vsel %vm286_vm5, %v5217_v26, 0.0 }
 0x391   : > { %v5274_v19 = vsel %vm286_vm5, %v5215_v30, 0.0  ;;  %v5280_v27 = vsel %vm286_vm5, %v5218_v17, 0.0  ;;  %p7224_p12 = pnand %p7223_p11, %p7219_p8 }
 0x392   : > { %v5261_v34 = vadd.f32 %v5260_v22, %v5259_v24 }
 0x394   : > { %v5263_v62 = vadd.f32 %v5262_v20, %v5261_v34 }
 0x396   : > { %v5265_v10 = vadd.f32 %v5264_v41, %v5263_v62 }
 0x398   : > { %v5267_v32 = vadd.f32 %v5266_v8, %v5265_v10 }
 0x39a   : > { %v5269_v0 = vadd.f32 %v5268_v45, %v5267_v32 }
 0x39c   : > { %v5271_v50 = vadd.f32 %v5270_v54, %v5269_v0 }
 0x39e   : > { %v5273_v49 = vadd.f32 %v5272_v60, %v5271_v50 }
 0x3a0   : > { %v5275_v14 = vadd.f32 %v5274_v19, %v5273_v49 }
 0x3a2   : > { %v5277_v2 = vadd.f32 %v5276_v7, %v5275_v14 }
 0x3a4   : > { %v5279_v5 = vadd.f32 %v5278_v42, %v5277_v2 }
 0x3a6   : > { %v5281_v43 = vadd.f32 %v5280_v27, %v5279_v5 }
 0x3a8   : > { %v5282_v56 = vrot.slane %v5281_v43, 4 }
 0x3aa   : > { %v5283_v61 = vadd.f32 %v5282_v56, %v5281_v43 }
 0x3ac   : > { %v5284_v9 = vrot.slane %v5283_v61, 2 }
 0x3ae   : > { %v5285_v53 = vadd.f32 %v5284_v9, %v5283_v61 }
 0x3b0   : > { %v5286_v36 = vrot.slane %v5285_v53, 1 }
 0x3b2   : > { %v5287_v35 = vadd.f32 %v5286_v36, %v5285_v53 }
 0x3b4   : > { %5290 = vst.msk [vmem:[%s9787_s14 + $0x1] sm:$0x1] %vm5288_vm10, %v5287_v35 }
 0x3b5   : > { %7227 = shalt.err (!%p7224_p12)
}
 0x3b6   : > { %7124 = dma.vmem_to_hbm [thread:$0]  (%p7343_p5), %s6181_s28, 32, %s6183_s29, %s6155_s9  }
 0x3b7 PF: > { %p7135_p13 = scmp.ge.s32.totalorder %s7266_s24, 2  ;;  %s6219_s15 = sand.u32 1, %s7254_s21  }
 0x3b8   : > { %s6220_s14 = scalar_lea.sflag [#allocation4], %s6219_s15 }
 0x3b9   : > { %p7129_p0 = pnand %p7135_p13, %p7347_p6 }
 0x3bb   : > { %p7130_p1 = pneg %p7129_p0 }
 0x3bd   : > { %7245 = dma.done.wait (%p7130_p1), %s6220_s14, 32  }
 0x3be   : > { %7247 = vsyncadd (%p7130_p1), %s6220_s14, 4294967264  ;;  %s6238_s13 = scalar_lea.sflag [#allocation6], %s6219_s15 }
 0x3bf   : > { %7249 = dma.done.wait (%p7130_p1), %s6238_s13, 32  }
 0x3c0   : > { %7251 = vsyncadd (%p7130_p1), %s6238_s13, 4294967264  ;;  %p20_p5 = scmp.ge.s32.totalorder %s7330_s27, 4   ;;  %s10048_s21 = smov %s7258_s22 }
 0x3c1   : > { %s10049_s22 = smov %s7262_s23  ;;  %s10050_s23 = smov %s7341_s30 }
 0x3c2   : > { %s10051_s24 = smov %s7330_s27  ;;  %22 = sbr.rel (!%p20_p5) target bundleno = 5 (0x5), region = 118 }
 0x3c7   :  { %6244 = vsyncpa [#allocation4], 1 }
 0x3c8   :  { %6246 = vsyncpa [#allocation4 + $0x1], 1 }
 0x3c9   :  { %6247 = vsyncpa [#allocation6], 1 }
 0x3ca   :  { %6249 = vsyncpa [#allocation6 + $0x1], 1 }

</bundles_post_ra>
